<compile_context>
chip_gen: v6e
topology: v6e:2x2x1
jax: 0.10.0
libtpu: 0.0.40
codegen_flags: <defaults>
</compile_context>

<pallas_src>
import functools

import jax
import jax.numpy as jnp
import numpy as np
from jax.experimental import pallas as pl
from jax.experimental.pallas import tpu as pltpu

HBLK = 32                        # per-image row block: 28 image rows + 4 pad rows
VMEM_LIMIT = 32 * 1024 * 1024    # explicit scoped-VMEM limit (safe on v5e/v6e/v7x)
WGT_DTYPE = jnp.bfloat16         # MXU input dtype; accumulation is always f32


def _round_up(x, m):
    return (x + m - 1) // m * m


# ---------------------------------------------------------------------------
# The single fused kernel
# ---------------------------------------------------------------------------
def _cnn_kernel(x_ref, band1_ref, bias1_ref, band2_ref, bias2_ref,
                band3_ref, bias3_ref, fc1w_ref, fc1b_ref, fc2w_ref, fc2b_ref,
                o_ref, *, tb):
    r = tb * HBLK                        # rows handled by this grid step
    f32 = jnp.float32

    def pad_rows(a, n=8):
        # Tail rows so shifted row-slices below stay in bounds (never read by
        # valid output rows).
        return jnp.concatenate([a, jnp.zeros((n, a.shape[1]), a.dtype)], axis=0)

    def conv_band(act, band_ref, bias_ref, row_step):
        """Valid conv + bias + ReLU as kh row-shifted matmuls vs banded weights."""
        a = pad_rows(act.astype(WGT_DTYPE))
        kh = band_ref.shape[0]
        acc = jnp.zeros((r, band_ref.shape[2]), f32)
        for i in range(kh):
            acc += jnp.dot(a[i * row_step:i * row_step + r, :], band_ref[i],
                           preferred_element_type=f32)
        return jnp.maximum(acc + bias_ref[...], 0.0)

    def pool2x2(act, row_step):
        """2x2 / stride-2 max pool.  Even/odd output columns already live in the
        two lane halves (weight columns were permuted at prep time), so the
        W-max is a lane-half max; the H-max is a shift-by-`row_step` row max."""
        half = act.shape[1] // 2
        m = jnp.maximum(act[:, :half], act[:, half:])
        mp = pad_rows(m)
        return jnp.maximum(mp[0:r, :], mp[row_step:row_step + r, :])

    x = x_ref[...]                                        # (r, 28) f32 image rows
    a1 = conv_band(x, band1_ref, bias1_ref, 1)            # (r, 24*16)
    a2 = conv_band(a1, band2_ref, bias2_ref, 1)           # (r, 20*32)
    p1 = pool2x2(a2, 1)                                   # (r, 10*32)  valid rows: even
    a3 = conv_band(p1, band3_ref, bias3_ref, 2)           # (r,  6*64)  valid rows: even
    p2 = pool2x2(a3, 2)                                   # (r,  3*64)  valid rows: 0,4,8 (mod HBLK)

    # Flatten + fc1 + ReLU + fc2, still inside the kernel.  The 3 valid pooled
    # rows of every image are gathered with tiny one-hot selection matmuls
    # (no strided loads / in-kernel gathers needed).
    p2w = p2.astype(WGT_DTYPE)
    row_iota = jax.lax.broadcasted_iota(jnp.int32, (tb, r), 1)
    img_iota = jax.lax.broadcasted_iota(jnp.int32, (tb, r), 0)
    h = jnp.zeros((tb, fc1w_ref.shape[2]), f32)
    for h4 in range(3):
        sel = (row_iota == img_iota * HBLK + 4 * h4).astype(WGT_DTYPE)
        z = jnp.dot(sel, p2w, preferred_element_type=f32)            # (tb, 192)
        h += jnp.dot(z.astype(WGT_DTYPE), fc1w_ref[h4],
                     preferred_element_type=f32)
    h = jnp.maximum(h + fc1b_ref[...], 0.0)

    logits = jnp.dot(h.astype(WGT_DTYPE), fc2w_ref[...],
                     preferred_element_type=f32) + fc2b_ref[...]      # (tb, 128)
    o_ref[...] = logits[:, :10].reshape(1, tb, 10)


def _full_spec(arr):
    nd = arr.ndim
    return pl.BlockSpec(arr.shape, lambda i, _n=nd: (0,) * _n)


def cnn_forward(prepared, x):
    """Forward pass. x: (B, 1, 28, 28) f32 NCHW -> (B, 10) f32 logits."""
    B = x.shape[0]
    assert x.shape[1:] == (1, 28, 28), x.shape

    # Batch tile: keep >=2 grid steps whenever B >= 2 so the "parallel" grid
    # axis can shard across both v7x TensorCores; cap at 8 images per step.
    tb = min(8, max(1, B // 2))
    bpad = _round_up(B, tb)
    n_blocks = bpad // tb

    img = x.reshape(B, 28, 28)
    img = jnp.pad(img, ((0, bpad - B), (0, HBLK - 28), (0, 0)))
    x2d = img.reshape(bpad * HBLK, 28)          # rows = (image, padded image row)

    p = prepared
    weight_args = (p["band1"], p["bias1"], p["band2"], p["bias2"],
                   p["band3"], p["bias3"], p["fc1_w"], p["fc1_b"],
                   p["fc2_w"], p["fc2_b"])

    out = pl.pallas_call(
        functools.partial(_cnn_kernel, tb=tb),
        out_shape=jax.ShapeDtypeStruct((n_blocks, tb, 10), jnp.float32),
        grid=(n_blocks,),
        in_specs=[pl.BlockSpec((tb * HBLK, 28), lambda i: (i, 0))]
                 + [_full_spec(a) for a in weight_args],
        out_specs=pl.BlockSpec((1, tb, 10), lambda i: (i, 0, 0)),
        compiler_params=pltpu.CompilerParams(
            dimension_semantics=("parallel",),
            vmem_limit_bytes=VMEM_LIMIT),
    )(x2d, *weight_args)

    logits = out.reshape(bpad, 10)
    return logits[:B] if bpad != B else logits


# ---------------------------------------------------------------------------
# Parameters (PyTorch layout) and one-time weight preprocessing
# ---------------------------------------------------------------------------
def init_params(key):
    ks = jax.random.split(key, 10)
    return {
        "conv1_w": jax.random.normal(ks[0], (16, 1, 5, 5), jnp.float32) * 0.1,
        "conv1_b": jax.random.normal(ks[1], (16,), jnp.float32) * 0.01,
        "conv2_w": jax.random.normal(ks[2], (32, 16, 5, 5), jnp.float32) * 0.05,
        "conv2_b": jax.random.normal(ks[3], (32,), jnp.float32) * 0.01,
        "conv3_w": jax.random.normal(ks[4], (64, 32, 5, 5), jnp.float32) * 0.05,
        "conv3_b": jax.random.normal(ks[5], (64,), jnp.float32) * 0.01,
        "fc1_w": jax.random.normal(ks[6], (100, 64 * 3 * 3), jnp.float32) * 0.05,
        "fc1_b": jax.random.normal(ks[7], (100,), jnp.float32) * 0.01,
        "fc2_w": jax.random.normal(ks[8], (10, 100), jnp.float32) * 0.05,
        "fc2_b": jax.random.normal(ks[9], (10,), jnp.float32) * 0.01,
    }


def _band_weights(w, b, w_in, pool_permute):
    """Torch conv weight (cout, cin, kh, kw) -> kh banded matmul weights.

    band[i][w*cin + ci, col(ow)*cout + co] = w[co, ci, i, w - ow]  (0 <= w-ow < kw).
    With pool_permute=True the even / odd output columns are grouped into the
    two lane halves so the following 2x2 max-pool is a contiguous lane max.
    """
    w = np.asarray(w, np.float32)
    cout, cin, kh, kw = w.shape
    ow_n = w_in - kw + 1

    def col(ow):
        if not pool_permute:
            return ow
        return (ow // 2) if ow % 2 == 0 else (ow_n // 2 + ow // 2)

    band = np.zeros((kh, w_in * cin, ow_n * cout), np.float32)
    for i in range(kh):
        for j in range(kw):
            blk = w[:, :, i, j].T                      # (cin, cout)
            for ow in range(ow_n):
                r0 = (ow + j) * cin
                c0 = col(ow) * cout
                band[i, r0:r0 + cin, c0:c0 + cout] = blk
    bias = np.tile(np.asarray(b, np.float32), ow_n).reshape(1, ow_n * cout)
    return jnp.asarray(band, WGT_DTYPE), jnp.asarray(bias, jnp.float32)


def prepare_params(p):
    """One-time host-side prep: banded conv weights, permuted/padded FC weights."""
    band1, bias1 = _band_weights(p["conv1_w"], p["conv1_b"], 28, False)
    band2, bias2 = _band_weights(p["conv2_w"], p["conv2_b"], 24, True)
    band3, bias3 = _band_weights(p["conv3_w"], p["conv3_b"], 10, True)

    # fc1 consumes our (h4, w4, c)-ordered pooled rows; torch's weight indexes
    # the NCHW flatten (c*9 + h4*3 + w4) -> permute once, split per h4, pad N.
    fc1 = np.asarray(p["fc1_w"], np.float32).reshape(100, 64, 3, 3)  # (n, c, h4, w4)
    fc1w = np.zeros((3, 3 * 64, 128), np.float32)
    for h4 in range(3):
        piece = fc1[:, :, h4, :].transpose(2, 1, 0).reshape(3 * 64, 100)
        fc1w[h4, :, :100] = piece
    fc1b = np.zeros((1, 128), np.float32)
    fc1b[0, :100] = np.asarray(p["fc1_b"], np.float32)

    fc2w = np.zeros((128, 128), np.float32)
    fc2w[:100, :10] = np.asarray(p["fc2_w"], np.float32).T
    fc2b = np.zeros((1, 128), np.float32)
    fc2b[0, :10] = np.asarray(p["fc2_b"], np.float32)

    return {
        "band1": band1, "bias1": bias1,
        "band2": band2, "bias2": bias2,
        "band3": band3, "bias3": bias3,
        "fc1_w": jnp.asarray(fc1w, WGT_DTYPE), "fc1_b": jnp.asarray(fc1b),
        "fc2_w": jnp.asarray(fc2w, WGT_DTYPE), "fc2_b": jnp.asarray(fc2b),
    }


# ---------------------------------------------------------------------------
# Plain-XLA f32 reference (for a loose numerical sanity check)
# ---------------------------------------------------------------------------
def reference_forward(p, x):
    def conv_relu(y, w, b):
        y = jax.lax.conv_general_dilated(
            y, w, window_strides=(1, 1), padding="VALID",
            dimension_numbers=("NCHW", "OIHW", "NCHW"))
        return jnp.maximum(y + b.reshape(1, -1, 1, 1), 0.0)

    def maxpool2(y):
        B, C, H, W = y.shape
        return y.reshape(B, C, H // 2, 2, W // 2, 2).max(axis=(3, 5))

    y = conv_relu(x, p["conv1_w"], p["conv1_b"])
    y = conv_relu(y, p["conv2_w"], p["conv2_b"])
    y = maxpool2(y)
    y = conv_relu(y, p["conv3_w"], p["conv3_b"])
    y = maxpool2(y)
    y = y.reshape(x.shape[0], -1)
    y = jnp.maximum(y @ p["fc1_w"].T + p["fc1_b"], 0.0)
    return y @ p["fc2_w"].T + p["fc2_b"]


if __name__ == "__main__":
    key = jax.random.PRNGKey(0)
    pkey, xkey = jax.random.split(key)
    params = init_params(pkey)
    prepared = prepare_params(params)        # one-time weight prep (host side)

    # batch = 2, single-channel 28x28 images (the 64*3*3 flatten in the
    # reference module fixes the spatial size at 28x28).
    x = jax.random.normal(xkey, (2, 1, 28, 28), jnp.float32)

    forward = jax.jit(cnn_forward)
    logits = jax.block_until_ready(forward(prepared, x))
    assert logits.shape == (2, 10) and logits.dtype == jnp.float32

    # Loose check vs the f32 XLA reference (kernel matmuls run bf16 / f32-acc).
    ref = jax.block_until_ready(reference_forward(params, x))
    err = float(jnp.max(jnp.abs(ref - logits)))
    tol = 0.05 * float(jnp.max(jnp.abs(ref))) + 0.02
    assert err <= tol, (err, tol)

    print("KERNEL_OK")
</pallas_src>

<mosaic_0001>
module attributes {stable_mosaic.version = 11 : i64} {
  func.func @_cnn_kernel(%arg0: i32, %arg1: memref<32x28xf32, #tpu.memory_space<vmem>>, %arg2: memref<5x28x384xbf16, #tpu.memory_space<vmem>>, %arg3: memref<1x384xf32, #tpu.memory_space<vmem>>, %arg4: memref<5x384x640xbf16, #tpu.memory_space<vmem>>, %arg5: memref<1x640xf32, #tpu.memory_space<vmem>>, %arg6: memref<5x320x384xbf16, #tpu.memory_space<vmem>>, %arg7: memref<1x384xf32, #tpu.memory_space<vmem>>, %arg8: memref<3x192x128xbf16, #tpu.memory_space<vmem>>, %arg9: memref<1x128xf32, #tpu.memory_space<vmem>>, %arg10: memref<128x128xbf16, #tpu.memory_space<vmem>>, %arg11: memref<1x128xf32, #tpu.memory_space<vmem>>, %arg12: memref<1x1x10xf32, #tpu.memory_space<vmem>>) attributes {dimension_semantics = [#tpu.dimension_semantics<parallel>], iteration_bounds = array<i64: 2>, scalar_prefetch = 0 : i64, scratch_operands = 0 : i64, tpu.core_type = #tpu.core_type<tc>, window_params = [{transform_indices = @transform_0, window_bounds = array<i64: 32, 28>}, {pipeline_mode = #tpu.pipeline_mode<synchronous>, transform_indices = @transform_1, window_bounds = array<i64: 5, 28, 384>}, {pipeline_mode = #tpu.pipeline_mode<synchronous>, transform_indices = @transform_2, window_bounds = array<i64: 1, 384>}, {pipeline_mode = #tpu.pipeline_mode<synchronous>, transform_indices = @transform_3, window_bounds = array<i64: 5, 384, 640>}, {pipeline_mode = #tpu.pipeline_mode<synchronous>, transform_indices = @transform_4, window_bounds = array<i64: 1, 640>}, {pipeline_mode = #tpu.pipeline_mode<synchronous>, transform_indices = @transform_5, window_bounds = array<i64: 5, 320, 384>}, {pipeline_mode = #tpu.pipeline_mode<synchronous>, transform_indices = @transform_6, window_bounds = array<i64: 1, 384>}, {pipeline_mode = #tpu.pipeline_mode<synchronous>, transform_indices = @transform_7, window_bounds = array<i64: 3, 192, 128>}, {pipeline_mode = #tpu.pipeline_mode<synchronous>, transform_indices = @transform_8, window_bounds = array<i64: 1, 128>}, {pipeline_mode = #tpu.pipeline_mode<synchronous>, transform_indices = @transform_9, window_bounds = array<i64: 128, 128>}, {pipeline_mode = #tpu.pipeline_mode<synchronous>, transform_indices = @transform_10, window_bounds = array<i64: 1, 128>}, {transform_indices = @transform_11, window_bounds = array<i64: 1, 1, 10>}]} {
    %c0 = arith.constant 0 : index
    %c0_0 = arith.constant 0 : index
    %0 = vector.load %arg1[%c0, %c0_0] : memref<32x28xf32, #tpu.memory_space<vmem>>, vector<32x28xf32>
    %1 = arith.truncf %0 : vector<32x28xf32> to vector<32x28xbf16>
    %cst = arith.constant 0.000000e+00 : bf16
    %2 = vector.broadcast %cst : bf16 to vector<8x28xbf16>
    %3 = tpu.concatenate %1, %2 in 0 : vector<32x28xbf16>, vector<8x28xbf16> -> vector<40x28xbf16>
    %cst_1 = arith.constant 0.000000e+00 : f32
    %4 = vector.broadcast %cst_1 : f32 to vector<32x384xf32>
    %5 = vector.extract_strided_slice %3 {offsets = [0, 0], sizes = [32, 28], strides = [1, 1]} : vector<40x28xbf16> to vector<32x28xbf16>
    %c0_2 = arith.constant 0 : index
    %c0_3 = arith.constant 0 : index
    %c0_4 = arith.constant 0 : index
    %6 = vector.load %arg2[%c0_2, %c0_3, %c0_4] : memref<5x28x384xbf16, #tpu.memory_space<vmem>>, vector<1x28x384xbf16>
    %7 = vector.shape_cast %6 : vector<1x28x384xbf16> to vector<28x384xbf16>
    %cst_5 = arith.constant dense<0.000000e+00> : vector<32x384xf32>
    %8 = tpu.matmul %5, %7, %cst_5 {dimension_numbers = #tpu.dot_dimension_numbers<[1], [0], [0], [1], [0, 0, 1, 1], [], []>} : vector<32x28xbf16>, vector<28x384xbf16>, vector<32x384xf32> -> vector<32x384xf32>
    %9 = arith.addf %4, %8 : vector<32x384xf32>
    %10 = vector.extract_strided_slice %3 {offsets = [1, 0], sizes = [32, 28], strides = [1, 1]} : vector<40x28xbf16> to vector<32x28xbf16>
    %c1 = arith.constant 1 : index
    %c0_6 = arith.constant 0 : index
    %c0_7 = arith.constant 0 : index
    %11 = vector.load %arg2[%c1, %c0_6, %c0_7] : memref<5x28x384xbf16, #tpu.memory_space<vmem>>, vector<1x28x384xbf16>
    %12 = vector.shape_cast %11 : vector<1x28x384xbf16> to vector<28x384xbf16>
    %cst_8 = arith.constant dense<0.000000e+00> : vector<32x384xf32>
    %13 = tpu.matmul %10, %12, %cst_8 {dimension_numbers = #tpu.dot_dimension_numbers<[1], [0], [0], [1], [0, 0, 1, 1], [], []>} : vector<32x28xbf16>, vector<28x384xbf16>, vector<32x384xf32> -> vector<32x384xf32>
    %14 = arith.addf %9, %13 : vector<32x384xf32>
    %15 = vector.extract_strided_slice %3 {offsets = [2, 0], sizes = [32, 28], strides = [1, 1]} : vector<40x28xbf16> to vector<32x28xbf16>
    %c2 = arith.constant 2 : index
    %c0_9 = arith.constant 0 : index
    %c0_10 = arith.constant 0 : index
    %16 = vector.load %arg2[%c2, %c0_9, %c0_10] : memref<5x28x384xbf16, #tpu.memory_space<vmem>>, vector<1x28x384xbf16>
    %17 = vector.shape_cast %16 : vector<1x28x384xbf16> to vector<28x384xbf16>
    %cst_11 = arith.constant dense<0.000000e+00> : vector<32x384xf32>
    %18 = tpu.matmul %15, %17, %cst_11 {dimension_numbers = #tpu.dot_dimension_numbers<[1], [0], [0], [1], [0, 0, 1, 1], [], []>} : vector<32x28xbf16>, vector<28x384xbf16>, vector<32x384xf32> -> vector<32x384xf32>
    %19 = arith.addf %14, %18 : vector<32x384xf32>
    %20 = vector.extract_strided_slice %3 {offsets = [3, 0], sizes = [32, 28], strides = [1, 1]} : vector<40x28xbf16> to vector<32x28xbf16>
    %c3 = arith.constant 3 : index
    %c0_12 = arith.constant 0 : index
    %c0_13 = arith.constant 0 : index
    %21 = vector.load %arg2[%c3, %c0_12, %c0_13] : memref<5x28x384xbf16, #tpu.memory_space<vmem>>, vector<1x28x384xbf16>
    %22 = vector.shape_cast %21 : vector<1x28x384xbf16> to vector<28x384xbf16>
    %cst_14 = arith.constant dense<0.000000e+00> : vector<32x384xf32>
    %23 = tpu.matmul %20, %22, %cst_14 {dimension_numbers = #tpu.dot_dimension_numbers<[1], [0], [0], [1], [0, 0, 1, 1], [], []>} : vector<32x28xbf16>, vector<28x384xbf16>, vector<32x384xf32> -> vector<32x384xf32>
    %24 = arith.addf %19, %23 : vector<32x384xf32>
    %25 = vector.extract_strided_slice %3 {offsets = [4, 0], sizes = [32, 28], strides = [1, 1]} : vector<40x28xbf16> to vector<32x28xbf16>
    %c4 = arith.constant 4 : index
    %c0_15 = arith.constant 0 : index
    %c0_16 = arith.constant 0 : index
    %26 = vector.load %arg2[%c4, %c0_15, %c0_16] : memref<5x28x384xbf16, #tpu.memory_space<vmem>>, vector<1x28x384xbf16>
    %27 = vector.shape_cast %26 : vector<1x28x384xbf16> to vector<28x384xbf16>
    %cst_17 = arith.constant dense<0.000000e+00> : vector<32x384xf32>
    %28 = tpu.matmul %25, %27, %cst_17 {dimension_numbers = #tpu.dot_dimension_numbers<[1], [0], [0], [1], [0, 0, 1, 1], [], []>} : vector<32x28xbf16>, vector<28x384xbf16>, vector<32x384xf32> -> vector<32x384xf32>
    %29 = arith.addf %24, %28 : vector<32x384xf32>
    %c0_18 = arith.constant 0 : index
    %c0_19 = arith.constant 0 : index
    %30 = vector.load %arg3[%c0_18, %c0_19] : memref<1x384xf32, #tpu.memory_space<vmem>>, vector<1x384xf32>
    %31 = vector.broadcast %30 : vector<1x384xf32> to vector<32x384xf32>
    %32 = arith.addf %29, %31 : vector<32x384xf32>
    %cst_20 = arith.constant 0.000000e+00 : f32
    %33 = vector.broadcast %cst_20 : f32 to vector<32x384xf32>
    %34 = arith.maximumf %32, %33 : vector<32x384xf32>
    %35 = arith.truncf %34 : vector<32x384xf32> to vector<32x384xbf16>
    %cst_21 = arith.constant 0.000000e+00 : bf16
    %36 = vector.broadcast %cst_21 : bf16 to vector<8x384xbf16>
    %37 = tpu.concatenate %35, %36 in 0 : vector<32x384xbf16>, vector<8x384xbf16> -> vector<40x384xbf16>
    %cst_22 = arith.constant 0.000000e+00 : f32
    %38 = vector.broadcast %cst_22 : f32 to vector<32x640xf32>
    %39 = vector.extract_strided_slice %37 {offsets = [0, 0], sizes = [32, 384], strides = [1, 1]} : vector<40x384xbf16> to vector<32x384xbf16>
    %c0_23 = arith.constant 0 : index
    %c0_24 = arith.constant 0 : index
    %c0_25 = arith.constant 0 : index
    %40 = vector.load %arg4[%c0_23, %c0_24, %c0_25] : memref<5x384x640xbf16, #tpu.memory_space<vmem>>, vector<1x384x640xbf16>
    %41 = vector.shape_cast %40 : vector<1x384x640xbf16> to vector<384x640xbf16>
    %cst_26 = arith.constant dense<0.000000e+00> : vector<32x640xf32>
    %42 = tpu.matmul %39, %41, %cst_26 {dimension_numbers = #tpu.dot_dimension_numbers<[1], [0], [0], [1], [0, 0, 1, 1], [], []>} : vector<32x384xbf16>, vector<384x640xbf16>, vector<32x640xf32> -> vector<32x640xf32>
    %43 = arith.addf %38, %42 : vector<32x640xf32>
    %44 = vector.extract_strided_slice %37 {offsets = [1, 0], sizes = [32, 384], strides = [1, 1]} : vector<40x384xbf16> to vector<32x384xbf16>
    %c1_27 = arith.constant 1 : index
    %c0_28 = arith.constant 0 : index
    %c0_29 = arith.constant 0 : index
    %45 = vector.load %arg4[%c1_27, %c0_28, %c0_29] : memref<5x384x640xbf16, #tpu.memory_space<vmem>>, vector<1x384x640xbf16>
    %46 = vector.shape_cast %45 : vector<1x384x640xbf16> to vector<384x640xbf16>
    %cst_30 = arith.constant dense<0.000000e+00> : vector<32x640xf32>
    %47 = tpu.matmul %44, %46, %cst_30 {dimension_numbers = #tpu.dot_dimension_numbers<[1], [0], [0], [1], [0, 0, 1, 1], [], []>} : vector<32x384xbf16>, vector<384x640xbf16>, vector<32x640xf32> -> vector<32x640xf32>
    %48 = arith.addf %43, %47 : vector<32x640xf32>
    %49 = vector.extract_strided_slice %37 {offsets = [2, 0], sizes = [32, 384], strides = [1, 1]} : vector<40x384xbf16> to vector<32x384xbf16>
    %c2_31 = arith.constant 2 : index
    %c0_32 = arith.constant 0 : index
    %c0_33 = arith.constant 0 : index
    %50 = vector.load %arg4[%c2_31, %c0_32, %c0_33] : memref<5x384x640xbf16, #tpu.memory_space<vmem>>, vector<1x384x640xbf16>
    %51 = vector.shape_cast %50 : vector<1x384x640xbf16> to vector<384x640xbf16>
    %cst_34 = arith.constant dense<0.000000e+00> : vector<32x640xf32>
    %52 = tpu.matmul %49, %51, %cst_34 {dimension_numbers = #tpu.dot_dimension_numbers<[1], [0], [0], [1], [0, 0, 1, 1], [], []>} : vector<32x384xbf16>, vector<384x640xbf16>, vector<32x640xf32> -> vector<32x640xf32>
    %53 = arith.addf %48, %52 : vector<32x640xf32>
    %54 = vector.extract_strided_slice %37 {offsets = [3, 0], sizes = [32, 384], strides = [1, 1]} : vector<40x384xbf16> to vector<32x384xbf16>
    %c3_35 = arith.constant 3 : index
    %c0_36 = arith.constant 0 : index
    %c0_37 = arith.constant 0 : index
    %55 = vector.load %arg4[%c3_35, %c0_36, %c0_37] : memref<5x384x640xbf16, #tpu.memory_space<vmem>>, vector<1x384x640xbf16>
    %56 = vector.shape_cast %55 : vector<1x384x640xbf16> to vector<384x640xbf16>
    %cst_38 = arith.constant dense<0.000000e+00> : vector<32x640xf32>
    %57 = tpu.matmul %54, %56, %cst_38 {dimension_numbers = #tpu.dot_dimension_numbers<[1], [0], [0], [1], [0, 0, 1, 1], [], []>} : vector<32x384xbf16>, vector<384x640xbf16>, vector<32x640xf32> -> vector<32x640xf32>
    %58 = arith.addf %53, %57 : vector<32x640xf32>
    %59 = vector.extract_strided_slice %37 {offsets = [4, 0], sizes = [32, 384], strides = [1, 1]} : vector<40x384xbf16> to vector<32x384xbf16>
    %c4_39 = arith.constant 4 : index
    %c0_40 = arith.constant 0 : index
    %c0_41 = arith.constant 0 : index
    %60 = vector.load %arg4[%c4_39, %c0_40, %c0_41] : memref<5x384x640xbf16, #tpu.memory_space<vmem>>, vector<1x384x640xbf16>
    %61 = vector.shape_cast %60 : vector<1x384x640xbf16> to vector<384x640xbf16>
    %cst_42 = arith.constant dense<0.000000e+00> : vector<32x640xf32>
    %62 = tpu.matmul %59, %61, %cst_42 {dimension_numbers = #tpu.dot_dimension_numbers<[1], [0], [0], [1], [0, 0, 1, 1], [], []>} : vector<32x384xbf16>, vector<384x640xbf16>, vector<32x640xf32> -> vector<32x640xf32>
    %63 = arith.addf %58, %62 : vector<32x640xf32>
    %c0_43 = arith.constant 0 : index
    %c0_44 = arith.constant 0 : index
    %64 = vector.load %arg5[%c0_43, %c0_44] : memref<1x640xf32, #tpu.memory_space<vmem>>, vector<1x640xf32>
    %65 = vector.broadcast %64 : vector<1x640xf32> to vector<32x640xf32>
    %66 = arith.addf %63, %65 : vector<32x640xf32>
    %cst_45 = arith.constant 0.000000e+00 : f32
    %67 = vector.broadcast %cst_45 : f32 to vector<32x640xf32>
    %68 = arith.maximumf %66, %67 : vector<32x640xf32>
    %69 = vector.extract_strided_slice %68 {offsets = [0, 0], sizes = [32, 320], strides = [1, 1]} : vector<32x640xf32> to vector<32x320xf32>
    %70 = vector.extract_strided_slice %68 {offsets = [0, 320], sizes = [32, 320], strides = [1, 1]} : vector<32x640xf32> to vector<32x320xf32>
    %71 = arith.maximumf %69, %70 : vector<32x320xf32>
    %cst_46 = arith.constant 0.000000e+00 : f32
    %72 = vector.broadcast %cst_46 : f32 to vector<8x320xf32>
    %73 = tpu.concatenate %71, %72 in 0 : vector<32x320xf32>, vector<8x320xf32> -> vector<40x320xf32>
    %74 = vector.extract_strided_slice %73 {offsets = [0, 0], sizes = [32, 320], strides = [1, 1]} : vector<40x320xf32> to vector<32x320xf32>
    %75 = vector.extract_strided_slice %73 {offsets = [1, 0], sizes = [32, 320], strides = [1, 1]} : vector<40x320xf32> to vector<32x320xf32>
    %76 = arith.maximumf %74, %75 : vector<32x320xf32>
    %77 = arith.truncf %76 : vector<32x320xf32> to vector<32x320xbf16>
    %cst_47 = arith.constant 0.000000e+00 : bf16
    %78 = vector.broadcast %cst_47 : bf16 to vector<8x320xbf16>
    %79 = tpu.concatenate %77, %78 in 0 : vector<32x320xbf16>, vector<8x320xbf16> -> vector<40x320xbf16>
    %cst_48 = arith.constant 0.000000e+00 : f32
    %80 = vector.broadcast %cst_48 : f32 to vector<32x384xf32>
    %81 = vector.extract_strided_slice %79 {offsets = [0, 0], sizes = [32, 320], strides = [1, 1]} : vector<40x320xbf16> to vector<32x320xbf16>
    %c0_49 = arith.constant 0 : index
    %c0_50 = arith.constant 0 : index
    %c0_51 = arith.constant 0 : index
    %82 = vector.load %arg6[%c0_49, %c0_50, %c0_51] : memref<5x320x384xbf16, #tpu.memory_space<vmem>>, vector<1x320x384xbf16>
    %83 = vector.shape_cast %82 : vector<1x320x384xbf16> to vector<320x384xbf16>
    %cst_52 = arith.constant dense<0.000000e+00> : vector<32x384xf32>
    %84 = tpu.matmul %81, %83, %cst_52 {dimension_numbers = #tpu.dot_dimension_numbers<[1], [0], [0], [1], [0, 0, 1, 1], [], []>} : vector<32x320xbf16>, vector<320x384xbf16>, vector<32x384xf32> -> vector<32x384xf32>
    %85 = arith.addf %80, %84 : vector<32x384xf32>
    %86 = vector.extract_strided_slice %79 {offsets = [2, 0], sizes = [32, 320], strides = [1, 1]} : vector<40x320xbf16> to vector<32x320xbf16>
    %c1_53 = arith.constant 1 : index
    %c0_54 = arith.constant 0 : index
    %c0_55 = arith.constant 0 : index
    %87 = vector.load %arg6[%c1_53, %c0_54, %c0_55] : memref<5x320x384xbf16, #tpu.memory_space<vmem>>, vector<1x320x384xbf16>
    %88 = vector.shape_cast %87 : vector<1x320x384xbf16> to vector<320x384xbf16>
    %cst_56 = arith.constant dense<0.000000e+00> : vector<32x384xf32>
    %89 = tpu.matmul %86, %88, %cst_56 {dimension_numbers = #tpu.dot_dimension_numbers<[1], [0], [0], [1], [0, 0, 1, 1], [], []>} : vector<32x320xbf16>, vector<320x384xbf16>, vector<32x384xf32> -> vector<32x384xf32>
    %90 = arith.addf %85, %89 : vector<32x384xf32>
    %91 = vector.extract_strided_slice %79 {offsets = [4, 0], sizes = [32, 320], strides = [1, 1]} : vector<40x320xbf16> to vector<32x320xbf16>
    %c2_57 = arith.constant 2 : index
    %c0_58 = arith.constant 0 : index
    %c0_59 = arith.constant 0 : index
    %92 = vector.load %arg6[%c2_57, %c0_58, %c0_59] : memref<5x320x384xbf16, #tpu.memory_space<vmem>>, vector<1x320x384xbf16>
    %93 = vector.shape_cast %92 : vector<1x320x384xbf16> to vector<320x384xbf16>
    %cst_60 = arith.constant dense<0.000000e+00> : vector<32x384xf32>
    %94 = tpu.matmul %91, %93, %cst_60 {dimension_numbers = #tpu.dot_dimension_numbers<[1], [0], [0], [1], [0, 0, 1, 1], [], []>} : vector<32x320xbf16>, vector<320x384xbf16>, vector<32x384xf32> -> vector<32x384xf32>
    %95 = arith.addf %90, %94 : vector<32x384xf32>
    %96 = vector.extract_strided_slice %79 {offsets = [6, 0], sizes = [32, 320], strides = [1, 1]} : vector<40x320xbf16> to vector<32x320xbf16>
    %c3_61 = arith.constant 3 : index
    %c0_62 = arith.constant 0 : index
    %c0_63 = arith.constant 0 : index
    %97 = vector.load %arg6[%c3_61, %c0_62, %c0_63] : memref<5x320x384xbf16, #tpu.memory_space<vmem>>, vector<1x320x384xbf16>
    %98 = vector.shape_cast %97 : vector<1x320x384xbf16> to vector<320x384xbf16>
    %cst_64 = arith.constant dense<0.000000e+00> : vector<32x384xf32>
    %99 = tpu.matmul %96, %98, %cst_64 {dimension_numbers = #tpu.dot_dimension_numbers<[1], [0], [0], [1], [0, 0, 1, 1], [], []>} : vector<32x320xbf16>, vector<320x384xbf16>, vector<32x384xf32> -> vector<32x384xf32>
    %100 = arith.addf %95, %99 : vector<32x384xf32>
    %101 = vector.extract_strided_slice %79 {offsets = [8, 0], sizes = [32, 320], strides = [1, 1]} : vector<40x320xbf16> to vector<32x320xbf16>
    %c4_65 = arith.constant 4 : index
    %c0_66 = arith.constant 0 : index
    %c0_67 = arith.constant 0 : index
    %102 = vector.load %arg6[%c4_65, %c0_66, %c0_67] : memref<5x320x384xbf16, #tpu.memory_space<vmem>>, vector<1x320x384xbf16>
    %103 = vector.shape_cast %102 : vector<1x320x384xbf16> to vector<320x384xbf16>
    %cst_68 = arith.constant dense<0.000000e+00> : vector<32x384xf32>
    %104 = tpu.matmul %101, %103, %cst_68 {dimension_numbers = #tpu.dot_dimension_numbers<[1], [0], [0], [1], [0, 0, 1, 1], [], []>} : vector<32x320xbf16>, vector<320x384xbf16>, vector<32x384xf32> -> vector<32x384xf32>
    %105 = arith.addf %100, %104 : vector<32x384xf32>
    %c0_69 = arith.constant 0 : index
    %c0_70 = arith.constant 0 : index
    %106 = vector.load %arg7[%c0_69, %c0_70] : memref<1x384xf32, #tpu.memory_space<vmem>>, vector<1x384xf32>
    %107 = vector.broadcast %106 : vector<1x384xf32> to vector<32x384xf32>
    %108 = arith.addf %105, %107 : vector<32x384xf32>
    %cst_71 = arith.constant 0.000000e+00 : f32
    %109 = vector.broadcast %cst_71 : f32 to vector<32x384xf32>
    %110 = arith.maximumf %108, %109 : vector<32x384xf32>
    %111 = vector.extract_strided_slice %110 {offsets = [0, 0], sizes = [32, 192], strides = [1, 1]} : vector<32x384xf32> to vector<32x192xf32>
    %112 = vector.extract_strided_slice %110 {offsets = [0, 192], sizes = [32, 192], strides = [1, 1]} : vector<32x384xf32> to vector<32x192xf32>
    %113 = arith.maximumf %111, %112 : vector<32x192xf32>
    %cst_72 = arith.constant 0.000000e+00 : f32
    %114 = vector.broadcast %cst_72 : f32 to vector<8x192xf32>
    %115 = tpu.concatenate %113, %114 in 0 : vector<32x192xf32>, vector<8x192xf32> -> vector<40x192xf32>
    %116 = vector.extract_strided_slice %115 {offsets = [0, 0], sizes = [32, 192], strides = [1, 1]} : vector<40x192xf32> to vector<32x192xf32>
    %117 = vector.extract_strided_slice %115 {offsets = [2, 0], sizes = [32, 192], strides = [1, 1]} : vector<40x192xf32> to vector<32x192xf32>
    %118 = arith.maximumf %116, %117 : vector<32x192xf32>
    %119 = arith.truncf %118 : vector<32x192xf32> to vector<32x192xbf16>
    %120 = tpu.iota {dimensions = array<i32: 1>} : vector<1x32xi32>
    %121 = tpu.iota {dimensions = array<i32: 0>} : vector<1x32xi32>
    %cst_73 = arith.constant 0.000000e+00 : f32
    %122 = vector.broadcast %cst_73 : f32 to vector<1x128xf32>
    %c32_i32 = arith.constant 32 : i32
    %123 = vector.broadcast %c32_i32 : i32 to vector<1x32xi32>
    %124 = arith.muli %121, %123 : vector<1x32xi32>
    %c0_i32 = arith.constant 0 : i32
    %125 = vector.broadcast %c0_i32 : i32 to vector<1x32xi32>
    %126 = arith.addi %124, %125 : vector<1x32xi32>
    %127 = arith.cmpi eq, %120, %126 : vector<1x32xi32>
    %128 = arith.extui %127 : vector<1x32xi1> to vector<1x32xi32>
    %129 = arith.sitofp %128 : vector<1x32xi32> to vector<1x32xf32>
    %130 = arith.truncf %129 : vector<1x32xf32> to vector<1x32xbf16>
    %cst_74 = arith.constant dense<0.000000e+00> : vector<1x192xf32>
    %131 = tpu.matmul %130, %119, %cst_74 {dimension_numbers = #tpu.dot_dimension_numbers<[1], [0], [0], [1], [0, 0, 1, 1], [], []>} : vector<1x32xbf16>, vector<32x192xbf16>, vector<1x192xf32> -> vector<1x192xf32>
    %132 = arith.truncf %131 : vector<1x192xf32> to vector<1x192xbf16>
    %c0_75 = arith.constant 0 : index
    %c0_76 = arith.constant 0 : index
    %c0_77 = arith.constant 0 : index
    %133 = vector.load %arg8[%c0_75, %c0_76, %c0_77] : memref<3x192x128xbf16, #tpu.memory_space<vmem>>, vector<1x192x128xbf16>
    %134 = vector.shape_cast %133 : vector<1x192x128xbf16> to vector<192x128xbf16>
    %cst_78 = arith.constant dense<0.000000e+00> : vector<1x128xf32>
    %135 = tpu.matmul %132, %134, %cst_78 {dimension_numbers = #tpu.dot_dimension_numbers<[1], [0], [0], [1], [0, 0, 1, 1], [], []>} : vector<1x192xbf16>, vector<192x128xbf16>, vector<1x128xf32> -> vector<1x128xf32>
    %136 = arith.addf %122, %135 : vector<1x128xf32>
    %c32_i32_79 = arith.constant 32 : i32
    %137 = vector.broadcast %c32_i32_79 : i32 to vector<1x32xi32>
    %138 = arith.muli %121, %137 : vector<1x32xi32>
    %c4_i32 = arith.constant 4 : i32
    %139 = vector.broadcast %c4_i32 : i32 to vector<1x32xi32>
    %140 = arith.addi %138, %139 : vector<1x32xi32>
    %141 = arith.cmpi eq, %120, %140 : vector<1x32xi32>
    %142 = arith.extui %141 : vector<1x32xi1> to vector<1x32xi32>
    %143 = arith.sitofp %142 : vector<1x32xi32> to vector<1x32xf32>
    %144 = arith.truncf %143 : vector<1x32xf32> to vector<1x32xbf16>
    %cst_80 = arith.constant dense<0.000000e+00> : vector<1x192xf32>
    %145 = tpu.matmul %144, %119, %cst_80 {dimension_numbers = #tpu.dot_dimension_numbers<[1], [0], [0], [1], [0, 0, 1, 1], [], []>} : vector<1x32xbf16>, vector<32x192xbf16>, vector<1x192xf32> -> vector<1x192xf32>
    %146 = arith.truncf %145 : vector<1x192xf32> to vector<1x192xbf16>
    %c1_81 = arith.constant 1 : index
    %c0_82 = arith.constant 0 : index
    %c0_83 = arith.constant 0 : index
    %147 = vector.load %arg8[%c1_81, %c0_82, %c0_83] : memref<3x192x128xbf16, #tpu.memory_space<vmem>>, vector<1x192x128xbf16>
    %148 = vector.shape_cast %147 : vector<1x192x128xbf16> to vector<192x128xbf16>
    %cst_84 = arith.constant dense<0.000000e+00> : vector<1x128xf32>
    %149 = tpu.matmul %146, %148, %cst_84 {dimension_numbers = #tpu.dot_dimension_numbers<[1], [0], [0], [1], [0, 0, 1, 1], [], []>} : vector<1x192xbf16>, vector<192x128xbf16>, vector<1x128xf32> -> vector<1x128xf32>
    %150 = arith.addf %136, %149 : vector<1x128xf32>
    %c32_i32_85 = arith.constant 32 : i32
    %151 = vector.broadcast %c32_i32_85 : i32 to vector<1x32xi32>
    %152 = arith.muli %121, %151 : vector<1x32xi32>
    %c8_i32 = arith.constant 8 : i32
    %153 = vector.broadcast %c8_i32 : i32 to vector<1x32xi32>
    %154 = arith.addi %152, %153 : vector<1x32xi32>
    %155 = arith.cmpi eq, %120, %154 : vector<1x32xi32>
    %156 = arith.extui %155 : vector<1x32xi1> to vector<1x32xi32>
    %157 = arith.sitofp %156 : vector<1x32xi32> to vector<1x32xf32>
    %158 = arith.truncf %157 : vector<1x32xf32> to vector<1x32xbf16>
    %cst_86 = arith.constant dense<0.000000e+00> : vector<1x192xf32>
    %159 = tpu.matmul %158, %119, %cst_86 {dimension_numbers = #tpu.dot_dimension_numbers<[1], [0], [0], [1], [0, 0, 1, 1], [], []>} : vector<1x32xbf16>, vector<32x192xbf16>, vector<1x192xf32> -> vector<1x192xf32>
    %160 = arith.truncf %159 : vector<1x192xf32> to vector<1x192xbf16>
    %c2_87 = arith.constant 2 : index
    %c0_88 = arith.constant 0 : index
    %c0_89 = arith.constant 0 : index
    %161 = vector.load %arg8[%c2_87, %c0_88, %c0_89] : memref<3x192x128xbf16, #tpu.memory_space<vmem>>, vector<1x192x128xbf16>
    %162 = vector.shape_cast %161 : vector<1x192x128xbf16> to vector<192x128xbf16>
    %cst_90 = arith.constant dense<0.000000e+00> : vector<1x128xf32>
    %163 = tpu.matmul %160, %162, %cst_90 {dimension_numbers = #tpu.dot_dimension_numbers<[1], [0], [0], [1], [0, 0, 1, 1], [], []>} : vector<1x192xbf16>, vector<192x128xbf16>, vector<1x128xf32> -> vector<1x128xf32>
    %164 = arith.addf %150, %163 : vector<1x128xf32>
    %c0_91 = arith.constant 0 : index
    %c0_92 = arith.constant 0 : index
    %165 = vector.load %arg9[%c0_91, %c0_92] : memref<1x128xf32, #tpu.memory_space<vmem>>, vector<1x128xf32>
    %166 = arith.addf %164, %165 : vector<1x128xf32>
    %cst_93 = arith.constant 0.000000e+00 : f32
    %167 = vector.broadcast %cst_93 : f32 to vector<1x128xf32>
    %168 = arith.maximumf %166, %167 : vector<1x128xf32>
    %169 = arith.truncf %168 : vector<1x128xf32> to vector<1x128xbf16>
    %c0_94 = arith.constant 0 : index
    %c0_95 = arith.constant 0 : index
    %170 = vector.load %arg10[%c0_94, %c0_95] : memref<128x128xbf16, #tpu.memory_space<vmem>>, vector<128x128xbf16>
    %cst_96 = arith.constant dense<0.000000e+00> : vector<1x128xf32>
    %171 = tpu.matmul %169, %170, %cst_96 {dimension_numbers = #tpu.dot_dimension_numbers<[1], [0], [0], [1], [0, 0, 1, 1], [], []>} : vector<1x128xbf16>, vector<128x128xbf16>, vector<1x128xf32> -> vector<1x128xf32>
    %c0_97 = arith.constant 0 : index
    %c0_98 = arith.constant 0 : index
    %172 = vector.load %arg11[%c0_97, %c0_98] : memref<1x128xf32, #tpu.memory_space<vmem>>, vector<1x128xf32>
    %173 = arith.addf %171, %172 : vector<1x128xf32>
    %174 = vector.extract_strided_slice %173 {offsets = [0, 0], sizes = [1, 10], strides = [1, 1]} : vector<1x128xf32> to vector<1x10xf32>
    %175 = vector.shape_cast %174 : vector<1x10xf32> to vector<1x1x10xf32>
    %c0_99 = arith.constant 0 : index
    %c0_100 = arith.constant 0 : index
    %c0_101 = arith.constant 0 : index
    %176 = vector.load %arg12[%c0_99, %c0_100, %c0_101] : memref<1x1x10xf32, #tpu.memory_space<vmem>>, vector<1x1x10xf32>
    tpu.vector_store %arg12[%c0_99, %c0_100, %c0_101], %175 {strides = array<i32>} : memref<1x1x10xf32, #tpu.memory_space<vmem>>, vector<1x1x10xf32>,
    return
  }
  func.func @transform_0(%arg0: i32) -> (i32, i32) {
    %c0_i32 = arith.constant 0 : i32
    %c0_i32_0 = arith.constant 0 : i32
    return %arg0, %c0_i32 : i32, i32
  }
  func.func @transform_1(%arg0: i32) -> (i32, i32, i32) {
    %c0_i32 = arith.constant 0 : i32
    %c0_i32_0 = arith.constant 0 : i32
    %c0_i32_1 = arith.constant 0 : i32
    %c0_i32_2 = arith.constant 0 : i32
    return %c0_i32, %c0_i32_0, %c0_i32_1 : i32, i32, i32
  }
  func.func @transform_2(%arg0: i32) -> (i32, i32) {
    %c0_i32 = arith.constant 0 : i32
    %c0_i32_0 = arith.constant 0 : i32
    %c0_i32_1 = arith.constant 0 : i32
    return %c0_i32, %c0_i32_0 : i32, i32
  }
  func.func @transform_3(%arg0: i32) -> (i32, i32, i32) {
    %c0_i32 = arith.constant 0 : i32
    %c0_i32_0 = arith.constant 0 : i32
    %c0_i32_1 = arith.constant 0 : i32
    %c0_i32_2 = arith.constant 0 : i32
    return %c0_i32, %c0_i32_0, %c0_i32_1 : i32, i32, i32
  }
  func.func @transform_4(%arg0: i32) -> (i32, i32) {
    %c0_i32 = arith.constant 0 : i32
    %c0_i32_0 = arith.constant 0 : i32
    %c0_i32_1 = arith.constant 0 : i32
    return %c0_i32, %c0_i32_0 : i32, i32
  }
  func.func @transform_5(%arg0: i32) -> (i32, i32, i32) {
    %c0_i32 = arith.constant 0 : i32
    %c0_i32_0 = arith.constant 0 : i32
    %c0_i32_1 = arith.constant 0 : i32
    %c0_i32_2 = arith.constant 0 : i32
    return %c0_i32, %c0_i32_0, %c0_i32_1 : i32, i32, i32
  }
  func.func @transform_6(%arg0: i32) -> (i32, i32) {
    %c0_i32 = arith.constant 0 : i32
    %c0_i32_0 = arith.constant 0 : i32
    %c0_i32_1 = arith.constant 0 : i32
    return %c0_i32, %c0_i32_0 : i32, i32
  }
  func.func @transform_7(%arg0: i32) -> (i32, i32, i32) {
    %c0_i32 = arith.constant 0 : i32
    %c0_i32_0 = arith.constant 0 : i32
    %c0_i32_1 = arith.constant 0 : i32
    %c0_i32_2 = arith.constant 0 : i32
    return %c0_i32, %c0_i32_0, %c0_i32_1 : i32, i32, i32
  }
  func.func @transform_8(%arg0: i32) -> (i32, i32) {
    %c0_i32 = arith.constant 0 : i32
    %c0_i32_0 = arith.constant 0 : i32
    %c0_i32_1 = arith.constant 0 : i32
    return %c0_i32, %c0_i32_0 : i32, i32
  }
  func.func @transform_9(%arg0: i32) -> (i32, i32) {
    %c0_i32 = arith.constant 0 : i32
    %c0_i32_0 = arith.constant 0 : i32
    %c0_i32_1 = arith.constant 0 : i32
    return %c0_i32, %c0_i32_0 : i32, i32
  }
  func.func @transform_10(%arg0: i32) -> (i32, i32) {
    %c0_i32 = arith.constant 0 : i32
    %c0_i32_0 = arith.constant 0 : i32
    %c0_i32_1 = arith.constant 0 : i32
    return %c0_i32, %c0_i32_0 : i32, i32
  }
  func.func @transform_11(%arg0: i32) -> (i32, i32, i32) {
    %c0_i32 = arith.constant 0 : i32
    %c0_i32_0 = arith.constant 0 : i32
    %c0_i32_1 = arith.constant 0 : i32
    return %arg0, %c0_i32, %c0_i32_0 : i32, i32, i32
  }
}

</mosaic_0001>

<bundles_post_ra>
// kernel: cnn_forward.1
= control target key start
LH: loop header
LB: loop body
LE: loop exit
PB: predicated region body
PF: predicated region fallthrough
CT: control target
= control target key end

     0   :  { %s16584_s0 = inlined_call_operand.vmem [shape: f32[64,28], index: 0, kind: input, shape index: {}]   ;;  %s16585_s1 = inlined_call_operand.hbm [shape: bf16[5,28,384], index: 1, kind: input, shape index: {}]   ;;  %s16586_s2 = inlined_call_operand.hbm [shape: f32[1,384], index: 2, kind: input, shape index: {}]   ;;  %s16587_s3 = inlined_call_operand.hbm [shape: bf16[5,384,640], index: 3, kind: input, shape index: {}]   ;;  %s16588_s4 = inlined_call_operand.hbm [shape: f32[1,640], index: 4, kind: input, shape index: {}]   ;;  %s16589_s5 = inlined_call_operand.hbm [shape: bf16[5,320,384], index: 5, kind: input, shape index: {}]   ;;  %s16590_s6 = inlined_call_operand.hbm [shape: f32[1,384], index: 6, kind: input, shape index: {}]   ;;  %s16591_s7 = inlined_call_operand.hbm [shape: bf16[3,192,128], index: 7, kind: input, shape index: {}]   ;;  %s16592_s8 = inlined_call_operand.hbm [shape: f32[1,128], index: 8, kind: input, shape index: {}]   ;;  %s16593_s9 = inlined_call_operand.hbm [shape: bf16[128,128], index: 9, kind: input, shape index: {}]   ;;  %s16594_s10 = inlined_call_operand.hbm [shape: f32[1,128], index: 10, kind: input, shape index: {}]   ;;  %s16595_s11 = inlined_call_operand.hbm [shape: f32[2,1,10], index: 11, kind: output, shape index: {}]  }
   0x1   :  { %16618 = sst [smem:[#allocation50_spill]] %s16585_s1 }
   0x2   :  { %16619 = sst [smem:[#allocation51_spill]] %s16586_s2 }
   0x3   :  { %16 = vsyncpa [#allocation3], 0 }
   0x4   :  { %17 = vsyncpa [#allocation6], 0 }
   0x5   :  { %18 = vsyncpa [#allocation9], 0 }
   0x6   :  { %19 = vsyncpa [#allocation12], 0 }
   0x7   :  { %20 = vsyncpa [#allocation15], 0 }
   0x8   :  { %21 = vsyncpa [#allocation18], 0 }
   0x9   :  { %22 = vsyncpa [#allocation4], 0 }
   0xa   :  { %24 = vsyncpa [#allocation4 + $0x1], 0  ;;  %s14996_s17 = smov 0   ;;  %s14998_s18 = smov 0  }
   0xb   :  { %s15000_s19 = smov 0   ;;  %s15002_s20 = smov 0  }
   0xc LB: > { %16620 = sst [smem:[#allocation27_spill]] %s14909_s19  ;;  %s15017_s21 = sadd.s32 4294967295, %s14913_s20   ;;  %s14913_s20 = sphi %s15002_s20, %s16695_s20   ;;  %s14909_s19 = sphi %s15000_s19, %s16692_s19   ;;  %s14905_s18 = sphi %s14998_s18, %s16694_s18   ;;  %s14901_s17 = sphi %s14996_s17, %s16693_s17  }
   0xd   : > { %s11370_s22 = sadd.s32 4294967294, %s14913_s20   ;;  %s15021_s23 = sadd.s32 1, %s14913_s20  }
   0xe   : > { %s273_s24 = sadd.s32 1, %s14909_s19  ;;  %s270_s25 = ssub.s32 %s14913_s20, %s15021_s23 }
   0xf   : > { %p283_p0 = scmp.ne.s32.totalorder %s14909_s19, %s14905_s18  ;;  %p271_p1 = scmp.eq.s32.totalorder %s270_s25, 0 }
  0x10   : > { %p284_p2 = scmp.eq.s32.totalorder %s15017_s21, 1  ;;  %p289_p3 = scmp.ne.s32.totalorder %s14905_s18, %s14901_s17 }
  0x11   : > { %p290_p4 = scmp.eq.s32.totalorder %s11370_s22, 1  ;;  %p11371_p7 = scmp.ge.s32.totalorder %s14913_s20, 1 }
  0x12   : > { %s15032_s26 = scalar_select %p271_p1, %s14909_s19, %s273_s24  }
  0x13   : > { %p15034_p5 = por %p284_p2, %p283_p0  ;;  %p15038_p6 = por %p290_p4, %p289_p3 }
  0x14   : > { %16621 = sst [smem:[#allocation28_spill]] %s15032_s26  ;;  %p297_p8 = scmp.lt.s32.totalorder %s14913_s20, 3 }
  0x15   : > { %s16622_s27 = scalar_select %p15034_p5, 1, 0 }
  0x16   : > { %s16623_s28 = scalar_select %p15038_p6, 1, 0 }
  0x17   : > { %p16596_p9 = scmp.eq.s32.totalorder %s15017_s21, 0  ;;  %p15045_p10 = pnand %p11371_p7, %p297_p8 }
  0x18   : > { %s14915_s30 = smov [#allocation5]   ;;  %s14916_s13 = smov [#allocation8]  }
  0x19   : > { %s16624_s29 = scalar_select %p15045_p10, 1, 0 }
  0x1a   : > { %s323_s12 = sshll.u32 %s14915_s30, 4  ;;  %p13087_p11 = pneg %p15045_p10  ;;  %s324_s12 = int_to_ptr.vmem [resolvable:$true] %s323_s12 }
  0x1b   : > { %s347_s14 = sshll.u32 %s14916_s13, 4  ;;  %s14917_s16 = smov [#allocation11]   ;;  %s348_s14 = int_to_ptr.vmem [resolvable:$true] %s347_s14 }
  0x1c   : > { %p15053_p12 = pnand %p16596_p9, %p13087_p11  ;;  %s371_s22 = sshll.u32 %s14917_s16, 4  ;;  %s15057_s22 = int_to_ptr.vmem [resolvable:$true] %s371_s22 }
  0x1d   : > { %s14580_s25 = scalar_lea.vmem %s324_s12, 48  ;;  %s14587_s30 = scalar_lea.vmem %s324_s12, 64 }
  0x1e   : > { %p15061_p13 = pneg %p15053_p12  ;;  %p14581_p0 = scmp.ne.s32.totalorder %s324_s12, %s14580_s25 }
  0x1f   : > { %p14588_p3 = scmp.lt.s32.totalorder %s324_s12, %s324_s12  ;;  %p14589_p4 = scmp.lt.s32.totalorder %s14587_s30, %s14580_s25 }
  0x20   : > { %p14583_p1 = pnand %p14581_p0, %p15061_p13 }
  0x21   : > { %p14590_p7 = por %p14589_p4, %p14588_p3 }
  0x22   : > { %p14584_p2 = pneg %p14583_p1 }
  0x24   : > { %p14591_p8 = pnand %p14590_p7, %p14584_p2 }
  0x26   : > { %14594 = shalt.err (!%p14591_p8)
}
  0x27   : > { %s16627_s2 = sld [smem:[#allocation51_spill]]  ;;  %s14606_s26 = scalar_lea.vmem %s348_s14, 80 }
  0x28   : > { %p14607_p11 = scmp.ne.s32.totalorder %s348_s14, %s14606_s26  ;;  %s14613_s19 = scalar_lea.vmem %s348_s14, 96 }
  0x29   : > { %p14614_p0 = scmp.lt.s32.totalorder %s348_s14, %s348_s14  ;;  %p14615_p1 = scmp.lt.s32.totalorder %s14613_s19, %s14606_s26 }
  0x2a   : > { %p14609_p9 = pnand %p14607_p11, %p15061_p13 }
  0x2b   : > { %p14616_p5 = por %p14615_p1, %p14614_p0 }
  0x2c   : > { %p14610_p6 = pneg %p14609_p9 }
  0x2d   : > { %13093 = dma.hbm_to_vmem [thread:$0]  (!%p15053_p12), %s16627_s2, 48, %s324_s12, [#allocation6]  }
  0x2e   : > { %p14617_p10 = pnand %p14616_p5, %p14610_p6 }
  0x30   : > { %14620 = shalt.err (!%p14617_p10)
}
  0x31   : > { %13099 = dma.hbm_to_vmem [thread:$0]  (!%p15053_p12), %s16588_s4, 80, %s348_s14, [#allocation9]  }
  0x32   : > { %s14632_s12 = scalar_lea.vmem %s15057_s22, 48  ;;  %s14639_s19 = scalar_lea.vmem %s15057_s22, 64 }
  0x33   : > { %p14633_p2 = scmp.ne.s32.totalorder %s15057_s22, %s14632_s12  ;;  %p14640_p5 = scmp.lt.s32.totalorder %s15057_s22, %s15057_s22 }
  0x34   : > { %p14641_p6 = scmp.lt.s32.totalorder %s14639_s19, %s14632_s12 }
  0x35   : > { %p14635_p9 = pnand %p14633_p2, %p15061_p13 }
  0x36   : > { %p14642_p10 = por %p14641_p6, %p14640_p5 }
  0x37   : > { %p14636_p3 = pneg %p14635_p9 }
  0x39   : > { %p14643_p4 = pnand %p14642_p10, %p14636_p3 }
  0x3b   : > { %14646 = shalt.err (!%p14643_p4)
}
  0x3c   : > { %13105 = dma.hbm_to_vmem [thread:$0]  (!%p15053_p12), %s16590_s6, 48, %s15057_s22, [#allocation12]  }
  0x3d   : > { %s14918_s14 = smov [#allocation14]   ;;  %s14919_s25 = smov [#allocation2]  }
  0x3e   : > { %s395_s16 = sshll.u32 %s14918_s14, 4  ;;  %s309_s30 = sshll.u32 %s14919_s25, 4  ;;  %s396_s16 = int_to_ptr.vmem [resolvable:$true] %s395_s16  ;;  %s310_s30 = int_to_ptr.vmem [resolvable:$true] %s309_s30 }
  0x3f   : > { %s14658_s2 = scalar_lea.vmem %s396_s16, 16  ;;  %s14665_s12 = scalar_lea.vmem %s396_s16, 32 }
  0x40   : > { %p14659_p7 = scmp.ne.s32.totalorder %s396_s16, %s14658_s2  ;;  %p14666_p0 = scmp.lt.s32.totalorder %s396_s16, %s396_s16 }
  0x41   : > { %p14667_p1 = scmp.lt.s32.totalorder %s14665_s12, %s14658_s2 }
  0x42   : > { %p14661_p8 = pnand %p14659_p7, %p15061_p13 }
  0x43   : > { %p14668_p2 = por %p14667_p1, %p14666_p0 }
  0x44   : > { %p14662_p11 = pneg %p14661_p8 }
  0x46   : > { %p14669_p9 = pnand %p14668_p2, %p14662_p11 }
  0x48   : > { %14672 = shalt.err (!%p14669_p9)
}
  0x49   : > { %13111 = dma.hbm_to_vmem [thread:$0]  (!%p15053_p12), %s16592_s8, 16, %s396_s16, [#allocation15]  }
  0x4a   : > { %s14684_s26 = scalar_lea.vmem %s310_s30, 3840  ;;  %p14692_p10 = scmp.lt.s32.totalorder %s310_s30, %s310_s30 }
  0x4b   : > { %p14685_p3 = scmp.ne.s32.totalorder %s310_s30, %s14684_s26  ;;  %p14693_p4 = scmp.lt.s32.totalorder %s14684_s26, %s14684_s26 }
  0x4d   : > { %p14687_p5 = pnand %p14685_p3, %p15061_p13  ;;  %p14694_p7 = por %p14693_p4, %p14692_p10 }
  0x4f   : > { %p14688_p6 = pneg %p14687_p5 }
  0x51   : > { %p14695_p8 = pnand %p14694_p7, %p14688_p6 }
  0x53   : > { %14698 = shalt.err (!%p14695_p8)
}
  0x54   : > { %s16600_s2 = smov 192   ;;  %s16601_s13 = smov 12  }
  0x55   : > { %s16628_s1 = sld [smem:[#allocation50_spill]]  ;;  %s14922_s25 = smov [#allocation7]  }
  0x56   : > { %s333_s12 = sshll.u32 %s14922_s25, 4  ;;  %s334_s12 = int_to_ptr.vmem [resolvable:$true] %s333_s12 }
  0x57   : > { %s14710_s19 = scalar_lea.vmem %s334_s12, 76800  ;;  %p14718_p2 = scmp.lt.s32.totalorder %s334_s12, %s334_s12 }
  0x58   : > { %p14711_p11 = scmp.ne.s32.totalorder %s334_s12, %s14710_s19  ;;  %p14719_p9 = scmp.lt.s32.totalorder %s14710_s19, %s14710_s19 }
  0x5a   : > { %p14713_p0 = pnand %p14711_p11, %p15061_p13  ;;  %p14720_p3 = por %p14719_p9, %p14718_p2 }
  0x5b   : > { %13090 = dma.hbm_to_vmem [thread:$0]  (!%p15053_p12), %s16628_s1, 3840, %s310_s30, [#allocation3], %s16600_s2, %s16600_s2, %s16601_s13  }
  0x5c   : > { %p14714_p1 = pneg %p14713_p0 }
  0x5e   : > { %p14721_p5 = pnand %p14720_p3, %p14714_p1 }
  0x60   : > { %14724 = shalt.err (!%p14721_p5)
}
  0x61   : > { %s14923_s22 = smov 320   ;;  %s14924_s26 = smov 20  }
  0x62   : > { %13096 = dma.hbm_to_vmem [thread:$0]  (!%p15053_p12), %s16587_s3, 76800, %s334_s12, [#allocation6], %s14923_s22, %s14923_s22, %s14924_s26  }
  0x63   : > { %s14925_s16 = smov [#allocation10]   ;;  %s14926_s2 = smov [#allocation13]  }
  0x64   : > { %s357_s25 = sshll.u32 %s14925_s16, 4  ;;  %s381_s13 = sshll.u32 %s14926_s2, 4  ;;  %s358_s25 = int_to_ptr.vmem [resolvable:$true] %s357_s25  ;;  %s382_s13 = int_to_ptr.vmem [resolvable:$true] %s381_s13 }
  0x65   : > { %s14736_s1 = scalar_lea.vmem %s358_s25, 38400  ;;  %p14744_p7 = scmp.lt.s32.totalorder %s358_s25, %s358_s25 }
  0x66   : > { %p14737_p6 = scmp.ne.s32.totalorder %s358_s25, %s14736_s1  ;;  %p14745_p8 = scmp.lt.s32.totalorder %s14736_s1, %s14736_s1 }
  0x68   : > { %p14739_p10 = pnand %p14737_p6, %p15061_p13  ;;  %p14746_p11 = por %p14745_p8, %p14744_p7 }
  0x6a   : > { %p14740_p4 = pneg %p14739_p10 }
  0x6c   : > { %p14747_p0 = pnand %p14746_p11, %p14740_p4 }
  0x6e   : > { %14750 = shalt.err (!%p14747_p0)
}
  0x6f   : > { %s16629_s19 = smov 12   ;;  %s16630_s12 = smov 192  }
  0x70   : > { %13102 = dma.hbm_to_vmem [thread:$0]  (!%p15053_p12), %s16589_s5, 38400, %s358_s25, [#allocation9], %s16630_s12, %s16630_s12, %s16629_s19  }
  0x71   : > { %s14762_s2 = scalar_lea.vmem %s382_s13, 4608  ;;  %p14770_p3 = scmp.lt.s32.totalorder %s382_s13, %s382_s13 }
  0x72   : > { %p14763_p1 = scmp.ne.s32.totalorder %s382_s13, %s14762_s2  ;;  %p14771_p5 = scmp.lt.s32.totalorder %s14762_s2, %s14762_s2 }
  0x74   : > { %p14765_p2 = pnand %p14763_p1, %p15061_p13  ;;  %p14772_p6 = por %p14771_p5, %p14770_p3 }
  0x76   : > { %p14766_p9 = pneg %p14765_p2 }
  0x78   : > { %p14773_p10 = pnand %p14772_p6, %p14766_p9 }
  0x7a   : > { %14776 = shalt.err (!%p14773_p10)
}
  0x7b   : > { %s14927_s1 = smov 64   ;;  %s14928_s14 = smov 4  }
  0x7c   : > { %13108 = dma.hbm_to_vmem [thread:$0]  (!%p15053_p12), %s16591_s7, 4608, %s382_s13, [#allocation12], %s14927_s1, %s14927_s1, %s14928_s14  }
  0x7d   : > { %s14929_s25 = smov [#allocation16]   ;;  %s14930_s12 = smov [#allocation17]  }
  0x7e   : > { %s405_s19 = sshll.u32 %s14929_s25, 4  ;;  %s419_s22 = sshll.u32 %s14930_s12, 4  ;;  %s406_s19 = int_to_ptr.vmem [resolvable:$true] %s405_s19  ;;  %s420_s22 = int_to_ptr.vmem [resolvable:$true] %s419_s22 }
  0x7f   : > { %s14788_s26 = scalar_lea.vmem %s406_s19, 1024  ;;  %p14796_p11 = scmp.lt.s32.totalorder %s406_s19, %s406_s19 }
  0x80   : > { %p14789_p4 = scmp.ne.s32.totalorder %s406_s19, %s14788_s26  ;;  %p14797_p0 = scmp.lt.s32.totalorder %s14788_s26, %s14788_s26 }
  0x82   : > { %p14791_p7 = pnand %p14789_p4, %p15061_p13  ;;  %p14798_p1 = por %p14797_p0, %p14796_p11 }
  0x84   : > { %p14792_p8 = pneg %p14791_p7 }
  0x86   : > { %p14799_p2 = pnand %p14798_p1, %p14792_p8 }
  0x88   : > { %14802 = shalt.err (!%p14799_p2)
}
  0x89   : > { %13114 = dma.hbm_to_vmem [thread:$0]  (!%p15053_p12), %s16593_s9, 1024, %s406_s19, [#allocation15], %s14927_s1, %s14927_s1, %s14928_s14  }
  0x8a   : > { %s14814_s30 = scalar_lea.vmem %s420_s22, 16  ;;  %s14821_s16 = scalar_lea.vmem %s420_s22, 32 }
  0x8b   : > { %p14815_p9 = scmp.ne.s32.totalorder %s420_s22, %s14814_s30  ;;  %p14822_p6 = scmp.lt.s32.totalorder %s420_s22, %s420_s22 }
  0x8c   : > { %p14823_p10 = scmp.lt.s32.totalorder %s14821_s16, %s14814_s30 }
  0x8d   : > { %p14817_p3 = pnand %p14815_p9, %p15061_p13 }
  0x8e   : > { %p14824_p4 = por %p14823_p10, %p14822_p6 }
  0x8f   : > { %p14818_p5 = pneg %p14817_p3 }
  0x91   : > { %p14825_p7 = pnand %p14824_p4, %p14818_p5 }
  0x93   : > { %14828 = shalt.err (!%p14825_p7)
}
  0x94   : > { %13117 = dma.hbm_to_vmem [thread:$0]  (!%p15053_p12), %s16594_s10, 16, %s420_s22, [#allocation18]  }
  0x95   : > { %p16631_p8 = scmp.ne.s32.totalorder %s16624_s29, 0 }
  0x97   : > { %441 = sbr.rel (%p16631_p8) target bundleno = 2879 (0xb3f), region = 64 }
  0x9c   : > { %p16632_p11 = scmp.eq.s32.totalorder %s15017_s21, 0 }
  0x9e   : > { %14872 = dma.done.wait (%p16632_p11), [#allocation3], 3840   ;;  %p16633_p13 = pmov %p16632_p11 }
  0x9f   : > { %p16634_p0 = pmov %p16632_p11 }
  0xa0   : > { %14874 = vsyncadd (%p16633_p13), [#allocation3], 4294963456 }
  0xa1   : > { %14876 = dma.done.wait (%p16634_p0), [#allocation6], 76848   ;;  %p16635_p1 = pmov %p16634_p0 }
  0xa2   : > { %p16636_p2 = pmov %p16634_p0 }
  0xa3   : > { %14878 = vsyncadd (%p16635_p1), [#allocation6], 4294890448 }
  0xa4   : > { %14880 = dma.done.wait (%p16636_p2), [#allocation9], 38480   ;;  %p16637_p12 = pmov %p16634_p0 }
  0xa5   : > { %p16638_p9 = pmov %p16634_p0 }
  0xa6   : > { %14882 = vsyncadd (%p16637_p12), [#allocation9], 4294928816 }
  0xa7   : > { %14884 = dma.done.wait (%p16638_p9), [#allocation12], 4656   ;;  %p16639_p3 = pmov %p16634_p0 }
  0xa8   : > { %p16640_p5 = pmov %p16634_p0 }
  0xa9   : > { %14886 = vsyncadd (%p16639_p3), [#allocation12], 4294962640 }
  0xaa   : > { %14888 = dma.done.wait (%p16640_p5), [#allocation15], 1040   ;;  %p16641_p6 = pmov %p16634_p0 }
  0xab   : > { %p16642_p10 = pmov %p16634_p0 }
  0xac   : > { %14890 = vsyncadd (%p16641_p6), [#allocation15], 4294966256 }
  0xad   : > { %14892 = dma.done.wait (%p16642_p10), [#allocation18], 16   ;;  %p16643_p4 = pmov %p16634_p0 }
  0xae   : > { %s11394_s29 = sshll.u32 %s15017_s21, 2  ;;  %v16603_v0 = vmov 0   ;;  %vm603_vm0 = vcmask 1045504   ;;  %v13245_v1 = vld [vmem:[#allocation2 + $0x4c] ss:$12 sps:$4 sm:$0x3f]  }
  0xaf   : > { %14894 = vsyncadd (%p16643_p4), [#allocation18], 4294967280  ;;  %645 = vmatprep.mubr.bf16.mxu0 %v16603_v0  ;;  %655 = vmatprep.mubr.bf16.mxu1 %v16603_v0  ;;  %p517_p7 = scmp.lt.s32.totalorder %s11394_s29, 7  ;;  %v13247_v2 = vld [vmem:[#allocation2 + $0x48] ss:$12 sps:$4 sm:$0x3f]  }
  0xb0   : > { %11402 = vmatprep.subr.msk.bf16.mxu0 %vm603_vm0, %v13245_v1  ;;  %13036 = vmatprep.subr.msk.bf16.mxu1 %vm603_vm0, %v13245_v1  ;;  %v13248_v3 = vld [vmem:[#allocation2 + $0x34] ss:$12 sps:$4 sm:$0xff]   ;;  %v13250_v4 = vld [vmem:[#allocation2 + $0x30] ss:$12 sps:$4 sm:$0xff]   ;;  %v605_v6 = vsel %vm603_vm0, %v13247_v2, 0  ;;  %v15195_v20 = vrot.slane %v16603_v0, 1 }
  0xb1   : > { %s16697_s29 = smov (!%p517_p7, %s11394_s29), 7  ;;  %626 = vmatpush1.bf16.msra.mxu0 %v605_v6  ;;  %13038 = vmatpush1.bf16.msra.mxu1 %v605_v6  ;;  %v13251_v12 = vld [vmem:[#allocation2 + $0x50] ss:$12 sps:$4 sm:$0x3f]   ;;  %vm546_vm1 = vsmask.f32 7424 }
  0xb2   : > { %s11395_s15 = sshll.u32 %s16697_s29, 3  ;;  %627 = vmatprep.subr.bf16.mxu0 %v13248_v3  ;;  %13037 = vmatprep.subr.bf16.mxu1 %v13248_v3  ;;  %v13252_v17 = vld [vmem:[#allocation2 + $0x20] ss:$12 sps:$4 sm:$0x3f]   ;;  %16644 = vst [vmem:[#allocation29_spill] sm:$0xff] %v15195_v20  ;;  %vm596_vm2 = vcmask 228352  }
  0xb3   : > { %s520_s14 = scalar_lea.vmem %s16584_s0, %s11395_s15  ;;  %v611_v23 = vsel %vm603_vm0, %v13251_v12, 0  ;;  %v13253_v24 = vld [vmem:[#allocation2 + $0x38] ss:$12 sps:$4 sm:$0xff]   ;;  %v755_v25 = vsel %vm603_vm0, %v13252_v17, 0  ;;  %v13254_v26 = vld [vmem:[#allocation2 + $0x8] ss:$12 sps:$4 sm:$0xff]  }
  0xb4   : > { %v523_v5 = vld [vmem:[%s520_s14] sm:$0xff]  ;;  %v524_v7 = vld [vmem:[%s520_s14 + $0x8] sm:$0xff]  ;;  %v525_v8 = vld [vmem:[%s520_s14 + $0x10] sm:$0xff]  ;;  %vm871_vm3 = vcmask 1046528   ;;  %vm1044_vm4 = vsmask.f32 6400 }
  0xb5   : > { %v526_v9 = vld [vmem:[%s520_s14 + $0x18] sm:$0xff]  ;;  %v15182_v10 = vpack.c.bf16 %v524_v7, %v523_v5  ;;  %628 = vmatpush1.bf16.msra.mxu0 %v13250_v4  ;;  %13039 = vmatpush1.bf16.msra.mxu1 %v13250_v4  ;;  %v13263_v33 = vld [vmem:[#allocation2 + $0x4] ss:$12 sps:$4 sm:$0xff]   ;;  %v13261_v37 = vld [vmem:[#allocation2] ss:$12 sps:$4 sm:$0xff]   ;;  %v15237_v57 = vrot.slane %v16603_v0, 2 }
  0xb6   : > { %v15184_v11 = vpack.c.bf16 %v526_v9, %v525_v8  ;;  %13040 = vmatprep.subr.msk.bf16.mxu1 %vm603_vm0, %v13251_v12  ;;  %13041 = vmatprep.subr.msk.bf16.mxu0 %vm603_vm0, %v13252_v17  ;;  %v13255_v29 = vld [vmem:[#allocation2 + $0x1c] ss:$12 sps:$4 sm:$0x3f]   ;;  %v13257_v30 = vld [vmem:[#allocation2 + $0x18] ss:$12 sps:$4 sm:$0x3f]  }
  0xb7   : > { %v548_v13 = vshrl.u32 %v15182_v10, 16  ;;  %v550_v14 = vshll.u32 %v15182_v10, 16  ;;  %v13258_v31 = vld [vmem:[#allocation2 + $0x7c] ss:$12 sps:$4 sm:$0x3f]   ;;  %v749_v34 = vsel %vm603_vm0, %v13257_v30, 0  ;;  %v15249_v61 = vor.u32 %v15237_v57, %v15195_v20 }
  0xb8   : > { %v555_v15 = vshll.u32 %v15184_v11, 16  ;;  %v559_v16 = vshrl.u32 %v15184_v11, 16  ;;  %v13260_v32 = vld [vmem:[#allocation2 + $0x78] ss:$12 sps:$4 sm:$0x3f]   ;;  %v872_v40 = vrot.slane %v15182_v10, 1 }
  0xb9   : > { %v552_v18 = vrot.slane %v550_v14, 1  ;;  %v913_v35 = vsel %vm603_vm0, %v13260_v32, 0  ;;  %v13266_v36 = vld [vmem:[#allocation2 + $0x64] ss:$12 sps:$4 sm:$0xff]   ;;  %v13264_v38 = vld [vmem:[#allocation2 + $0x60] ss:$12 sps:$4 sm:$0xff]  }
  0xba   : > { %v557_v19 = vrot.slane %v555_v15, 1  ;;  %v13267_v39 = vld [vmem:[#allocation2 + $0x80] ss:$12 sps:$4 sm:$0x3f]   ;;  %v873_v41 = vrot.slane %v15184_v11, 1  ;;  %v1045_v44 = vrot.slane %v548_v13, 1 }
  0xbb   : > { %v553_v21 = vor.u32 %v552_v18, %v548_v13  ;;  %v13268_v42 = vld [vmem:[#allocation2 + $0xb0] ss:$12 sps:$4 sm:$0x3f]   ;;  %v919_v43 = vsel %vm603_vm0, %v13267_v39, 0  ;;  %v13269_v46 = vld [vmem:[#allocation2 + $0x68] ss:$12 sps:$4 sm:$0xff]  }
  0xbc   : > { %v561_v22 = vor.u32 %v559_v16, %v557_v19  ;;  %v874_v45 = vsel %vm871_vm3, %v872_v40, %v873_v41  ;;  %v1046_v47 = vrot.slane %v550_v14, 2  ;;  %v1048_v48 = vrot.slane %v559_v16, 1  ;;  %v13270_v51 = vld [vmem:[#allocation2 + $0x98] ss:$12 sps:$4 sm:$0xff]   ;;  %16645 = vst [vmem:[#allocation30_spill] sm:$0xff] %v15237_v57  ;;  %s14932_s19 = smov 64  }
  0xbd   : > { %v558_v27 = vsel %vm546_vm1, %v553_v21, %v557_v19  ;;  %v1049_v49 = vrot.slane %v555_v15, 2  ;;  %v1100_v50 = vsel %vm603_vm0, %v13268_v42, 0  ;;  %v13271_v52 = vld [vmem:[#allocation2 + $0xac] ss:$12 sps:$4 sm:$0x3f]   ;;  %v876_v56 = vsel %vm871_vm3, %v873_v41, %v15195_v20  ;;  %s514_s22 = sand.u32 1, %s14905_s18  }
  0xbe   : > { %v566_v28 = vsel %vm546_vm1, %v561_v22, %v15195_v20  ;;  %11403 = vmatmul.mubr.msk.bf16.vlgmr.msra.gmra.mxu0 %vm596_vm2, %v558_v27  ;;  %v13274_v53 = vld [vmem:[#allocation2 + $0xdc] ss:$12 sps:$4 sm:$0x3f]   ;;  %v1047_v54 = vor.u32 %v1046_v47, %v1045_v44  ;;  %v13276_v60 = vld [vmem:[#allocation2 + $0xd8] ss:$12 sps:$4 sm:$0x3f]  }
  0xbf   : > { %11404 = vmatmul.mubr.msk.bf16.vlgmr.msra.gmra.mxu1 %vm596_vm2, %v566_v28  ;;  %12825 = vmatpush3.bf16.msra.mxu0 %v755_v25  ;;  %v1050_v55 = vor.u32 %v1049_v49, %v1048_v48  ;;  %v13273_v59 = vld [vmem:[#allocation2 + $0xa8] ss:$12 sps:$4 sm:$0x3f]   ;;  %v13282_v63 = vld [vmem:[#allocation2 + $0xc4] ss:$12 sps:$4 sm:$0xff]   ;;  %v1267_v3 = vsel %vm603_vm0, %v13276_v60, 0 }
  0xc0   : > { %12817 = vmatpush3.bf16.msra.mxu1 %v611_v23  ;;  %12826 = vmatprep.subr.bf16.mxu0 %v13254_v26  ;;  %v13279_v62 = vld [vmem:[#allocation2 + $0x94] ss:$12 sps:$4 sm:$0xff]   ;;  %v1094_v2 = vsel %vm603_vm0, %v13273_v59, 0  ;;  %v13277_v4 = vld [vmem:[#allocation2 + $0x90] ss:$12 sps:$4 sm:$0xff]   ;;  %v1226_v7 = vrot.slane %v15182_v10, 2 }
  0xc1   : > { %12818 = vmatprep.subr.bf16.mxu1 %v13253_v24  ;;  %12820 = vmatprep.mubr.msk.bf16.mxu1 %vm596_vm2, %v558_v27  ;;  %v1051_v58 = vsel %vm1044_vm4, %v1047_v54, %v1050_v55  ;;  %v1057_v1 = vsel %vm1044_vm4, %v1050_v55, %v15249_v61  ;;  %v13280_v5 = vld [vmem:[#allocation2 + $0xc0] ss:$12 sps:$4 sm:$0xff]   ;;  %v1227_v8 = vrot.slane %v15184_v11, 2  ;;  %v13284_v12 = vld [vmem:[#allocation2 + $0xc8] ss:$12 sps:$4 sm:$0xff]   ;;  %vm7119_vm5 = vcmask 523264  }
  0xc2   : > { %12828 = vmatprep.mubr.msk.bf16.mxu0 %vm596_vm2, %v15182_v10  ;;  %v13283_v6 = vld [vmem:[#allocation2 + $0xe0] ss:$12 sps:$4 sm:$0x3f]   ;;  %v13290_v15 = vld [vmem:[#allocation7 + $0x4b4] ss:$20 sps:$4 sm:$0xff]   ;;  %vm9184_vm6 = vcmask 1044480  }
  0xc3   : > { %12827 = vmatpush3.bf16.msra.mxu0 %v13254_v26  ;;  %v1228_v9 = vsel %vm603_vm0, %v1226_v7, %v1227_v8  ;;  %v1273_v13 = vsel %vm603_vm0, %v13283_v6, 0  ;;  %v13285_v14 = vld [vmem:[#allocation7 + $0x4d8] ss:$20 sps:$4 sm:$0xff]   ;;  %v13288_v16 = vld [vmem:[#allocation7 + $0x4b0] ss:$20 sps:$4 sm:$0xff]   ;;  %vm9825_vm7 = vcmask 1043456  }
  0xc4   : > { %12819 = vmatpush3.bf16.msra.mxu1 %v13253_v24  ;;  %11424 = vmatprep.subr.msk.bf16.mxu0 %vm603_vm0, %v13258_v31  ;;  %v13293_v17 = vld [vmem:[#allocation7 + $0x48c] ss:$20 sps:$4 sm:$0xff]   ;;  %v13291_v18 = vld [vmem:[#allocation7 + $0x488] ss:$20 sps:$4 sm:$0xff]   ;;  %v13296_v19 = vld [vmem:[#allocation7 + $0x464] ss:$20 sps:$4 sm:$0xff]  }
  0xc5   : > { %11413 = vmatprep.subr.msk.bf16.mxu1 %vm603_vm0, %v13255_v29  ;;  %v13294_v21 = vld [vmem:[#allocation7 + $0x460] ss:$20 sps:$4 sm:$0xff]   ;;  %v13299_v22 = vld [vmem:[#allocation7 + $0x43c] ss:$20 sps:$4 sm:$0xff]   ;;  %v13297_v23 = vld [vmem:[#allocation7 + $0x438] ss:$20 sps:$4 sm:$0xff]  }
  0xc6   : > { %12829 = vmatmul.mubr.msk.bf16.vlgmr.msra.gmra.mxu0 %vm596_vm2, %v15184_v11  ;;  %v13302_v24 = vld [vmem:[#allocation7 + $0x414] ss:$20 sps:$4 sm:$0xff]   ;;  %v13300_v25 = vld [vmem:[#allocation7 + $0x410] ss:$20 sps:$4 sm:$0xff]   ;;  %v13305_v26 = vld [vmem:[#allocation7 + $0x3ec] ss:$20 sps:$4 sm:$0xff]  }
  0xc7   : > { %12821 = vmatmul.mubr.msk.bf16.vlgmr.msra.gmra.mxu1 %vm596_vm2, %v566_v28  ;;  %934 = vmatpush1.bf16.msra.mxu0 %v913_v35  ;;  %v13303_v27 = vld [vmem:[#allocation7 + $0x3e8] ss:$20 sps:$4 sm:$0xff]   ;;  %v13308_v28 = vld [vmem:[#allocation7 + $0x3c4] ss:$20 sps:$4 sm:$0xff]   ;;  %v13306_v29 = vld [vmem:[#allocation7 + $0x3c0] ss:$20 sps:$4 sm:$0xff]  }
  0xc8   : > { %770 = vmatpush1.bf16.msra.mxu1 %v749_v34  ;;  %935 = vmatprep.subr.bf16.mxu0 %v13266_v36  ;;  %v13311_v30 = vld [vmem:[#allocation7 + $0x61c] ss:$20 sps:$4 sm:$0xff]   ;;  %v13309_v31 = vld [vmem:[#allocation7 + $0x618] ss:$20 sps:$4 sm:$0xff]   ;;  %v13314_v32 = vld [vmem:[#allocation7 + $0x5f4] ss:$20 sps:$4 sm:$0xff]  }
  0xc9   : > { %771 = vmatprep.subr.bf16.mxu1 %v13263_v33  ;;  %789 = vmatprep.mubr.bf16.mxu1 %v16603_v0  ;;  %v13312_v33 = vld [vmem:[#allocation7 + $0x5f0] ss:$20 sps:$4 sm:$0xff]   ;;  %v13315_v35 = vld [vmem:[#allocation7 + $0x758] ss:$20 sps:$4 sm:$0xff]   ;;  %v13324_v41 = vld [vmem:[#allocation7 + $0x5a0] ss:$20 sps:$4 sm:$0xff]  }
  0xca   : > { %953 = vmatprep.mubr.bf16.mxu0 %v16603_v0  ;;  %v13317_v34 = vld [vmem:[#allocation7 + $0x75c] ss:$20 sps:$4 sm:$0xff]   ;;  %v13320_v36 = vld [vmem:[#allocation7 + $0x5cc] ss:$20 sps:$4 sm:$0xff]   ;;  %v13326_v40 = vld [vmem:[#allocation7 + $0x5a4] ss:$20 sps:$4 sm:$0xff]  }
  0xcb   : > { %936 = vmatpush1.bf16.msra.mxu0 %v13264_v38  ;;  %v13323_v38 = vld [vmem:[#allocation7 + $0x734] ss:$20 sps:$4 sm:$0xff]   ;;  %v13332_v44 = vld [vmem:[#allocation7 + $0x57c] ss:$20 sps:$4 sm:$0xff]   ;;  %v13353_v59 = vld [vmem:[#allocation7 + $0x66c] ss:$20 sps:$4 sm:$0xff]  }
  0xcc   : > { %772 = vmatpush1.bf16.msra.mxu1 %v13261_v37  ;;  %13043 = vmatprep.subr.msk.bf16.mxu0 %vm603_vm0, %v13268_v42  ;;  %v13318_v37 = vld [vmem:[#allocation7 + $0x5c8] ss:$20 sps:$4 sm:$0xff]   ;;  %v13329_v42 = vld [vmem:[#allocation7 + $0x70c] ss:$20 sps:$4 sm:$0xff]   ;;  %v13336_v49 = vld [vmem:[#allocation7 + $0x550] ss:$20 sps:$4 sm:$0xff]  }
  0xcd   : > { %13042 = vmatprep.subr.msk.bf16.mxu1 %vm603_vm0, %v13267_v39  ;;  %v13321_v39 = vld [vmem:[#allocation7 + $0x730] ss:$20 sps:$4 sm:$0xff]   ;;  %v13333_v47 = vld [vmem:[#allocation7 + $0x6e0] ss:$20 sps:$4 sm:$0xff]   ;;  %v13351_v60 = vld [vmem:[#allocation7 + $0x668] ss:$20 sps:$4 sm:$0xff]  }
  0xce   : > { %11425 = vmatmul.mubr.msk.bf16.vlgmr.msra.gmra.mxu0 %vm596_vm2, %v874_v45  ;;  %v13338_v48 = vld [vmem:[#allocation7 + $0x554] ss:$20 sps:$4 sm:$0xff]   ;;  %v13345_v55 = vld [vmem:[#allocation7 + $0x690] ss:$20 sps:$4 sm:$0xff]   ;;  %vm10524_vm10 = vcmask 261120   ;;  %vm14934_vm12 = vmmov 0  }
  0xcf   : > { %11414 = vmatmul.mubr.msk.bf16.vlgmr.msra.gmra.mxu1 %vm596_vm2, %v15182_v10  ;;  %963 = vmatprep.mubr.bf16.mxu0 %v16603_v0  ;;  %v1230_v10 = vsel %vm603_vm0, %v1227_v8, %v15237_v57  ;;  %v13347_v54 = vld [vmem:[#allocation7 + $0x694] ss:$20 sps:$4 sm:$0xff]   ;;  %s12424_s26 = sshll.u32 %s15017_s21, 4  ;;  %s515_s2 = scalar_lea.vmem [#allocation19], %s514_s22  ;;  %vm11202_vm13 = vcmask 73728  }
  0xd0   : > { %799 = vmatprep.mubr.bf16.mxu1 %v16603_v0  ;;  %12833 = vmatpush3.bf16.msra.mxu1 %v919_v43  ;;  %v13327_v43 = vld [vmem:[#allocation7 + $0x708] ss:$20 sps:$4 sm:$0xff]   ;;  %s11217_s13 = sshll.u32 %s515_s2, 4  ;;  %s16543_s25 = scalar_lea.hbm %s16595_s11, %s12424_s26  ;;  %s16545_s13 = int_to_ptr.vmem [resolvable:$true] %s11217_s13 }
  0xd1   : > { %12841 = vmatpush3.bf16.msra.mxu0 %v1100_v50  ;;  %12834 = vmatprep.subr.bf16.mxu1 %v13269_v46  ;;  %v13341_v50 = vld [vmem:[#allocation7 + $0x6bc] ss:$20 sps:$4 sm:$0xff]   ;;  %s11205_s12 = scalar_lea.sflag [#allocation4], %s514_s22  ;;  %s14829_s21 = scalar_lea.vmem %s16545_s13, 16 }
  0xd2   : > { %12842 = vmatprep.subr.bf16.mxu0 %v13270_v51  ;;  %p14830_p8 = scmp.ne.s32.totalorder %s16545_s13, %s14829_s21  ;;  %p16689_p11 = scmp.ne.s32.totalorder %s16622_s27, 0 }
  0xd3   : > { %s14935_s29 = smov [#allocation19]  }
  0xd4   : > { %12835 = vmatpush3.bf16.msra.mxu1 %v13269_v46  ;;  %v13335_v46 = vld [vmem:[#allocation7 + $0x6e4] ss:$20 sps:$4 sm:$0xff]   ;;  %p14831_p13 = pnand %p14830_p8, %p16689_p11  ;;  %s14833_s15 = sshll.u32 %s14935_s29, 4  ;;  %s14834_s15 = int_to_ptr.vmem [resolvable:$false] %s14833_s15 }
  0xd5   : > { %12843 = vmatpush3.bf16.msra.mxu0 %v13270_v51  ;;  %11435 = vmatprep.subr.msk.bf16.mxu1 %vm603_vm0, %v13271_v52  ;;  %v13339_v51 = vld [vmem:[#allocation7 + $0x6b8] ss:$20 sps:$4 sm:$0xff]   ;;  %s14835_s24 = scalar_lea.vmem %s14834_s15, 32  ;;  %p14836_p1 = scmp.lt.s32.totalorder %s16545_s13, %s14834_s15 }
  0xd6   : > { %11446 = vmatprep.subr.msk.bf16.mxu0 %vm603_vm0, %v13274_v53  ;;  %11426 = vmatmul.mubr.msk.bf16.gmra.mxu0 %vm596_vm2, %v876_v56  ;;  %v13344_v52 = vld [vmem:[#allocation7 + $0x52c] ss:$20 sps:$4 sm:$0xff]   ;;  %v13342_v53 = vld [vmem:[#allocation7 + $0x528] ss:$20 sps:$4 sm:$0xff]   ;;  %p14832_p0 = pneg %p14831_p13  ;;  %p14837_p2 = scmp.lt.s32.totalorder %s14835_s24, %s14829_s21 }
  0xd7   : > { %11415 = vmatmul.mubr.msk.bf16.gmra.mxu1 %vm596_vm2, %v15184_v11  ;;  %12844 = vmatprep.mubr.msk.bf16.mxu0 %vm596_vm2, %v1051_v58  ;;  %v13287_v11 = vld [vmem:[#allocation7 + $0x4dc] ss:$20 sps:$4 sm:$0xff]  }
  0xd8   : > { %12836 = vmatprep.mubr.msk.bf16.mxu1 %vm596_vm2, %v874_v45  ;;  %v13330_v45 = vld [vmem:[#allocation7 + $0x578] ss:$20 sps:$4 sm:$0xff]   ;;  %p14838_p12 = por %p14837_p2, %p14836_p1 }
  0xda   : > { %p14839_p9 = pnand %p14838_p12, %p14832_p0 }
  0xde   : > { %12845 = vmatmul.mubr.msk.bf16.vlgmr.msra.gmra.mxu0 %vm596_vm2, %v1057_v1 }
  0xdf   : > { %12837 = vmatmul.mubr.msk.bf16.vlgmr.msra.gmra.mxu1 %vm596_vm2, %v876_v56  ;;  %1288 = vmatpush1.bf16.msra.mxu0 %v1267_v3  ;;  %v13350_v56 = vld [vmem:[#allocation7 + $0x504] ss:$20 sps:$4 sm:$0xff]  }
  0xe0   : > { %1115 = vmatpush1.bf16.msra.mxu1 %v1094_v2  ;;  %1289 = vmatprep.subr.bf16.mxu0 %v13282_v63  ;;  %v13357_v63 = vld [vmem:[#allocation7 + $0x640] ss:$20 sps:$4 sm:$0xff]   ;;  %v13365_v2 = vld [vmem:[#allocation7 + $0x4e4] ss:$20 sps:$4 sm:$0xff]  }
  0xe1   : > { %1116 = vmatprep.subr.bf16.mxu1 %v13279_v62  ;;  %1134 = vmatprep.mubr.bf16.mxu1 %v16603_v0  ;;  %v13356_v62 = vld [vmem:[#allocation7 + $0x764] ss:$20 sps:$4 sm:$0xff]  }
  0xe2   : > { %1307 = vmatprep.mubr.bf16.mxu0 %v16603_v0 }
  0xe3   : > { %1290 = vmatpush1.bf16.msra.mxu0 %v13280_v5 }
  0xe4   : > { %1117 = vmatpush1.bf16.msra.mxu1 %v13277_v4  ;;  %2403 = vmatprep.subr.bf16.mxu0 %v13287_v11 }
  0xe5   : > { %13044 = vmatprep.subr.msk.bf16.mxu1 %vm603_vm0, %v13283_v6 }
  0xe6   : > { %11447 = vmatmul.mubr.msk.bf16.vlgmr.msra.gmra.mxu0 %vm596_vm2, %v1228_v9 }
  0xe7   : > { %11436 = vmatmul.mubr.msk.bf16.vlgmr.msra.gmra.mxu1 %vm596_vm2, %v1051_v58  ;;  %1317 = vmatprep.mubr.bf16.mxu0 %v16603_v0  ;;  %v13348_v58 = vld [vmem:[#allocation7 + $0x500] ss:$20 sps:$4 sm:$0xff]  }
  0xe8   : > { %1144 = vmatprep.mubr.bf16.mxu1 %v16603_v0  ;;  %12849 = vmatpush3.bf16.msra.mxu1 %v1273_v13 }
  0xe9   : > { %12850 = vmatprep.subr.bf16.mxu1 %v13284_v12  ;;  %2404 = vmatpush1.bf16.msra.mxu0 %v13285_v14 }
  0xea   : > { %2405 = vmatprep.subr.bf16.mxu0 %v13290_v15 }
  0xec   : > { %12851 = vmatpush3.bf16.msra.mxu1 %v13284_v12 }
  0xed   : > { %2406 = vmatpush1.bf16.msra.mxu0 %v13288_v16  ;;  %2456 = vmatprep.subr.bf16.mxu1 %v13317_v34 }
  0xee   : > { %11448 = vmatmul.mubr.msk.bf16.gmra.mxu0 %vm596_vm2, %v1230_v10  ;;  %2407 = vmatprep.subr.bf16.mxu0 %v13293_v17 }
  0xef   : > { %11437 = vmatmul.mubr.msk.bf16.gmra.mxu1 %vm596_vm2, %v1057_v1  ;;  %v13359_v1 = vld [vmem:[#allocation7 + $0x644] ss:$20 sps:$4 sm:$0xff]  }
  0xf0   : > { %12852 = vmatprep.mubr.msk.bf16.mxu1 %vm596_vm2, %v1228_v9 }
  0xf1   : > { %2408 = vmatpush1.bf16.msra.mxu0 %v13291_v18 }
  0xf2   : > { %2409 = vmatprep.subr.bf16.mxu0 %v13296_v19 }
  0xf5   : > { %2410 = vmatpush1.bf16.msra.mxu0 %v13294_v21 }
  0xf6   : > { %2411 = vmatprep.subr.bf16.mxu0 %v13299_v22 }
  0xf7   : > { %12853 = vmatmul.mubr.msk.bf16.vlgmr.msra.gmra.mxu1 %vm596_vm2, %v1230_v10 }
  0xf8   : > { %2488 = vmatprep.mubr.bf16.mxu1 %v16603_v0  ;;  %2457 = vmatpush1.bf16.msra.mxu1 %v13315_v35 }
  0xf9   : > { %2412 = vmatpush1.bf16.msra.mxu0 %v13297_v23  ;;  %2458 = vmatprep.subr.bf16.mxu1 %v13323_v38 }
  0xfa   : > { %2413 = vmatprep.subr.bf16.mxu0 %v13302_v24 }
  0xfc   : > { %2459 = vmatpush1.bf16.msra.mxu1 %v13321_v39 }
  0xfd   : > { %2414 = vmatpush1.bf16.msra.mxu0 %v13300_v25  ;;  %2460 = vmatprep.subr.bf16.mxu1 %v13329_v42 }
  0xfe   : > { %2415 = vmatprep.subr.bf16.mxu0 %v13305_v26 }
 0x100   : > { %2461 = vmatpush1.bf16.msra.mxu1 %v13327_v43 }
 0x101   : > { %2416 = vmatpush1.bf16.msra.mxu0 %v13303_v27  ;;  %2462 = vmatprep.subr.bf16.mxu1 %v13335_v46 }
 0x102   : > { %2417 = vmatprep.subr.bf16.mxu0 %v13308_v28 }
 0x104   : > { %2463 = vmatpush1.bf16.msra.mxu1 %v13333_v47 }
 0x105   : > { %2418 = vmatpush1.bf16.msra.mxu0 %v13306_v29  ;;  %2464 = vmatprep.subr.bf16.mxu1 %v13341_v50 }
 0x106   : > { %2419 = vmatprep.subr.bf16.mxu0 %v13311_v30 }
 0x108   : > { %2465 = vmatpush1.bf16.msra.mxu1 %v13339_v51 }
 0x109   : > { %2420 = vmatpush2.bf16.msra.mxu0 %v13309_v31  ;;  %2466 = vmatprep.subr.bf16.mxu1 %v13347_v54 }
 0x10a   : > { %2421 = vmatprep.subr.bf16.mxu0 %v13314_v32 }
 0x10c   : > { %2467 = vmatpush1.bf16.msra.mxu1 %v13345_v55 }
 0x10d   : > { %2422 = vmatpush2.bf16.msra.mxu0 %v13312_v33  ;;  %2468 = vmatprep.subr.bf16.mxu1 %v13353_v59 }
 0x10e   : > { %2423 = vmatprep.subr.bf16.mxu0 %v13320_v36  ;;  %v16602_v36 = vlaneseq }
 0x110   : > { %2469 = vmatpush1.bf16.msra.mxu1 %v13351_v60  ;;  %v15300_v42 = vshrl.u32 %v16602_v36, 7  ;;  %v13734_v36 = vld [vmem:[#allocation7 + $0xa0c] ss:$20 sps:$4 sm:$0xff]  }
 0x111   : > { %2424 = vmatpush2.bf16.msra.mxu0 %v13318_v37  ;;  %2470 = vmatprep.subr.bf16.mxu1 %v13359_v1 }
 0x112   : > { %2425 = vmatprep.subr.bf16.mxu0 %v13326_v40  ;;  %16646 = vst [vmem:[#allocation31_spill] sm:$0xff] %v15300_v42  ;;  %v15311_v50 = vsub.s32 0, %v15300_v42 }
 0x114   : > { %2471 = vmatpush1.bf16.msra.mxu1 %v13357_v63  ;;  %16647 = vst [vmem:[#allocation32_spill] sm:$0xff] %v15311_v50 }
 0x115   : > { %2426 = vmatpush2.bf16.msra.mxu0 %v13324_v41  ;;  %2509 = vmatprep.subr.bf16.mxu1 %v13365_v2 }
 0x116   : > { %2427 = vmatprep.subr.bf16.mxu0 %v13332_v44 }
 0x119   : > { %2428 = vmatpush2.bf16.msra.mxu0 %v13330_v45 }
 0x11a   : > { %2429 = vmatprep.subr.bf16.mxu0 %v13338_v48 }
 0x11d   : > { %2430 = vmatpush2.bf16.msra.mxu0 %v13336_v49 }
 0x11e   : > { %2431 = vmatprep.subr.bf16.mxu0 %v13344_v52 }
 0x121   : > { %2432 = vmatpush2.bf16.msra.mxu0 %v13342_v53  ;;  %v1389_v53 = vld [vmem:[#allocation5] sm:$0x7] }
 0x122   : > { %2433 = vmatprep.subr.bf16.mxu0 %v13350_v56 }
 0x125   : > { %2434 = vmatpush2.bf16.msra.mxu0 %v13348_v58  ;;  %v15314_v58 = vsub.s32 1, %v15300_v42 }
 0x126   : > { %2562 = vmatprep.subr.bf16.mxu0 %v13356_v62 }
 0x127   : > { %16648 = vst [vmem:[#allocation33_spill] sm:$0xff] %v15314_v58 }
 0x17e   : > { %v647_v3 = vpop.f32.mrf.mxu0 }
 0x17f   : > { %v657_v4 = vpop.f32.mrf.mxu1 }
 0x180   : > { %v649_v5 = vpop.f32.mrf.mxu0 }
 0x181   : > { %v659_v6 = vpop.f32.mrf.mxu1 }
 0x182   : > { %v651_v7 = vpop.f32.mrf.mxu0 }
 0x183   : > { %v15275_v8 = vpop.f32.mrf.mxu1 }
 0x184   : > { %v653_v9 = vpop.f32.mrf.mxu0 }
 0x185   : > { %v15277_v12 = vpop.f32.mrf.mxu1 }
 0x186   : > { %v15281_v10 = vpop.f32.mrf.mxu0 }
 0x187   : > { %v15279_v13 = vpop.f32.mrf.mxu1 }
 0x188   : > { %v15285_v14 = vpop.f32.mrf.mxu0 }
 0x189   : > { %v15283_v11 = vpop.f32.mrf.mxu1 }
 0x18a   : > { %v15289_v16 = vpop.f32.mrf.mxu0 }
 0x18b   : > { %v15287_v15 = vpop.f32.mrf.mxu1 }
 0x18c   : > { %v15293_v18 = vpop.f32.mrf.mxu0 }
 0x18d   : > { %v15291_v17 = vpop.f32.mrf.mxu1 }
 0x18e   : > { %v955_v21 = vpop.f32.mrf.mxu0 }
 0x18f   : > { %v791_v19 = vpop.f32.mrf.mxu1 }
 0x190   : > { %v957_v23 = vpop.f32.mrf.mxu0  ;;  %v792_v41 = vadd.f32 %v791_v19, %v647_v3 }
 0x191   : > { %v793_v22 = vpop.f32.mrf.mxu1 }
 0x192   : > { %v959_v25 = vpop.f32.mrf.mxu0  ;;  %v794_v45 = vadd.f32 %v793_v22, %v649_v5  ;;  %v1023_v48 = vadd.f32 %v955_v21, %v792_v41  ;;  %v1394_v5 = vrot.slane %v1389_v53, %v15311_v50 }
 0x193   : > { %v795_v24 = vpop.f32.mrf.mxu1 }
 0x194   : > { %v961_v27 = vpop.f32.mrf.mxu0  ;;  %v796_v49 = vadd.f32 %v795_v24, %v651_v7  ;;  %v1024_v54 = vadd.f32 %v957_v23, %v794_v45 }
 0x195   : > { %v797_v26 = vpop.f32.mrf.mxu1 }
 0x196   : > { %v965_v29 = vpop.f32.mrf.mxu0  ;;  %v798_v55 = vadd.f32 %v797_v26, %v653_v9  ;;  %v1026_v62 = vadd.f32 %v959_v25, %v796_v49  ;;  %v1398_v9 = vrot.slane %v1389_v53, %v15314_v58 }
 0x197   : > { %v801_v28 = vpop.f32.mrf.mxu1 }
 0x198   : > { %v967_v31 = vpop.f32.mrf.mxu0  ;;  %v802_v63 = vadd.f32 %v801_v28, %v657_v4  ;;  %v1027_v21 = vadd.f32 %v961_v27, %v798_v55  ;;  %v15320_v4 = vsub.s32 2, %v15300_v42  ;;  %v13867_v42 = vld [vmem:[#allocation7 + $0xc60] ss:$20 sps:$4 sm:$0xff]  }
 0x199   : > { %v803_v30 = vpop.f32.mrf.mxu1 }
 0x19a   : > { %v969_v33 = vpop.f32.mrf.mxu0  ;;  %v804_v2 = vadd.f32 %v803_v30, %v659_v6  ;;  %v1029_v45 = vadd.f32 %v965_v29, %v802_v63  ;;  %16649 = vst [vmem:[#allocation34_spill] sm:$0xff] %v15320_v4  ;;  %v853_v6 = vadd.f32 %v15281_v10, %v15279_v13  ;;  %v845_v29 = vadd.f32 %v15285_v14, %v15283_v11 }
 0x19b   : > { %v805_v32 = vpop.f32.mrf.mxu1  ;;  %v856_v11 = vadd.f32 %v15289_v16, %v15287_v15  ;;  %v848_v14 = vadd.f32 %v15293_v18, %v15291_v17 }
 0x19c   : > { %v971_v35 = vpop.f32.mrf.mxu0  ;;  %v806_v23 = vadd.f32 %v805_v32, %v15275_v8  ;;  %v1030_v28 = vadd.f32 %v967_v31, %v804_v2  ;;  %v1402_v2 = vrot.slane %v1389_v53, %v15320_v4 }
 0x19d   : > { %v807_v34 = vpop.f32.mrf.mxu1 }
 0x19e   : > { %v15295_v38 = vpop.f32.mrf.mxu0  ;;  %v808_v27 = vadd.f32 %v807_v34, %v15277_v12  ;;  %v1032_v55 = vadd.f32 %v969_v33, %v806_v23 }
 0x19f   : > { %v12838_v37 = vpop.f32.mrf.mxu1 }
 0x1a0   : > { %v15297_v40 = vpop.f32.mrf.mxu0  ;;  %v1033_v10 = vadd.f32 %v971_v35, %v808_v27 }
 0x1a1   : > { %v1008_v39 = vpop.f32.mrf.mxu1 }
 0x1a2   : > { %v15304_v44 = vpop.f32.mrf.mxu0  ;;  %v1025_v31 = vadd.f32 %v1008_v39, %v845_v29 }
 0x1a3   : > { %v15302_v43 = vpop.f32.mrf.mxu1 }
 0x1a4   : > { %v15308_v47 = vpop.f32.mrf.mxu0 }
 0x1a5   : > { %v15306_v46 = vpop.f32.mrf.mxu1 }
 0x1a6   : > { %v1309_v52 = vpop.f32.mrf.mxu0 }
 0x1a7   : > { %v1136_v51 = vpop.f32.mrf.mxu1 }
 0x1a8   : > { %v1204_v56 = vadd.f32 %v1136_v51, %v1023_v48  ;;  %v1311_v60 = vpop.f32.mrf.mxu0 }
 0x1a9   : > { %v1138_v59 = vpop.f32.mrf.mxu1 }
 0x1aa   : > { %v1205_v1 = vadd.f32 %v1138_v59, %v1024_v54  ;;  %v1377_v3 = vadd.f32 %v1309_v52, %v1204_v56  ;;  %v1313_v19 = vpop.f32.mrf.mxu0 }
 0x1ab   : > { %v1140_v7 = vpop.f32.mrf.mxu1 }
 0x1ac   : > { %v1207_v22 = vadd.f32 %v1140_v7, %v1026_v62  ;;  %v1378_v24 = vadd.f32 %v1311_v60, %v1205_v1  ;;  %v1315_v41 = vpop.f32.mrf.mxu0  ;;  %v1406_v30 = vadd.f32 %v1394_v5, %v1377_v3  ;;  %v1031_v60 = vadd.f32 %v12838_v37, %v853_v6 }
 0x1ad   : > { %v1142_v26 = vpop.f32.mrf.mxu1 }
 0x1ae   : > { %v1208_v48 = vadd.f32 %v1142_v26, %v1027_v21  ;;  %v1380_v25 = vadd.f32 %v1313_v19, %v1207_v22  ;;  %v1319_v51 = vpop.f32.mrf.mxu0  ;;  %v1407_v52 = vadd.f32 %v1398_v9, %v1378_v24  ;;  %v1418_v3 = vmax.f32 %v1406_v30, 0.0 }
 0x1af   : > { %v1146_v49 = vpop.f32.mrf.mxu1  ;;  %v1212_v39 = vadd.f32 %v15295_v38, %v1031_v60  ;;  %v1034_v26 = vadd.f32 %v15302_v43, %v856_v11 }
 0x1b0   : > { %v1409_v54 = vadd.f32 %v1394_v5, %v1380_v25  ;;  %v1210_v8 = vadd.f32 %v1146_v49, %v1029_v45  ;;  %v1381_v32 = vadd.f32 %v1315_v41, %v1208_v48  ;;  %v1321_v59 = vpop.f32.mrf.mxu0  ;;  %v1419_v7 = vmax.f32 %v1407_v52, 0.0 }
 0x1b1   : > { %v1148_v56 = vpop.f32.mrf.mxu1  ;;  %v1206_v41 = vadd.f32 %v15297_v40, %v1025_v31  ;;  %v1028_v45 = vadd.f32 %v15306_v46, %v848_v14  ;;  %v1215_v40 = vadd.f32 %v15304_v44, %v1034_v26 }
 0x1b2   : > { %v1410_v62 = vadd.f32 %v1398_v9, %v1381_v32  ;;  %v1211_v63 = vadd.f32 %v1148_v56, %v1030_v28  ;;  %v1383_v13 = vadd.f32 %v1319_v51, %v1210_v8  ;;  %v1421_v12 = vmax.f32 %v1409_v54, 0.0  ;;  %v1323_v1 = vpop.f32.mrf.mxu0 }
 0x1b3   : > { %v1150_v34 = vpop.f32.mrf.mxu1  ;;  %v1209_v46 = vadd.f32 %v15308_v47, %v1028_v45 }
 0x1b4   : > { %v1422_v19 = vmax.f32 %v1410_v62, 0.0  ;;  %v1213_v21 = vadd.f32 %v1150_v34, %v1032_v55  ;;  %v1412_v33 = vadd.f32 %v1394_v5, %v1383_v13  ;;  %v1384_v37 = vadd.f32 %v1321_v59, %v1211_v63  ;;  %v1325_v35 = vpop.f32.mrf.mxu0 }
 0x1b5   : > { %v1152_v22 = vpop.f32.mrf.mxu1  ;;  %v15338_v15 = vpack.c.bf16 %v1421_v12, %v1418_v3 }
 0x1b6   : > { %v15333_v24 = vpack.c.bf16 %v1422_v19, %v1419_v7  ;;  %v1214_v23 = vadd.f32 %v1152_v22, %v1033_v10  ;;  %v1386_v53 = vadd.f32 %v1323_v1, %v1213_v21  ;;  %v1413_v17 = vadd.f32 %v1398_v9, %v1384_v37  ;;  %v13354_v22 = vld [vmem:[#allocation7 + $0x760] ss:$20 sps:$4 sm:$0xff]  }
 0x1b7   : > { %v12854_v16 = vpop.f32.mrf.mxu1  ;;  %v1424_v6 = vmax.f32 %v1412_v33, 0.0  ;;  %v1728_v52 = vshll.u32 %v15338_v15, 16  ;;  %v1726_v1 = vshrl.u32 %v15338_v15, 16 }
 0x1b8   : > { %v1415_v18 = vadd.f32 %v1394_v5, %v1386_v53  ;;  %v1387_v48 = vadd.f32 %v1325_v35, %v1214_v23  ;;  %v1385_v25 = vadd.f32 %v12854_v16, %v1212_v39  ;;  %v1738_v38 = vshrl.u32 %v15333_v24, 16  ;;  %v13362_v39 = vld [vmem:[#allocation7 + $0x73c] ss:$20 sps:$4 sm:$0xff]  }
 0x1b9   : > { %v1362_v28 = vpop.f32.mrf.mxu1  ;;  %v1740_v27 = vshll.u32 %v15333_v24, 16  ;;  %v1425_v54 = vmax.f32 %v1413_v17, 0.0  ;;  %v1730_v13 = vrot.slane %v1728_v52, 1 }
 0x1ba   : > { %v1427_v30 = vmax.f32 %v1415_v18, 0.0  ;;  %v1416_v49 = vadd.f32 %v1398_v9, %v1387_v48  ;;  %v1379_v43 = vadd.f32 %v1362_v28, %v1206_v41  ;;  %v1414_v32 = vadd.f32 %v1402_v2, %v1385_v25  ;;  %v13360_v18 = vld [vmem:[#allocation7 + $0x738] ss:$20 sps:$4 sm:$0xff]  }
 0x1bb   : > { %v12855_v51 = vpop.f32.mrf.mxu1  ;;  %v4922_v59 = vrot.slane %v1738_v38, 1  ;;  %v4923_v60 = vrot.slane %v1740_v27, 2  ;;  %v1742_v63 = vrot.slane %v1740_v27, 1  ;;  %v1731_v35 = vor.u32 %v1730_v13, %v1726_v1  ;;  %v13374_v13 = vld [vmem:[#allocation7 + $0x6ec] ss:$20 sps:$4 sm:$0xff]  }
 0x1bc   : > { %v15345_v5 = vpack.c.bf16 %v1427_v30, %v1424_v6  ;;  %v1428_v8 = vmax.f32 %v1416_v49, 0.0  ;;  %v1408_v29 = vadd.f32 %v1402_v2, %v1379_v43  ;;  %v1388_v55 = vadd.f32 %v12855_v51, %v1215_v40  ;;  %v13363_v30 = vld [vmem:[#allocation7 + $0x4e0] ss:$20 sps:$4 sm:$0xff]  }
 0x1bd   : > { %v1365_v56 = vpop.f32.mrf.mxu1  ;;  %v4924_v10 = vor.u32 %v4923_v60, %v4922_v59  ;;  %v1426_v31 = vmax.f32 %v1414_v32, 0.0  ;;  %v1743_v14 = vor.u32 %v1742_v63, %v1738_v38  ;;  %v4915_v27 = vrot.slane %v1726_v1, 1  ;;  %v13368_v43 = vld [vmem:[#allocation7 + $0x714] ss:$20 sps:$4 sm:$0xff]  }
 0x1be   : > { %v15347_v62 = vpack.c.bf16 %v1428_v8, %v1425_v54  ;;  %v1382_v9 = vadd.f32 %v1365_v56, %v1209_v46  ;;  %v1733_v44 = vshll.u32 %v15345_v5, 16  ;;  %v1417_v47 = vadd.f32 %v1402_v2, %v1388_v55  ;;  %v13366_v54 = vld [vmem:[#allocation7 + $0x710] ss:$20 sps:$4 sm:$0xff]   ;;  %v13372_v1 = vld [vmem:[#allocation7 + $0x6e8] ss:$20 sps:$4 sm:$0xff]  }
 0x1bf   : > { %v1420_v3 = vmax.f32 %v1408_v29, 0.0  ;;  %v1761_v23 = vshrl.u32 %v15345_v5, 16  ;;  %v4916_v46 = vrot.slane %v1728_v52, 2  ;;  %v13371_v56 = vld [vmem:[#allocation7 + $0x4bc] ss:$20 sps:$4 sm:$0xff]  }
 0x1c0   : > { %v1411_v12 = vadd.f32 %v1402_v2, %v1382_v9  ;;  %v1745_v34 = vshll.u32 %v15347_v62, 16  ;;  %v1429_v7 = vmax.f32 %v1417_v47, 0.0  ;;  %v1735_v19 = vrot.slane %v1733_v44, 1 }
 0x1c1   : > { %v1765_v21 = vshrl.u32 %v15347_v62, 16  ;;  %v4918_v28 = vrot.slane %v1761_v23, 1  ;;  %v4919_v32 = vrot.slane %v1733_v44, 2  ;;  %v4917_v59 = vor.u32 %v4916_v46, %v4915_v27  ;;  %v13401_v27 = vld [vmem:[#allocation7 + $0x3f4] ss:$20 sps:$4 sm:$0xff]  }
 0x1c2   : > { %v1423_v11 = vmax.f32 %v1411_v12, 0.0  ;;  %v1747_v33 = vrot.slane %v1745_v34, 1  ;;  %v15353_v37 = vpack.c.bf16 %v1429_v7, %v1426_v31  ;;  %v15363_v41 = vsel %vm546_vm1, %v1731_v35, %v1735_v19  ;;  %v13404_v46 = vld [vmem:[#allocation7 + $0x3c8] ss:$20 sps:$4 sm:$0xff]  }
 0x1c3   : > { %v4925_v16 = vrot.slane %v1765_v21, 1  ;;  %v4926_v38 = vrot.slane %v1745_v34, 2  ;;  %v1763_v40 = vor.u32 %v1761_v23, %v1735_v19  ;;  %v15381_v47 = vor.u32 %v4919_v32, %v4918_v28  ;;  %v13369_v34 = vld [vmem:[#allocation7 + $0x4b8] ss:$20 sps:$4 sm:$0xff]   ;;  %v13375_v19 = vld [vmem:[#allocation7 + $0x490] ss:$20 sps:$4 sm:$0xff]  }
 0x1c4   : > { %v15356_v2 = vpack.c.bf16 %v1423_v11, %v1420_v3  ;;  %v15359_v53 = vsel %vm546_vm1, %v1743_v14, %v1747_v33  ;;  %v1767_v26 = vor.u32 %v1765_v21, %v1747_v33  ;;  %v1757_v45 = vshll.u32 %v15353_v37, 16  ;;  %v13377_v3 = vld [vmem:[#allocation7 + $0x494] ss:$20 sps:$4 sm:$0xff]   ;;  %v13380_v11 = vld [vmem:[#allocation7 + $0x6c4] ss:$20 sps:$4 sm:$0xff]  }
 0x1c5   : > { %2435 = vmatprep.mubr.bf16.mxu0 %v15359_v53  ;;  %v1769_v6 = vshrl.u32 %v15353_v37, 16  ;;  %v15375_v8 = vor.u32 %v4926_v38, %v4925_v16  ;;  %v15389_v12 = vsel %vm546_vm1, %v1763_v40, %v15195_v20  ;;  %v13378_v33 = vld [vmem:[#allocation7 + $0x6c0] ss:$20 sps:$4 sm:$0xff]   ;;  %v13381_v23 = vld [vmem:[#allocation7 + $0x468] ss:$20 sps:$4 sm:$0xff]  }
 0x1c6   : > { %2436 = vmatmul.mubr.bf16.vlgmr.msra.gmra.mxu0 %v15363_v41  ;;  %v15369_v17 = vsel %vm546_vm1, %v1767_v26, %v15195_v20  ;;  %v1750_v48 = vshrl.u32 %v15356_v2, 16  ;;  %v1752_v25 = vshll.u32 %v15356_v2, 16  ;;  %v1759_v51 = vrot.slane %v1757_v45, 1  ;;  %v13384_v26 = vld [vmem:[#allocation7 + $0x698] ss:$20 sps:$4 sm:$0xff]  }
 0x1c7   : > { %2563 = vmatpush1.bf16.msra.mxu0 %v13354_v22  ;;  %2445 = vmatprep.mubr.bf16.mxu0 %v15369_v17  ;;  %v4932_v9 = vrot.slane %v1769_v6, 1  ;;  %v15379_v63 = vsel %vm1044_vm4, %v4924_v10, %v15375_v8  ;;  %v4933_v44 = vrot.slane %v1757_v45, 2  ;;  %v15393_v10 = vsel %vm1044_vm4, %v4917_v59, %v15381_v47  ;;  %v13383_v22 = vld [vmem:[#allocation7 + $0x46c] ss:$20 sps:$4 sm:$0xff]   ;;  %v13389_v45 = vld [vmem:[#allocation7 + $0x444] ss:$20 sps:$4 sm:$0xff]  }
 0x1c8   : > { %2564 = vmatprep.subr.bf16.mxu0 %v13362_v39  ;;  %v1754_v49 = vrot.slane %v1752_v25, 1  ;;  %v4929_v29 = vrot.slane %v1750_v48, 1  ;;  %v4930_v60 = vrot.slane %v1752_v25, 2  ;;  %v1771_v21 = vor.u32 %v1769_v6, %v1759_v51  ;;  %v13386_v39 = vld [vmem:[#allocation7 + $0x69c] ss:$20 sps:$4 sm:$0xff]  }
 0x1c9   : > { %v15396_v7 = vor.u32 %v4933_v44, %v4932_v9  ;;  %v13387_v16 = vld [vmem:[#allocation7 + $0x440] ss:$20 sps:$4 sm:$0xff]   ;;  %v13395_v25 = vld [vmem:[#allocation7 + $0x41c] ss:$20 sps:$4 sm:$0xff]   ;;  %v13393_v6 = vld [vmem:[#allocation7 + $0x418] ss:$20 sps:$4 sm:$0xff]  }
 0x1ca   : > { %v1755_v55 = vor.u32 %v1754_v49, %v1750_v48  ;;  %v4931_v31 = vor.u32 %v4930_v60, %v4929_v29  ;;  %v15406_v35 = vsel %vm546_vm1, %v1771_v21, %v15195_v20  ;;  %v13390_v48 = vld [vmem:[#allocation7 + $0x670] ss:$20 sps:$4 sm:$0xff]   ;;  %v13398_v28 = vld [vmem:[#allocation7 + $0x64c] ss:$20 sps:$4 sm:$0xff]   ;;  %v13396_v38 = vld [vmem:[#allocation7 + $0x648] ss:$20 sps:$4 sm:$0xff]  }
 0x1cb   : > { %2565 = vmatpush1.bf16.msra.mxu0 %v13360_v18  ;;  %v13392_v18 = vld [vmem:[#allocation7 + $0x674] ss:$20 sps:$4 sm:$0xff]   ;;  %v13406_v40 = vld [vmem:[#allocation7 + $0x3cc] ss:$20 sps:$4 sm:$0xff]   ;;  %v13411_v32 = vld [vmem:[#allocation7 + $0x624] ss:$20 sps:$4 sm:$0xff]  }
 0x1cc   : > { %v15384_v52 = vsel %vm546_vm1, %v1755_v55, %v1759_v51  ;;  %2566 = vmatprep.subr.bf16.mxu0 %v13368_v43  ;;  %v15401_v14 = vsel %vm1044_vm4, %v4931_v31, %v15396_v7  ;;  %v13402_v49 = vld [vmem:[#allocation7 + $0x628] ss:$20 sps:$4 sm:$0xff]   ;;  %v13407_v51 = vld [vmem:[#allocation7 + $0x600] ss:$20 sps:$4 sm:$0xff]   ;;  %v13412_v29 = vld [vmem:[#allocation7 + $0x5d8] ss:$20 sps:$4 sm:$0xff]  }
 0x1cd   : > { %2489 = vmatmul.mubr.bf16.vlgmr.msra.gmra.mxu1 %v15384_v52  ;;  %v13403_v43 = vld [vmem:[#allocation7 + $0x4e8] ss:$20 sps:$4 sm:$0xff]   ;;  %v13409_v55 = vld [vmem:[#allocation7 + $0x620] ss:$20 sps:$4 sm:$0xff]   ;;  %v13414_v59 = vld [vmem:[#allocation7 + $0x5f8] ss:$20 sps:$4 sm:$0xff]  }
 0x1ce   : > { %2510 = vmatpush1.bf16.msra.mxu1 %v13363_v30  ;;  %2446 = vmatmul.mubr.bf16.gmra.mxu0 %v15389_v12  ;;  %v13399_v30 = vld [vmem:[#allocation7 + $0x3f0] ss:$20 sps:$4 sm:$0xff]   ;;  %v13421_v31 = vld [vmem:[#allocation7 + $0x5d4] ss:$20 sps:$4 sm:$0xff]  }
 0x1cf   : > { %2567 = vmatpush1.bf16.msra.mxu0 %v13366_v54  ;;  %2511 = vmatprep.subr.bf16.mxu1 %v13371_v56  ;;  %v13408_v54 = vld [vmem:[#allocation7 + $0x4c0] ss:$20 sps:$4 sm:$0xff]   ;;  %v13413_v56 = vld [vmem:[#allocation7 + $0x498] ss:$20 sps:$4 sm:$0xff]   ;;  %v13416_v60 = vld [vmem:[#allocation7 + $0x5fc] ss:$20 sps:$4 sm:$0xff]  }
 0x1d0   : > { %2568 = vmatprep.subr.bf16.mxu0 %v13374_v13  ;;  %2498 = vmatprep.mubr.bf16.mxu1 %v16603_v0  ;;  %v13417_v9 = vld [vmem:[#allocation7 + $0x5b0] ss:$20 sps:$4 sm:$0xff]   ;;  %v13427_v21 = vld [vmem:[#allocation7 + $0x560] ss:$20 sps:$4 sm:$0xff]  }
 0x1d1   : > { %2594 = vmatprep.mubr.bf16.mxu0 %v16603_v0  ;;  %v13418_v13 = vld [vmem:[#allocation7 + $0x470] ss:$20 sps:$4 sm:$0xff]  }
 0x1d2   : > { %2512 = vmatpush1.bf16.msra.mxu1 %v13369_v34  ;;  %v13419_v44 = vld [vmem:[#allocation7 + $0x5d0] ss:$20 sps:$4 sm:$0xff]   ;;  %v13422_v34 = vld [vmem:[#allocation7 + $0x588] ss:$20 sps:$4 sm:$0xff]  }
 0x1d3   : > { %2569 = vmatpush1.bf16.msra.mxu0 %v13372_v1  ;;  %2513 = vmatprep.subr.bf16.mxu1 %v13377_v3  ;;  %v13423_v1 = vld [vmem:[#allocation7 + $0x448] ss:$20 sps:$4 sm:$0xff]   ;;  %v13426_v3 = vld [vmem:[#allocation7 + $0x5ac] ss:$20 sps:$4 sm:$0xff]  }
 0x1d4   : > { %2570 = vmatprep.subr.bf16.mxu0 %v13380_v11  ;;  %v13428_v11 = vld [vmem:[#allocation7 + $0x420] ss:$20 sps:$4 sm:$0xff]  }
 0x1d5   : > { %2499 = vmatmul.mubr.bf16.gmra.mxu1 %v15406_v35 }
 0x1d6   : > { %2514 = vmatpush1.bf16.msra.mxu1 %v13375_v19  ;;  %2541 = vmatprep.mubr.bf16.mxu1 %v15359_v53  ;;  %v13424_v19 = vld [vmem:[#allocation7 + $0x5a8] ss:$20 sps:$4 sm:$0xff]  }
 0x1d7   : > { %2571 = vmatpush1.bf16.msra.mxu0 %v13378_v33  ;;  %2515 = vmatprep.subr.bf16.mxu1 %v13383_v22  ;;  %v13431_v33 = vld [vmem:[#allocation7 + $0x584] ss:$20 sps:$4 sm:$0xff]   ;;  %v13429_v22 = vld [vmem:[#allocation7 + $0x580] ss:$20 sps:$4 sm:$0xff]  }
 0x1d8   : > { %2572 = vmatprep.subr.bf16.mxu0 %v13386_v39  ;;  %v13433_v39 = vld [vmem:[#allocation7 + $0x3f8] ss:$20 sps:$4 sm:$0xff]  }
 0x1da   : > { %2516 = vmatpush1.bf16.msra.mxu1 %v13381_v23  ;;  %v13436_v23 = vld [vmem:[#allocation7 + $0x55c] ss:$20 sps:$4 sm:$0xff]  }
 0x1db   : > { %2573 = vmatpush1.bf16.msra.mxu0 %v13384_v26  ;;  %2517 = vmatprep.subr.bf16.mxu1 %v13389_v45  ;;  %v13434_v26 = vld [vmem:[#allocation7 + $0x558] ss:$20 sps:$4 sm:$0xff]   ;;  %v13437_v45 = vld [vmem:[#allocation7 + $0x510] ss:$20 sps:$4 sm:$0xff]  }
 0x1dc   : > { %2574 = vmatprep.subr.bf16.mxu0 %v13392_v18  ;;  %v13441_v18 = vld [vmem:[#allocation7 + $0x534] ss:$20 sps:$4 sm:$0xff]  }
 0x1de   : > { %2518 = vmatpush1.bf16.msra.mxu1 %v13387_v16  ;;  %v13438_v16 = vld [vmem:[#allocation7 + $0x3d0] ss:$20 sps:$4 sm:$0xff]  }
 0x1df   : > { %2575 = vmatpush1.bf16.msra.mxu0 %v13390_v48  ;;  %2519 = vmatprep.subr.bf16.mxu1 %v13395_v25  ;;  %v13444_v48 = vld [vmem:[#allocation7 + $0x11c] ss:$20 sps:$4 sm:$0xff]  }
 0x1e0   : > { %2576 = vmatprep.subr.bf16.mxu0 %v13398_v28  ;;  %v13439_v25 = vld [vmem:[#allocation7 + $0x530] ss:$20 sps:$4 sm:$0xff]   ;;  %v13445_v28 = vld [vmem:[#allocation7 + $0x508] ss:$20 sps:$4 sm:$0xff]  }
 0x1e2   : > { %2520 = vmatpush1.bf16.msra.mxu1 %v13393_v6  ;;  %v13442_v6 = vld [vmem:[#allocation7 + $0x118] ss:$20 sps:$4 sm:$0xff]  }
 0x1e3   : > { %2577 = vmatpush1.bf16.msra.mxu0 %v13396_v38  ;;  %2521 = vmatprep.subr.bf16.mxu1 %v13401_v27  ;;  %v13447_v38 = vld [vmem:[#allocation7 + $0x50c] ss:$20 sps:$4 sm:$0xff]   ;;  %v13450_v27 = vld [vmem:[#allocation7 + $0xf4] ss:$20 sps:$4 sm:$0xff]  }
 0x1e4   : > { %12447 = vmatprep.subr.bf16.mxu0 %v13402_v49  ;;  %v13451_v49 = vld [vmem:[#allocation7 + $0x768] ss:$20 sps:$4 sm:$0xff]  }
 0x1e6   : > { %2522 = vmatpush1.bf16.msra.mxu1 %v13399_v30  ;;  %2595 = vmatmul.mubr.bf16.vlgmr.msra.gmra.mxu0 %v15384_v52  ;;  %v13448_v30 = vld [vmem:[#allocation7 + $0xf0] ss:$20 sps:$4 sm:$0xff]  }
 0x1e7   : > { %12448 = vmatpush3.bf16.msra.mxu0 %v13403_v43  ;;  %2523 = vmatprep.subr.bf16.mxu1 %v13406_v40  ;;  %v13454_v43 = vld [vmem:[#allocation7 + $0xcc] ss:$20 sps:$4 sm:$0xff]   ;;  %v13452_v40 = vld [vmem:[#allocation7 + $0xc8] ss:$20 sps:$4 sm:$0xff]  }
 0x1e8   : > { %12449 = vmatprep.subr.bf16.mxu0 %v13407_v51  ;;  %2604 = vmatprep.mubr.bf16.mxu0 %v16603_v0  ;;  %v13458_v51 = vld [vmem:[#allocation7 + $0xa4] ss:$20 sps:$4 sm:$0xff]  }
 0x1ea   : > { %2524 = vmatpush1.bf16.msra.mxu1 %v13404_v46  ;;  %v13455_v46 = vld [vmem:[#allocation7 + $0x740] ss:$20 sps:$4 sm:$0xff]  }
 0x1eb   : > { %12450 = vmatpush3.bf16.msra.mxu0 %v13408_v54  ;;  %2525 = vmatprep.subr.bf16.mxu1 %v13411_v32  ;;  %v13456_v54 = vld [vmem:[#allocation7 + $0xa0] ss:$20 sps:$4 sm:$0xff]   ;;  %v13459_v32 = vld [vmem:[#allocation7 + $0x718] ss:$20 sps:$4 sm:$0xff]  }
 0x1ec   : > { %12451 = vmatprep.subr.bf16.mxu0 %v13412_v29  ;;  %v13462_v29 = vld [vmem:[#allocation7 + $0x7c] ss:$20 sps:$4 sm:$0xff]  }
 0x1ee   : > { %2526 = vmatpush2.bf16.msra.mxu1 %v13409_v55  ;;  %2605 = vmatmul.mubr.bf16.gmra.mxu0 %v15406_v35  ;;  %v13460_v55 = vld [vmem:[#allocation7 + $0x78] ss:$20 sps:$4 sm:$0xff]  }
 0x1ef   : > { %12452 = vmatpush3.bf16.msra.mxu0 %v13413_v56  ;;  %2647 = vmatprep.mubr.bf16.mxu0 %v15359_v53  ;;  %v13432_v53 = vld [vmem:[#allocation7 + $0x538] ss:$20 sps:$4 sm:$0xff]   ;;  %v13463_v56 = vld [vmem:[#allocation7 + $0x6f0] ss:$20 sps:$4 sm:$0xff]  }
 0x1f0   : > { %2527 = vmatprep.subr.bf16.mxu1 %v13416_v60  ;;  %12453 = vmatprep.subr.bf16.mxu0 %v13417_v9  ;;  %v13470_v60 = vld [vmem:[#allocation7 + $0x2c] ss:$20 sps:$4 sm:$0xff]   ;;  %v13468_v9 = vld [vmem:[#allocation7 + $0x28] ss:$20 sps:$4 sm:$0xff]  }
 0x1f2   : > { %2528 = vmatpush2.bf16.msra.mxu1 %v13414_v59  ;;  %v13466_v59 = vld [vmem:[#allocation7 + $0x54] ss:$20 sps:$4 sm:$0xff]  }
 0x1f3   : > { %12454 = vmatpush3.bf16.msra.mxu0 %v13418_v13  ;;  %2529 = vmatprep.subr.bf16.mxu1 %v13421_v31  ;;  %v13471_v13 = vld [vmem:[#allocation7 + $0x6a0] ss:$20 sps:$4 sm:$0xff]   ;;  %v13474_v31 = vld [vmem:[#allocation7 + $0x4] ss:$20 sps:$4 sm:$0xff]  }
 0x1f4   : > { %12455 = vmatprep.subr.bf16.mxu0 %v13422_v34  ;;  %v13476_v34 = vld [vmem:[#allocation7 + $0x258] ss:$20 sps:$4 sm:$0xff]  }
 0x1f6   : > { %2530 = vmatpush2.bf16.msra.mxu1 %v13419_v44  ;;  %v13472_v44 = vld [vmem:[#allocation7] ss:$20 sps:$4 sm:$0xff]  }
 0x1f7   : > { %12456 = vmatpush3.bf16.msra.mxu0 %v13423_v1  ;;  %2531 = vmatprep.subr.bf16.mxu1 %v13426_v3  ;;  %v13479_v1 = vld [vmem:[#allocation7 + $0x650] ss:$20 sps:$4 sm:$0xff]   ;;  %v13482_v3 = vld [vmem:[#allocation7 + $0x234] ss:$20 sps:$4 sm:$0xff]  }
 0x1f8   : > { %12457 = vmatprep.subr.bf16.mxu0 %v13427_v21  ;;  %v13485_v21 = vld [vmem:[#allocation7 + $0x39c] ss:$20 sps:$4 sm:$0xff]  }
 0x1fa   : > { %2532 = vmatpush2.bf16.msra.mxu1 %v13424_v19  ;;  %v13480_v19 = vld [vmem:[#allocation7 + $0x230] ss:$20 sps:$4 sm:$0xff]  }
 0x1fb   : > { %12458 = vmatpush3.bf16.msra.mxu0 %v13428_v11  ;;  %2533 = vmatprep.subr.bf16.mxu1 %v13431_v33  ;;  %v13488_v11 = vld [vmem:[#allocation7 + $0x20c] ss:$20 sps:$4 sm:$0xff]  }
 0x1fc   : > { %12459 = vmatprep.subr.bf16.mxu0 %v13432_v53  ;;  %v13483_v33 = vld [vmem:[#allocation7 + $0x398] ss:$20 sps:$4 sm:$0xff]   ;;  %v13491_v53 = vld [vmem:[#allocation7 + $0x374] ss:$20 sps:$4 sm:$0xff]  }
 0x1fe   : > { %2534 = vmatpush2.bf16.msra.mxu1 %v13429_v22  ;;  %v13486_v22 = vld [vmem:[#allocation7 + $0x208] ss:$20 sps:$4 sm:$0xff]  }
 0x1ff   : > { %12460 = vmatpush3.bf16.msra.mxu0 %v13433_v39  ;;  %2535 = vmatprep.subr.bf16.mxu1 %v13436_v23  ;;  %v13494_v39 = vld [vmem:[#allocation7 + $0x1e4] ss:$20 sps:$4 sm:$0xff]  }
 0x200   : > { %12461 = vmatprep.subr.bf16.mxu0 %v13437_v45  ;;  %v13489_v23 = vld [vmem:[#allocation7 + $0x370] ss:$20 sps:$4 sm:$0xff]   ;;  %v13497_v45 = vld [vmem:[#allocation7 + $0x34c] ss:$20 sps:$4 sm:$0xff]  }
 0x202   : > { %2536 = vmatpush2.bf16.msra.mxu1 %v13434_v26  ;;  %v13492_v26 = vld [vmem:[#allocation7 + $0x1e0] ss:$20 sps:$4 sm:$0xff]  }
 0x203   : > { %12462 = vmatpush3.bf16.msra.mxu0 %v13438_v16  ;;  %2537 = vmatprep.subr.bf16.mxu1 %v13441_v18  ;;  %v13500_v16 = vld [vmem:[#allocation7 + $0x1bc] ss:$20 sps:$4 sm:$0xff]  }
 0x204   : > { %3337 = vmatprep.subr.bf16.mxu0 %v13444_v48  ;;  %v13495_v18 = vld [vmem:[#allocation7 + $0x348] ss:$20 sps:$4 sm:$0xff]   ;;  %v13498_v48 = vld [vmem:[#allocation7 + $0x1b8] ss:$20 sps:$4 sm:$0xff]  }
 0x206   : > { %2538 = vmatpush2.bf16.msra.mxu1 %v13439_v25  ;;  %2648 = vmatmul.mubr.bf16.vlgmr.msra.gmra.mxu0 %v15363_v41  ;;  %v13503_v25 = vld [vmem:[#allocation7 + $0x324] ss:$20 sps:$4 sm:$0xff]  }
 0x207   : > { %2655 = vmatprep.mubr.bf16.mxu0 %v15369_v17  ;;  %3338 = vmatpush1.bf16.msra.mxu0 %v13442_v6  ;;  %v13506_v6 = vld [vmem:[#allocation7 + $0x194] ss:$20 sps:$4 sm:$0xff]  }
 0x208   : > { %2539 = vmatprep.subr.bf16.mxu1 %v13447_v38  ;;  %3339 = vmatprep.subr.bf16.mxu0 %v13450_v27  ;;  %v13509_v38 = vld [vmem:[#allocation7 + $0x2fc] ss:$20 sps:$4 sm:$0xff]   ;;  %v13512_v27 = vld [vmem:[#allocation7 + $0x16c] ss:$20 sps:$4 sm:$0xff]  }
 0x20a   : > { %2540 = vmatpush2.bf16.msra.mxu1 %v13445_v28  ;;  %v13501_v28 = vld [vmem:[#allocation7 + $0x320] ss:$20 sps:$4 sm:$0xff]  }
 0x20b   : > { %3340 = vmatpush1.bf16.msra.mxu0 %v13448_v30  ;;  %12856 = vmatprep.subr.bf16.mxu1 %v13451_v49  ;;  %v13507_v30 = vld [vmem:[#allocation7 + $0x2f8] ss:$20 sps:$4 sm:$0xff]  }
 0x20c   : > { %3341 = vmatprep.subr.bf16.mxu0 %v13454_v43  ;;  %v13515_v43 = vld [vmem:[#allocation7 + $0x2d4] ss:$20 sps:$4 sm:$0xff]  }
 0x20d   : > { %2542 = vmatmul.mubr.bf16.vlgmr.msra.gmra.mxu1 %v15363_v41  ;;  %v13464_v41 = vld [vmem:[#allocation7 + $0x50] ss:$20 sps:$4 sm:$0xff]  }
 0x20e   : > { %2551 = vmatprep.mubr.bf16.mxu1 %v15369_v17  ;;  %2656 = vmatmul.mubr.bf16.gmra.mxu0 %v15389_v12  ;;  %v13467_v17 = vld [vmem:[#allocation7 + $0x6c8] ss:$20 sps:$4 sm:$0xff]  }
 0x20f   : > { %12857 = vmatpush3.bf16.msra.mxu1 %v13451_v49  ;;  %3342 = vmatpush1.bf16.msra.mxu0 %v13452_v40  ;;  %v13510_v49 = vld [vmem:[#allocation7 + $0x168] ss:$20 sps:$4 sm:$0xff]   ;;  %v13518_v40 = vld [vmem:[#allocation7 + $0x144] ss:$20 sps:$4 sm:$0xff]  }
 0x210   : > { %3369 = vmatprep.mubr.bf16.mxu0 %v15333_v24  ;;  %12858 = vmatprep.subr.bf16.mxu1 %v13455_v46 }
 0x211   : > { %3343 = vmatprep.subr.bf16.mxu0 %v13458_v51  ;;  %v13516_v51 = vld [vmem:[#allocation7 + $0x140] ss:$20 sps:$4 sm:$0xff]  }
 0x213   : > { %12859 = vmatpush3.bf16.msra.mxu1 %v13455_v46  ;;  %3344 = vmatpush1.bf16.msra.mxu0 %v13456_v54  ;;  %v13513_v46 = vld [vmem:[#allocation7 + $0x2d0] ss:$20 sps:$4 sm:$0xff]   ;;  %v13521_v54 = vld [vmem:[#allocation7 + $0x2ac] ss:$20 sps:$4 sm:$0xff]  }
 0x214   : > { %12860 = vmatprep.subr.bf16.mxu1 %v13459_v32  ;;  %3345 = vmatprep.subr.bf16.mxu0 %v13462_v29  ;;  %v13519_v29 = vld [vmem:[#allocation7 + $0x2a8] ss:$20 sps:$4 sm:$0xff]  }
 0x215   : > { %2552 = vmatmul.mubr.bf16.gmra.mxu1 %v15389_v12  ;;  %v13475_v12 = vld [vmem:[#allocation7 + $0x678] ss:$20 sps:$4 sm:$0xff]  }
 0x216   : > { %12872 = vmatprep.mubr.bf16.mxu1 %v15384_v52  ;;  %v13478_v52 = vld [vmem:[#allocation7 + $0x25c] ss:$20 sps:$4 sm:$0xff]  }
 0x217   : > { %12861 = vmatpush3.bf16.msra.mxu1 %v13459_v32  ;;  %3346 = vmatpush1.bf16.msra.mxu0 %v13460_v55  ;;  %v13524_v32 = vld [vmem:[#allocation7 + $0x3a4] ss:$20 sps:$4 sm:$0xff]   ;;  %v13522_v55 = vld [vmem:[#allocation7 + $0x3a0] ss:$20 sps:$4 sm:$0xff]  }
 0x218   : > { %12862 = vmatprep.subr.bf16.mxu1 %v13463_v56  ;;  %3347 = vmatprep.subr.bf16.mxu0 %v13466_v59  ;;  %v13530_v59 = vld [vmem:[#allocation7 + $0x37c] ss:$20 sps:$4 sm:$0xff]  }
 0x21b   : > { %12863 = vmatpush3.bf16.msra.mxu1 %v13463_v56  ;;  %3348 = vmatpush1.bf16.msra.mxu0 %v13464_v41  ;;  %v13527_v56 = vld [vmem:[#allocation7 + $0x284] ss:$20 sps:$4 sm:$0xff]   ;;  %v13525_v41 = vld [vmem:[#allocation7 + $0x280] ss:$20 sps:$4 sm:$0xff]  }
 0x21c   : > { %12864 = vmatprep.subr.bf16.mxu1 %v13467_v17  ;;  %3349 = vmatprep.subr.bf16.mxu0 %v13470_v60  ;;  %v13533_v60 = vld [vmem:[#allocation7 + $0x124] ss:$20 sps:$4 sm:$0xff]  }
 0x21f   : > { %12865 = vmatpush3.bf16.msra.mxu1 %v13467_v17  ;;  %3350 = vmatpush1.bf16.msra.mxu0 %v13468_v9  ;;  %v13528_v17 = vld [vmem:[#allocation7 + $0x378] ss:$20 sps:$4 sm:$0xff]   ;;  %v13531_v9 = vld [vmem:[#allocation7 + $0x120] ss:$20 sps:$4 sm:$0xff]  }
 0x220   : > { %12866 = vmatprep.subr.bf16.mxu1 %v13471_v13  ;;  %3351 = vmatprep.subr.bf16.mxu0 %v13474_v31  ;;  %v13534_v31 = vld [vmem:[#allocation7 + $0x350] ss:$20 sps:$4 sm:$0xff]  }
 0x223   : > { %12867 = vmatpush3.bf16.msra.mxu1 %v13471_v13  ;;  %3352 = vmatpush1.bf16.msra.mxu0 %v13472_v44  ;;  %v13536_v13 = vld [vmem:[#allocation7 + $0x354] ss:$20 sps:$4 sm:$0xff]   ;;  %v13539_v44 = vld [vmem:[#allocation7 + $0xfc] ss:$20 sps:$4 sm:$0xff]  }
 0x224   : > { %12868 = vmatprep.subr.bf16.mxu1 %v13475_v12  ;;  %3353 = vmatprep.subr.bf16.mxu0 %v13478_v52  ;;  %v13537_v52 = vld [vmem:[#allocation7 + $0xf8] ss:$20 sps:$4 sm:$0xff]  }
 0x227   : > { %12869 = vmatpush3.bf16.msra.mxu1 %v13475_v12  ;;  %3354 = vmatpush2.bf16.msra.mxu0 %v13476_v34  ;;  %v13542_v12 = vld [vmem:[#allocation7 + $0x32c] ss:$20 sps:$4 sm:$0xff]   ;;  %v13540_v34 = vld [vmem:[#allocation7 + $0x328] ss:$20 sps:$4 sm:$0xff]  }
 0x228   : > { %12870 = vmatprep.subr.bf16.mxu1 %v13479_v1  ;;  %3355 = vmatprep.subr.bf16.mxu0 %v13482_v3  ;;  %v13548_v3 = vld [vmem:[#allocation7 + $0x304] ss:$20 sps:$4 sm:$0xff]  }
 0x22b   : > { %12871 = vmatpush3.bf16.msra.mxu1 %v13479_v1  ;;  %3356 = vmatpush2.bf16.msra.mxu0 %v13480_v19  ;;  %v13545_v1 = vld [vmem:[#allocation7 + $0xd4] ss:$20 sps:$4 sm:$0xff]   ;;  %v13543_v19 = vld [vmem:[#allocation7 + $0xd0] ss:$20 sps:$4 sm:$0xff]  }
 0x22c   : > { %3390 = vmatprep.subr.bf16.mxu1 %v13485_v21  ;;  %3357 = vmatprep.subr.bf16.mxu0 %v13488_v11  ;;  %v13546_v21 = vld [vmem:[#allocation7 + $0x300] ss:$20 sps:$4 sm:$0xff]  }
 0x22d   : > { %v13551_v11 = vld [vmem:[#allocation7 + $0xac] ss:$20 sps:$4 sm:$0xff]  }
 0x22e   : > { %12873 = vmatmul.mubr.bf16.vlgmr.msra.gmra.mxu1 %v15406_v35  ;;  %v13504_v35 = vld [vmem:[#allocation7 + $0x190] ss:$20 sps:$4 sm:$0xff]  }
 0x22f   : > { %3391 = vmatpush1.bf16.msra.mxu1 %v13483_v33  ;;  %3358 = vmatpush2.bf16.msra.mxu0 %v13486_v22  ;;  %v13554_v33 = vld [vmem:[#allocation7 + $0x2dc] ss:$20 sps:$4 sm:$0xff]  }
 0x230   : > { %3392 = vmatprep.subr.bf16.mxu1 %v13491_v53  ;;  %3359 = vmatprep.subr.bf16.mxu0 %v13494_v39  ;;  %v13549_v22 = vld [vmem:[#allocation7 + $0xa8] ss:$20 sps:$4 sm:$0xff]   ;;  %v13552_v53 = vld [vmem:[#allocation7 + $0x2d8] ss:$20 sps:$4 sm:$0xff]  }
 0x231   : > { %3422 = vmatprep.mubr.bf16.mxu1 %v16603_v0  ;;  %v13557_v39 = vld [vmem:[#allocation7 + $0x84] ss:$20 sps:$4 sm:$0xff]  }
 0x233   : > { %3393 = vmatpush1.bf16.msra.mxu1 %v13489_v23  ;;  %3360 = vmatpush2.bf16.msra.mxu0 %v13492_v26  ;;  %v13560_v23 = vld [vmem:[#allocation7 + $0x2b4] ss:$20 sps:$4 sm:$0xff]  }
 0x234   : > { %3394 = vmatprep.subr.bf16.mxu1 %v13497_v45  ;;  %3361 = vmatprep.subr.bf16.mxu0 %v13500_v16  ;;  %v13555_v26 = vld [vmem:[#allocation7 + $0x80] ss:$20 sps:$4 sm:$0xff]   ;;  %v13558_v45 = vld [vmem:[#allocation7 + $0x2b0] ss:$20 sps:$4 sm:$0xff]  }
 0x235   : > { %v13563_v16 = vld [vmem:[#allocation7 + $0x5c] ss:$20 sps:$4 sm:$0xff]  }
 0x237   : > { %3395 = vmatpush1.bf16.msra.mxu1 %v13495_v18  ;;  %3362 = vmatpush2.bf16.msra.mxu0 %v13498_v48  ;;  %v13561_v18 = vld [vmem:[#allocation7 + $0x58] ss:$20 sps:$4 sm:$0xff]  }
 0x238   : > { %3396 = vmatprep.subr.bf16.mxu1 %v13503_v25  ;;  %3363 = vmatprep.subr.bf16.mxu0 %v13506_v6  ;;  %v13566_v48 = vld [vmem:[#allocation7 + $0x28c] ss:$20 sps:$4 sm:$0xff]   ;;  %v13564_v25 = vld [vmem:[#allocation7 + $0x288] ss:$20 sps:$4 sm:$0xff]  }
 0x239   : > { %v13569_v6 = vld [vmem:[#allocation7 + $0x34] ss:$20 sps:$4 sm:$0xff]  }
 0x23b   : > { %3397 = vmatpush1.bf16.msra.mxu1 %v13501_v28  ;;  %3364 = vmatpush2.bf16.msra.mxu0 %v13504_v35  ;;  %v13567_v28 = vld [vmem:[#allocation7 + $0x30] ss:$20 sps:$4 sm:$0xff]   ;;  %v13570_v35 = vld [vmem:[#allocation7 + $0x268] ss:$20 sps:$4 sm:$0xff]  }
 0x23c   : > { %3398 = vmatprep.subr.bf16.mxu1 %v13509_v38  ;;  %3365 = vmatprep.subr.bf16.mxu0 %v13512_v27  ;;  %v13571_v38 = vld [vmem:[#allocation7 + $0x128] ss:$20 sps:$4 sm:$0xff]   ;;  %v13574_v27 = vld [vmem:[#allocation7 + $0xc] ss:$20 sps:$4 sm:$0xff]  }
 0x23f   : > { %3399 = vmatpush1.bf16.msra.mxu1 %v13507_v30  ;;  %3366 = vmatpush2.bf16.msra.mxu0 %v13510_v49  ;;  %v13572_v30 = vld [vmem:[#allocation7 + $0x8] ss:$20 sps:$4 sm:$0xff]   ;;  %v13575_v49 = vld [vmem:[#allocation7 + $0x240] ss:$20 sps:$4 sm:$0xff]  }
 0x240   : > { %3400 = vmatprep.subr.bf16.mxu1 %v13515_v43  ;;  %3367 = vmatprep.subr.bf16.mxu0 %v13518_v40  ;;  %v13576_v43 = vld [vmem:[#allocation7 + $0x100] ss:$20 sps:$4 sm:$0xff]   ;;  %v13579_v40 = vld [vmem:[#allocation7 + $0x264] ss:$20 sps:$4 sm:$0xff]  }
 0x243   : > { %3401 = vmatpush1.bf16.msra.mxu1 %v13513_v46  ;;  %3368 = vmatpush2.bf16.msra.mxu0 %v13516_v51  ;;  %v13577_v46 = vld [vmem:[#allocation7 + $0x260] ss:$20 sps:$4 sm:$0xff]   ;;  %v13580_v51 = vld [vmem:[#allocation7 + $0x218] ss:$20 sps:$4 sm:$0xff]  }
 0x244   : > { %3402 = vmatprep.subr.bf16.mxu1 %v13521_v54  ;;  %3496 = vmatprep.subr.bf16.mxu0 %v13524_v32  ;;  %v13581_v54 = vld [vmem:[#allocation7 + $0xd8] ss:$20 sps:$4 sm:$0xff]   ;;  %v13584_v32 = vld [vmem:[#allocation7 + $0x23c] ss:$20 sps:$4 sm:$0xff]  }
 0x246   : > { %3370 = vmatmul.mubr.bf16.vlgmr.msra.gmra.mxu0 %v15338_v15 }
 0x247   : > { %3403 = vmatpush1.bf16.msra.mxu1 %v13519_v29  ;;  %3379 = vmatprep.mubr.bf16.mxu0 %v15347_v62  ;;  %v13585_v29 = vld [vmem:[#allocation7 + $0x1f0] ss:$20 sps:$4 sm:$0xff]  }
 0x248   : > { %3497 = vmatpush1.bf16.msra.mxu0 %v13522_v55  ;;  %3404 = vmatprep.subr.bf16.mxu1 %v13527_v56  ;;  %v13582_v55 = vld [vmem:[#allocation7 + $0x238] ss:$20 sps:$4 sm:$0xff]   ;;  %v13586_v56 = vld [vmem:[#allocation7 + $0xb0] ss:$20 sps:$4 sm:$0xff]  }
 0x249   : > { %3498 = vmatprep.subr.bf16.mxu0 %v13530_v59  ;;  %v13589_v59 = vld [vmem:[#allocation7 + $0x214] ss:$20 sps:$4 sm:$0xff]  }
 0x24b   : > { %3405 = vmatpush1.bf16.msra.mxu1 %v13525_v41  ;;  %v13590_v41 = vld [vmem:[#allocation7 + $0x1c8] ss:$20 sps:$4 sm:$0xff]  }
 0x24c   : > { %3499 = vmatpush1.bf16.msra.mxu0 %v13528_v17  ;;  %3443 = vmatprep.subr.bf16.mxu1 %v13533_v60  ;;  %v13587_v17 = vld [vmem:[#allocation7 + $0x210] ss:$20 sps:$4 sm:$0xff]   ;;  %v13591_v60 = vld [vmem:[#allocation7 + $0x88] ss:$20 sps:$4 sm:$0xff]  }
 0x24d   : > { %3500 = vmatprep.subr.bf16.mxu0 %v13536_v13  ;;  %v13592_v13 = vld [vmem:[#allocation7 + $0x1e8] ss:$20 sps:$4 sm:$0xff]  }
 0x24e   : > { %3423 = vmatmul.mubr.bf16.vlgmr.msra.gmra.mxu1 %v15356_v2  ;;  %3380 = vmatmul.mubr.bf16.gmra.mxu0 %v15345_v5 }
 0x24f   : > { %3444 = vmatpush1.bf16.msra.mxu1 %v13531_v9  ;;  %3432 = vmatprep.mubr.bf16.mxu1 %v16603_v0  ;;  %v13594_v9 = vld [vmem:[#allocation7 + $0x1ec] ss:$20 sps:$4 sm:$0xff]  }
 0x250   : > { %3501 = vmatpush1.bf16.msra.mxu0 %v13534_v31  ;;  %3445 = vmatprep.subr.bf16.mxu1 %v13539_v44  ;;  %v13595_v31 = vld [vmem:[#allocation7 + $0x1a0] ss:$20 sps:$4 sm:$0xff]  }
 0x251   : > { %3502 = vmatprep.subr.bf16.mxu0 %v13542_v12  ;;  %3528 = vmatprep.mubr.bf16.mxu0 %v16603_v0  ;;  %v13596_v44 = vld [vmem:[#allocation7 + $0x60] ss:$20 sps:$4 sm:$0xff]   ;;  %v13599_v12 = vld [vmem:[#allocation7 + $0x1c4] ss:$20 sps:$4 sm:$0xff]  }
 0x253   : > { %3446 = vmatpush1.bf16.msra.mxu1 %v13537_v52  ;;  %v13597_v52 = vld [vmem:[#allocation7 + $0x1c0] ss:$20 sps:$4 sm:$0xff]  }
 0x254   : > { %3503 = vmatpush1.bf16.msra.mxu0 %v13540_v34  ;;  %3447 = vmatprep.subr.bf16.mxu1 %v13545_v1  ;;  %v13600_v34 = vld [vmem:[#allocation7 + $0x178] ss:$20 sps:$4 sm:$0xff]  }
 0x255   : > { %3504 = vmatprep.subr.bf16.mxu0 %v13548_v3  ;;  %v13601_v1 = vld [vmem:[#allocation7 + $0x38] ss:$20 sps:$4 sm:$0xff]   ;;  %v13604_v3 = vld [vmem:[#allocation7 + $0x19c] ss:$20 sps:$4 sm:$0xff]  }
 0x256   : > { %3433 = vmatmul.mubr.bf16.gmra.mxu1 %v15353_v37 }
 0x257   : > { %3448 = vmatpush1.bf16.msra.mxu1 %v13543_v19  ;;  %3475 = vmatprep.mubr.bf16.mxu1 %v15333_v24  ;;  %v13602_v19 = vld [vmem:[#allocation7 + $0x198] ss:$20 sps:$4 sm:$0xff]  }
 0x258   : > { %3505 = vmatpush1.bf16.msra.mxu0 %v13546_v21  ;;  %3449 = vmatprep.subr.bf16.mxu1 %v13551_v11  ;;  %v13605_v21 = vld [vmem:[#allocation7 + $0x150] ss:$20 sps:$4 sm:$0xff]  }
 0x259   : > { %3506 = vmatprep.subr.bf16.mxu0 %v13554_v33  ;;  %v13606_v11 = vld [vmem:[#allocation7 + $0x10] ss:$20 sps:$4 sm:$0xff]   ;;  %v13609_v33 = vld [vmem:[#allocation7 + $0x174] ss:$20 sps:$4 sm:$0xff]  }
 0x25b   : > { %3450 = vmatpush1.bf16.msra.mxu1 %v13549_v22  ;;  %v13607_v22 = vld [vmem:[#allocation7 + $0x170] ss:$20 sps:$4 sm:$0xff]  }
 0x25c   : > { %3507 = vmatpush1.bf16.msra.mxu0 %v13552_v53  ;;  %3451 = vmatprep.subr.bf16.mxu1 %v13557_v39  ;;  %v13612_v53 = vld [vmem:[#allocation7 + $0x89c] ss:$20 sps:$4 sm:$0xff]   ;;  %v13610_v39 = vld [vmem:[#allocation7 + $0x898] ss:$20 sps:$4 sm:$0xff]  }
 0x25d   : > { %3508 = vmatprep.subr.bf16.mxu0 %v13560_v23  ;;  %v13613_v23 = vld [vmem:[#allocation7 + $0x148] ss:$20 sps:$4 sm:$0xff]  }
 0x25f   : > { %3452 = vmatpush1.bf16.msra.mxu1 %v13555_v26  ;;  %v13615_v26 = vld [vmem:[#allocation7 + $0x14c] ss:$20 sps:$4 sm:$0xff]  }
 0x260   : > { %3509 = vmatpush1.bf16.msra.mxu0 %v13558_v45  ;;  %3453 = vmatprep.subr.bf16.mxu1 %v13563_v16  ;;  %v13618_v45 = vld [vmem:[#allocation7 + $0x874] ss:$20 sps:$4 sm:$0xff]  }
 0x261   : > { %3510 = vmatprep.subr.bf16.mxu0 %v13566_v48  ;;  %v13616_v48 = vld [vmem:[#allocation7 + $0x870] ss:$20 sps:$4 sm:$0xff]  }
 0x263   : > { %3454 = vmatpush1.bf16.msra.mxu1 %v13561_v18 }
 0x264   : > { %3511 = vmatpush1.bf16.msra.mxu0 %v13564_v25  ;;  %3455 = vmatprep.subr.bf16.mxu1 %v13569_v6  ;;  %v13619_v25 = vld [vmem:[#allocation7 + $0x3a8] ss:$20 sps:$4 sm:$0xff]   ;;  %v13622_v6 = vld [vmem:[#allocation7 + $0x84c] ss:$20 sps:$4 sm:$0xff]  }
 0x265   : > { %12485 = vmatprep.subr.bf16.mxu0 %v13570_v35  ;;  %v13620_v35 = vld [vmem:[#allocation7 + $0x848] ss:$20 sps:$4 sm:$0xff]  }
 0x267   : > { %3456 = vmatpush1.bf16.msra.mxu1 %v13567_v28  ;;  %3529 = vmatmul.mubr.bf16.vlgmr.msra.gmra.mxu0 %v15356_v2 }
 0x268   : > { %12486 = vmatpush3.bf16.msra.mxu0 %v13571_v38  ;;  %3457 = vmatprep.subr.bf16.mxu1 %v13574_v27  ;;  %v3802_v38 = vrot.slane %v15347_v62, 1  ;;  %v13623_v27 = vld [vmem:[#allocation7 + $0x380] ss:$20 sps:$4 sm:$0xff]  }
 0x269   : > { %12487 = vmatprep.subr.bf16.mxu0 %v13575_v49  ;;  %3538 = vmatprep.mubr.bf16.mxu0 %v16603_v0 }
 0x26b   : > { %3458 = vmatpush1.bf16.msra.mxu1 %v13572_v30  ;;  %v13626_v30 = vld [vmem:[#allocation7 + $0x824] ss:$20 sps:$4 sm:$0xff]  }
 0x26c   : > { %12488 = vmatpush3.bf16.msra.mxu0 %v13576_v43  ;;  %3459 = vmatprep.subr.bf16.mxu1 %v13579_v40 }
 0x26d   : > { %12489 = vmatprep.subr.bf16.mxu0 %v13580_v51 }
 0x26f   : > { %3460 = vmatpush2.bf16.msra.mxu1 %v13577_v46  ;;  %3539 = vmatmul.mubr.bf16.gmra.mxu0 %v15353_v37  ;;  %v3801_v46 = vrot.slane %v15333_v24, 1 }
 0x270   : > { %12490 = vmatpush3.bf16.msra.mxu0 %v13581_v54  ;;  %3581 = vmatprep.mubr.bf16.mxu0 %v15333_v24  ;;  %v13624_v54 = vld [vmem:[#allocation7 + $0x820] ss:$20 sps:$4 sm:$0xff]  }
 0x271   : > { %3461 = vmatprep.subr.bf16.mxu1 %v13584_v32  ;;  %12491 = vmatprep.subr.bf16.mxu0 %v13585_v29  ;;  %v15450_v32 = vsel %vm871_vm3, %v3801_v46, %v3802_v38  ;;  %v13654_v46 = vld [vmem:[#allocation7 + $0x988] ss:$20 sps:$4 sm:$0xff]  }
 0x273   : > { %3462 = vmatpush2.bf16.msra.mxu1 %v13582_v55  ;;  %v13627_v55 = vld [vmem:[#allocation7 + $0x358] ss:$20 sps:$4 sm:$0xff]  }
 0x274   : > { %12492 = vmatpush3.bf16.msra.mxu0 %v13586_v56  ;;  %3463 = vmatprep.subr.bf16.mxu1 %v13589_v59 }
 0x275   : > { %12493 = vmatprep.subr.bf16.mxu0 %v13590_v41  ;;  %v13630_v41 = vld [vmem:[#allocation7 + $0x7fc] ss:$20 sps:$4 sm:$0xff]  }
 0x277   : > { %3464 = vmatpush2.bf16.msra.mxu1 %v13587_v17 }
 0x278   : > { %12494 = vmatpush3.bf16.msra.mxu0 %v13591_v60  ;;  %3465 = vmatprep.subr.bf16.mxu1 %v13594_v9  ;;  %v13628_v9 = vld [vmem:[#allocation7 + $0x7f8] ss:$20 sps:$4 sm:$0xff]  }
 0x279   : > { %12495 = vmatprep.subr.bf16.mxu0 %v13595_v31 }
 0x27b   : > { %3466 = vmatpush2.bf16.msra.mxu1 %v13592_v13  ;;  %v13631_v13 = vld [vmem:[#allocation7 + $0x330] ss:$20 sps:$4 sm:$0xff]  }
 0x27c   : > { %12496 = vmatpush3.bf16.msra.mxu0 %v13596_v44  ;;  %3467 = vmatprep.subr.bf16.mxu1 %v13599_v12  ;;  %v13634_v12 = vld [vmem:[#allocation7 + $0x7d4] ss:$20 sps:$4 sm:$0xff]  }
 0x27d   : > { %12497 = vmatprep.subr.bf16.mxu0 %v13600_v34 }
 0x27f   : > { %3468 = vmatpush2.bf16.msra.mxu1 %v13597_v52 }
 0x280   : > { %12498 = vmatpush3.bf16.msra.mxu0 %v13601_v1  ;;  %3469 = vmatprep.subr.bf16.mxu1 %v13604_v3  ;;  %v13632_v1 = vld [vmem:[#allocation7 + $0x7d0] ss:$20 sps:$4 sm:$0xff]  }
 0x281   : > { %12499 = vmatprep.subr.bf16.mxu0 %v13605_v21 }
 0x283   : > { %3470 = vmatpush2.bf16.msra.mxu1 %v13602_v19  ;;  %v13635_v19 = vld [vmem:[#allocation7 + $0x308] ss:$20 sps:$4 sm:$0xff]  }
 0x284   : > { %12500 = vmatpush3.bf16.msra.mxu0 %v13606_v11  ;;  %3471 = vmatprep.subr.bf16.mxu1 %v13609_v33  ;;  %v13638_v33 = vld [vmem:[#allocation7 + $0x7ac] ss:$20 sps:$4 sm:$0xff]  }
 0x285   : > { %4440 = vmatprep.subr.bf16.mxu0 %v13612_v53  ;;  %v13636_v53 = vld [vmem:[#allocation7 + $0x7a8] ss:$20 sps:$4 sm:$0xff]  }
 0x286   : > { %v2437_v16 = vpop.f32.mrf.mxu0 }
 0x287   : > { %3472 = vmatpush2.bf16.msra.mxu1 %v13607_v22  ;;  %3582 = vmatmul.mubr.bf16.vlgmr.msra.gmra.mxu0 %v15338_v15 }
 0x288   : > { %3589 = vmatprep.mubr.bf16.mxu0 %v15347_v62  ;;  %4441 = vmatpush1.bf16.msra.mxu0 %v13610_v39  ;;  %v2439_v18 = vpop.f32.mrf.mxu0  ;;  %v13639_v39 = vld [vmem:[#allocation7 + $0x2e0] ss:$20 sps:$4 sm:$0xff]  }
 0x289   : > { %3473 = vmatprep.subr.bf16.mxu1 %v13615_v26  ;;  %4442 = vmatprep.subr.bf16.mxu0 %v13618_v45  ;;  %v13640_v26 = vld [vmem:[#allocation7 + $0x780] ss:$20 sps:$4 sm:$0xff]   ;;  %v13643_v45 = vld [vmem:[#allocation7 + $0x2b8] ss:$20 sps:$4 sm:$0xff]  }
 0x28a   : > { %v2441_v28 = vpop.f32.mrf.mxu0 }
 0x28b   : > { %3474 = vmatpush2.bf16.msra.mxu1 %v13613_v23  ;;  %v13642_v23 = vld [vmem:[#allocation7 + $0x784] ss:$20 sps:$4 sm:$0xff]  }
 0x28c   : > { %4443 = vmatpush1.bf16.msra.mxu0 %v13616_v48  ;;  %12876 = vmatprep.subr.bf16.mxu1 %v13619_v25  ;;  %v15439_v49 = vpop.f32.mrf.mxu0  ;;  %v13647_v48 = vld [vmem:[#allocation7 + $0x290] ss:$20 sps:$4 sm:$0xff]  }
 0x28d   : > { %v2490_v43 = vpop.f32.mrf.mxu1  ;;  %4444 = vmatprep.subr.bf16.mxu0 %v13622_v6 }
 0x28e   : > { %3476 = vmatmul.mubr.bf16.vlgmr.msra.gmra.mxu1 %v15338_v15  ;;  %v15442_v40 = vadd.f32 %v2490_v43, %v2437_v16  ;;  %v2447_v56 = vpop.f32.mrf.mxu0  ;;  %v13646_v16 = vld [vmem:[#allocation7 + $0x9dc] ss:$20 sps:$4 sm:$0xff]   ;;  %v13651_v43 = vld [vmem:[#allocation7 + $0xb18] ss:$20 sps:$4 sm:$0xff]  }
 0x28f   : > { %3485 = vmatprep.mubr.bf16.mxu1 %v15347_v62  ;;  %3590 = vmatmul.mubr.bf16.gmra.mxu0 %v15345_v5  ;;  %v2492_v51 = vpop.f32.mrf.mxu1 }
 0x290   : > { %12877 = vmatpush3.bf16.msra.mxu1 %v13619_v25  ;;  %4445 = vmatpush1.bf16.msra.mxu0 %v13620_v35  ;;  %v15452_v29 = vadd.f32 %v2492_v51, %v2439_v18  ;;  %v2449_v31 = vpop.f32.mrf.mxu0  ;;  %v13644_v18 = vld [vmem:[#allocation7 + $0x9d8] ss:$20 sps:$4 sm:$0xff]   ;;  %v13650_v25 = vld [vmem:[#allocation7 + $0x9b4] ss:$20 sps:$4 sm:$0xff]   ;;  %v13648_v35 = vld [vmem:[#allocation7 + $0x9b0] ss:$20 sps:$4 sm:$0xff]  }
 0x291   : > { %4472 = vmatprep.mubr.bf16.mxu0 %v15450_v32  ;;  %12878 = vmatprep.subr.bf16.mxu1 %v13623_v27  ;;  %v2494_v59 = vpop.f32.mrf.mxu1 }
 0x292   : > { %v15455_v17 = vadd.f32 %v2494_v59, %v2441_v28  ;;  %4446 = vmatprep.subr.bf16.mxu0 %v13626_v30  ;;  %v2451_v21 = vpop.f32.mrf.mxu0  ;;  %v13656_v30 = vld [vmem:[#allocation7 + $0x98c] ss:$20 sps:$4 sm:$0xff]   ;;  %v13657_v59 = vld [vmem:[#allocation7 + $0xaf0] ss:$20 sps:$4 sm:$0xff]  }
 0x293   : > { %v15457_v60 = vpop.f32.mrf.mxu1 }
 0x294   : > { %12879 = vmatpush3.bf16.msra.mxu1 %v13623_v27  ;;  %4447 = vmatpush1.bf16.msra.mxu0 %v13624_v54  ;;  %v15467_v6 = vpop.f32.mrf.mxu0  ;;  %v13653_v27 = vld [vmem:[#allocation7 + $0xb1c] ss:$20 sps:$4 sm:$0xff]   ;;  %v13659_v54 = vld [vmem:[#allocation7 + $0xaf4] ss:$20 sps:$4 sm:$0xff]  }
 0x295   : > { %12880 = vmatprep.subr.bf16.mxu1 %v13627_v55  ;;  %v2500_v44 = vpop.f32.mrf.mxu1  ;;  %4448 = vmatprep.subr.bf16.mxu0 %v13630_v41  ;;  %v13660_v41 = vld [vmem:[#allocation7 + $0x960] ss:$20 sps:$4 sm:$0xff]  }
 0x296   : > { %3486 = vmatmul.mubr.bf16.gmra.mxu1 %v15345_v5  ;;  %v15460_v52 = vadd.f32 %v2500_v44, %v2447_v56  ;;  %v13666_v44 = vld [vmem:[#allocation7 + $0x938] ss:$20 sps:$4 sm:$0xff]  }
 0x297   : > { %12892 = vmatprep.mubr.bf16.mxu1 %v15356_v2  ;;  %v2502_v34 = vpop.f32.mrf.mxu1 }
 0x298   : > { %12881 = vmatpush3.bf16.msra.mxu1 %v13627_v55  ;;  %4449 = vmatpush1.bf16.msra.mxu0 %v13628_v9  ;;  %v15463_v3 = vadd.f32 %v2502_v34, %v2449_v31  ;;  %v13662_v55 = vld [vmem:[#allocation7 + $0x964] ss:$20 sps:$4 sm:$0xff]   ;;  %v13665_v9 = vld [vmem:[#allocation7 + $0xacc] ss:$20 sps:$4 sm:$0xff]   ;;  %v13663_v31 = vld [vmem:[#allocation7 + $0xac8] ss:$20 sps:$4 sm:$0xff]  }
 0x299   : > { %12882 = vmatprep.subr.bf16.mxu1 %v13631_v13  ;;  %v2504_v11 = vpop.f32.mrf.mxu1  ;;  %4450 = vmatprep.subr.bf16.mxu0 %v13634_v12  ;;  %v13671_v34 = vld [vmem:[#allocation7 + $0xaa4] ss:$20 sps:$4 sm:$0xff]  }
 0x29a   : > { %v15465_v22 = vadd.f32 %v2504_v11, %v2451_v21  ;;  %v13672_v21 = vld [vmem:[#allocation7 + $0x910] ss:$20 sps:$4 sm:$0xff]  }
 0x29c   : > { %12883 = vmatpush3.bf16.msra.mxu1 %v13631_v13  ;;  %4451 = vmatpush1.bf16.msra.mxu0 %v13632_v1  ;;  %v13668_v13 = vld [vmem:[#allocation7 + $0x93c] ss:$20 sps:$4 sm:$0xff]   ;;  %v13674_v1 = vld [vmem:[#allocation7 + $0x914] ss:$20 sps:$4 sm:$0xff]  }
 0x29d   : > { %12884 = vmatprep.subr.bf16.mxu1 %v13635_v19  ;;  %4452 = vmatprep.subr.bf16.mxu0 %v13638_v33  ;;  %v13677_v33 = vld [vmem:[#allocation7 + $0xa7c] ss:$20 sps:$4 sm:$0xff]  }
 0x2a0   : > { %12885 = vmatpush3.bf16.msra.mxu1 %v13635_v19  ;;  %4453 = vmatpush1.bf16.msra.mxu0 %v13636_v53  ;;  %v13669_v19 = vld [vmem:[#allocation7 + $0xaa0] ss:$20 sps:$4 sm:$0xff]  }
 0x2a1   : > { %12886 = vmatprep.subr.bf16.mxu1 %v13639_v39  ;;  %4454 = vmatprep.subr.bf16.mxu0 %v13642_v23  ;;  %v13680_v53 = vld [vmem:[#allocation7 + $0x8ec] ss:$20 sps:$4 sm:$0xff]   ;;  %v13678_v23 = vld [vmem:[#allocation7 + $0x8e8] ss:$20 sps:$4 sm:$0xff]  }
 0x2a4   : > { %12887 = vmatpush3.bf16.msra.mxu1 %v13639_v39  ;;  %4455 = vmatpush1.bf16.msra.mxu0 %v13640_v26  ;;  %v13675_v39 = vld [vmem:[#allocation7 + $0xa78] ss:$20 sps:$4 sm:$0xff]  }
 0x2a5   : > { %12888 = vmatprep.subr.bf16.mxu1 %v13643_v45  ;;  %4456 = vmatprep.subr.bf16.mxu0 %v13646_v16  ;;  %v13686_v16 = vld [vmem:[#allocation7 + $0x8c4] ss:$20 sps:$4 sm:$0xff]  }
 0x2a6   : > { %v15469_v28 = vpop.f32.mrf.mxu0 }
 0x2a8   : > { %12889 = vmatpush3.bf16.msra.mxu1 %v13643_v45  ;;  %4457 = vmatpush2.bf16.msra.mxu0 %v13644_v18  ;;  %v15471_v51 = vpop.f32.mrf.mxu0  ;;  %v13683_v45 = vld [vmem:[#allocation7 + $0xa54] ss:$20 sps:$4 sm:$0xff]   ;;  %v13681_v18 = vld [vmem:[#allocation7 + $0xa50] ss:$20 sps:$4 sm:$0xff]  }
 0x2a9   : > { %12890 = vmatprep.subr.bf16.mxu1 %v13647_v48  ;;  %4458 = vmatprep.subr.bf16.mxu0 %v13650_v25 }
 0x2aa   : > { %v15474_v56 = vpop.f32.mrf.mxu0 }
 0x2ac   : > { %12891 = vmatpush3.bf16.msra.mxu1 %v13647_v48  ;;  %4459 = vmatpush2.bf16.msra.mxu0 %v13648_v35  ;;  %v15477_v12 = vpop.f32.mrf.mxu0  ;;  %v13684_v48 = vld [vmem:[#allocation7 + $0x8c0] ss:$20 sps:$4 sm:$0xff]  }
 0x2ad   : > { %4493 = vmatprep.subr.bf16.mxu1 %v13653_v27  ;;  %4460 = vmatprep.subr.bf16.mxu0 %v13656_v30  ;;  %16650 = vst [vmem:[#allocation35_spill] sm:$0xff] %v15477_v12  ;;  %v13689_v35 = vld [vmem:[#allocation7 + $0xa2c] ss:$20 sps:$4 sm:$0xff]   ;;  %v13692_v27 = vld [vmem:[#allocation7 + $0xb24] ss:$20 sps:$4 sm:$0xff]  }
 0x2ae   : > { %v15479_v11 = vpop.f32.mrf.mxu0  ;;  %v13687_v30 = vld [vmem:[#allocation7 + $0xa28] ss:$20 sps:$4 sm:$0xff]  }
 0x2af   : > { %12893 = vmatmul.mubr.bf16.vlgmr.msra.gmra.mxu1 %v15353_v37 }
 0x2b0   : > { %4494 = vmatpush1.bf16.msra.mxu1 %v13651_v43  ;;  %4461 = vmatpush2.bf16.msra.mxu0 %v13654_v46  ;;  %v15481_v26 = vpop.f32.mrf.mxu0  ;;  %v3798_v43 = vrot.slane %v15338_v15, 1  ;;  %v3799_v46 = vrot.slane %v15345_v5, 1 }
 0x2b1   : > { %4495 = vmatprep.subr.bf16.mxu1 %v13659_v54  ;;  %4462 = vmatprep.subr.bf16.mxu0 %v13662_v55  ;;  %v13690_v54 = vld [vmem:[#allocation7 + $0xb20] ss:$20 sps:$4 sm:$0xff]   ;;  %v3804_v55 = vrot.slane %v15356_v2, 1 }
 0x2b2   : > { %4525 = vmatprep.mubr.bf16.mxu1 %v16603_v0  ;;  %v15483_v25 = vpop.f32.mrf.mxu0 }
 0x2b4   : > { %4496 = vmatpush1.bf16.msra.mxu1 %v13657_v59  ;;  %4463 = vmatpush2.bf16.msra.mxu0 %v13660_v41  ;;  %v3805_v59 = vrot.slane %v15353_v37, 1  ;;  %v15489_v41 = vpop.f32.mrf.mxu0 }
 0x2b5   : > { %4497 = vmatprep.subr.bf16.mxu1 %v13665_v9  ;;  %4464 = vmatprep.subr.bf16.mxu0 %v13668_v13  ;;  %16651 = vst [vmem:[#allocation36_spill] sm:$0xff] %v15489_v41  ;;  %v13695_v9 = vld [vmem:[#allocation7 + $0xa04] ss:$20 sps:$4 sm:$0xff]   ;;  %v13698_v13 = vld [vmem:[#allocation7 + $0xafc] ss:$20 sps:$4 sm:$0xff]  }
 0x2b8   : > { %4498 = vmatpush1.bf16.msra.mxu1 %v13663_v31  ;;  %4465 = vmatpush2.bf16.msra.mxu0 %v13666_v44  ;;  %v15492_v44 = vsel %vm871_vm3, %v3798_v43, %v3799_v46  ;;  %v15516_v43 = vsel %vm871_vm3, %v3804_v55, %v3805_v59 }
 0x2b9   : > { %4499 = vmatprep.subr.bf16.mxu1 %v13671_v34  ;;  %4466 = vmatprep.subr.bf16.mxu0 %v13674_v1  ;;  %v13693_v34 = vld [vmem:[#allocation7 + $0xa00] ss:$20 sps:$4 sm:$0xff]   ;;  %v15499_v1 = vsel %vm871_vm3, %v3802_v38, %v15195_v20 }
 0x2bc   : > { %4500 = vmatpush1.bf16.msra.mxu1 %v13669_v19  ;;  %4467 = vmatpush2.bf16.msra.mxu0 %v13672_v21 }
 0x2bd   : > { %4501 = vmatprep.subr.bf16.mxu1 %v13677_v33  ;;  %4468 = vmatprep.subr.bf16.mxu0 %v13680_v53  ;;  %v13696_v33 = vld [vmem:[#allocation7 + $0xaf8] ss:$20 sps:$4 sm:$0xff]  }
 0x2be   : > { %v13701_v53 = vld [vmem:[#allocation7 + $0x8a4] ss:$20 sps:$4 sm:$0xff]  }
 0x2c0   : > { %4502 = vmatpush1.bf16.msra.mxu1 %v13675_v39  ;;  %4469 = vmatpush2.bf16.msra.mxu0 %v13678_v23  ;;  %v13699_v23 = vld [vmem:[#allocation7 + $0x8a0] ss:$20 sps:$4 sm:$0xff]  }
 0x2c1   : > { %4503 = vmatprep.subr.bf16.mxu1 %v13683_v45  ;;  %4470 = vmatprep.subr.bf16.mxu0 %v13686_v16  ;;  %v13704_v45 = vld [vmem:[#allocation7 + $0xad4] ss:$20 sps:$4 sm:$0xff]   ;;  %v15506_v16 = vpop.f32.mrf.mxu1 }
 0x2c4   : > { %4504 = vmatpush1.bf16.msra.mxu1 %v13681_v18  ;;  %4471 = vmatpush2.bf16.msra.mxu0 %v13684_v48  ;;  %v13702_v18 = vld [vmem:[#allocation7 + $0xad0] ss:$20 sps:$4 sm:$0xff]  }
 0x2c5   : > { %4505 = vmatprep.subr.bf16.mxu1 %v13689_v35  ;;  %4599 = vmatprep.subr.bf16.mxu0 %v13692_v27  ;;  %v13707_v35 = vld [vmem:[#allocation7 + $0x87c] ss:$20 sps:$4 sm:$0xff]   ;;  %v13710_v27 = vld [vmem:[#allocation7 + $0xaac] ss:$20 sps:$4 sm:$0xff]  }
 0x2c6   : > { %v12463_v31 = vpop.f32.mrf.mxu0 }
 0x2c7   : > { %4473 = vmatmul.mubr.bf16.vlgmr.msra.gmra.mxu0 %v15492_v44 }
 0x2c8   : > { %4506 = vmatpush1.bf16.msra.mxu1 %v13687_v30  ;;  %4482 = vmatprep.mubr.bf16.mxu0 %v15499_v1  ;;  %v12464_v19 = vpop.f32.mrf.mxu0 }
 0x2c9   : > { %4600 = vmatpush1.bf16.msra.mxu0 %v13690_v54  ;;  %v15502_v21 = vadd.f32 %v12464_v19, %v12463_v31  ;;  %4507 = vmatprep.subr.bf16.mxu1 %v13695_v9  ;;  %v15520_v9 = vsel %vm871_vm3, %v3799_v46, %v15195_v20  ;;  %v13708_v46 = vld [vmem:[#allocation7 + $0xaa8] ss:$20 sps:$4 sm:$0xff]  }
 0x2ca   : > { %v15504_v39 = vpop.f32.mrf.mxu0  ;;  %4601 = vmatprep.subr.bf16.mxu0 %v13698_v13  ;;  %v13705_v13 = vld [vmem:[#allocation7 + $0x878] ss:$20 sps:$4 sm:$0xff]  }
 0x2cc   : > { %4508 = vmatpush1.bf16.msra.mxu1 %v13693_v34  ;;  %v15508_v38 = vpop.f32.mrf.mxu0 }
 0x2cd   : > { %4602 = vmatpush1.bf16.msra.mxu0 %v13696_v33  ;;  %v2543_v48 = vpop.f32.mrf.mxu1  ;;  %4546 = vmatprep.subr.bf16.mxu1 %v13701_v53  ;;  %v13713_v33 = vld [vmem:[#allocation7 + $0x854] ss:$20 sps:$4 sm:$0xff]  }
 0x2ce   : > { %v15511_v30 = vadd.f32 %v15469_v28, %v2543_v48  ;;  %v12469_v54 = vpop.f32.mrf.mxu0  ;;  %4603 = vmatprep.subr.bf16.mxu0 %v13704_v45  ;;  %v13711_v45 = vld [vmem:[#allocation7 + $0x850] ss:$20 sps:$4 sm:$0xff]  }
 0x2cf   : > { %4526 = vmatmul.mubr.bf16.vlgmr.msra.gmra.mxu1 %v15516_v43  ;;  %4483 = vmatmul.mubr.bf16.gmra.mxu0 %v15520_v9  ;;  %v2545_v31 = vpop.f32.mrf.mxu1  ;;  %v13716_v48 = vld [vmem:[#allocation7 + $0xa84] ss:$20 sps:$4 sm:$0xff]  }
 0x2d0   : > { %4547 = vmatpush1.bf16.msra.mxu1 %v13699_v23  ;;  %v15525_v28 = vadd.f32 %v15471_v51, %v2545_v31  ;;  %v12470_v34 = vpop.f32.mrf.mxu0  ;;  %4535 = vmatprep.mubr.bf16.mxu1 %v16603_v0  ;;  %v13722_v31 = vld [vmem:[#allocation7 + $0xa5c] ss:$20 sps:$4 sm:$0xff]  }
 0x2d1   : > { %4604 = vmatpush1.bf16.msra.mxu0 %v13702_v18  ;;  %v15528_v55 = vadd.f32 %v12470_v34, %v12469_v54  ;;  %v2547_v19 = vpop.f32.mrf.mxu1  ;;  %4548 = vmatprep.subr.bf16.mxu1 %v13707_v35  ;;  %v13714_v18 = vld [vmem:[#allocation7 + $0xa80] ss:$20 sps:$4 sm:$0xff]  }
 0x2d2   : > { %v15531_v53 = vadd.f32 %v15474_v56, %v2547_v19  ;;  %4605 = vmatprep.subr.bf16.mxu0 %v13710_v27  ;;  %4631 = vmatprep.mubr.bf16.mxu0 %v16603_v0  ;;  %v13719_v54 = vld [vmem:[#allocation7 + $0x82c] ss:$20 sps:$4 sm:$0xff]   ;;  %v15543_v56 = vsel %vm871_vm3, %v3805_v59, %v15195_v20  ;;  %v13717_v27 = vld [vmem:[#allocation7 + $0x828] ss:$20 sps:$4 sm:$0xff]  }
 0x2d3   : > { %v15534_v51 = vpop.f32.mrf.mxu1  ;;  %v13720_v19 = vld [vmem:[#allocation7 + $0xa58] ss:$20 sps:$4 sm:$0xff]  }
 0x2d4   : > { %16652 = vst [vmem:[#allocation37_spill] sm:$0xff] %v15534_v51  ;;  %4549 = vmatpush1.bf16.msra.mxu1 %v13705_v13 }
 0x2d5   : > { %4606 = vmatpush1.bf16.msra.mxu0 %v13708_v46  ;;  %v2553_v23 = vpop.f32.mrf.mxu1  ;;  %4550 = vmatprep.subr.bf16.mxu1 %v13713_v33  ;;  %v13725_v46 = vld [vmem:[#allocation7 + $0x804] ss:$20 sps:$4 sm:$0xff]   ;;  %v13723_v33 = vld [vmem:[#allocation7 + $0x800] ss:$20 sps:$4 sm:$0xff]  }
 0x2d6   : > { %v15537_v35 = vadd.f32 %v15479_v11, %v2553_v23  ;;  %4607 = vmatprep.subr.bf16.mxu0 %v13716_v48  ;;  %v13728_v48 = vld [vmem:[#allocation7 + $0xa34] ss:$20 sps:$4 sm:$0xff]   ;;  %v13731_v23 = vld [vmem:[#allocation7 + $0x7dc] ss:$20 sps:$4 sm:$0xff]  }
 0x2d7   : > { %4536 = vmatmul.mubr.bf16.gmra.mxu1 %v15543_v56  ;;  %v2555_v13 = vpop.f32.mrf.mxu1 }
 0x2d8   : > { %4551 = vmatpush1.bf16.msra.mxu1 %v13711_v45  ;;  %4578 = vmatprep.mubr.bf16.mxu1 %v15450_v32  ;;  %v15548_v34 = vadd.f32 %v15481_v26, %v2555_v13  ;;  %v13726_v45 = vld [vmem:[#allocation7 + $0xa30] ss:$20 sps:$4 sm:$0xff]   ;;  %v13729_v26 = vld [vmem:[#allocation7 + $0x7d8] ss:$20 sps:$4 sm:$0xff]  }
 0x2d9   : > { %4608 = vmatpush1.bf16.msra.mxu0 %v13714_v18  ;;  %v2557_v11 = vpop.f32.mrf.mxu1  ;;  %4552 = vmatprep.subr.bf16.mxu1 %v13719_v54  ;;  %v13732_v18 = vld [vmem:[#allocation7 + $0xa08] ss:$20 sps:$4 sm:$0xff]   ;;  %v13735_v13 = vld [vmem:[#allocation7 + $0x7b0] ss:$20 sps:$4 sm:$0xff]  }
 0x2da   : > { %v15551_v59 = vadd.f32 %v15483_v25, %v2557_v11  ;;  %4609 = vmatprep.subr.bf16.mxu0 %v13722_v31  ;;  %v13737_v54 = vld [vmem:[#allocation7 + $0x7b4] ss:$20 sps:$4 sm:$0xff]  }
 0x2db   : > { %v13738_v25 = vld [vmem:[#allocation7 + $0x9e8] ss:$20 sps:$4 sm:$0xff]  }
 0x2dc   : > { %4553 = vmatpush1.bf16.msra.mxu1 %v13717_v27  ;;  %v13739_v31 = vld [vmem:[#allocation7 + $0x8a8] ss:$20 sps:$4 sm:$0xff]   ;;  %v13742_v27 = vld [vmem:[#allocation7 + $0x78c] ss:$20 sps:$4 sm:$0xff]  }
 0x2dd   : > { %4610 = vmatpush1.bf16.msra.mxu0 %v13720_v19  ;;  %4554 = vmatprep.subr.bf16.mxu1 %v13725_v46  ;;  %v13740_v11 = vld [vmem:[#allocation7 + $0x788] ss:$20 sps:$4 sm:$0xff]   ;;  %v13743_v19 = vld [vmem:[#allocation7 + $0x9c0] ss:$20 sps:$4 sm:$0xff]  }
 0x2de   : > { %4611 = vmatprep.subr.bf16.mxu0 %v13728_v48  ;;  %v13744_v46 = vld [vmem:[#allocation7 + $0x880] ss:$20 sps:$4 sm:$0xff]   ;;  %v12472_v48 = vpop.f32.mrf.mxu0 }
 0x2e0   : > { %4555 = vmatpush1.bf16.msra.mxu1 %v13723_v33  ;;  %v13747_v33 = vld [vmem:[#allocation7 + $0x9e4] ss:$20 sps:$4 sm:$0xff]  }
 0x2e1   : > { %4612 = vmatpush1.bf16.msra.mxu0 %v13726_v45  ;;  %4556 = vmatprep.subr.bf16.mxu1 %v13731_v23  ;;  %v13748_v45 = vld [vmem:[#allocation7 + $0x998] ss:$20 sps:$4 sm:$0xff]  }
 0x2e2   : > { %4613 = vmatprep.subr.bf16.mxu0 %v13734_v36  ;;  %v13745_v36 = vld [vmem:[#allocation7 + $0x9e0] ss:$20 sps:$4 sm:$0xff]   ;;  %v13749_v23 = vld [vmem:[#allocation7 + $0x858] ss:$20 sps:$4 sm:$0xff]  }
 0x2e4   : > { %4557 = vmatpush1.bf16.msra.mxu1 %v13729_v26  ;;  %v15555_v26 = vpop.f32.mrf.mxu1 }
 0x2e5   : > { %4614 = vmatpush1.bf16.msra.mxu0 %v13732_v18  ;;  %4558 = vmatprep.subr.bf16.mxu1 %v13737_v54  ;;  %16653 = vst [vmem:[#allocation38_spill] sm:$0xff] %v15555_v26  ;;  %v13752_v18 = vld [vmem:[#allocation7 + $0x9bc] ss:$20 sps:$4 sm:$0xff]  }
 0x2e6   : > { %12523 = vmatprep.subr.bf16.mxu0 %v13738_v25  ;;  %v13753_v54 = vld [vmem:[#allocation7 + $0x970] ss:$20 sps:$4 sm:$0xff]  }
 0x2e7   : > { %v13866_v26 = vld [vmem:[#allocation7 + $0xebc] ss:$20 sps:$4 sm:$0xff]  }
 0x2e8   : > { %4559 = vmatpush1.bf16.msra.mxu1 %v13735_v13  ;;  %4632 = vmatmul.mubr.bf16.vlgmr.msra.gmra.mxu0 %v15516_v43  ;;  %v12473_v13 = vpop.f32.mrf.mxu0 }
 0x2e9   : > { %12524 = vmatpush3.bf16.msra.mxu0 %v13739_v31  ;;  %4560 = vmatprep.subr.bf16.mxu1 %v13742_v27  ;;  %v12474_v20 = vadd.f32 %v12473_v13, %v12472_v48  ;;  %v13760_v48 = vld [vmem:[#allocation7 + $0x968] ss:$20 sps:$4 sm:$0xff]  }
 0x2ea   : > { %12525 = vmatprep.subr.bf16.mxu0 %v13743_v19  ;;  %4641 = vmatprep.mubr.bf16.mxu0 %v16603_v0  ;;  %v13750_v19 = vld [vmem:[#allocation7 + $0x9b8] ss:$20 sps:$4 sm:$0xff]   ;;  %v13754_v0 = vld [vmem:[#allocation7 + $0x830] ss:$20 sps:$4 sm:$0xff]  }
 0x2eb   : > { %v13772_v13 = vld [vmem:[#allocation7 + $0x91c] ss:$20 sps:$4 sm:$0xff]  }
 0x2ec   : > { %4561 = vmatpush1.bf16.msra.mxu1 %v13740_v11  ;;  %v13757_v11 = vld [vmem:[#allocation7 + $0x994] ss:$20 sps:$4 sm:$0xff]  }
 0x2ed   : > { %12526 = vmatpush3.bf16.msra.mxu0 %v13744_v46  ;;  %4562 = vmatprep.subr.bf16.mxu1 %v13747_v33  ;;  %v13758_v33 = vld [vmem:[#allocation7 + $0x948] ss:$20 sps:$4 sm:$0xff]  }
 0x2ee   : > { %v12874_v25 = vpop.f32.mrf.mxu1  ;;  %12527 = vmatprep.subr.bf16.mxu0 %v13748_v45  ;;  %v13759_v45 = vld [vmem:[#allocation7 + $0x808] ss:$20 sps:$4 sm:$0xff]  }
 0x2ef   : > { %v15558_v31 = vadd.f32 %v12874_v25, %v15528_v55  ;;  %v13762_v25 = vld [vmem:[#allocation7 + $0x96c] ss:$20 sps:$4 sm:$0xff]  }
 0x2f0   : > { %4563 = vmatpush2.bf16.msra.mxu1 %v13745_v36  ;;  %4642 = vmatmul.mubr.bf16.gmra.mxu0 %v15543_v56  ;;  %v2698_v27 = vpop.f32.mrf.mxu1  ;;  %v13755_v36 = vld [vmem:[#allocation7 + $0x990] ss:$20 sps:$4 sm:$0xff]  }
 0x2f1   : > { %v15562_v58 = vadd.f32 %v15502_v21, %v2698_v27  ;;  %12528 = vmatpush3.bf16.msra.mxu0 %v13749_v23  ;;  %4684 = vmatprep.mubr.bf16.mxu0 %v15450_v32  ;;  %v13763_v21 = vld [vmem:[#allocation7 + $0x920] ss:$20 sps:$4 sm:$0xff]   ;;  %v13767_v23 = vld [vmem:[#allocation7 + $0x944] ss:$20 sps:$4 sm:$0xff]  }
 0x2f2   : > { %v12875_v46 = vpop.f32.mrf.mxu1  ;;  %4564 = vmatprep.subr.bf16.mxu1 %v13752_v18  ;;  %12529 = vmatprep.subr.bf16.mxu0 %v13753_v54  ;;  %v13764_v32 = vld [vmem:[#allocation7 + $0x7e0] ss:$20 sps:$4 sm:$0xff]   ;;  %v13768_v54 = vld [vmem:[#allocation7 + $0x8f8] ss:$20 sps:$4 sm:$0xff]   ;;  %v13773_v27 = vld [vmem:[#allocation7 + $0x8d0] ss:$20 sps:$4 sm:$0xff]  }
 0x2f3   : > { %v15565_v55 = vadd.f32 %v12875_v46, %v12474_v20  ;;  %v13765_v18 = vld [vmem:[#allocation7 + $0x940] ss:$20 sps:$4 sm:$0xff]   ;;  %v13769_v20 = vld [vmem:[#allocation7 + $0x7b8] ss:$20 sps:$4 sm:$0xff]   ;;  %v13780_v46 = vld [vmem:[#allocation7 + $0xc5c] ss:$20 sps:$4 sm:$0xff]  }
 0x2f4   : > { %4565 = vmatpush2.bf16.msra.mxu1 %v13750_v19  ;;  %v13774_v19 = vld [vmem:[#allocation7 + $0x790] ss:$20 sps:$4 sm:$0xff]  }
 0x2f5   : > { %12530 = vmatpush3.bf16.msra.mxu0 %v13754_v0  ;;  %4566 = vmatprep.subr.bf16.mxu1 %v13757_v11  ;;  %v13770_v0 = vld [vmem:[#allocation7 + $0x918] ss:$20 sps:$4 sm:$0xff]   ;;  %v13777_v11 = vld [vmem:[#allocation7 + $0x8f4] ss:$20 sps:$4 sm:$0xff]  }
 0x2f6   : > { %12531 = vmatprep.subr.bf16.mxu0 %v13758_v33  ;;  %v13775_v33 = vld [vmem:[#allocation7 + $0x8f0] ss:$20 sps:$4 sm:$0xff]  }
 0x2f8   : > { %4567 = vmatpush2.bf16.msra.mxu1 %v13755_v36  ;;  %v13778_v36 = vld [vmem:[#allocation7 + $0xc58] ss:$20 sps:$4 sm:$0xff]  }
 0x2f9   : > { %12532 = vmatpush3.bf16.msra.mxu0 %v13759_v45  ;;  %4568 = vmatprep.subr.bf16.mxu1 %v13762_v25  ;;  %v13783_v25 = vld [vmem:[#allocation7 + $0x8cc] ss:$20 sps:$4 sm:$0xff]  }
 0x2fa   : > { %12533 = vmatprep.subr.bf16.mxu0 %v13763_v21 }
 0x2fc   : > { %4569 = vmatpush2.bf16.msra.mxu1 %v13760_v48  ;;  %v13786_v48 = vld [vmem:[#allocation7 + $0xc34] ss:$20 sps:$4 sm:$0xff]  }
 0x2fd   : > { %12534 = vmatpush3.bf16.msra.mxu0 %v13764_v32  ;;  %4570 = vmatprep.subr.bf16.mxu1 %v13767_v23  ;;  %v13781_v23 = vld [vmem:[#allocation7 + $0x8c8] ss:$20 sps:$4 sm:$0xff]  }
 0x2fe   : > { %12535 = vmatprep.subr.bf16.mxu0 %v13768_v54  ;;  %v13784_v54 = vld [vmem:[#allocation7 + $0xc30] ss:$20 sps:$4 sm:$0xff]  }
 0x300   : > { %4571 = vmatpush2.bf16.msra.mxu1 %v13765_v18 }
 0x301   : > { %12536 = vmatpush3.bf16.msra.mxu0 %v13769_v20  ;;  %4572 = vmatprep.subr.bf16.mxu1 %v13772_v13  ;;  %v13787_v20 = vld [vmem:[#allocation7 + $0xb28] ss:$20 sps:$4 sm:$0xff]  }
 0x302   : > { %12537 = vmatprep.subr.bf16.mxu0 %v13773_v27 }
 0x304   : > { %4573 = vmatpush2.bf16.msra.mxu1 %v13770_v0  ;;  %v13790_v0 = vld [vmem:[#allocation7 + $0xc0c] ss:$20 sps:$4 sm:$0xff]  }
 0x305   : > { %12538 = vmatpush3.bf16.msra.mxu0 %v13774_v19  ;;  %4574 = vmatprep.subr.bf16.mxu1 %v13777_v11  ;;  %v15572_v19 = vpop.f32.mrf.mxu1  ;;  %v13788_v11 = vld [vmem:[#allocation7 + $0xc08] ss:$20 sps:$4 sm:$0xff]  }
 0x306   : > { %v3371_v45 = vpop.f32.mrf.mxu0  ;;  %5569 = vmatprep.subr.bf16.mxu0 %v13780_v46 }
 0x307   : > { %v3372_v21 = vadd.f32 %v3371_v45, %v15442_v40 }
 0x308   : > { %4575 = vmatpush2.bf16.msra.mxu1 %v13775_v33  ;;  %4685 = vmatmul.mubr.bf16.vlgmr.msra.gmra.mxu0 %v15492_v44  ;;  %v3373_v32 = vpop.f32.mrf.mxu0 }
 0x309   : > { %4692 = vmatprep.mubr.bf16.mxu0 %v15499_v1  ;;  %5570 = vmatpush1.bf16.msra.mxu0 %v13778_v36  ;;  %v3374_v18 = vadd.f32 %v3373_v32, %v15452_v29  ;;  %v13791_v29 = vld [vmem:[#allocation7 + $0xb00] ss:$20 sps:$4 sm:$0xff]  }
 0x30a   : > { %4576 = vmatprep.subr.bf16.mxu1 %v13783_v25  ;;  %v3375_v13 = vpop.f32.mrf.mxu0  ;;  %5571 = vmatprep.subr.bf16.mxu0 %v13786_v48  ;;  %v13794_v25 = vld [vmem:[#allocation7 + $0xbe4] ss:$20 sps:$4 sm:$0xff]  }
 0x30b   : > { %v3376_v27 = vadd.f32 %v3375_v13, %v15455_v17  ;;  %v13798_v13 = vld [vmem:[#allocation7 + $0xbbc] ss:$20 sps:$4 sm:$0xff]  }
 0x30c   : > { %4577 = vmatpush2.bf16.msra.mxu1 %v13781_v23  ;;  %v15574_v40 = vpop.f32.mrf.mxu0 }
 0x30d   : > { %5572 = vmatpush1.bf16.msra.mxu0 %v13784_v54  ;;  %12896 = vmatprep.subr.bf16.mxu1 %v13787_v20  ;;  %v13792_v54 = vld [vmem:[#allocation7 + $0xbe0] ss:$20 sps:$4 sm:$0xff]  }
 0x30e   : > { %v3424_v46 = vpop.f32.mrf.mxu1  ;;  %v3381_v33 = vpop.f32.mrf.mxu0  ;;  %5573 = vmatprep.subr.bf16.mxu0 %v13790_v0 }
 0x30f   : > { %v15576_v36 = vadd.f32 %v3424_v46, %v3372_v21  ;;  %4579 = vmatmul.mubr.bf16.vlgmr.msra.gmra.mxu1 %v15492_v44  ;;  %v3382_v45 = vadd.f32 %v3381_v33, %v15460_v52  ;;  %v13795_v52 = vld [vmem:[#allocation7 + $0xad8] ss:$20 sps:$4 sm:$0xff]  }
 0x310   : > { %4588 = vmatprep.mubr.bf16.mxu1 %v15499_v1  ;;  %4693 = vmatmul.mubr.bf16.gmra.mxu0 %v15520_v9  ;;  %v3426_v17 = vpop.f32.mrf.mxu1  ;;  %v3383_v48 = vpop.f32.mrf.mxu0 }
 0x311   : > { %12897 = vmatpush3.bf16.msra.mxu1 %v13787_v20  ;;  %v15582_v32 = vadd.f32 %v3426_v17, %v3374_v18  ;;  %5574 = vmatpush1.bf16.msra.mxu0 %v13788_v11  ;;  %v3384_v23 = vadd.f32 %v3383_v48, %v15463_v3  ;;  %v13796_v18 = vld [vmem:[#allocation7 + $0xbb8] ss:$20 sps:$4 sm:$0xff]   ;;  %v13799_v3 = vld [vmem:[#allocation7 + $0xab0] ss:$20 sps:$4 sm:$0xff]   ;;  %v13802_v11 = vld [vmem:[#allocation7 + $0xb94] ss:$20 sps:$4 sm:$0xff]  }
 0x312   : > { %5601 = vmatprep.mubr.bf16.mxu0 %v15379_v63  ;;  %v3428_v21 = vpop.f32.mrf.mxu1  ;;  %12898 = vmatprep.subr.bf16.mxu1 %v13791_v29  ;;  %v3385_v44 = vpop.f32.mrf.mxu0  ;;  %v13803_v17 = vld [vmem:[#allocation7 + $0xa88] ss:$20 sps:$4 sm:$0xff]   ;;  %v13806_v48 = vld [vmem:[#allocation7 + $0xb6c] ss:$20 sps:$4 sm:$0xff]  }
 0x313   : > { %v15586_v0 = vadd.f32 %v3428_v21, %v3376_v27  ;;  %v3386_v1 = vadd.f32 %v3385_v44, %v15465_v22  ;;  %5575 = vmatprep.subr.bf16.mxu0 %v13794_v25  ;;  %v13800_v25 = vld [vmem:[#allocation7 + $0xb90] ss:$20 sps:$4 sm:$0xff]   ;;  %v13811_v21 = vld [vmem:[#allocation7 + $0xa38] ss:$20 sps:$4 sm:$0xff]  }
 0x314   : > { %v15589_v46 = vpop.f32.mrf.mxu1  ;;  %v13814_v44 = vld [vmem:[#allocation7 + $0xd9c] ss:$20 sps:$4 sm:$0xff]  }
 0x315   : > { %12899 = vmatpush3.bf16.msra.mxu1 %v13791_v29  ;;  %5576 = vmatpush1.bf16.msra.mxu0 %v13792_v54 }
 0x316   : > { %v3434_v20 = vpop.f32.mrf.mxu1  ;;  %12900 = vmatprep.subr.bf16.mxu1 %v13795_v52  ;;  %5577 = vmatprep.subr.bf16.mxu0 %v13798_v13  ;;  %v13815_v13 = vld [vmem:[#allocation7 + $0xa10] ss:$20 sps:$4 sm:$0xff]  }
 0x317   : > { %v15591_v33 = vadd.f32 %v3434_v20, %v3382_v45  ;;  %4589 = vmatmul.mubr.bf16.gmra.mxu1 %v15520_v9  ;;  %v13804_v45 = vld [vmem:[#allocation7 + $0xb68] ss:$20 sps:$4 sm:$0xff]   ;;  %v13807_v9 = vld [vmem:[#allocation7 + $0xa60] ss:$20 sps:$4 sm:$0xff]  }
 0x318   : > { %12912 = vmatprep.mubr.bf16.mxu1 %v15516_v43  ;;  %v3436_v27 = vpop.f32.mrf.mxu1  ;;  %v13810_v43 = vld [vmem:[#allocation7 + $0xb44] ss:$20 sps:$4 sm:$0xff]  }
 0x319   : > { %12901 = vmatpush3.bf16.msra.mxu1 %v13795_v52  ;;  %v15595_v22 = vadd.f32 %v3436_v27, %v3384_v23  ;;  %5578 = vmatpush1.bf16.msra.mxu0 %v13796_v18  ;;  %v13808_v23 = vld [vmem:[#allocation7 + $0xb40] ss:$20 sps:$4 sm:$0xff]   ;;  %v13812_v52 = vld [vmem:[#allocation7 + $0xd98] ss:$20 sps:$4 sm:$0xff]   ;;  %v15599_v18 = vpop.f32.mrf.mxu0 }
 0x31a   : > { %v3438_v29 = vpop.f32.mrf.mxu1  ;;  %12902 = vmatprep.subr.bf16.mxu1 %v13799_v3  ;;  %5579 = vmatprep.subr.bf16.mxu0 %v13802_v11  ;;  %v13821_v11 = vld [vmem:[#allocation7 + $0xedc] ss:$20 sps:$4 sm:$0xff]   ;;  %v13824_v27 = vld [vmem:[#allocation7 + $0xd4c] ss:$20 sps:$4 sm:$0xff]  }
 0x31b   : > { %v15597_v54 = vadd.f32 %v3438_v29, %v3386_v1  ;;  %v13818_v1 = vld [vmem:[#allocation7 + $0xd74] ss:$20 sps:$4 sm:$0xff]   ;;  %v13819_v29 = vld [vmem:[#allocation7 + $0xed8] ss:$20 sps:$4 sm:$0xff]  }
 0x31d   : > { %12903 = vmatpush3.bf16.msra.mxu1 %v13799_v3  ;;  %5580 = vmatpush1.bf16.msra.mxu0 %v13800_v25  ;;  %v13816_v3 = vld [vmem:[#allocation7 + $0xd70] ss:$20 sps:$4 sm:$0xff]  }
 0x31e   : > { %12904 = vmatprep.subr.bf16.mxu1 %v13803_v17  ;;  %5581 = vmatprep.subr.bf16.mxu0 %v13806_v48  ;;  %v13827_v48 = vld [vmem:[#allocation7 + $0xeb4] ss:$20 sps:$4 sm:$0xff]  }
 0x321   : > { %12905 = vmatpush3.bf16.msra.mxu1 %v13803_v17  ;;  %5582 = vmatpush1.bf16.msra.mxu0 %v13804_v45  ;;  %v13822_v17 = vld [vmem:[#allocation7 + $0xd48] ss:$20 sps:$4 sm:$0xff]   ;;  %v13830_v45 = vld [vmem:[#allocation7 + $0xd24] ss:$20 sps:$4 sm:$0xff]  }
 0x322   : > { %12906 = vmatprep.subr.bf16.mxu1 %v13807_v9  ;;  %5583 = vmatprep.subr.bf16.mxu0 %v13810_v43  ;;  %v13825_v43 = vld [vmem:[#allocation7 + $0xeb0] ss:$20 sps:$4 sm:$0xff]  }
 0x325   : > { %12907 = vmatpush3.bf16.msra.mxu1 %v13807_v9  ;;  %5584 = vmatpush1.bf16.msra.mxu0 %v13808_v23  ;;  %v13828_v23 = vld [vmem:[#allocation7 + $0xd20] ss:$20 sps:$4 sm:$0xff]  }
 0x326   : > { %12908 = vmatprep.subr.bf16.mxu1 %v13811_v21  ;;  %5585 = vmatprep.subr.bf16.mxu0 %v13814_v44  ;;  %v13836_v44 = vld [vmem:[#allocation7 + $0xcfc] ss:$20 sps:$4 sm:$0xff]  }
 0x327   : > { %v15601_v20 = vpop.f32.mrf.mxu0 }
 0x329   : > { %12909 = vmatpush3.bf16.msra.mxu1 %v13811_v21  ;;  %5586 = vmatpush2.bf16.msra.mxu0 %v13812_v52  ;;  %v15603_v25 = vpop.f32.mrf.mxu0  ;;  %v13833_v21 = vld [vmem:[#allocation7 + $0xe8c] ss:$20 sps:$4 sm:$0xff]   ;;  %v16654_v52 = vmov 0  }
 0x32a   : > { %12910 = vmatprep.subr.bf16.mxu1 %v13815_v13  ;;  %5587 = vmatprep.subr.bf16.mxu0 %v13818_v1  ;;  %v13831_v1 = vld [vmem:[#allocation7 + $0xe88] ss:$20 sps:$4 sm:$0xff]  }
 0x32b   : > { %v15606_v9 = vpop.f32.mrf.mxu0 }
 0x32d   : > { %12911 = vmatpush3.bf16.msra.mxu1 %v13815_v13  ;;  %5588 = vmatpush2.bf16.msra.mxu0 %v13816_v3  ;;  %v15609_v13 = vpop.f32.mrf.mxu0  ;;  %v13834_v3 = vld [vmem:[#allocation7 + $0xcf8] ss:$20 sps:$4 sm:$0xff]  }
 0x32e   : > { %5622 = vmatprep.subr.bf16.mxu1 %v13821_v11  ;;  %5589 = vmatprep.subr.bf16.mxu0 %v13824_v27  ;;  %16655 = vst [vmem:[#allocation39_spill] sm:$0xff] %v15609_v13  ;;  %v13842_v11 = vld [vmem:[#allocation7 + $0xcd4] ss:$20 sps:$4 sm:$0xff]   ;;  %v15628_v13 = vpop.f32.mrf.mxu1 }
 0x32f   : > { %v15611_v27 = vpop.f32.mrf.mxu0 }
 0x330   : > { %12913 = vmatmul.mubr.bf16.vlgmr.msra.gmra.mxu1 %v15543_v56  ;;  %v13839_v56 = vld [vmem:[#allocation7 + $0xe64] ss:$20 sps:$4 sm:$0xff]  }
 0x331   : > { %5623 = vmatpush1.bf16.msra.mxu1 %v13819_v29  ;;  %5590 = vmatpush2.bf16.msra.mxu0 %v13822_v17  ;;  %v13837_v29 = vld [vmem:[#allocation7 + $0xe60] ss:$20 sps:$4 sm:$0xff]   ;;  %v13840_v17 = vld [vmem:[#allocation7 + $0xcd0] ss:$20 sps:$4 sm:$0xff]   ;;  %v15613_v50 = vpop.f32.mrf.mxu0 }
 0x332   : > { %5624 = vmatprep.subr.bf16.mxu1 %v13827_v48  ;;  %5591 = vmatprep.subr.bf16.mxu0 %v13830_v45  ;;  %v13845_v48 = vld [vmem:[#allocation7 + $0xe3c] ss:$20 sps:$4 sm:$0xff]   ;;  %v13848_v45 = vld [vmem:[#allocation7 + $0xcac] ss:$20 sps:$4 sm:$0xff]  }
 0x333   : > { %5654 = vmatprep.mubr.bf16.mxu1 %v16654_v52  ;;  %v15615_v4 = vpop.f32.mrf.mxu0 }
 0x335   : > { %5625 = vmatpush1.bf16.msra.mxu1 %v13825_v43  ;;  %5592 = vmatpush2.bf16.msra.mxu0 %v13828_v23  ;;  %v13843_v43 = vld [vmem:[#allocation7 + $0xe38] ss:$20 sps:$4 sm:$0xff]   ;;  %v13846_v23 = vld [vmem:[#allocation7 + $0xca8] ss:$20 sps:$4 sm:$0xff]   ;;  %v15617_v41 = vpop.f32.mrf.mxu0 }
 0x336   : > { %5626 = vmatprep.subr.bf16.mxu1 %v13833_v21  ;;  %5593 = vmatprep.subr.bf16.mxu0 %v13836_v44  ;;  %v13851_v21 = vld [vmem:[#allocation7 + $0xe14] ss:$20 sps:$4 sm:$0xff]   ;;  %v13854_v44 = vld [vmem:[#allocation7 + $0xc84] ss:$20 sps:$4 sm:$0xff]   ;;  %16656 = vst [vmem:[#allocation40_spill] sm:$0xff] %v15617_v41  ;;  %v12468_v41 = vadd.f32 %v15508_v38, %v15504_v39  ;;  %v15638_v39 = vsel %vm1044_vm4, %v15381_v47, %v15249_v61 }
 0x339   : > { %5627 = vmatpush1.bf16.msra.mxu1 %v13831_v1  ;;  %5594 = vmatpush2.bf16.msra.mxu0 %v13834_v3  ;;  %v13849_v1 = vld [vmem:[#allocation7 + $0xe10] ss:$20 sps:$4 sm:$0xff]   ;;  %v13852_v3 = vld [vmem:[#allocation7 + $0xc80] ss:$20 sps:$4 sm:$0xff]  }
 0x33a   : > { %5628 = vmatprep.subr.bf16.mxu1 %v13839_v56  ;;  %5595 = vmatprep.subr.bf16.mxu0 %v13842_v11  ;;  %v13857_v56 = vld [vmem:[#allocation7 + $0xdec] ss:$20 sps:$4 sm:$0xff]   ;;  %v13860_v11 = vld [vmem:[#allocation7 + $0xee4] ss:$20 sps:$4 sm:$0xff]  }
 0x33d   : > { %5629 = vmatpush1.bf16.msra.mxu1 %v13837_v29  ;;  %5596 = vmatpush2.bf16.msra.mxu0 %v13840_v17  ;;  %v13855_v29 = vld [vmem:[#allocation7 + $0xde8] ss:$20 sps:$4 sm:$0xff]   ;;  %v13858_v17 = vld [vmem:[#allocation7 + $0xee0] ss:$20 sps:$4 sm:$0xff]  }
 0x33e   : > { %5630 = vmatprep.subr.bf16.mxu1 %v13845_v48  ;;  %5597 = vmatprep.subr.bf16.mxu0 %v13848_v45  ;;  %v13863_v48 = vld [vmem:[#allocation7 + $0xdc4] ss:$20 sps:$4 sm:$0xff]  }
 0x341   : > { %5631 = vmatpush1.bf16.msra.mxu1 %v13843_v43  ;;  %5598 = vmatpush2.bf16.msra.mxu0 %v13846_v23  ;;  %v15623_v43 = vsel %vm1044_vm4, %v15375_v8, %v15249_v61 }
 0x342   : > { %5632 = vmatprep.subr.bf16.mxu1 %v13851_v21  ;;  %5599 = vmatprep.subr.bf16.mxu0 %v13854_v44  ;;  %v13861_v21 = vld [vmem:[#allocation7 + $0xdc0] ss:$20 sps:$4 sm:$0xff]  }
 0x345   : > { %5633 = vmatpush1.bf16.msra.mxu1 %v13849_v1  ;;  %5600 = vmatpush2.bf16.msra.mxu0 %v13852_v3  ;;  %v13864_v1 = vld [vmem:[#allocation7 + $0xeb8] ss:$20 sps:$4 sm:$0xff]  }
 0x346   : > { %5634 = vmatprep.subr.bf16.mxu1 %v13857_v56  ;;  %5728 = vmatprep.subr.bf16.mxu0 %v13860_v11  ;;  %v13869_v3 = vld [vmem:[#allocation7 + $0xc64] ss:$20 sps:$4 sm:$0xff]   ;;  %v13872_v11 = vld [vmem:[#allocation7 + $0xe94] ss:$20 sps:$4 sm:$0xff]  }
 0x347   : > { %v12501_v45 = vpop.f32.mrf.mxu0 }
 0x348   : > { %5602 = vmatmul.mubr.bf16.vlgmr.msra.gmra.mxu0 %v15393_v10 }
 0x349   : > { %5635 = vmatpush1.bf16.msra.mxu1 %v13855_v29  ;;  %5611 = vmatprep.mubr.bf16.mxu0 %v15623_v43  ;;  %v12502_v23 = vpop.f32.mrf.mxu0 }
 0x34a   : > { %5729 = vmatpush1.bf16.msra.mxu0 %v13858_v17  ;;  %v12503_v44 = vadd.f32 %v12502_v23, %v12501_v45  ;;  %5636 = vmatprep.subr.bf16.mxu1 %v13863_v48  ;;  %v2702_v17 = vadd.f32 %v12468_v41, %v15572_v19  ;;  %v13870_v23 = vld [vmem:[#allocation7 + $0xe90] ss:$20 sps:$4 sm:$0xff]  }
 0x34b   : > { %v12504_v56 = vpop.f32.mrf.mxu0  ;;  %5730 = vmatprep.subr.bf16.mxu0 %v13866_v26  ;;  %v13875_v26 = vld [vmem:[#allocation7 + $0xc3c] ss:$20 sps:$4 sm:$0xff]  }
 0x34c   : > { %v15631_v8 = vadd.f32 %v12503_v44, %v15562_v58  ;;  %v13878_v58 = vld [vmem:[#allocation7 + $0xe6c] ss:$20 sps:$4 sm:$0xff]  }
 0x34d   : > { %5637 = vmatpush1.bf16.msra.mxu1 %v13861_v21  ;;  %v12505_v29 = vpop.f32.mrf.mxu0  ;;  %v13873_v44 = vld [vmem:[#allocation7 + $0xc38] ss:$20 sps:$4 sm:$0xff]  }
 0x34e   : > { %5731 = vmatpush1.bf16.msra.mxu0 %v13864_v1  ;;  %v12506_v48 = vadd.f32 %v12505_v29, %v12504_v56  ;;  %v3477_v45 = vpop.f32.mrf.mxu1  ;;  %5675 = vmatprep.subr.bf16.mxu1 %v13869_v3  ;;  %v13876_v3 = vld [vmem:[#allocation7 + $0xe68] ss:$20 sps:$4 sm:$0xff]  }
 0x34f   : > { %v3478_v12 = vadd.f32 %v3477_v45, %v15511_v30  ;;  %v12507_v51 = vpop.f32.mrf.mxu0  ;;  %5732 = vmatprep.subr.bf16.mxu0 %v13872_v11  ;;  %v13881_v56 = vld [vmem:[#allocation7 + $0xc14] ss:$20 sps:$4 sm:$0xff]  }
 0x350   : > { %5655 = vmatmul.mubr.bf16.vlgmr.msra.gmra.mxu1 %v15401_v14  ;;  %5612 = vmatmul.mubr.bf16.gmra.mxu0 %v15638_v39  ;;  %v3479_v41 = vpop.f32.mrf.mxu1  ;;  %v15642_v38 = vadd.f32 %v12506_v48, %v2702_v17  ;;  %v13879_v48 = vld [vmem:[#allocation7 + $0xc10] ss:$20 sps:$4 sm:$0xff]  }
 0x351   : > { %v15645_v19 = vadd.f32 %v15601_v20, %v3478_v12  ;;  %5676 = vmatpush1.bf16.msra.mxu1 %v13867_v42  ;;  %v3480_v30 = vadd.f32 %v3479_v41, %v15525_v28  ;;  %v12508_v21 = vpop.f32.mrf.mxu0  ;;  %5664 = vmatprep.mubr.bf16.mxu1 %v16654_v52  ;;  %v13884_v42 = vld [vmem:[#allocation7 + $0xe44] ss:$20 sps:$4 sm:$0xff]  }
 0x352   : > { %5733 = vmatpush1.bf16.msra.mxu0 %v13870_v23  ;;  %v12509_v47 = vadd.f32 %v12508_v21, %v12507_v51  ;;  %v3481_v1 = vpop.f32.mrf.mxu1  ;;  %5677 = vmatprep.subr.bf16.mxu1 %v13875_v26  ;;  %v13887_v23 = vld [vmem:[#allocation7 + $0xbec] ss:$20 sps:$4 sm:$0xff]   ;;  %v13885_v21 = vld [vmem:[#allocation7 + $0xbe8] ss:$20 sps:$4 sm:$0xff]  }
 0x353   : > { %v15650_v11 = vadd.f32 %v15603_v25, %v3480_v30  ;;  %v3482_v29 = vadd.f32 %v3481_v1, %v15531_v53  ;;  %v12510_v12 = vpop.f32.mrf.mxu0  ;;  %5734 = vmatprep.subr.bf16.mxu0 %v13878_v58  ;;  %5760 = vmatprep.mubr.bf16.mxu0 %v16654_v52  ;;  %v13882_v53 = vld [vmem:[#allocation7 + $0xe40] ss:$20 sps:$4 sm:$0xff]   ;;  %v15666_v58 = vsel %vm1044_vm4, %v15396_v7, %v15249_v61  ;;  %v13888_v7 = vld [vmem:[#allocation7 + $0xe18] ss:$20 sps:$4 sm:$0xff]  }
 0x354   : > { %v15654_v28 = vpop.f32.mrf.mxu1  ;;  %v15657_v20 = vadd.f32 %v12509_v47, %v15558_v31  ;;  %v13890_v31 = vld [vmem:[#allocation7 + $0xe1c] ss:$20 sps:$4 sm:$0xff]   ;;  %v13896_v1 = vld [vmem:[#allocation7 + $0xdf4] ss:$20 sps:$4 sm:$0xff]  }
 0x355   : > { %v15660_v51 = vadd.f32 %v15606_v9, %v3482_v29  ;;  %5678 = vmatpush1.bf16.msra.mxu1 %v13873_v44  ;;  %v12511_v17 = vpop.f32.mrf.mxu0  ;;  %v13893_v44 = vld [vmem:[#allocation7 + $0xbc4] ss:$20 sps:$4 sm:$0xff]   ;;  %v13902_v29 = vld [vmem:[#allocation7 + $0xdcc] ss:$20 sps:$4 sm:$0xff]  }
 0x356   : > { %5735 = vmatpush1.bf16.msra.mxu0 %v13876_v3  ;;  %v12512_v25 = vadd.f32 %v12511_v17, %v12510_v12  ;;  %v3487_v45 = vpop.f32.mrf.mxu1  ;;  %5679 = vmatprep.subr.bf16.mxu1 %v13881_v56  ;;  %v13891_v3 = vld [vmem:[#allocation7 + $0xbc0] ss:$20 sps:$4 sm:$0xff]   ;;  %v13899_v56 = vld [vmem:[#allocation7 + $0xb9c] ss:$20 sps:$4 sm:$0xff]   ;;  %v13897_v12 = vld [vmem:[#allocation7 + $0xb98] ss:$20 sps:$4 sm:$0xff]  }
 0x357   : > { %v3488_v26 = vadd.f32 %v3487_v45, %v15537_v35  ;;  %5736 = vmatprep.subr.bf16.mxu0 %v13884_v42  ;;  %v13905_v42 = vld [vmem:[#allocation7 + $0xb74] ss:$20 sps:$4 sm:$0xff]   ;;  %v13903_v17 = vld [vmem:[#allocation7 + $0xb70] ss:$20 sps:$4 sm:$0xff]  }
 0x358   : > { %5665 = vmatmul.mubr.bf16.gmra.mxu1 %v15666_v58  ;;  %v3489_v9 = vpop.f32.mrf.mxu1  ;;  %v15670_v41 = vadd.f32 %v12512_v25, %v15565_v55  ;;  %v13911_v25 = vld [vmem:[#allocation7 + $0xd80] ss:$20 sps:$4 sm:$0xff]   ;;  %v13908_v45 = vld [vmem:[#allocation7 + $0xb48] ss:$20 sps:$4 sm:$0xff]  }
 0x359   : > { %v15673_v30 = vadd.f32 %v15611_v27, %v3488_v26  ;;  %5680 = vmatpush1.bf16.msra.mxu1 %v13879_v48  ;;  %5707 = vmatprep.mubr.bf16.mxu1 %v15379_v63  ;;  %v3490_v35 = vadd.f32 %v3489_v9, %v15548_v34  ;;  %v13894_v34 = vld [vmem:[#allocation7 + $0xdf0] ss:$20 sps:$4 sm:$0xff]   ;;  %v13910_v48 = vld [vmem:[#allocation7 + $0xb4c] ss:$20 sps:$4 sm:$0xff]  }
 0x35a   : > { %5737 = vmatpush1.bf16.msra.mxu0 %v13882_v53  ;;  %v3491_v61 = vpop.f32.mrf.mxu1  ;;  %5681 = vmatprep.subr.bf16.mxu1 %v13887_v23  ;;  %v13912_v53 = vld [vmem:[#allocation7 + $0xc40] ss:$20 sps:$4 sm:$0xff]   ;;  %v13915_v23 = vld [vmem:[#allocation7 + $0xda4] ss:$20 sps:$4 sm:$0xff]  }
 0x35b   : > { %v15678_v47 = vadd.f32 %v15613_v50, %v3490_v35  ;;  %v3492_v55 = vadd.f32 %v3491_v61, %v15551_v59  ;;  %5738 = vmatprep.subr.bf16.mxu0 %v13890_v31  ;;  %v13900_v50 = vld [vmem:[#allocation7 + $0xdc8] ss:$20 sps:$4 sm:$0xff]   ;;  %v13916_v26 = vld [vmem:[#allocation7 + $0xd58] ss:$20 sps:$4 sm:$0xff]   ;;  %v13913_v9 = vld [vmem:[#allocation7 + $0xda0] ss:$20 sps:$4 sm:$0xff]  }
 0x35c   : > { %v13906_v59 = vld [vmem:[#allocation7 + $0xda8] ss:$20 sps:$4 sm:$0xff]   ;;  %v15686_v31 = vpop.f32.mrf.mxu1  ;;  %v13917_v35 = vld [vmem:[#allocation7 + $0xc18] ss:$20 sps:$4 sm:$0xff]  }
 0x35d   : > { %v15682_v27 = vadd.f32 %v15615_v4, %v3492_v55  ;;  %5682 = vmatpush1.bf16.msra.mxu1 %v13885_v21  ;;  %v13907_v4 = vld [vmem:[#allocation7 + $0xc68] ss:$20 sps:$4 sm:$0xff]  }
 0x35e   : > { %5739 = vmatpush1.bf16.msra.mxu0 %v13888_v7  ;;  %5683 = vmatprep.subr.bf16.mxu1 %v13893_v44  ;;  %v13920_v61 = vld [vmem:[#allocation7 + $0xd7c] ss:$20 sps:$4 sm:$0xff]  }
 0x35f   : > { %5740 = vmatprep.subr.bf16.mxu0 %v13896_v1  ;;  %v13921_v7 = vld [vmem:[#allocation7 + $0xd30] ss:$20 sps:$4 sm:$0xff]   ;;  %v13918_v1 = vld [vmem:[#allocation7 + $0xd78] ss:$20 sps:$4 sm:$0xff]  }
 0x361   : > { %5684 = vmatpush1.bf16.msra.mxu1 %v13891_v3 }
 0x362   : > { %5741 = vmatpush1.bf16.msra.mxu0 %v13894_v34  ;;  %5685 = vmatprep.subr.bf16.mxu1 %v13899_v56  ;;  %v13922_v34 = vld [vmem:[#allocation7 + $0xbf0] ss:$20 sps:$4 sm:$0xff]   ;;  %v13925_v56 = vld [vmem:[#allocation7 + $0xd54] ss:$20 sps:$4 sm:$0xff]  }
 0x363   : > { %5742 = vmatprep.subr.bf16.mxu0 %v13902_v29 }
 0x365   : > { %5686 = vmatpush1.bf16.msra.mxu1 %v13897_v12  ;;  %v13926_v12 = vld [vmem:[#allocation7 + $0xd08] ss:$20 sps:$4 sm:$0xff]  }
 0x366   : > { %5743 = vmatpush1.bf16.msra.mxu0 %v13900_v50  ;;  %5687 = vmatprep.subr.bf16.mxu1 %v13905_v42  ;;  %v13923_v50 = vld [vmem:[#allocation7 + $0xd50] ss:$20 sps:$4 sm:$0xff]   ;;  %v13927_v42 = vld [vmem:[#allocation7 + $0xbc8] ss:$20 sps:$4 sm:$0xff]  }
 0x367   : > { %12561 = vmatprep.subr.bf16.mxu0 %v13906_v59  ;;  %v13930_v59 = vld [vmem:[#allocation7 + $0xd2c] ss:$20 sps:$4 sm:$0xff]  }
 0x369   : > { %5688 = vmatpush1.bf16.msra.mxu1 %v13903_v17  ;;  %5761 = vmatmul.mubr.bf16.vlgmr.msra.gmra.mxu0 %v15401_v14  ;;  %v13928_v17 = vld [vmem:[#allocation7 + $0xd28] ss:$20 sps:$4 sm:$0xff]  }
 0x36a   : > { %12562 = vmatpush3.bf16.msra.mxu0 %v13907_v4  ;;  %5689 = vmatprep.subr.bf16.mxu1 %v13910_v48  ;;  %v13935_v4 = vld [vmem:[#allocation7 + $0xd04] ss:$20 sps:$4 sm:$0xff]  }
 0x36b   : > { %12563 = vmatprep.subr.bf16.mxu0 %v13911_v25  ;;  %5770 = vmatprep.mubr.bf16.mxu0 %v16654_v52  ;;  %v13936_v48 = vld [vmem:[#allocation7 + $0xcb8] ss:$20 sps:$4 sm:$0xff]   ;;  %v13933_v25 = vld [vmem:[#allocation7 + $0xd00] ss:$20 sps:$4 sm:$0xff]  }
 0x36d   : > { %5690 = vmatpush1.bf16.msra.mxu1 %v13908_v45  ;;  %v13940_v45 = vld [vmem:[#allocation7 + $0xcdc] ss:$20 sps:$4 sm:$0xff]  }
 0x36e   : > { %12564 = vmatpush3.bf16.msra.mxu0 %v13912_v53  ;;  %5691 = vmatprep.subr.bf16.mxu1 %v13915_v23  ;;  %v13941_v53 = vld [vmem:[#allocation7 + $0xc90] ss:$20 sps:$4 sm:$0xff]   ;;  %v13938_v23 = vld [vmem:[#allocation7 + $0xcd8] ss:$20 sps:$4 sm:$0xff]  }
 0x36f   : > { %v12894_v21 = vpop.f32.mrf.mxu1  ;;  %12565 = vmatprep.subr.bf16.mxu0 %v13916_v26  ;;  %v13942_v26 = vld [vmem:[#allocation7 + $0xb50] ss:$20 sps:$4 sm:$0xff]  }
 0x370   : > { %v15689_v44 = vadd.f32 %v12894_v21, %v15657_v20  ;;  %v13943_v21 = vld [vmem:[#allocation7 + $0xcb0] ss:$20 sps:$4 sm:$0xff]  }
 0x371   : > { %5692 = vmatpush2.bf16.msra.mxu1 %v13913_v9  ;;  %5771 = vmatmul.mubr.bf16.gmra.mxu0 %v15666_v58  ;;  %v3632_v55 = vpop.f32.mrf.mxu1  ;;  %v13945_v9 = vld [vmem:[#allocation7 + $0xcb4] ss:$20 sps:$4 sm:$0xff]  }
 0x372   : > { %v15693_v3 = vadd.f32 %v3632_v55, %v15631_v8  ;;  %12566 = vmatpush3.bf16.msra.mxu0 %v13917_v35  ;;  %5813 = vmatprep.mubr.bf16.mxu0 %v15379_v63  ;;  %v13931_v8 = vld [vmem:[#allocation7 + $0xce0] ss:$20 sps:$4 sm:$0xff]   ;;  %v13948_v35 = vld [vmem:[#allocation7 + $0x101c] ss:$20 sps:$4 sm:$0xff]  }
 0x373   : > { %v12895_v29 = vpop.f32.mrf.mxu1  ;;  %5693 = vmatprep.subr.bf16.mxu1 %v13920_v61  ;;  %12567 = vmatprep.subr.bf16.mxu0 %v13921_v7  ;;  %v13932_v63 = vld [vmem:[#allocation7 + $0xba0] ss:$20 sps:$4 sm:$0xff]   ;;  %v13946_v61 = vld [vmem:[#allocation7 + $0x1018] ss:$20 sps:$4 sm:$0xff]  }
 0x374   : > { %v15697_v20 = vadd.f32 %v12895_v29, %v15670_v41  ;;  %v13937_v41 = vld [vmem:[#allocation7 + $0xb78] ss:$20 sps:$4 sm:$0xff]   ;;  %v13952_v29 = vld [vmem:[#allocation7 + $0xff0] ss:$20 sps:$4 sm:$0xff]  }
 0x375   : > { %5694 = vmatpush2.bf16.msra.mxu1 %v13918_v1  ;;  %v13951_v55 = vld [vmem:[#allocation7 + $0xc8c] ss:$20 sps:$4 sm:$0xff]   ;;  %v13954_v1 = vld [vmem:[#allocation7 + $0xff4] ss:$20 sps:$4 sm:$0xff]  }
 0x376   : > { %12568 = vmatpush3.bf16.msra.mxu0 %v13922_v34  ;;  %5695 = vmatprep.subr.bf16.mxu1 %v13925_v56  ;;  %v13949_v56 = vld [vmem:[#allocation7 + $0xc88] ss:$20 sps:$4 sm:$0xff]  }
 0x377   : > { %12569 = vmatprep.subr.bf16.mxu0 %v13926_v12  ;;  %v13955_v12 = vld [vmem:[#allocation7 + $0xee8] ss:$20 sps:$4 sm:$0xff]  }
 0x379   : > { %5696 = vmatpush2.bf16.msra.mxu1 %v13923_v50 }
 0x37a   : > { %12570 = vmatpush3.bf16.msra.mxu0 %v13927_v42  ;;  %5697 = vmatprep.subr.bf16.mxu1 %v13930_v59  ;;  %v13958_v42 = vld [vmem:[#allocation7 + $0xfcc] ss:$20 sps:$4 sm:$0xff]   ;;  %v15701_v59 = vpop.f32.mrf.mxu1 }
 0x37b   : > { %12571 = vmatprep.subr.bf16.mxu0 %v13931_v8  ;;  %v13956_v8 = vld [vmem:[#allocation7 + $0xfc8] ss:$20 sps:$4 sm:$0xff]  }
 0x37d   : > { %5698 = vmatpush2.bf16.msra.mxu1 %v13928_v17  ;;  %v6048_v17 = vrot.slane %v15347_v62, 2 }
 0x37e   : > { %12572 = vmatpush3.bf16.msra.mxu0 %v13932_v63  ;;  %5699 = vmatprep.subr.bf16.mxu1 %v13935_v4 }
 0x37f   : > { %12573 = vmatprep.subr.bf16.mxu0 %v13936_v48  ;;  %v13959_v48 = vld [vmem:[#allocation7 + $0xec0] ss:$20 sps:$4 sm:$0xff]  }
 0x381   : > { %5700 = vmatpush2.bf16.msra.mxu1 %v13933_v25 }
 0x382   : > { %12574 = vmatpush3.bf16.msra.mxu0 %v13937_v41  ;;  %5701 = vmatprep.subr.bf16.mxu1 %v13940_v45  ;;  %v6047_v41 = vrot.slane %v15333_v24, 2  ;;  %v13962_v45 = vld [vmem:[#allocation7 + $0xfa4] ss:$20 sps:$4 sm:$0xff]  }
 0x383   : > { %12575 = vmatprep.subr.bf16.mxu0 %v13941_v53 }
 0x385   : > { %5702 = vmatpush2.bf16.msra.mxu1 %v13938_v23 }
 0x386   : > { %12576 = vmatpush3.bf16.msra.mxu0 %v13942_v26  ;;  %5703 = vmatprep.subr.bf16.mxu1 %v13945_v9  ;;  %v15716_v9 = vsel %vm603_vm0, %v6047_v41, %v6048_v17  ;;  %v13974_v41 = vld [vmem:[#allocation7 + $0xf2c] ss:$20 sps:$4 sm:$0xff]  }
 0x387   : > { %v4474_v7 = vpop.f32.mrf.mxu0  ;;  %6686 = vmatprep.subr.bf16.mxu0 %v13948_v35 }
 0x389   : > { %5704 = vmatpush2.bf16.msra.mxu1 %v13943_v21  ;;  %5814 = vmatmul.mubr.bf16.vlgmr.msra.gmra.mxu0 %v15393_v10  ;;  %v4476_v34 = vpop.f32.mrf.mxu0  ;;  %v13966_v21 = vld [vmem:[#allocation7 + $0xf7c] ss:$20 sps:$4 sm:$0xff]  }
 0x38a   : > { %5821 = vmatprep.mubr.bf16.mxu0 %v15623_v43  ;;  %6687 = vmatpush1.bf16.msra.mxu0 %v13946_v61 }
 0x38b   : > { %5705 = vmatprep.subr.bf16.mxu1 %v13951_v55  ;;  %v4478_v50 = vpop.f32.mrf.mxu0  ;;  %6688 = vmatprep.subr.bf16.mxu0 %v13954_v1  ;;  %v13964_v1 = vld [vmem:[#allocation7 + $0xf78] ss:$20 sps:$4 sm:$0xff]  }
 0x38d   : > { %5706 = vmatpush2.bf16.msra.mxu1 %v13949_v56  ;;  %v15704_v63 = vpop.f32.mrf.mxu0 }
 0x38e   : > { %6689 = vmatpush1.bf16.msra.mxu0 %v13952_v29  ;;  %12916 = vmatprep.subr.bf16.mxu1 %v13955_v12  ;;  %v13967_v29 = vld [vmem:[#allocation7 + $0xe70] ss:$20 sps:$4 sm:$0xff]  }
 0x38f   : > { %v4527_v4 = vpop.f32.mrf.mxu1  ;;  %6690 = vmatprep.subr.bf16.mxu0 %v13958_v42  ;;  %v4484_v35 = vpop.f32.mrf.mxu0 }
 0x390   : > { %v4528_v25 = vadd.f32 %v4527_v4, %v4474_v7  ;;  %5708 = vmatmul.mubr.bf16.vlgmr.msra.gmra.mxu1 %v15393_v10  ;;  %v13960_v10 = vld [vmem:[#allocation7 + $0xfa0] ss:$20 sps:$4 sm:$0xff]  }
 0x391   : > { %5717 = vmatprep.mubr.bf16.mxu1 %v15623_v43  ;;  %5822 = vmatmul.mubr.bf16.gmra.mxu0 %v15638_v39  ;;  %v4529_v53 = vpop.f32.mrf.mxu1  ;;  %v13963_v43 = vld [vmem:[#allocation7 + $0xe98] ss:$20 sps:$4 sm:$0xff]  }
 0x392   : > { %v15711_v23 = vadd.f32 %v4528_v25, %v15576_v36  ;;  %12917 = vmatpush3.bf16.msra.mxu1 %v13955_v12  ;;  %v4530_v26 = vadd.f32 %v4529_v53, %v4476_v34  ;;  %6691 = vmatpush1.bf16.msra.mxu0 %v13956_v8  ;;  %v4486_v34 = vpop.f32.mrf.mxu0  ;;  %v13970_v12 = vld [vmem:[#allocation7 + $0xf54] ss:$20 sps:$4 sm:$0xff]   ;;  %v13968_v8 = vld [vmem:[#allocation7 + $0xf50] ss:$20 sps:$4 sm:$0xff]  }
 0x393   : > { %6718 = vmatprep.mubr.bf16.mxu0 %v15716_v9  ;;  %v4531_v24 = vpop.f32.mrf.mxu1  ;;  %12918 = vmatprep.subr.bf16.mxu1 %v13959_v48  ;;  %v13971_v25 = vld [vmem:[#allocation7 + $0xe48] ss:$20 sps:$4 sm:$0xff]   ;;  %v13975_v53 = vld [vmem:[#allocation7 + $0xe20] ss:$20 sps:$4 sm:$0xff]  }
 0x394   : > { %v15720_v61 = vadd.f32 %v4530_v26, %v15582_v32  ;;  %v4532_v36 = vadd.f32 %v4531_v24, %v4478_v50  ;;  %6692 = vmatprep.subr.bf16.mxu0 %v13962_v45  ;;  %v4488_v4 = vpop.f32.mrf.mxu0  ;;  %v13978_v26 = vld [vmem:[#allocation7 + $0xf04] ss:$20 sps:$4 sm:$0xff]   ;;  %v13982_v24 = vld [vmem:[#allocation7 + $0x115c] ss:$20 sps:$4 sm:$0xff]  }
 0x395   : > { %v15722_v7 = vpop.f32.mrf.mxu1 }
 0x396   : > { %v15725_v55 = vadd.f32 %v4532_v36, %v15586_v0  ;;  %12919 = vmatpush3.bf16.msra.mxu1 %v13959_v48  ;;  %6693 = vmatpush1.bf16.msra.mxu0 %v13960_v10  ;;  %v13976_v10 = vld [vmem:[#allocation7 + $0xf00] ss:$20 sps:$4 sm:$0xff]  }
 0x397   : > { %v4537_v56 = vpop.f32.mrf.mxu1  ;;  %12920 = vmatprep.subr.bf16.mxu1 %v13963_v43  ;;  %6694 = vmatprep.subr.bf16.mxu0 %v13966_v21  ;;  %v15738_v21 = vpop.f32.mrf.mxu0 }
 0x398   : > { %v4538_v42 = vadd.f32 %v4537_v56, %v4484_v35  ;;  %5718 = vmatmul.mubr.bf16.gmra.mxu1 %v15638_v39  ;;  %v13979_v35 = vld [vmem:[#allocation7 + $0xdf8] ss:$20 sps:$4 sm:$0xff]  }
 0x399   : > { %12932 = vmatprep.mubr.bf16.mxu1 %v15401_v14  ;;  %v4539_v32 = vpop.f32.mrf.mxu1  ;;  %v13992_v56 = vld [vmem:[#allocation7 + $0x110c] ss:$20 sps:$4 sm:$0xff]  }
 0x39a   : > { %v15730_v50 = vadd.f32 %v4538_v42, %v15591_v33  ;;  %12921 = vmatpush3.bf16.msra.mxu1 %v13963_v43  ;;  %v4540_v0 = vadd.f32 %v4539_v32, %v4486_v34  ;;  %6695 = vmatpush1.bf16.msra.mxu0 %v13964_v1  ;;  %v13972_v33 = vld [vmem:[#allocation7 + $0xf28] ss:$20 sps:$4 sm:$0xff]   ;;  %v13984_v1 = vld [vmem:[#allocation7 + $0x1130] ss:$20 sps:$4 sm:$0xff]  }
 0x39b   : > { %v4541_v48 = vpop.f32.mrf.mxu1  ;;  %12922 = vmatprep.subr.bf16.mxu1 %v13967_v29  ;;  %6696 = vmatprep.subr.bf16.mxu0 %v13970_v12  ;;  %v13986_v43 = vld [vmem:[#allocation7 + $0x1134] ss:$20 sps:$4 sm:$0xff]   ;;  %v13989_v34 = vld [vmem:[#allocation7 + $0x129c] ss:$20 sps:$4 sm:$0xff]   ;;  %v13987_v12 = vld [vmem:[#allocation7 + $0x1298] ss:$20 sps:$4 sm:$0xff]  }
 0x39c   : > { %v15733_v45 = vadd.f32 %v4540_v0, %v15595_v22  ;;  %v4542_v39 = vadd.f32 %v4541_v48, %v4488_v4  ;;  %v13980_v22 = vld [vmem:[#allocation7 + $0x1158] ss:$20 sps:$4 sm:$0xff]   ;;  %v13990_v42 = vld [vmem:[#allocation7 + $0x1108] ss:$20 sps:$4 sm:$0xff]   ;;  %v13993_v4 = vld [vmem:[#allocation7 + $0x1270] ss:$20 sps:$4 sm:$0xff]  }
 0x39d   : > { %v13995_v32 = vld [vmem:[#allocation7 + $0x1274] ss:$20 sps:$4 sm:$0xff]   ;;  %v13998_v0 = vld [vmem:[#allocation7 + $0x10e4] ss:$20 sps:$4 sm:$0xff]   ;;  %v15774_v62 = vpop.f32.mrf.mxu1 }
 0x39e   : > { %v15736_v14 = vadd.f32 %v4542_v39, %v15597_v54  ;;  %12923 = vmatpush3.bf16.msra.mxu1 %v13967_v29  ;;  %6697 = vmatpush1.bf16.msra.mxu0 %v13968_v8  ;;  %v13983_v54 = vld [vmem:[#allocation7 + $0xdd0] ss:$20 sps:$4 sm:$0xff]   ;;  %v13996_v48 = vld [vmem:[#allocation7 + $0x10e0] ss:$20 sps:$4 sm:$0xff]  }
 0x39f   : > { %12924 = vmatprep.subr.bf16.mxu1 %v13971_v25  ;;  %6698 = vmatprep.subr.bf16.mxu0 %v13974_v41  ;;  %v14004_v41 = vld [vmem:[#allocation7 + $0x10bc] ss:$20 sps:$4 sm:$0xff]  }
 0x3a2   : > { %12925 = vmatpush3.bf16.msra.mxu1 %v13971_v25  ;;  %6699 = vmatpush1.bf16.msra.mxu0 %v13972_v33  ;;  %v14001_v25 = vld [vmem:[#allocation7 + $0x124c] ss:$20 sps:$4 sm:$0xff]   ;;  %v13999_v33 = vld [vmem:[#allocation7 + $0x1248] ss:$20 sps:$4 sm:$0xff]  }
 0x3a3   : > { %12926 = vmatprep.subr.bf16.mxu1 %v13975_v53  ;;  %6700 = vmatprep.subr.bf16.mxu0 %v13978_v26  ;;  %v14010_v26 = vld [vmem:[#allocation7 + $0x1094] ss:$20 sps:$4 sm:$0xff]  }
 0x3a6   : > { %12927 = vmatpush3.bf16.msra.mxu1 %v13975_v53  ;;  %6701 = vmatpush1.bf16.msra.mxu0 %v13976_v10  ;;  %v14002_v53 = vld [vmem:[#allocation7 + $0x10b8] ss:$20 sps:$4 sm:$0xff]  }
 0x3a7   : > { %12928 = vmatprep.subr.bf16.mxu1 %v13979_v35  ;;  %6702 = vmatprep.subr.bf16.mxu0 %v13982_v24  ;;  %v14008_v24 = vld [vmem:[#allocation7 + $0x1090] ss:$20 sps:$4 sm:$0xff]  }
 0x3a8   : > { %v15740_v36 = vpop.f32.mrf.mxu0 }
 0x3aa   : > { %12929 = vmatpush3.bf16.msra.mxu1 %v13979_v35  ;;  %6703 = vmatpush2.bf16.msra.mxu0 %v13980_v22  ;;  %v15742_v29 = vpop.f32.mrf.mxu0  ;;  %v14005_v35 = vld [vmem:[#allocation7 + $0x1220] ss:$20 sps:$4 sm:$0xff]   ;;  %v14013_v22 = vld [vmem:[#allocation7 + $0x11fc] ss:$20 sps:$4 sm:$0xff]  }
 0x3ab   : > { %12930 = vmatprep.subr.bf16.mxu1 %v13983_v54  ;;  %6704 = vmatprep.subr.bf16.mxu0 %v13986_v43 }
 0x3ac   : > { %v15745_v8 = vpop.f32.mrf.mxu0 }
 0x3ae   : > { %12931 = vmatpush3.bf16.msra.mxu1 %v13983_v54  ;;  %6705 = vmatpush2.bf16.msra.mxu0 %v13984_v1  ;;  %v15748_v39 = vpop.f32.mrf.mxu0  ;;  %v14016_v54 = vld [vmem:[#allocation7 + $0x106c] ss:$20 sps:$4 sm:$0xff]  }
 0x3af   : > { %6739 = vmatprep.subr.bf16.mxu1 %v13989_v34  ;;  %6706 = vmatprep.subr.bf16.mxu0 %v13992_v56  ;;  %v14011_v1 = vld [vmem:[#allocation7 + $0x11f8] ss:$20 sps:$4 sm:$0xff]   ;;  %v14014_v34 = vld [vmem:[#allocation7 + $0x1068] ss:$20 sps:$4 sm:$0xff]  }
 0x3b0   : > { %v15750_v10 = vpop.f32.mrf.mxu0  ;;  %v14019_v56 = vld [vmem:[#allocation7 + $0x11d4] ss:$20 sps:$4 sm:$0xff]  }
 0x3b1   : > { %12933 = vmatmul.mubr.bf16.vlgmr.msra.gmra.mxu1 %v15666_v58  ;;  %v14007_v58 = vld [vmem:[#allocation7 + $0x1224] ss:$20 sps:$4 sm:$0xff]  }
 0x3b2   : > { %6740 = vmatpush1.bf16.msra.mxu1 %v13987_v12  ;;  %6707 = vmatpush2.bf16.msra.mxu0 %v13990_v42  ;;  %v15752_v43 = vpop.f32.mrf.mxu0  ;;  %v14022_v12 = vld [vmem:[#allocation7 + $0x1044] ss:$20 sps:$4 sm:$0xff]  }
 0x3b3   : > { %6741 = vmatprep.subr.bf16.mxu1 %v13995_v32  ;;  %6708 = vmatprep.subr.bf16.mxu0 %v13998_v0  ;;  %v14017_v32 = vld [vmem:[#allocation7 + $0x11d0] ss:$20 sps:$4 sm:$0xff]   ;;  %v14020_v0 = vld [vmem:[#allocation7 + $0x1040] ss:$20 sps:$4 sm:$0xff]  }
 0x3b4   : > { %6771 = vmatprep.mubr.bf16.mxu1 %v16654_v52  ;;  %v15754_v42 = vpop.f32.mrf.mxu0 }
 0x3b6   : > { %6742 = vmatpush1.bf16.msra.mxu1 %v13993_v4  ;;  %6709 = vmatpush2.bf16.msra.mxu0 %v13996_v48  ;;  %v14025_v4 = vld [vmem:[#allocation7 + $0x11ac] ss:$20 sps:$4 sm:$0xff]   ;;  %v14028_v48 = vld [vmem:[#allocation7 + $0x12a4] ss:$20 sps:$4 sm:$0xff]  }
 0x3b7   : > { %6743 = vmatprep.subr.bf16.mxu1 %v14001_v25  ;;  %6710 = vmatprep.subr.bf16.mxu0 %v14004_v41  ;;  %v6045_v25 = vrot.slane %v15345_v5, 2  ;;  %v15757_v41 = vpop.f32.mrf.mxu0  ;;  %v15768_v5 = vsel %vm603_vm0, %v6048_v17, %v15237_v57 }
 0x3ba   : > { %6744 = vmatpush1.bf16.msra.mxu1 %v13999_v33  ;;  %6711 = vmatpush2.bf16.msra.mxu0 %v14002_v53  ;;  %v14023_v33 = vld [vmem:[#allocation7 + $0x11a8] ss:$20 sps:$4 sm:$0xff]   ;;  %v6044_v53 = vrot.slane %v15338_v15, 2 }
 0x3bb   : > { %6745 = vmatprep.subr.bf16.mxu1 %v14007_v58  ;;  %6712 = vmatprep.subr.bf16.mxu0 %v14010_v26  ;;  %v14026_v58 = vld [vmem:[#allocation7 + $0x12a0] ss:$20 sps:$4 sm:$0xff]   ;;  %v14031_v26 = vld [vmem:[#allocation7 + $0x1184] ss:$20 sps:$4 sm:$0xff]  }
 0x3be   : > { %6746 = vmatpush1.bf16.msra.mxu1 %v14005_v35  ;;  %6713 = vmatpush2.bf16.msra.mxu0 %v14008_v24  ;;  %v15761_v24 = vsel %vm603_vm0, %v6044_v53, %v6045_v25 }
 0x3bf   : > { %6747 = vmatprep.subr.bf16.mxu1 %v14013_v22  ;;  %6714 = vmatprep.subr.bf16.mxu0 %v14016_v54  ;;  %v14034_v22 = vld [vmem:[#allocation7 + $0x127c] ss:$20 sps:$4 sm:$0xff]   ;;  %v14029_v54 = vld [vmem:[#allocation7 + $0x1180] ss:$20 sps:$4 sm:$0xff]  }
 0x3c2   : > { %6748 = vmatpush1.bf16.msra.mxu1 %v14011_v1  ;;  %6715 = vmatpush2.bf16.msra.mxu0 %v14014_v34  ;;  %v14032_v34 = vld [vmem:[#allocation7 + $0x1278] ss:$20 sps:$4 sm:$0xff]  }
 0x3c3   : > { %6749 = vmatprep.subr.bf16.mxu1 %v14019_v56  ;;  %6716 = vmatprep.subr.bf16.mxu0 %v14022_v12  ;;  %v14037_v56 = vld [vmem:[#allocation7 + $0x1024] ss:$20 sps:$4 sm:$0xff]  }
 0x3c6   : > { %6750 = vmatpush1.bf16.msra.mxu1 %v14017_v32  ;;  %6717 = vmatpush2.bf16.msra.mxu0 %v14020_v0  ;;  %v6050_v32 = vrot.slane %v15356_v2, 2  ;;  %v14040_v0 = vld [vmem:[#allocation7 + $0x1254] ss:$20 sps:$4 sm:$0xff]  }
 0x3c7   : > { %6751 = vmatprep.subr.bf16.mxu1 %v14025_v4  ;;  %6845 = vmatprep.subr.bf16.mxu0 %v14028_v48  ;;  %v6051_v4 = vrot.slane %v15353_v37, 2  ;;  %v14035_v48 = vld [vmem:[#allocation7 + $0x1020] ss:$20 sps:$4 sm:$0xff]  }
 0x3c8   : > { %v12539_v35 = vpop.f32.mrf.mxu0  ;;  %v14046_v37 = vld [vmem:[#allocation7 + $0x122c] ss:$20 sps:$4 sm:$0xff]  }
 0x3c9   : > { %6719 = vmatmul.mubr.bf16.vlgmr.msra.gmra.mxu0 %v15761_v24 }
 0x3ca   : > { %6752 = vmatpush1.bf16.msra.mxu1 %v14023_v33  ;;  %6728 = vmatprep.mubr.bf16.mxu0 %v15768_v5  ;;  %v12540_v15 = vpop.f32.mrf.mxu0 }
 0x3cb   : > { %6846 = vmatpush1.bf16.msra.mxu0 %v14026_v58  ;;  %v15771_v1 = vadd.f32 %v12540_v15, %v12539_v35  ;;  %6753 = vmatprep.subr.bf16.mxu1 %v14031_v26  ;;  %v14038_v58 = vld [vmem:[#allocation7 + $0x1250] ss:$20 sps:$4 sm:$0xff]   ;;  %v15785_v15 = vsel %vm603_vm0, %v6045_v25, %v15237_v57 }
 0x3cc   : > { %v12542_v12 = vpop.f32.mrf.mxu0  ;;  %6847 = vmatprep.subr.bf16.mxu0 %v14034_v22  ;;  %v14043_v26 = vld [vmem:[#allocation7 + $0xffc] ss:$20 sps:$4 sm:$0xff]   ;;  %v15781_v22 = vsel %vm603_vm0, %v6050_v32, %v6051_v4 }
 0x3ce   : > { %6754 = vmatpush1.bf16.msra.mxu1 %v14029_v54  ;;  %v12543_v17 = vpop.f32.mrf.mxu0 }
 0x3cf   : > { %6848 = vmatpush1.bf16.msra.mxu0 %v14032_v34  ;;  %v15777_v33 = vadd.f32 %v12543_v17, %v12542_v12  ;;  %v4580_v53 = vpop.f32.mrf.mxu1  ;;  %6792 = vmatprep.subr.bf16.mxu1 %v14037_v56  ;;  %v14041_v12 = vld [vmem:[#allocation7 + $0xff8] ss:$20 sps:$4 sm:$0xff]   ;;  %v14049_v17 = vld [vmem:[#allocation7 + $0xfd4] ss:$20 sps:$4 sm:$0xff]  }
 0x3d0   : > { %v4634_v35 = vadd.f32 %v15740_v36, %v4580_v53  ;;  %v12545_v2 = vpop.f32.mrf.mxu0  ;;  %6849 = vmatprep.subr.bf16.mxu0 %v14040_v0  ;;  %v14044_v0 = vld [vmem:[#allocation7 + $0x1228] ss:$20 sps:$4 sm:$0xff]  }
 0x3d1   : > { %6772 = vmatmul.mubr.bf16.vlgmr.msra.gmra.mxu1 %v15781_v22  ;;  %6729 = vmatmul.mubr.bf16.gmra.mxu0 %v15785_v15  ;;  %v4582_v54 = vpop.f32.mrf.mxu1 }
 0x3d2   : > { %v15790_v34 = vadd.f32 %v4634_v35, %v15645_v19  ;;  %6793 = vmatpush1.bf16.msra.mxu1 %v14035_v48  ;;  %v4636_v36 = vadd.f32 %v15742_v29, %v4582_v54  ;;  %v12546_v56 = vpop.f32.mrf.mxu0  ;;  %6781 = vmatprep.mubr.bf16.mxu1 %v16654_v52  ;;  %v14052_v48 = vld [vmem:[#allocation7 + $0x1204] ss:$20 sps:$4 sm:$0xff]  }
 0x3d3   : > { %6850 = vmatpush1.bf16.msra.mxu0 %v14038_v58  ;;  %v15794_v25 = vadd.f32 %v12546_v56, %v12545_v2  ;;  %v4584_v32 = vpop.f32.mrf.mxu1  ;;  %6794 = vmatprep.subr.bf16.mxu1 %v14043_v26  ;;  %v14047_v26 = vld [vmem:[#allocation7 + $0xfd0] ss:$20 sps:$4 sm:$0xff]   ;;  %v15811_v56 = vsel %vm603_vm0, %v6051_v4, %v15237_v57 }
 0x3d4   : > { %v15797_v53 = vadd.f32 %v4636_v36, %v15650_v11  ;;  %v4638_v19 = vadd.f32 %v15745_v8, %v4584_v32  ;;  %v12548_v35 = vpop.f32.mrf.mxu0  ;;  %6851 = vmatprep.subr.bf16.mxu0 %v14046_v37  ;;  %6877 = vmatprep.mubr.bf16.mxu0 %v16654_v52  ;;  %v14050_v36 = vld [vmem:[#allocation7 + $0x1200] ss:$20 sps:$4 sm:$0xff]   ;;  %v14058_v32 = vld [vmem:[#allocation7 + $0x11dc] ss:$20 sps:$4 sm:$0xff]   ;;  %v14061_v4 = vld [vmem:[#allocation7 + $0xf84] ss:$20 sps:$4 sm:$0xff]  }
 0x3d5   : > { %v15801_v29 = vpop.f32.mrf.mxu1  ;;  %v14055_v8 = vld [vmem:[#allocation7 + $0xfac] ss:$20 sps:$4 sm:$0xff]  }
 0x3d6   : > { %v15804_v58 = vadd.f32 %v4638_v19, %v15660_v51  ;;  %6795 = vmatpush1.bf16.msra.mxu1 %v14041_v12  ;;  %v12549_v2 = vpop.f32.mrf.mxu0  ;;  %v14056_v19 = vld [vmem:[#allocation7 + $0x11d8] ss:$20 sps:$4 sm:$0xff]  }
 0x3d7   : > { %6852 = vmatpush1.bf16.msra.mxu0 %v14044_v0  ;;  %v15806_v54 = vadd.f32 %v12549_v2, %v12548_v35  ;;  %v4590_v11 = vpop.f32.mrf.mxu1  ;;  %6796 = vmatprep.subr.bf16.mxu1 %v14049_v17  ;;  %v14053_v17 = vld [vmem:[#allocation7 + $0xfa8] ss:$20 sps:$4 sm:$0xff]  }
 0x3d8   : > { %v4644_v37 = vadd.f32 %v15750_v10, %v4590_v11  ;;  %6853 = vmatprep.subr.bf16.mxu0 %v14052_v48  ;;  %v14064_v2 = vld [vmem:[#allocation7 + $0x11b4] ss:$20 sps:$4 sm:$0xff]   ;;  %v14067_v11 = vld [vmem:[#allocation7 + $0xf5c] ss:$20 sps:$4 sm:$0xff]  }
 0x3d9   : > { %6782 = vmatmul.mubr.bf16.gmra.mxu1 %v15811_v56  ;;  %v4592_v51 = vpop.f32.mrf.mxu1 }
 0x3da   : > { %v15815_v12 = vadd.f32 %v4644_v37, %v15673_v30  ;;  %6797 = vmatpush1.bf16.msra.mxu1 %v14047_v26  ;;  %6824 = vmatprep.mubr.bf16.mxu1 %v15716_v9  ;;  %v4646_v0 = vadd.f32 %v15752_v43, %v4592_v51  ;;  %v14059_v26 = vld [vmem:[#allocation7 + $0xf80] ss:$20 sps:$4 sm:$0xff]   ;;  %v14062_v43 = vld [vmem:[#allocation7 + $0x11b0] ss:$20 sps:$4 sm:$0xff]  }
 0x3db   : > { %6854 = vmatpush1.bf16.msra.mxu0 %v14050_v36  ;;  %v4594_v10 = vpop.f32.mrf.mxu1  ;;  %6798 = vmatprep.subr.bf16.mxu1 %v14055_v8  ;;  %v14070_v36 = vld [vmem:[#allocation7 + $0x118c] ss:$20 sps:$4 sm:$0xff]   ;;  %v14073_v37 = vld [vmem:[#allocation7 + $0xf34] ss:$20 sps:$4 sm:$0xff]  }
 0x3dc   : > { %v15820_v35 = vadd.f32 %v4646_v0, %v15678_v47  ;;  %v4648_v48 = vadd.f32 %v15754_v42, %v4594_v10  ;;  %6855 = vmatprep.subr.bf16.mxu0 %v14058_v32  ;;  %v14065_v8 = vld [vmem:[#allocation7 + $0xf58] ss:$20 sps:$4 sm:$0xff]   ;;  %v14068_v47 = vld [vmem:[#allocation7 + $0x1188] ss:$20 sps:$4 sm:$0xff]   ;;  %v14071_v32 = vld [vmem:[#allocation7 + $0xf30] ss:$20 sps:$4 sm:$0xff]  }
 0x3dd   : > { %v14074_v42 = vld [vmem:[#allocation7 + $0x1168] ss:$20 sps:$4 sm:$0xff]   ;;  %v14078_v51 = vld [vmem:[#allocation7 + $0xf0c] ss:$20 sps:$4 sm:$0xff]  }
 0x3de   : > { %v15824_v30 = vadd.f32 %v4648_v48, %v15682_v27  ;;  %6799 = vmatpush1.bf16.msra.mxu1 %v14053_v17  ;;  %v14075_v27 = vld [vmem:[#allocation7 + $0x1028] ss:$20 sps:$4 sm:$0xff]   ;;  %v14079_v0 = vld [vmem:[#allocation7 + $0x1140] ss:$20 sps:$4 sm:$0xff]   ;;  %v15828_v48 = vpop.f32.mrf.mxu1 }
 0x3df   : > { %6856 = vmatpush1.bf16.msra.mxu0 %v14056_v19  ;;  %6800 = vmatprep.subr.bf16.mxu1 %v14061_v4  ;;  %v14076_v17 = vld [vmem:[#allocation7 + $0xf08] ss:$20 sps:$4 sm:$0xff]   ;;  %v14080_v10 = vld [vmem:[#allocation7 + $0x1000] ss:$20 sps:$4 sm:$0xff]   ;;  %v14083_v19 = vld [vmem:[#allocation7 + $0x1164] ss:$20 sps:$4 sm:$0xff]  }
 0x3e0   : > { %6857 = vmatprep.subr.bf16.mxu0 %v14064_v2  ;;  %v14084_v4 = vld [vmem:[#allocation7 + $0x1118] ss:$20 sps:$4 sm:$0xff]   ;;  %v14081_v2 = vld [vmem:[#allocation7 + $0x1160] ss:$20 sps:$4 sm:$0xff]  }
 0x3e2   : > { %6801 = vmatpush1.bf16.msra.mxu1 %v14059_v26  ;;  %v14085_v26 = vld [vmem:[#allocation7 + $0xfd8] ss:$20 sps:$4 sm:$0xff]  }
 0x3e3   : > { %6858 = vmatpush1.bf16.msra.mxu0 %v14062_v43  ;;  %6802 = vmatprep.subr.bf16.mxu1 %v14067_v11  ;;  %v14088_v11 = vld [vmem:[#allocation7 + $0x113c] ss:$20 sps:$4 sm:$0xff]  }
 0x3e4   : > { %6859 = vmatprep.subr.bf16.mxu0 %v14070_v36  ;;  %v14089_v36 = vld [vmem:[#allocation7 + $0x10f0] ss:$20 sps:$4 sm:$0xff]  }
 0x3e6   : > { %6803 = vmatpush1.bf16.msra.mxu1 %v14065_v8 }
 0x3e7   : > { %6860 = vmatpush1.bf16.msra.mxu0 %v14068_v47  ;;  %6804 = vmatprep.subr.bf16.mxu1 %v14073_v37  ;;  %v14086_v37 = vld [vmem:[#allocation7 + $0x1138] ss:$20 sps:$4 sm:$0xff]  }
 0x3e8   : > { %12599 = vmatprep.subr.bf16.mxu0 %v14074_v42 }
 0x3ea   : > { %6805 = vmatpush1.bf16.msra.mxu1 %v14071_v32  ;;  %6878 = vmatmul.mubr.bf16.vlgmr.msra.gmra.mxu0 %v15781_v22 }
 0x3eb   : > { %12600 = vmatpush3.bf16.msra.mxu0 %v14075_v27  ;;  %6806 = vmatprep.subr.bf16.mxu1 %v14078_v51  ;;  %v14090_v27 = vld [vmem:[#allocation7 + $0xfb0] ss:$20 sps:$4 sm:$0xff]   ;;  %v14093_v51 = vld [vmem:[#allocation7 + $0x1114] ss:$20 sps:$4 sm:$0xff]  }
 0x3ec   : > { %12601 = vmatprep.subr.bf16.mxu0 %v14079_v0  ;;  %6887 = vmatprep.mubr.bf16.mxu0 %v16654_v52 }
 0x3ee   : > { %6807 = vmatpush1.bf16.msra.mxu1 %v14076_v17  ;;  %v14094_v17 = vld [vmem:[#allocation7 + $0x10c8] ss:$20 sps:$4 sm:$0xff]  }
 0x3ef   : > { %12602 = vmatpush3.bf16.msra.mxu0 %v14080_v10  ;;  %6808 = vmatprep.subr.bf16.mxu1 %v14083_v19 }
 0x3f0   : > { %v12914_v43 = vpop.f32.mrf.mxu1  ;;  %12603 = vmatprep.subr.bf16.mxu0 %v14084_v4 }
 0x3f1   : > { %v4744_v8 = vadd.f32 %v12914_v43, %v15794_v25 }
 0x3f2   : > { %6809 = vmatpush2.bf16.msra.mxu1 %v14081_v2  ;;  %6888 = vmatmul.mubr.bf16.gmra.mxu0 %v15811_v56  ;;  %v4735_v47 = vpop.f32.mrf.mxu1  ;;  %v14095_v2 = vld [vmem:[#allocation7 + $0xf88] ss:$20 sps:$4 sm:$0xff]  }
 0x3f3   : > { %v15833_v42 = vadd.f32 %v4744_v8, %v15689_v44  ;;  %v4736_v32 = vadd.f32 %v15771_v1, %v4735_v47  ;;  %12604 = vmatpush3.bf16.msra.mxu0 %v14085_v26  ;;  %6930 = vmatprep.mubr.bf16.mxu0 %v15716_v9  ;;  %v14091_v44 = vld [vmem:[#allocation7 + $0x1110] ss:$20 sps:$4 sm:$0xff]   ;;  %v3636_v1 = vadd.f32 %v15701_v59, %v15642_v38  ;;  %v14098_v26 = vld [vmem:[#allocation7 + $0x10ec] ss:$20 sps:$4 sm:$0xff]  }
 0x3f4   : > { %v12915_v0 = vpop.f32.mrf.mxu1  ;;  %6810 = vmatprep.subr.bf16.mxu1 %v14088_v11  ;;  %12605 = vmatprep.subr.bf16.mxu0 %v14089_v36  ;;  %v14100_v11 = vld [vmem:[#allocation7 + $0xf60] ss:$20 sps:$4 sm:$0xff]   ;;  %v14103_v36 = vld [vmem:[#allocation7 + $0x10c4] ss:$20 sps:$4 sm:$0xff]  }
 0x3f5   : > { %v15838_v25 = vadd.f32 %v4736_v32, %v15693_v3  ;;  %v4747_v10 = vadd.f32 %v12915_v0, %v15806_v54  ;;  %v14099_v3 = vld [vmem:[#allocation7 + $0x10a0] ss:$20 sps:$4 sm:$0xff]   ;;  %v14096_v54 = vld [vmem:[#allocation7 + $0x10e8] ss:$20 sps:$4 sm:$0xff]   ;;  %v14104_v38 = vld [vmem:[#allocation7 + $0x1078] ss:$20 sps:$4 sm:$0xff]  }
 0x3f6   : > { %6811 = vmatpush2.bf16.msra.mxu1 %v14086_v37  ;;  %v4738_v19 = vpop.f32.mrf.mxu1  ;;  %v14105_v59 = vld [vmem:[#allocation7 + $0xf38] ss:$20 sps:$4 sm:$0xff]   ;;  %v14109_v8 = vld [vmem:[#allocation7 + $0x1050] ss:$20 sps:$4 sm:$0xff]   ;;  %v14113_v32 = vld [vmem:[#allocation7 + $0x1074] ss:$20 sps:$4 sm:$0xff]  }
 0x3f7   : > { %v15844_v4 = vadd.f32 %v4747_v10, %v15697_v20  ;;  %v4739_v9 = vadd.f32 %v15777_v33, %v4738_v19  ;;  %12606 = vmatpush3.bf16.msra.mxu0 %v14090_v27  ;;  %6812 = vmatprep.subr.bf16.mxu1 %v14093_v51  ;;  %v14101_v20 = vld [vmem:[#allocation7 + $0x10c0] ss:$20 sps:$4 sm:$0xff]   ;;  %v14108_v33 = vld [vmem:[#allocation7 + $0x109c] ss:$20 sps:$4 sm:$0xff]   ;;  %v14106_v47 = vld [vmem:[#allocation7 + $0x1098] ss:$20 sps:$4 sm:$0xff]  }
 0x3f8   : > { %12607 = vmatprep.subr.bf16.mxu0 %v14094_v17  ;;  %v14110_v37 = vld [vmem:[#allocation7 + $0xf10] ss:$20 sps:$4 sm:$0xff]   ;;  %v14116_v51 = vld [vmem:[#allocation7 + $0x104c] ss:$20 sps:$4 sm:$0xff]   ;;  %v14114_v10 = vld [vmem:[#allocation7 + $0x1048] ss:$20 sps:$4 sm:$0xff]  }
 0x3f9   : > { %16657 = vst [vmem:[#allocation41_spill] sm:$0xff] %v15844_v4  ;;  %v15847_v43 = vadd.f32 %v4739_v9, %v3636_v1  ;;  %v14111_v27 = vld [vmem:[#allocation7 + $0x1070] ss:$20 sps:$4 sm:$0xff]   ;;  %v14117_v19 = vld [vmem:[#allocation7 + $0x12a8] ss:$20 sps:$4 sm:$0xff]  }
 0x3fa   : > { %6813 = vmatpush2.bf16.msra.mxu1 %v14091_v44  ;;  %v14125_v4 = vld [vmem:[#allocation10 + $0x288] ss:$12 sps:$4 sm:$0xff]  }
 0x3fb   : > { %16658 = vst [vmem:[#allocation42_spill] sm:$0xff] %v15847_v43  ;;  %12608 = vmatpush3.bf16.msra.mxu0 %v14095_v2  ;;  %6814 = vmatprep.subr.bf16.mxu1 %v14098_v26  ;;  %v14118_v2 = vld [vmem:[#allocation7 + $0x1280] ss:$20 sps:$4 sm:$0xff]  }
 0x3fc   : > { %12609 = vmatprep.subr.bf16.mxu0 %v14099_v3 }
 0x3fe   : > { %6815 = vmatpush2.bf16.msra.mxu1 %v14096_v54 }
 0x3ff   : > { %12610 = vmatpush3.bf16.msra.mxu0 %v14100_v11  ;;  %6816 = vmatprep.subr.bf16.mxu1 %v14103_v36 }
 0x400   : > { %12611 = vmatprep.subr.bf16.mxu0 %v14104_v38 }
 0x402   : > { %6817 = vmatpush2.bf16.msra.mxu1 %v14101_v20  ;;  %v14119_v20 = vld [vmem:[#allocation7 + $0x1258] ss:$20 sps:$4 sm:$0xff]  }
 0x403   : > { %12612 = vmatpush3.bf16.msra.mxu0 %v14105_v59  ;;  %6818 = vmatprep.subr.bf16.mxu1 %v14108_v33 }
 0x404   : > { %12613 = vmatprep.subr.bf16.mxu0 %v14109_v8 }
 0x406   : > { %6819 = vmatpush2.bf16.msra.mxu1 %v14106_v47 }
 0x407   : > { %12614 = vmatpush3.bf16.msra.mxu0 %v14110_v37  ;;  %6820 = vmatprep.subr.bf16.mxu1 %v14113_v32 }
 0x408   : > { %v5603_v0 = vpop.f32.mrf.mxu0 }
 0x40a   : > { %6821 = vmatpush2.bf16.msra.mxu1 %v14111_v27  ;;  %6931 = vmatmul.mubr.bf16.vlgmr.msra.gmra.mxu0 %v15761_v24  ;;  %v5605_v17 = vpop.f32.mrf.mxu0 }
 0x40b   : > { %6938 = vmatprep.mubr.bf16.mxu0 %v15768_v5  ;;  %6822 = vmatprep.subr.bf16.mxu1 %v14116_v51 }
 0x40c   : > { %v5607_v44 = vpop.f32.mrf.mxu0 }
 0x40e   : > { %6823 = vmatpush2.bf16.msra.mxu1 %v14114_v10  ;;  %v15851_v1 = vpop.f32.mrf.mxu0 }
 0x40f   : > { %12936 = vmatprep.subr.bf16.mxu1 %v14117_v19 }
 0x410   : > { %v5656_v9 = vpop.f32.mrf.mxu1  ;;  %v5613_v36 = vpop.f32.mrf.mxu0 }
 0x411   : > { %v5657_v26 = vadd.f32 %v5656_v9, %v5603_v0  ;;  %6825 = vmatmul.mubr.bf16.vlgmr.msra.gmra.mxu1 %v15761_v24 }
 0x412   : > { %6834 = vmatprep.mubr.bf16.mxu1 %v15768_v5  ;;  %6939 = vmatmul.mubr.bf16.gmra.mxu0 %v15785_v15  ;;  %v5658_v3 = vpop.f32.mrf.mxu1  ;;  %v5615_v5 = vpop.f32.mrf.mxu0 }
 0x413   : > { %v15857_v54 = vadd.f32 %v5657_v26, %v15711_v23  ;;  %12937 = vmatpush3.bf16.msra.mxu1 %v14117_v19  ;;  %v5659_v11 = vadd.f32 %v5658_v3, %v5605_v17  ;;  %v14120_v23 = vld [vmem:[#allocation7 + $0x1230] ss:$20 sps:$4 sm:$0xff]  }
 0x414   : > { %v5660_v38 = vpop.f32.mrf.mxu1  ;;  %12938 = vmatprep.subr.bf16.mxu1 %v14118_v2  ;;  %v5617_v51 = vpop.f32.mrf.mxu0 }
 0x415   : > { %v15860_v59 = vadd.f32 %v5659_v11, %v15720_v61  ;;  %v5661_v33 = vadd.f32 %v5660_v38, %v5607_v44 }
 0x416   : > { %v15862_v8 = vpop.f32.mrf.mxu1  ;;  %v15878_v44 = vpop.f32.mrf.mxu0 }
 0x417   : > { %v15865_v24 = vadd.f32 %v5661_v33, %v15725_v55  ;;  %12939 = vmatpush3.bf16.msra.mxu1 %v14118_v2  ;;  %v14121_v55 = vld [vmem:[#allocation7 + $0x1208] ss:$20 sps:$4 sm:$0xff]  }
 0x418   : > { %v5666_v47 = vpop.f32.mrf.mxu1  ;;  %12940 = vmatprep.subr.bf16.mxu1 %v14119_v20 }
 0x419   : > { %v5667_v37 = vadd.f32 %v5666_v47, %v5613_v36  ;;  %6835 = vmatmul.mubr.bf16.gmra.mxu1 %v15785_v15  ;;  %v14124_v15 = vld [vmem:[#allocation7 + $0x1190] ss:$20 sps:$4 sm:$0xff]  }
 0x41a   : > { %12952 = vmatprep.mubr.bf16.mxu1 %v15781_v22  ;;  %v5668_v32 = vpop.f32.mrf.mxu1  ;;  %v14122_v22 = vld [vmem:[#allocation7 + $0x11e0] ss:$20 sps:$4 sm:$0xff]  }
 0x41b   : > { %v15870_v61 = vadd.f32 %v5667_v37, %v15730_v50  ;;  %12941 = vmatpush3.bf16.msra.mxu1 %v14119_v20  ;;  %v5669_v27 = vadd.f32 %v5668_v32, %v5615_v5  ;;  %v14123_v50 = vld [vmem:[#allocation7 + $0x11b8] ss:$20 sps:$4 sm:$0xff]  }
 0x41c   : > { %v5670_v0 = vpop.f32.mrf.mxu1  ;;  %12942 = vmatprep.subr.bf16.mxu1 %v14120_v23 }
 0x41d   : > { %v15873_v17 = vadd.f32 %v5669_v27, %v15733_v45  ;;  %v5671_v10 = vadd.f32 %v5670_v0, %v5617_v51 }
 0x41e   : > { %v15894_v5 = vpop.f32.mrf.mxu1 }
 0x41f   : > { %v15876_v19 = vadd.f32 %v5671_v10, %v15736_v14  ;;  %12943 = vmatpush3.bf16.msra.mxu1 %v14120_v23 }
 0x420   : > { %12944 = vmatprep.subr.bf16.mxu1 %v14121_v55 }
 0x423   : > { %12945 = vmatpush3.bf16.msra.mxu1 %v14121_v55 }
 0x424   : > { %12946 = vmatprep.subr.bf16.mxu1 %v14122_v22 }
 0x427   : > { %12947 = vmatpush3.bf16.msra.mxu1 %v14122_v22 }
 0x428   : > { %12948 = vmatprep.subr.bf16.mxu1 %v14123_v50 }
 0x429   : > { %v5762_v9 = vpop.f32.mrf.mxu0 }
 0x42b   : > { %12949 = vmatpush3.bf16.msra.mxu1 %v14123_v50  ;;  %v15880_v45 = vpop.f32.mrf.mxu0 }
 0x42c   : > { %12950 = vmatprep.subr.bf16.mxu1 %v14124_v15 }
 0x42d   : > { %v5766_v14 = vpop.f32.mrf.mxu0 }
 0x42f   : > { %12951 = vmatpush3.bf16.msra.mxu1 %v14124_v15  ;;  %v15884_v2 = vpop.f32.mrf.mxu0 }
 0x431   : > { %v15886_v26 = vpop.f32.mrf.mxu0 }
 0x432   : > { %12953 = vmatmul.mubr.bf16.vlgmr.msra.gmra.mxu1 %v15811_v56 }
 0x433   : > { %7815 = vmatprep.mubr.bf16.mxu1 %v16654_v52  ;;  %v15888_v3 = vpop.f32.mrf.mxu0 }
 0x435   : > { %v15890_v11 = vpop.f32.mrf.mxu0 }
 0x437   : > { %v15892_v36 = vpop.f32.mrf.mxu0 }
 0x449   : > { %v12577_v38 = vpop.f32.mrf.mxu0 }
 0x44b   : > { %v12578_v20 = vpop.f32.mrf.mxu0 }
 0x44c   : > { %v12579_v33 = vadd.f32 %v12578_v20, %v12577_v38 }
 0x44d   : > { %v15906_v55 = vpop.f32.mrf.mxu0 }
 0x44f   : > { %v15910_v22 = vpop.f32.mrf.mxu0 }
 0x450   : > { %v5709_v47 = vpop.f32.mrf.mxu1  ;;  %16661 = vst [vmem:[#allocation45_spill] sm:$0xff] %v15910_v22 }
 0x451   : > { %v5763_v56 = vadd.f32 %v5762_v9, %v5709_v47  ;;  %v12583_v15 = vpop.f32.mrf.mxu0 }
 0x452   : > { %v15896_v23 = vpop.f32.mrf.mxu1 }
 0x453   : > { %v15899_v37 = vadd.f32 %v5763_v56, %v15790_v34  ;;  %v12584_v34 = vpop.f32.mrf.mxu0 }
 0x454   : > { %v5713_v32 = vpop.f32.mrf.mxu1 }
 0x455   : > { %16659 = vst [vmem:[#allocation43_spill] sm:$0xff] %v15899_v37  ;;  %v5767_v27 = vadd.f32 %v5766_v14, %v5713_v32  ;;  %v12585_v14 = vadd.f32 %v12584_v34, %v12583_v15  ;;  %v15924_v57 = vpop.f32.mrf.mxu0  ;;  %v14127_v15 = vld [vmem:[#allocation10 + $0x28c] ss:$12 sps:$4 sm:$0xff]   ;;  %v14130_v34 = vld [vmem:[#allocation10 + $0x274] ss:$12 sps:$4 sm:$0xff]  }
 0x456   : > { %v15904_v0 = vpop.f32.mrf.mxu1  ;;  %7730 = vmatprep.subr.bf16.mxu0 %v14127_v15 }
 0x457   : > { %v15902_v51 = vadd.f32 %v5767_v27, %v15804_v58  ;;  %v15926_v52 = vpop.f32.mrf.mxu0  ;;  %7731 = vmatpush1.bf16.msra.mxu0 %v14125_v4 }
 0x458   : > { %v15908_v10 = vpop.f32.mrf.mxu1  ;;  %7732 = vmatprep.subr.bf16.mxu0 %v14130_v34  ;;  %v5663_v34 = vadd.f32 %v15862_v8, %v15851_v1  ;;  %v4544_v8 = vadd.f32 %v15774_v62, %v15738_v21 }
 0x459   : > { %16660 = vst [vmem:[#allocation44_spill] sm:$0xff] %v15902_v51 }
 0x45a   : > { %v15912_v50 = vpop.f32.mrf.mxu1 }
 0x45c   : > { %v15914_v9 = vpop.f32.mrf.mxu1 }
 0x45e   : > { %v15916_v38 = vpop.f32.mrf.mxu1 }
 0x471   : > { %v12934_v20 = vpop.f32.mrf.mxu1 }
 0x472   : > { %v5873_v58 = vadd.f32 %v12934_v20, %v12585_v14 }
 0x473   : > { %v5864_v47 = vpop.f32.mrf.mxu1 }
 0x474   : > { %v15919_v56 = vadd.f32 %v5873_v58, %v15833_v42  ;;  %v5865_v32 = vadd.f32 %v12579_v33, %v5864_v47  ;;  %v14128_v42 = vld [vmem:[#allocation10 + $0x270] ss:$12 sps:$4 sm:$0xff]   ;;  %v2497_v58 = vadd.f32 %v15457_v60, %v15439_v49 }
 0x475   : > { %v15928_v51 = vpop.f32.mrf.mxu1  ;;  %7733 = vmatpush1.bf16.msra.mxu0 %v14128_v42  ;;  %v2507_v42 = vadd.f32 %v15506_v16, %v15467_v6  ;;  %v5673_v6 = vadd.f32 %v15894_v5, %v15878_v44 }
 0x476   : > { %16662 = vst [vmem:[#allocation46_spill] sm:$0xff] %v15919_v56  ;;  %v15922_v27 = vadd.f32 %v5865_v32, %v15838_v25  ;;  %16664 = vst [vmem:[#allocation48_spill] sm:$0xff] %v15928_v51  ;;  %v14133_v25 = vld [vmem:[#allocation10 + $0x25c] ss:$12 sps:$4 sm:$0xff]   ;;  %v3378_v32 = vadd.f32 %v15574_v40, %v2497_v58  ;;  %v14131_v51 = vld [vmem:[#allocation10 + $0x258] ss:$12 sps:$4 sm:$0xff]  }
 0x477   : > { %v15930_v20 = vpop.f32.mrf.mxu1  ;;  %7734 = vmatprep.subr.bf16.mxu0 %v14133_v25 }
 0x478   : > { %16663 = vst [vmem:[#allocation47_spill] sm:$0xff] %v15922_v27  ;;  %16665 = vst [vmem:[#allocation49_spill] sm:$0xff] %v15930_v20  ;;  %v4534_v27 = vadd.f32 %v15722_v7, %v15704_v63  ;;  %v3431_v20 = vadd.f32 %v15589_v46, %v3378_v32 }
 0x479   : > { %7735 = vmatpush1.bf16.msra.mxu0 %v14131_v51 }
 0x47a   : > { %v4756_v40 = vadd.f32 %v4534_v27, %v3431_v20 }
 0x47c   : > { %v5885_v46 = vadd.f32 %v5663_v34, %v4756_v40  ;;  %v16667_v40 = vld [vmem:[#allocation35_spill] sm:$0xff] }
 0x489   : > { %v6720_v37 = vpop.f32.mrf.mxu0 }
 0x48b   : > { %v6722_v43 = vpop.f32.mrf.mxu0 }
 0x48d   : > { %v6724_v14 = vpop.f32.mrf.mxu0 }
 0x48f   : > { %v6726_v33 = vpop.f32.mrf.mxu0 }
 0x491   : > { %v6773_v47 = vpop.f32.mrf.mxu1  ;;  %v6730_v15 = vpop.f32.mrf.mxu0 }
 0x492   : > { %v6774_v56 = vadd.f32 %v6773_v47, %v6720_v37 }
 0x493   : > { %v6775_v4 = vpop.f32.mrf.mxu1  ;;  %v6732_v7 = vpop.f32.mrf.mxu0 }
 0x494   : > { %v15941_v22 = vadd.f32 %v6774_v56, %v15857_v54  ;;  %v6776_v49 = vadd.f32 %v6775_v4, %v6722_v43  ;;  %v3388_v43 = vadd.f32 %v15599_v18, %v2507_v42 }
 0x495   : > { %v6777_v60 = vpop.f32.mrf.mxu1  ;;  %v6734_v51 = vpop.f32.mrf.mxu0 }
 0x496   : > { %v15944_v58 = vadd.f32 %v6776_v49, %v15860_v59  ;;  %v6778_v63 = vadd.f32 %v6777_v60, %v6724_v14  ;;  %v3441_v14 = vadd.f32 %v15628_v13, %v3388_v43 }
 0x497   : > { %v6779_v37 = vpop.f32.mrf.mxu1  ;;  %v6736_v62 = vpop.f32.mrf.mxu0 }
 0x498   : > { %v15949_v25 = vadd.f32 %v6778_v63, %v15865_v24  ;;  %v6780_v1 = vadd.f32 %v6779_v37, %v6726_v33  ;;  %v4766_v33 = vadd.f32 %v4544_v8, %v3441_v14  ;;  %v16669_v8 = vld [vmem:[#allocation39_spill] sm:$0xff] }
 0x499   : > { %v6783_v54 = vpop.f32.mrf.mxu1 }
 0x49a   : > { %v15954_v59 = vadd.f32 %v6780_v1, %v5885_v46  ;;  %v6784_v56 = vadd.f32 %v6783_v54, %v6730_v15  ;;  %v5895_v32 = vadd.f32 %v5673_v6, %v4766_v33  ;;  %v4640_v46 = vadd.f32 %v15748_v39, %v15801_v29  ;;  %v16668_v54 = vld [vmem:[#allocation31_spill] sm:$0xff]  ;;  %v16671_v6 = vld [vmem:[#allocation36_spill] sm:$0xff] }
 0x49b   : > { %v6785_v27 = vpop.f32.mrf.mxu1  ;;  %v7032_v43 = vsub.s32 3, %v16668_v54  ;;  %v15992_v33 = vld [vmem:[#allocation8] sm:$0x1f]  ;;  %v14134_v29 = vld [vmem:[#allocation10 + $0x240] ss:$12 sps:$4 sm:$0xff]  }
 0x49c   : > { %v15960_v16 = vadd.f32 %v6784_v56, %v15870_v61  ;;  %v6786_v24 = vadd.f32 %v6785_v27, %v6732_v7 }
 0x49d   : > { %v6787_v20 = vpop.f32.mrf.mxu1 }
 0x49e   : > { %v15963_v18 = vadd.f32 %v6786_v24, %v15873_v17  ;;  %v6788_v21 = vadd.f32 %v6787_v20, %v6734_v51  ;;  %v16666_v17 = vld [vmem:[#allocation37_spill] sm:$0xff]  ;;  %v5769_v51 = vadd.f32 %v15884_v2, %v15904_v0  ;;  %v7033_v0 = vrot.slane %v15992_v33, %v7032_v43 }
 0x49f   : > { %v6789_v47 = vpop.f32.mrf.mxu1  ;;  %v2603_v63 = vadd.f32 %v16667_v40, %v16666_v17  ;;  %v4650_v17 = vadd.f32 %v15757_v41, %v15828_v48  ;;  %v5777_v40 = vadd.f32 %v15890_v11, %v15914_v9  ;;  %v5779_v41 = vadd.f32 %v15892_v36, %v15916_v38 }
 0x4a0   : > { %v15966_v15 = vadd.f32 %v6788_v21, %v15876_v19  ;;  %v6790_v13 = vadd.f32 %v6789_v47, %v6736_v62  ;;  %v5765_v19 = vadd.f32 %v15880_v45, %v15896_v23  ;;  %v14136_v21 = vld [vmem:[#allocation10 + $0x244] ss:$12 sps:$4 sm:$0xff]  }
 0x4a1   : > { %v3484_v7 = vadd.f32 %v15654_v28, %v2603_v63  ;;  %v16670_v28 = vld [vmem:[#allocation38_spill] sm:$0xff]  ;;  %7736 = vmatprep.subr.bf16.mxu0 %v14136_v21 }
 0x4a2   : > { %v15968_v4 = vadd.f32 %v6790_v13, %v5895_v32  ;;  %v2613_v24 = vadd.f32 %v16671_v6, %v16670_v28  ;;  %v5882_v45 = vadd.f32 %v5765_v19, %v15797_v53  ;;  %v14139_v32 = vld [vmem:[#allocation10 + $0x22c] ss:$12 sps:$4 sm:$0xff]   ;;  %v5775_v53 = vadd.f32 %v15888_v3, %v15912_v50  ;;  %7737 = vmatpush1.bf16.msra.mxu0 %v14134_v29 }
 0x4a3   : > { %v3537_v56 = vadd.f32 %v16669_v8, %v3484_v7  ;;  %7738 = vmatprep.subr.bf16.mxu0 %v14139_v32  ;;  %v5773_v3 = vadd.f32 %v15886_v26, %v15908_v10  ;;  %v5896_v8 = vadd.f32 %v5777_v40, %v15824_v30  ;;  %v16673_v21 = vld [vmem:[#allocation34_spill] sm:$0xff] }
 0x4a4   : > { %v3494_v62 = vadd.f32 %v15686_v31, %v2613_v24  ;;  %v14137_v31 = vld [vmem:[#allocation10 + $0x228] ss:$12 sps:$4 sm:$0xff]   ;;  %v5892_v43 = vadd.f32 %v5775_v53, %v15820_v35 }
 0x4a5   : > { %v4758_v20 = vadd.f32 %v4640_v46, %v3537_v56  ;;  %v16672_v46 = vld [vmem:[#allocation40_spill] sm:$0xff]  ;;  %v5891_v36 = vadd.f32 %v5773_v3, %v15815_v12 }
 0x4a6   : > { %7739 = vmatpush1.bf16.msra.mxu0 %v14137_v31  ;;  %v14143_v31 = vld [vmem:[#allocation10 + $0x1f8] ss:$12 sps:$4 sm:$0xff]   ;;  %v14146_v3 = vld [vmem:[#allocation10 + $0x1e0] ss:$12 sps:$4 sm:$0xff]  }
 0x4a7   : > { %v5887_v13 = vadd.f32 %v5769_v51, %v4758_v20  ;;  %v14140_v51 = vld [vmem:[#allocation10 + $0x210] ss:$12 sps:$4 sm:$0xff]  }
 0x4aa   : > { %v15970_v44 = vpop.f32.mrf.mxu0 }
 0x4ac   : > { %v6881_v61 = vpop.f32.mrf.mxu0 }
 0x4ae   : > { %v15972_v5 = vpop.f32.mrf.mxu0 }
 0x4b0   : > { %v6885_v34 = vpop.f32.mrf.mxu0 }
 0x4b2   : > { %v6889_v49 = vpop.f32.mrf.mxu0 }
 0x4b4   : > { %v6891_v60 = vpop.f32.mrf.mxu0 }
 0x4b6   : > { %v6893_v37 = vpop.f32.mrf.mxu0 }
 0x4b8   : > { %v6895_v27 = vpop.f32.mrf.mxu0 }
 0x4ca   : > { %v15994_v39 = vpop.f32.mrf.mxu0 }
 0x4cc   : > { %v16004_v7 = vpop.f32.mrf.mxu0 }
 0x4ce   : > { %v16013_v28 = vpop.f32.mrf.mxu0 }
 0x4d0   : > { %v12619_v30 = vpop.f32.mrf.mxu0 }
 0x4d1   : > { %v15979_v42 = vpop.f32.mrf.mxu1 }
 0x4d2   : > { %v12621_v32 = vpop.f32.mrf.mxu0 }
 0x4d3   : > { %v6828_v1 = vpop.f32.mrf.mxu1 }
 0x4d4   : > { %v6882_v14 = vadd.f32 %v6881_v61, %v6828_v1  ;;  %v3547_v1 = vadd.f32 %v16672_v46, %v3494_v62  ;;  %v16018_v62 = vrot.slane %v15992_v33, %v16673_v21  ;;  %v12622_v40 = vpop.f32.mrf.mxu0  ;;  %v14148_v46 = vld [vmem:[#allocation10 + $0x1e4] ss:$12 sps:$4 sm:$0xff]  }
 0x4d5   : > { %v15990_v23 = vpop.f32.mrf.mxu1 }
 0x4d6   : > { %v6999_v47 = vadd.f32 %v6882_v14, %v5882_v45  ;;  %v4768_v9 = vadd.f32 %v4650_v17, %v3547_v1  ;;  %v14142_v14 = vld [vmem:[#allocation10 + $0x214] ss:$12 sps:$4 sm:$0xff]   ;;  %v12624_v1 = vpop.f32.mrf.mxu0 }
 0x4d7   : > { %v6832_v2 = vpop.f32.mrf.mxu1  ;;  %7740 = vmatprep.subr.bf16.mxu0 %v14142_v14 }
 0x4d8   : > { %v6886_v61 = vadd.f32 %v6885_v34, %v6832_v2  ;;  %v7046_v34 = vadd.f32 %v7033_v0, %v6999_v47  ;;  %v5897_v38 = vadd.f32 %v5779_v41, %v4768_v9  ;;  %7741 = vmatpush1.bf16.msra.mxu0 %v14140_v51  ;;  %v12623_v41 = vadd.f32 %v12622_v40, %v12621_v32  ;;  %v14149_v9 = vld [vmem:[#allocation10 + $0x348] ss:$12 sps:$4 sm:$0xff]  }
 0x4d9   : > { %v6836_v63 = vpop.f32.mrf.mxu1  ;;  %v16675_v51 = vld [vmem:[#allocation48_spill] sm:$0xff]  ;;  %v6884_v32 = vadd.f32 %v15972_v5, %v15990_v23 }
 0x4da   : > { %v7004_v19 = vadd.f32 %v6886_v61, %v5887_v13  ;;  %v6890_v6 = vadd.f32 %v6889_v49, %v6836_v63  ;;  %v7066_v35 = vmax.f32 %v7046_v34, 0.0  ;;  %v7036_v34 = vsub.s32 4, %v16668_v54  ;;  %v14158_v23 = vld [vmem:[#allocation10 + $0x3a8] ss:$12 sps:$4 sm:$0xff]  }
 0x4db   : > { %v6838_v50 = vpop.f32.mrf.mxu1 }
 0x4dc   : > { %v6892_v48 = vadd.f32 %v6891_v60, %v6838_v50  ;;  %v7051_v11 = vadd.f32 %v7033_v0, %v7004_v19  ;;  %v7008_v47 = vadd.f32 %v6890_v6, %v5891_v36  ;;  %v14145_v19 = vld [vmem:[#allocation10 + $0x1fc] ss:$12 sps:$4 sm:$0xff]   ;;  %v14151_v50 = vld [vmem:[#allocation10 + $0x34c] ss:$12 sps:$4 sm:$0xff]   ;;  %v12617_v6 = vadd.f32 %v16004_v7, %v15994_v39 }
 0x4dd   : > { %v6840_v56 = vpop.f32.mrf.mxu1  ;;  %7742 = vmatprep.subr.bf16.mxu0 %v14145_v19  ;;  %v16677_v36 = vld [vmem:[#allocation46_spill] sm:$0xff]  ;;  %v16679_v39 = vld [vmem:[#allocation47_spill] sm:$0xff] }
 0x4de   : > { %v7009_v26 = vadd.f32 %v6892_v48, %v5892_v43  ;;  %v6894_v10 = vadd.f32 %v6893_v37, %v6840_v56  ;;  %v7071_v24 = vmax.f32 %v7051_v11, 0.0  ;;  %7743 = vmatpush1.bf16.msra.mxu0 %v14143_v31  ;;  %v12588_v43 = vadd.f32 %v15926_v52, %v15924_v57  ;;  %v12625_v48 = vpop.f32.mrf.mxu0  ;;  %v16676_v57 = vld [vmem:[#allocation49_spill] sm:$0xff] }
 0x4df   : > { %v6842_v45 = vpop.f32.mrf.mxu1  ;;  %7744 = vmatprep.subr.bf16.mxu0 %v14148_v46  ;;  %v6880_v46 = vadd.f32 %v15970_v44, %v15979_v42 }
 0x4e0   : > { %v7013_v60 = vadd.f32 %v6894_v10, %v5896_v8  ;;  %v6896_v20 = vadd.f32 %v6895_v27, %v6842_v45  ;;  %v13205_v29 = vpack.i.bf16 %v7071_v24, %v7066_v35  ;;  %v7056_v49 = vadd.f32 %v7033_v0, %v7009_v26  ;;  %v16674_v8 = vld [vmem:[#allocation45_spill] sm:$0xff]  ;;  %v14154_v10 = vld [vmem:[#allocation10 + $0x334] ss:$12 sps:$4 sm:$0xff]  }
 0x4e1   : > { %v16025_v27 = vadd.f32 %v16018_v62, %v7008_v47  ;;  %v12582_v56 = vadd.f32 %v16674_v8, %v15906_v55  ;;  %v5876_v14 = vadd.f32 %v16675_v51, %v12588_v43  ;;  %v7037_v24 = vrot.slane %v15992_v33, %v7036_v34  ;;  %v14152_v55 = vld [vmem:[#allocation10 + $0x330] ss:$12 sps:$4 sm:$0xff]  }
 0x4e2   : > { %v7014_v2 = vadd.f32 %v6896_v20, %v5897_v38  ;;  %13206 = vrot.lane.b32.xlu1 %v13205_v29, %s14932_s19  ;;  %v16022_v37 = vadd.f32 %v16018_v62, %v7013_v60  ;;  %v7076_v13 = vmax.f32 %v7056_v49, 0.0  ;;  %7745 = vmatpush1.bf16.msra.mxu0 %v14146_v3  ;;  %v12626_v35 = vadd.f32 %v12625_v48, %v12624_v1  ;;  %v16678_v29 = vld [vmem:[#allocation41_spill] sm:$0xff]  ;;  %v16681_v3 = vld [vmem:[#allocation44_spill] sm:$0xff] }
 0x4e3   : > { %v7075_v63 = vmax.f32 %v16025_v27, 0.0  ;;  %7746 = vmatprep.subr.bf16.mxu0 %v14151_v50  ;;  %v5868_v52 = vadd.f32 %v12582_v56, %v16676_v57  ;;  %v5898_v47 = vadd.f32 %v5876_v14, %v16678_v29  ;;  %v12620_v49 = vadd.f32 %v12619_v30, %v16013_v28  ;;  %v14161_v48 = vld [vmem:[#allocation10 + $0x300] ss:$12 sps:$4 sm:$0xff]   ;;  %v14163_v14 = vld [vmem:[#allocation10 + $0x304] ss:$12 sps:$4 sm:$0xff]  }
 0x4e4   : > { %v7061_v12 = vadd.f32 %v7033_v0, %v7014_v2  ;;  %v7080_v61 = vmax.f32 %v16022_v37, 0.0  ;;  %v7003_v50 = vadd.f32 %v6884_v32, %v16681_v3  ;;  %v14169_v57 = vld [vmem:[#allocation10 + $0x2ec] ss:$12 sps:$4 sm:$0xff]   ;;  %v16683_v32 = vld [vmem:[#allocation32_spill] sm:$0xff] }
 0x4e5   : > { %v14176_v29 = vld [vmem:[#allocation10 + $0x360] ss:$12 sps:$4 sm:$0xff]  }
 0x4e6   : > { %v7081_v53 = vmax.f32 %v7061_v12, 0.0  ;;  %v13220_v0 = vpack.i.bf16 %v7080_v61, %v7075_v63  ;;  %7747 = vmatpush2.bf16.msra.mxu0 %v14149_v9  ;;  %v14157_v12 = vld [vmem:[#allocation10 + $0x31c] ss:$12 sps:$4 sm:$0xff]   ;;  %v16057_v44 = vadd.f32 %v16018_v62, %v7003_v50 }
 0x4e7   : > { %7748 = vmatprep.subr.bf16.mxu0 %v14154_v10  ;;  %v14164_v10 = vld [vmem:[#allocation10 + $0x390] ss:$12 sps:$4 sm:$0xff]  }
 0x4e8   : > { %v13210_v17 = vpack.i.bf16 %v7081_v53, %v7076_v13  ;;  %v16680_v53 = vld [vmem:[#allocation42_spill] sm:$0xff] }
 0x4ea   : > { %13211 = vrot.lane.b32.xlu1 %v13210_v17, %s14932_s19  ;;  %v5888_v17 = vadd.f32 %v5868_v52, %v16680_v53  ;;  %7749 = vmatpush2.bf16.msra.mxu0 %v14152_v55  ;;  %v14181_v55 = vld [vmem:[#allocation10 + $0x2bc] ss:$12 sps:$4 sm:$0xff]  }
 0x4eb   : > { %7750 = vmatprep.subr.bf16.mxu0 %v14157_v12 }
 0x4ee   : > { %13221 = vrot.lane.b32.xlu1 %v13220_v0, %s14932_s19  ;;  %v14155_v0 = vld [vmem:[#allocation10 + $0x318] ss:$12 sps:$4 sm:$0xff]  }
 0x4ef   : > { %7751 = vmatpush2.bf16.msra.mxu0 %v14155_v0 }
 0x4f0   : > { %7752 = vmatprep.subr.bf16.mxu0 %v14163_v14 }
 0x4f2   : > { %v12954_v11 = vpop.f32.mrf.mxu1 }
 0x4f3   : > { %v6990_v26 = vadd.f32 %v12954_v11, %v12623_v41  ;;  %v14160_v41 = vld [vmem:[#allocation10 + $0x3ac] ss:$12 sps:$4 sm:$0xff]   ;;  %7753 = vmatpush2.bf16.msra.mxu0 %v14161_v48 }
 0x4f4   : > { %v6981_v45 = vpop.f32.mrf.mxu1  ;;  %v16682_v11 = vld [vmem:[#allocation43_spill] sm:$0xff]  ;;  %7791 = vmatprep.subr.bf16.mxu1 %v14160_v41  ;;  %7754 = vmatprep.subr.bf16.mxu0 %v14169_v57 }
 0x4f5   : > { %v7010_v38 = vadd.f32 %v6990_v26, %v16677_v36  ;;  %v6982_v60 = vadd.f32 %v12617_v6, %v6981_v45  ;;  %v6998_v9 = vadd.f32 %v6880_v46, %v16682_v11  ;;  %7792 = vmatpush1.bf16.msra.mxu1 %v14158_v23  ;;  %v7070_v26 = vmax.f32 %v16057_v44, 0.0  ;;  %v14167_v45 = vld [vmem:[#allocation10 + $0x2e8] ss:$12 sps:$4 sm:$0xff]  }
 0x4f6   : > { %v12955_v20 = vpop.f32.mrf.mxu1  ;;  %v14172_v36 = vld [vmem:[#allocation10 + $0x37c] ss:$12 sps:$4 sm:$0xff]  }
 0x4f7   : > { %v7000_v7 = vadd.f32 %v6982_v60, %v16679_v39  ;;  %v6993_v2 = vadd.f32 %v12955_v20, %v12626_v35  ;;  %v7057_v40 = vadd.f32 %v7037_v24, %v7010_v38  ;;  %v16060_v6 = vadd.f32 %v16018_v62, %v6998_v9  ;;  %7755 = vmatpush2.bf16.msra.mxu0 %v14167_v45  ;;  %v14170_v35 = vld [vmem:[#allocation10 + $0x378] ss:$12 sps:$4 sm:$0xff]   ;;  %v14173_v38 = vld [vmem:[#allocation10 + $0x2d0] ss:$12 sps:$4 sm:$0xff]   ;;  %v14175_v60 = vld [vmem:[#allocation10 + $0x2d4] ss:$12 sps:$4 sm:$0xff]  }
 0x4f8   : > { %v6984_v13 = vpop.f32.mrf.mxu1  ;;  %v14178_v20 = vld [vmem:[#allocation10 + $0x364] ss:$12 sps:$4 sm:$0xff]   ;;  %7756 = vmatprep.subr.bf16.mxu0 %v14175_v60 }
 0x4f9   : > { %v7015_v31 = vadd.f32 %v6993_v2, %v5898_v47  ;;  %v6985_v19 = vadd.f32 %v12620_v49, %v6984_v13  ;;  %v7047_v1 = vadd.f32 %v7037_v24, %v7000_v7  ;;  %v7077_v34 = vmax.f32 %v7057_v40, 0.0  ;;  %v14179_v47 = vld [vmem:[#allocation10 + $0x2b8] ss:$12 sps:$4 sm:$0xff]   ;;  %v14182_v49 = vld [vmem:[#allocation10 + $0x350] ss:$12 sps:$4 sm:$0xff]  }
 0x4fa   : > { %v7065_v52 = vmax.f32 %v16060_v6, 0.0  ;;  %v14185_v39 = vld [vmem:[#allocation10 + $0x2a4] ss:$12 sps:$4 sm:$0xff]   ;;  %v14183_v7 = vld [vmem:[#allocation10 + $0x2a0] ss:$12 sps:$4 sm:$0xff]   ;;  %v7021_v13 = vrot.slane %v15992_v33, %v16683_v32 }
 0x4fb   : > { %v7062_v28 = vadd.f32 %v7037_v24, %v7015_v31  ;;  %v7005_v30 = vadd.f32 %v6985_v19, %v5888_v17  ;;  %v7067_v8 = vmax.f32 %v7047_v1, 0.0  ;;  %7757 = vmatpush2.bf16.msra.mxu0 %v14173_v38  ;;  %v14191_v2 = vld [vmem:[#allocation10 + $0xac] ss:$12 sps:$4 sm:$0xff]  }
 0x4fc   : > { %v13215_v62 = vpack.i.bf16 %v7070_v26, %v7065_v52  ;;  %7758 = vmatprep.subr.bf16.mxu0 %v14181_v55  ;;  %v7053_v17 = vadd.f32 %v7021_v13, %v15960_v16  ;;  %v7058_v40 = vadd.f32 %v7021_v13, %v15966_v15  ;;  %v7043_v55 = vadd.f32 %v7021_v13, %v15941_v22 }
 0x4fd   : > { %v7082_v43 = vmax.f32 %v7062_v28, 0.0  ;;  %v7052_v5 = vadd.f32 %v7037_v24, %v7005_v30  ;;  %v14166_v24 = vld [vmem:[#allocation10 + $0x394] ss:$12 sps:$4 sm:$0xff]  }
 0x4fe   : > { %7793 = vmatprep.subr.bf16.mxu1 %v14166_v24  ;;  %v7073_v30 = vmax.f32 %v7053_v17, 0.0  ;;  %v7078_v1 = vmax.f32 %v7058_v40, 0.0 }
 0x4ff   : > { %v7072_v56 = vmax.f32 %v7052_v5, 0.0  ;;  %v13200_v51 = vpack.i.bf16 %v7082_v43, %v7077_v34  ;;  %7794 = vmatpush1.bf16.msra.mxu1 %v14164_v10  ;;  %7759 = vmatpush2.bf16.msra.mxu0 %v14179_v47  ;;  %v14933_v34 = vmov 0.0  }
 0x500   : > { %7795 = vmatprep.subr.bf16.mxu1 %v14172_v36  ;;  %7760 = vmatprep.subr.bf16.mxu0 %v14185_v39  ;;  %v16080_v43 = vrot.slane %v14933_v34, 1 }
 0x501   : > { %v13195_v42 = vpack.i.bf16 %v7072_v56, %v7067_v8  ;;  %v16684_v56 = vld [vmem:[#allocation33_spill] sm:$0xff] }
 0x503   : > { %13196 = vrot.lane.b32.xlu0 %v13195_v42, %s14932_s19  ;;  %7796 = vmatpush1.bf16.msra.mxu1 %v14170_v35 }
 0x504   : > { %7797 = vmatprep.subr.bf16.mxu1 %v14178_v20  ;;  %7761 = vmatpush2.bf16.msra.mxu0 %v14183_v7 }
 0x505   : > { %8260 = vmatprep.subr.bf16.mxu0 %v14191_v2 }
 0x507   : > { %13201 = vrot.lane.b32.xlu0 %v13200_v51, %s14932_s19  ;;  %7798 = vmatpush1.bf16.msra.mxu1 %v14176_v29  ;;  %v7025_v51 = vrot.slane %v15992_v33, %v16684_v56  ;;  %v7048_v29 = vadd.f32 %v7021_v13, %v15949_v25  ;;  %v7063_v25 = vmax.f32 %v7043_v55, 0.0 }
 0x508   : > { %12637 = vmatprep.subr.bf16.mxu1 %v14182_v49 }
 0x509   : > { %v7044_v14 = vadd.f32 %v7025_v51, %v15944_v58  ;;  %v7049_v42 = vadd.f32 %v7025_v51, %v15954_v59  ;;  %v7054_v38 = vadd.f32 %v7025_v51, %v15963_v18  ;;  %v7059_v60 = vadd.f32 %v7025_v51, %v15968_v4 }
 0x50b   : > { %13216 = vrot.lane.b32.xlu0 %v13215_v62, %s14932_s19  ;;  %v7064_v35 = vmax.f32 %v7044_v14, 0.0  ;;  %v7069_v36 = vmax.f32 %v7049_v42, 0.0 }
 0x554   : > { %v16071_v12 = vpop.permute.xlu1 %13206 }
 0x555   : > { %v13209_v24 = vunpack.i.h.bf16 %v16071_v12  ;;  %v13208_v45 = vunpack.i.l.bf16 %v16071_v12  ;;  %v7074_v12 = vmax.f32 %v7054_v38, 0.0 }
 0x55c   : > { %v13212_v53 = vpop.permute.xlu1 %13211 }
 0x55d   : > { %v13214_v19 = vunpack.i.h.bf16 %v13212_v53  ;;  %v13213_v0 = vunpack.i.l.bf16 %v13212_v53  ;;  %v7079_v53 = vmax.f32 %v7059_v60, 0.0 }
 0x560   : > { %v13222_v31 = vpop.permute.xlu1 %13221 }
 0x561   : > { %v13224_v46 = vunpack.i.h.bf16 %v13222_v31  ;;  %v13223_v28 = vunpack.i.l.bf16 %v13222_v31 }
 0x563   : > { %v7124_v3 = vsel %vm7119_vm5, %v13223_v28, %v13213_v0  ;;  %v7126_v50 = vsel %vm7119_vm5, %v13224_v46, %v13214_v19 }
 0x564   : > { %v16082_v5 = vmax.f32 %v7073_v30, %v7124_v3  ;;  %v7149_v16 = vmax.f32 %v7078_v1, %v7126_v50  ;;  %v7068_v50 = vmax.f32 %v7048_v29, 0.0 }
 0x566   : > { %v7175_v15 = vrot.slane %v16082_v5, 1  ;;  %v7181_v23 = vrot.slane %v7149_v16, 1 }
 0x568   : > { %v7182_v41 = vsel %vm871_vm3, %v7175_v15, %v7181_v23  ;;  %v7188_v48 = vsel %vm871_vm3, %v7181_v23, %v16080_v43 }
 0x569   : > { %v7209_v11 = vmax.f32 %v16082_v5, %v7182_v41  ;;  %v7212_v9 = vmax.f32 %v7149_v16, %v7188_v48 }
 0x56b   : > { %v16091_v8 = vpack.c.bf16 %v7212_v9, %v7209_v11 }
 0x575   : > { %v13197_v10 = vpop.permute.xlu0 %13196 }
 0x576   : > { %v13199_v57 = vunpack.i.h.bf16 %v13197_v10  ;;  %v13198_v62 = vunpack.i.l.bf16 %v13197_v10 }
 0x578   : > { %v7121_v20 = vsel %vm7119_vm5, %v13208_v45, %v13198_v62  ;;  %v7123_v33 = vsel %vm7119_vm5, %v13209_v24, %v13199_v57  ;;  %v7142_v58 = vmax.f32 %v7065_v52, %v13198_v62  ;;  %v7145_v59 = vmax.f32 %v7070_v26, %v13199_v57 }
 0x579   : > { %v7141_v47 = vmax.f32 %v7064_v35, %v7121_v20  ;;  %v7144_v49 = vmax.f32 %v7069_v36, %v7123_v33  ;;  %v13202_v39 = vpop.permute.xlu0 %13201 }
 0x57a   : > { %v7172_v18 = vrot.slane %v7142_v58, 1  ;;  %v7173_v7 = vrot.slane %v7145_v59, 1  ;;  %v13204_v4 = vunpack.i.h.bf16 %v13202_v39  ;;  %v13203_v2 = vunpack.i.l.bf16 %v13202_v39  ;;  %v14187_v39 = vld [vmem:[#allocation10 + $0x338] ss:$12 sps:$4 sm:$0xff]  }
 0x57b   : > { %v7169_v17 = vrot.slane %v7141_v47, 1  ;;  %v7170_v40 = vrot.slane %v7144_v49, 1 }
 0x57c   : > { %v7174_v6 = vsel %vm871_vm3, %v7172_v18, %v7173_v7  ;;  %v7125_v44 = vsel %vm7119_vm5, %v13213_v0, %v13203_v2  ;;  %v7127_v26 = vsel %vm7119_vm5, %v13214_v19, %v13204_v4  ;;  %v7148_v22 = vmax.f32 %v7075_v63, %v13203_v2 }
 0x57d   : > { %v7171_v52 = vsel %vm871_vm3, %v7169_v17, %v7170_v40  ;;  %v7147_v13 = vmax.f32 %v7074_v12, %v7125_v44  ;;  %v7150_v31 = vmax.f32 %v7079_v53, %v7127_v26  ;;  %v13217_v46 = vpop.permute.xlu0 %13216  ;;  %v7151_v30 = vmax.f32 %v7080_v61, %v13204_v4  ;;  %v14188_v53 = vld [vmem:[#allocation10 + $0x278] ss:$12 sps:$4 sm:$0xff]   ;;  %v14196_v26 = vld [vmem:[#allocation10 + $0x94] ss:$12 sps:$4 sm:$0xff]  }
 0x57e   : > { %v7204_v28 = vmax.f32 %v7141_v47, %v7171_v52  ;;  %v7179_v1 = vrot.slane %v7148_v22, 1  ;;  %v13219_v3 = vunpack.i.h.bf16 %v13217_v46  ;;  %v7205_v16 = vmax.f32 %v7142_v58, %v7174_v6  ;;  %v14186_v47 = vld [vmem:[#allocation10 + $0x290] ss:$12 sps:$4 sm:$0xff]  }
 0x57f   : > { %v7177_v0 = vrot.slane %v7147_v13, 1  ;;  %v7183_v23 = vrot.slane %v7150_v31, 1  ;;  %v7185_v27 = vrot.slane %v7151_v30, 1  ;;  %v13218_v41 = vunpack.i.l.bf16 %v13217_v46  ;;  %v16686_v52 = vld [vmem:[#allocation29_spill] sm:$0xff] }
 0x580   : > { %v7180_v19 = vsel %vm871_vm3, %v7173_v7, %v7179_v1  ;;  %v7122_v63 = vsel %vm7119_vm5, %v13219_v3, %v13209_v24  ;;  %v16685_v17 = vmov 0   ;;  %v7389_v44 = vrot.slane %v16091_v8, 1  ;;  %v14202_v3 = vld [vmem:[#allocation10 + $0x2f0] ss:$12 sps:$4 sm:$0xff]  }
 0x581   : > { %v7178_v48 = vsel %vm871_vm3, %v7170_v40, %v7177_v0  ;;  %v7184_v11 = vsel %vm871_vm3, %v7177_v0, %v7183_v23  ;;  %v7189_v37 = vsel %vm871_vm3, %v7183_v23, %v16080_v43  ;;  %v7208_v61 = vmax.f32 %v7145_v59, %v7180_v19  ;;  %v14189_v40 = vld [vmem:[#allocation10 + $0xa8] ss:$12 sps:$4 sm:$0xff]   ;;  %v14203_v23 = vld [vmem:[#allocation10 + $0x230] ss:$12 sps:$4 sm:$0xff]   ;;  %v14207_v19 = vld [vmem:[#allocation10 + $0x2d8] ss:$12 sps:$4 sm:$0xff]  }
 0x582   : > { %v7186_v9 = vsel %vm871_vm3, %v7179_v1, %v7185_v27  ;;  %v7190_v51 = vsel %vm871_vm3, %v7185_v27, %v16080_v43  ;;  %v7207_v14 = vmax.f32 %v7144_v49, %v7178_v48  ;;  %v7210_v42 = vmax.f32 %v7147_v13, %v7184_v11  ;;  %v14198_v1 = vld [vmem:[#allocation10 + $0x248] ss:$12 sps:$4 sm:$0xff]   ;;  %v14204_v27 = vld [vmem:[#allocation10 + $0x60] ss:$12 sps:$4 sm:$0xff]  }
 0x583   : > { %v7211_v10 = vmax.f32 %v7148_v22, %v7186_v9  ;;  %v7213_v57 = vmax.f32 %v7150_v31, %v7189_v37  ;;  %v7214_v62 = vmax.f32 %v7151_v30, %v7190_v51  ;;  %v16126_v24 = vpack.c.bf16 %v7208_v61, %v7205_v16  ;;  %v14197_v31 = vld [vmem:[#allocation10 + $0x308] ss:$12 sps:$4 sm:$0xff]   ;;  %v14206_v16 = vld [vmem:[#allocation10 + $0x64] ss:$12 sps:$4 sm:$0xff]   ;;  %v14212_v48 = vld [vmem:[#allocation10 + $0x2c0] ss:$12 sps:$4 sm:$0xff]  }
 0x584   : > { %v16128_v35 = vpack.c.bf16 %v7207_v14, %v7204_v28  ;;  %v7143_v36 = vmax.f32 %v7068_v50, %v7122_v63  ;;  %v7120_v38 = vsel %vm7119_vm5, %v13218_v41, %v13208_v45  ;;  %v14194_v28 = vld [vmem:[#allocation10 + $0x90] ss:$12 sps:$4 sm:$0xff]   ;;  %v14199_v50 = vld [vmem:[#allocation10 + $0x78] ss:$12 sps:$4 sm:$0xff]   ;;  %v7397_v0 = vsel %vm871_vm3, %v7389_v44, %v16686_v52  ;;  %v14209_v11 = vld [vmem:[#allocation10 + $0x48] ss:$12 sps:$4 sm:$0xff]  }
 0x585   : > { %v16131_v60 = vpack.c.bf16 %v7213_v57, %v7210_v42  ;;  %v16133_v20 = vpack.c.bf16 %v7214_v62, %v7211_v10  ;;  %v7140_v33 = vmax.f32 %v7063_v25, %v7120_v38  ;;  %v7394_v58 = vrot.slane %v16126_v24, 1  ;;  %v14193_v25 = vld [vmem:[#allocation10 + $0x260] ss:$12 sps:$4 sm:$0xff]   ;;  %v14201_v30 = vld [vmem:[#allocation10 + $0x7c] ss:$12 sps:$4 sm:$0xff]  }
 0x586   : > { %v7167_v43 = vrot.slane %v7143_v36, 1  ;;  %v7391_v59 = vrot.slane %v16128_v35, 1  ;;  %v14211_v63 = vld [vmem:[#allocation10 + $0x4c] ss:$12 sps:$4 sm:$0xff]   ;;  %v14216_v37 = vld [vmem:[#allocation10 + $0x34] ss:$12 sps:$4 sm:$0xff]  }
 0x587   : > { %v7166_v55 = vrot.slane %v7140_v33, 1  ;;  %v7395_v29 = vrot.slane %v16133_v20, 1  ;;  %v7392_v49 = vrot.slane %v16131_v60, 1  ;;  %v14208_v41 = vld [vmem:[#allocation10 + $0x218] ss:$12 sps:$4 sm:$0xff]  }
 0x588   : > { %v7176_v45 = vsel %vm871_vm3, %v7167_v43, %v7175_v15  ;;  %v14192_v15 = vld [vmem:[#allocation10 + $0x320] ss:$12 sps:$4 sm:$0xff]   ;;  %v14217_v9 = vld [vmem:[#allocation10 + $0x2a8] ss:$12 sps:$4 sm:$0xff]   ;;  %v14214_v51 = vld [vmem:[#allocation10 + $0x30] ss:$12 sps:$4 sm:$0xff]  }
 0x589   : > { %v7206_v18 = vmax.f32 %v7143_v36, %v7176_v45  ;;  %v7168_v7 = vsel %vm871_vm3, %v7166_v55, %v7167_v43  ;;  %v16144_v4 = vsel %vm871_vm3, %v7394_v58, %v7395_v29  ;;  %v7393_v2 = vsel %vm871_vm3, %v7391_v59, %v7392_v49  ;;  %v14213_v61 = vld [vmem:[#allocation10 + $0x200] ss:$12 sps:$4 sm:$0xff]   ;;  %v14221_v14 = vld [vmem:[#allocation10 + $0x1c] ss:$12 sps:$4 sm:$0xff]   ;;  %v14219_v57 = vld [vmem:[#allocation10 + $0x18] ss:$12 sps:$4 sm:$0xff]  }
 0x58a   : > { %v7203_v12 = vmax.f32 %v7140_v33, %v7168_v7  ;;  %12111 = vmatmul.mubr.msk.bf16.vlgmr.msra.gmra.mxu1 %vm7119_vm5, %v16144_v4  ;;  %7762 = vmatprep.mubr.bf16.mxu0 %v7393_v2  ;;  %v7398_v13 = vsel %vm871_vm3, %v7392_v49, %v16686_v52  ;;  %v16159_v46 = vsel %vm871_vm3, %v7395_v29, %v16686_v52  ;;  %v14218_v42 = vld [vmem:[#allocation10 + $0x1e8] ss:$12 sps:$4 sm:$0xff]   ;;  %v14222_v10 = vld [vmem:[#allocation10 + $0x3b0] ss:$12 sps:$4 sm:$0xff]   ;;  %v14226_v36 = vld [vmem:[#allocation10 + $0x398] ss:$12 sps:$4 sm:$0xff]  }
 0x58b   : > { %12638 = vmatpush3.bf16.msra.mxu1 %v14186_v47  ;;  %7825 = vmatprep.mubr.bf16.mxu1 %v16685_v17  ;;  %v14225_v62 = vld [vmem:[#allocation10 + $0x4] ss:$12 sps:$4 sm:$0xff]   ;;  %v14223_v38 = vld [vmem:[#allocation10] ss:$12 sps:$4 sm:$0xff]   ;;  %v14227_v43 = vld [vmem:[#allocation10 + $0x168] ss:$12 sps:$4 sm:$0xff]  }
 0x58c   : > { %v16150_v5 = vpack.c.bf16 %v7206_v18, %v7203_v12  ;;  %12639 = vmatprep.subr.bf16.mxu1 %v14187_v39  ;;  %v14229_v33 = vld [vmem:[#allocation10 + $0x16c] ss:$12 sps:$4 sm:$0xff]   ;;  %v14233_v59 = vld [vmem:[#allocation10 + $0x154] ss:$12 sps:$4 sm:$0xff]   ;;  %v14231_v29 = vld [vmem:[#allocation10 + $0x150] ss:$12 sps:$4 sm:$0xff]  }
 0x58d   : > { %v14230_v58 = vld [vmem:[#allocation10 + $0x380] ss:$12 sps:$4 sm:$0xff]   ;;  %v14234_v55 = vld [vmem:[#allocation10 + $0x368] ss:$12 sps:$4 sm:$0xff]   ;;  %v14235_v45 = vld [vmem:[#allocation10 + $0x138] ss:$12 sps:$4 sm:$0xff]  }
 0x58e   : > { %v7388_v6 = vrot.slane %v16150_v5, 1  ;;  %v14237_v47 = vld [vmem:[#allocation10 + $0x13c] ss:$12 sps:$4 sm:$0xff]   ;;  %v14240_v49 = vld [vmem:[#allocation10 + $0x1cc] ss:$12 sps:$4 sm:$0xff]  }
 0x58f   : > { %12640 = vmatpush3.bf16.msra.mxu1 %v14188_v53  ;;  %v14243_v39 = vld [vmem:[#allocation10 + $0x124] ss:$12 sps:$4 sm:$0xff]   ;;  %v14238_v18 = vld [vmem:[#allocation10 + $0x1c8] ss:$12 sps:$4 sm:$0xff]   ;;  %v14249_v12 = vld [vmem:[#allocation10 + $0x10c] ss:$12 sps:$4 sm:$0xff]  }
 0x590   : > { %v7390_v22 = vsel %vm871_vm3, %v7388_v6, %v7389_v44  ;;  %12641 = vmatprep.subr.bf16.mxu1 %v14192_v15  ;;  %v14246_v7 = vld [vmem:[#allocation10 + $0x1b4] ss:$12 sps:$4 sm:$0xff]   ;;  %v14244_v53 = vld [vmem:[#allocation10 + $0x1b0] ss:$12 sps:$4 sm:$0xff]   ;;  %v14250_v6 = vld [vmem:[#allocation10 + $0x198] ss:$12 sps:$4 sm:$0xff]  }
 0x591   : > { %7763 = vmatmul.mubr.bf16.vlgmr.msra.gmra.mxu0 %v7390_v22  ;;  %v14247_v15 = vld [vmem:[#allocation10 + $0x108] ss:$12 sps:$4 sm:$0xff]   ;;  %v14258_v44 = vld [vmem:[#allocation10 + $0x184] ss:$12 sps:$4 sm:$0xff]  }
 0x592   : > { %8261 = vmatpush1.bf16.msra.mxu0 %v14189_v40  ;;  %7772 = vmatprep.mubr.bf16.mxu0 %v7398_v13  ;;  %v14255_v40 = vld [vmem:[#allocation10 + $0xf4] ss:$12 sps:$4 sm:$0xff]   ;;  %v14262_v52 = vld [vmem:[#allocation10 + $0x170] ss:$12 sps:$4 sm:$0xff]  }
 0x593   : > { %12112 = vmatmul.mubr.msk.bf16.gmra.mxu1 %vm7119_vm5, %v16159_v46  ;;  %8262 = vmatprep.subr.bf16.mxu0 %v14196_v26  ;;  %v14253_v26 = vld [vmem:[#allocation10 + $0xf0] ss:$12 sps:$4 sm:$0xff]  }
 0x594   : > { %12642 = vmatpush3.bf16.msra.mxu1 %v14193_v25  ;;  %7868 = vmatprep.mubr.bf16.mxu1 %v7393_v2  ;;  %v14241_v2 = vld [vmem:[#allocation10 + $0x120] ss:$12 sps:$4 sm:$0xff]  }
 0x595   : > { %12643 = vmatprep.subr.bf16.mxu1 %v14197_v31  ;;  %v14256_v25 = vld [vmem:[#allocation10 + $0x180] ss:$12 sps:$4 sm:$0xff]   ;;  %v14265_v31 = vld [vmem:[#allocation10 + $0xc4] ss:$12 sps:$4 sm:$0xff]  }
 0x596   : > { %8263 = vmatpush1.bf16.msra.mxu0 %v14194_v28  ;;  %v14267_v28 = vld [vmem:[#allocation10 + $0x158] ss:$12 sps:$4 sm:$0xff]  }
 0x597   : > { %8264 = vmatprep.subr.bf16.mxu0 %v14201_v30  ;;  %v14263_v30 = vld [vmem:[#allocation10 + $0xc0] ss:$12 sps:$4 sm:$0xff]  }
 0x598   : > { %12644 = vmatpush3.bf16.msra.mxu1 %v14198_v1  ;;  %v14271_v1 = vld [vmem:[#allocation10 + $0x46c] ss:$12 sps:$4 sm:$0xff]  }
 0x599   : > { %7773 = vmatmul.mubr.bf16.gmra.mxu0 %v7397_v0  ;;  %12645 = vmatprep.subr.bf16.mxu1 %v14202_v3  ;;  %v14268_v3 = vld [vmem:[#allocation10 + $0x98] ss:$12 sps:$4 sm:$0xff]  }
 0x59a   : > { %8265 = vmatpush1.bf16.msra.mxu0 %v14199_v50  ;;  %8292 = vmatprep.mubr.bf16.mxu0 %v16128_v35  ;;  %v14272_v50 = vld [vmem:[#allocation10 + $0x140] ss:$12 sps:$4 sm:$0xff]  }
 0x59b   : > { %8266 = vmatprep.subr.bf16.mxu0 %v14206_v16  ;;  %v14269_v16 = vld [vmem:[#allocation10 + $0x468] ss:$12 sps:$4 sm:$0xff]  }
 0x59c   : > { %12646 = vmatpush3.bf16.msra.mxu1 %v14203_v23  ;;  %v14273_v23 = vld [vmem:[#allocation10 + $0x80] ss:$12 sps:$4 sm:$0xff]  }
 0x59d   : > { %12647 = vmatprep.subr.bf16.mxu1 %v14207_v19  ;;  %v14277_v19 = vld [vmem:[#allocation10 + $0x128] ss:$12 sps:$4 sm:$0xff]  }
 0x59e   : > { %8267 = vmatpush1.bf16.msra.mxu0 %v14204_v27  ;;  %v14274_v27 = vld [vmem:[#allocation10 + $0x450] ss:$12 sps:$4 sm:$0xff]  }
 0x59f   : > { %8268 = vmatprep.subr.bf16.mxu0 %v14211_v63  ;;  %v14281_v63 = vld [vmem:[#allocation10 + $0x43c] ss:$12 sps:$4 sm:$0xff]  }
 0x5a0   : > { %12648 = vmatpush3.bf16.msra.mxu1 %v14208_v41  ;;  %v14278_v41 = vld [vmem:[#allocation10 + $0x68] ss:$12 sps:$4 sm:$0xff]  }
 0x5a1   : > { %12649 = vmatprep.subr.bf16.mxu1 %v14212_v48  ;;  %v8548_v48 = vrot.slane %v16128_v35, 2 }
 0x5a2   : > { %8269 = vmatpush1.bf16.msra.mxu0 %v14209_v11  ;;  %v8549_v11 = vrot.slane %v16131_v60, 2 }
 0x5a3   : > { %8270 = vmatprep.subr.bf16.mxu0 %v14216_v37  ;;  %v14282_v37 = vld [vmem:[#allocation10 + $0x110] ss:$12 sps:$4 sm:$0xff]  }
 0x5a4   : > { %12650 = vmatpush3.bf16.msra.mxu1 %v14213_v61  ;;  %v14279_v61 = vld [vmem:[#allocation10 + $0x438] ss:$12 sps:$4 sm:$0xff]  }
 0x5a5   : > { %12651 = vmatprep.subr.bf16.mxu1 %v14217_v9  ;;  %v14286_v9 = vld [vmem:[#allocation10 + $0x424] ss:$12 sps:$4 sm:$0xff]  }
 0x5a6   : > { %8271 = vmatpush1.bf16.msra.mxu0 %v14214_v51  ;;  %v14283_v51 = vld [vmem:[#allocation10 + $0x50] ss:$12 sps:$4 sm:$0xff]  }
 0x5a7   : > { %8272 = vmatprep.subr.bf16.mxu0 %v14221_v14  ;;  %v16185_v14 = vsel %vm603_vm0, %v8548_v48, %v8549_v11  ;;  %v14346_v48 = vld [vmem:[#allocation10 + $0x470] ss:$12 sps:$4 sm:$0xff]  }
 0x5a8   : > { %12652 = vmatpush3.bf16.msra.mxu1 %v14218_v42  ;;  %v14287_v42 = vld [vmem:[#allocation10 + $0xf8] ss:$12 sps:$4 sm:$0xff]  }
 0x5a9   : > { %12956 = vmatprep.subr.bf16.mxu1 %v14222_v10 }
 0x5aa   : > { %8273 = vmatpush1.bf16.msra.mxu0 %v14219_v57  ;;  %v14291_v57 = vld [vmem:[#allocation10 + $0x40c] ss:$12 sps:$4 sm:$0xff]  }
 0x5ab   : > { %7869 = vmatmul.mubr.bf16.vlgmr.msra.gmra.mxu1 %v7390_v22  ;;  %8274 = vmatprep.subr.bf16.mxu0 %v14225_v62  ;;  %v14261_v22 = vld [vmem:[#allocation10 + $0xdc] ss:$12 sps:$4 sm:$0xff]   ;;  %v14288_v62 = vld [vmem:[#allocation10 + $0x38] ss:$12 sps:$4 sm:$0xff]  }
 0x5ac   : > { %7876 = vmatprep.mubr.bf16.mxu1 %v7398_v13  ;;  %12957 = vmatpush3.bf16.msra.mxu1 %v14222_v10  ;;  %v14259_v13 = vld [vmem:[#allocation10 + $0xd8] ss:$12 sps:$4 sm:$0xff]   ;;  %v14284_v10 = vld [vmem:[#allocation10 + $0x420] ss:$12 sps:$4 sm:$0xff]  }
 0x5ad   : > { %12958 = vmatprep.subr.bf16.mxu1 %v14226_v36 }
 0x5ae   : > { %8275 = vmatpush1.bf16.msra.mxu0 %v14223_v38  ;;  %v14289_v38 = vld [vmem:[#allocation10 + $0x408] ss:$12 sps:$4 sm:$0xff]  }
 0x5af   : > { %8276 = vmatprep.subr.bf16.mxu0 %v14229_v33  ;;  %v14296_v33 = vld [vmem:[#allocation10 + $0x3f4] ss:$12 sps:$4 sm:$0xff]  }
 0x5b0   : > { %12959 = vmatpush3.bf16.msra.mxu1 %v14226_v36  ;;  %v14292_v36 = vld [vmem:[#allocation10 + $0xe0] ss:$12 sps:$4 sm:$0xff]  }
 0x5b1   : > { %12960 = vmatprep.subr.bf16.mxu1 %v14230_v58 }
 0x5b2   : > { %8277 = vmatpush2.bf16.msra.mxu0 %v14227_v43  ;;  %v14297_v43 = vld [vmem:[#allocation10 + $0xc8] ss:$12 sps:$4 sm:$0xff]  }
 0x5b3   : > { %7877 = vmatmul.mubr.bf16.gmra.mxu1 %v7397_v0  ;;  %8278 = vmatprep.subr.bf16.mxu0 %v14233_v59  ;;  %v14276_v0 = vld [vmem:[#allocation10 + $0x454] ss:$12 sps:$4 sm:$0xff]   ;;  %v14294_v59 = vld [vmem:[#allocation10 + $0x3f0] ss:$12 sps:$4 sm:$0xff]  }
 0x5b4   : > { %12961 = vmatpush3.bf16.msra.mxu1 %v14230_v58  ;;  %12964 = vmatprep.mubr.msk.bf16.mxu1 %vm7119_vm5, %v16144_v4  ;;  %v14252_v4 = vld [vmem:[#allocation10 + $0x19c] ss:$12 sps:$4 sm:$0xff]   ;;  %v14293_v58 = vld [vmem:[#allocation10 + $0x20] ss:$12 sps:$4 sm:$0xff]  }
 0x5b5   : > { %12962 = vmatprep.subr.bf16.mxu1 %v14234_v55 }
 0x5b6   : > { %8279 = vmatpush2.bf16.msra.mxu0 %v14231_v29  ;;  %v14298_v29 = vld [vmem:[#allocation10 + $0x8] ss:$12 sps:$4 sm:$0xff]  }
 0x5b7   : > { %8280 = vmatprep.subr.bf16.mxu0 %v14237_v47  ;;  %v14302_v47 = vld [vmem:[#allocation10 + $0x1d0] ss:$12 sps:$4 sm:$0xff]  }
 0x5b8   : > { %12963 = vmatpush3.bf16.msra.mxu1 %v14234_v55  ;;  %v14301_v55 = vld [vmem:[#allocation10 + $0x3dc] ss:$12 sps:$4 sm:$0xff]  }
 0x5b9   : > { %8321 = vmatprep.subr.bf16.mxu1 %v14240_v49  ;;  %v14299_v49 = vld [vmem:[#allocation10 + $0x3d8] ss:$12 sps:$4 sm:$0xff]  }
 0x5ba   : > { %8281 = vmatpush2.bf16.msra.mxu0 %v14235_v45  ;;  %v14305_v45 = vld [vmem:[#allocation10 + $0x3c4] ss:$12 sps:$4 sm:$0xff]  }
 0x5bb   : > { %12965 = vmatmul.mubr.msk.bf16.vlgmr.msra.gmra.mxu1 %vm7119_vm5, %v16159_v46  ;;  %8282 = vmatprep.subr.bf16.mxu0 %v14243_v39  ;;  %v14266_v46 = vld [vmem:[#allocation10 + $0xb0] ss:$12 sps:$4 sm:$0xff]   ;;  %v14306_v39 = vld [vmem:[#allocation10 + $0x1b8] ss:$12 sps:$4 sm:$0xff]  }
 0x5bc   : > { %8322 = vmatpush1.bf16.msra.mxu1 %v14238_v18  ;;  %8345 = vmatprep.mubr.bf16.mxu1 %v16685_v17  ;;  %v14303_v18 = vld [vmem:[#allocation10 + $0x3c0] ss:$12 sps:$4 sm:$0xff]  }
 0x5bd   : > { %8323 = vmatprep.subr.bf16.mxu1 %v14246_v7  ;;  %v14309_v7 = vld [vmem:[#allocation10 + $0x52c] ss:$12 sps:$4 sm:$0xff]  }
 0x5be   : > { %8283 = vmatpush2.bf16.msra.mxu0 %v14241_v2  ;;  %v14310_v2 = vld [vmem:[#allocation10 + $0x1a0] ss:$12 sps:$4 sm:$0xff]  }
 0x5bf   : > { %8284 = vmatprep.subr.bf16.mxu0 %v14249_v12  ;;  %v14307_v12 = vld [vmem:[#allocation10 + $0x528] ss:$12 sps:$4 sm:$0xff]  }
 0x5c0   : > { %8324 = vmatpush1.bf16.msra.mxu1 %v14244_v53  ;;  %v14313_v53 = vld [vmem:[#allocation10 + $0x514] ss:$12 sps:$4 sm:$0xff]  }
 0x5c1   : > { %8325 = vmatprep.subr.bf16.mxu1 %v14252_v4  ;;  %v14314_v4 = vld [vmem:[#allocation10 + $0x188] ss:$12 sps:$4 sm:$0xff]  }
 0x5c2   : > { %8285 = vmatpush2.bf16.msra.mxu0 %v14247_v15  ;;  %v14311_v15 = vld [vmem:[#allocation10 + $0x510] ss:$12 sps:$4 sm:$0xff]  }
 0x5c3   : > { %8286 = vmatprep.subr.bf16.mxu0 %v14255_v40  ;;  %v14317_v40 = vld [vmem:[#allocation10 + $0x4fc] ss:$12 sps:$4 sm:$0xff]  }
 0x5c4   : > { %8326 = vmatpush1.bf16.msra.mxu1 %v14250_v6  ;;  %v14320_v6 = vld [vmem:[#allocation10 + $0x58c] ss:$12 sps:$4 sm:$0xff]  }
 0x5c5   : > { %8327 = vmatprep.subr.bf16.mxu1 %v14258_v44  ;;  %v14315_v44 = vld [vmem:[#allocation10 + $0x4f8] ss:$12 sps:$4 sm:$0xff]  }
 0x5c6   : > { %8287 = vmatpush2.bf16.msra.mxu0 %v14253_v26  ;;  %v14323_v26 = vld [vmem:[#allocation10 + $0x4e4] ss:$12 sps:$4 sm:$0xff]  }
 0x5c7   : > { %8288 = vmatprep.subr.bf16.mxu0 %v14261_v22  ;;  %v14318_v22 = vld [vmem:[#allocation10 + $0x588] ss:$12 sps:$4 sm:$0xff]  }
 0x5c8   : > { %8328 = vmatpush1.bf16.msra.mxu1 %v14256_v25  ;;  %v14326_v25 = vld [vmem:[#allocation10 + $0x574] ss:$12 sps:$4 sm:$0xff]  }
 0x5c9   : > { %12671 = vmatprep.subr.bf16.mxu1 %v14262_v52  ;;  %v14321_v52 = vld [vmem:[#allocation10 + $0x4e0] ss:$12 sps:$4 sm:$0xff]  }
 0x5ca   : > { %8289 = vmatpush2.bf16.msra.mxu0 %v14259_v13  ;;  %v14329_v13 = vld [vmem:[#allocation10 + $0x4cc] ss:$12 sps:$4 sm:$0xff]  }
 0x5cb   : > { %12175 = vmatmul.mubr.msk.bf16.vlgmr.msra.gmra.mxu1 %vm7119_vm5, %v16126_v24  ;;  %8290 = vmatprep.subr.bf16.mxu0 %v14265_v31  ;;  %v14324_v31 = vld [vmem:[#allocation10 + $0x570] ss:$12 sps:$4 sm:$0xff]  }
 0x5cc   : > { %12672 = vmatpush3.bf16.msra.mxu1 %v14266_v46  ;;  %8355 = vmatprep.mubr.bf16.mxu1 %v16685_v17  ;;  %v14332_v46 = vld [vmem:[#allocation10 + $0x55c] ss:$12 sps:$4 sm:$0xff]  }
 0x5cd   : > { %12673 = vmatprep.subr.bf16.mxu1 %v14267_v28  ;;  %v14327_v28 = vld [vmem:[#allocation10 + $0x4c8] ss:$12 sps:$4 sm:$0xff]  }
 0x5ce   : > { %8291 = vmatpush2.bf16.msra.mxu0 %v14263_v30  ;;  %v14335_v30 = vld [vmem:[#allocation10 + $0x4b4] ss:$12 sps:$4 sm:$0xff]  }
 0x5cf   : > { %8887 = vmatprep.subr.bf16.mxu0 %v14271_v1  ;;  %v14330_v1 = vld [vmem:[#allocation10 + $0x558] ss:$12 sps:$4 sm:$0xff]  }
 0x5d0   : > { %12674 = vmatpush3.bf16.msra.mxu1 %v14268_v3  ;;  %v14338_v3 = vld [vmem:[#allocation10 + $0x544] ss:$12 sps:$4 sm:$0xff]  }
 0x5d1   : > { %8293 = vmatmul.mubr.bf16.vlgmr.msra.gmra.mxu0 %v16150_v5  ;;  %12675 = vmatprep.subr.bf16.mxu1 %v14272_v50  ;;  %v14333_v50 = vld [vmem:[#allocation10 + $0x4b0] ss:$12 sps:$4 sm:$0xff]  }
 0x5d2   : > { %8302 = vmatprep.mubr.bf16.mxu0 %v16131_v60  ;;  %8888 = vmatpush1.bf16.msra.mxu0 %v14269_v16  ;;  %v14341_v16 = vld [vmem:[#allocation10 + $0x49c] ss:$12 sps:$4 sm:$0xff]  }
 0x5d3   : > { %12176 = vmatmul.mubr.msk.bf16.gmra.mxu1 %vm7119_vm5, %v16133_v20  ;;  %8889 = vmatprep.subr.bf16.mxu0 %v14276_v0  ;;  %v14336_v0 = vld [vmem:[#allocation10 + $0x540] ss:$12 sps:$4 sm:$0xff]  }
 0x5d4   : > { %12676 = vmatpush3.bf16.msra.mxu1 %v14273_v23  ;;  %8398 = vmatprep.mubr.bf16.mxu1 %v16128_v35  ;;  %v14342_v23 = vld [vmem:[#allocation10 + $0x530] ss:$12 sps:$4 sm:$0xff]  }
 0x5d5   : > { %12677 = vmatprep.subr.bf16.mxu1 %v14277_v19  ;;  %v14339_v19 = vld [vmem:[#allocation10 + $0x498] ss:$12 sps:$4 sm:$0xff]  }
 0x5d6   : > { %8890 = vmatpush1.bf16.msra.mxu0 %v14274_v27  ;;  %v8551_v27 = vrot.slane %v16126_v24, 2 }
 0x5d7   : > { %8891 = vmatprep.subr.bf16.mxu0 %v14281_v63  ;;  %v8552_v63 = vrot.slane %v16133_v20, 2 }
 0x5d8   : > { %12678 = vmatpush3.bf16.msra.mxu1 %v14278_v41  ;;  %v14345_v41 = vld [vmem:[#allocation10 + $0x484] ss:$12 sps:$4 sm:$0xff]  }
 0x5d9   : > { %8303 = vmatmul.mubr.bf16.gmra.mxu0 %v16091_v8  ;;  %12679 = vmatprep.subr.bf16.mxu1 %v14282_v37  ;;  %v14347_v37 = vld [vmem:[#allocation10 + $0x518] ss:$12 sps:$4 sm:$0xff]  }
 0x5da   : > { %8892 = vmatpush1.bf16.msra.mxu0 %v14279_v61  ;;  %8919 = vmatprep.mubr.bf16.mxu0 %v16185_v14  ;;  %v16199_v61 = vsel %vm603_vm0, %v8551_v27, %v8552_v63  ;;  %v14394_v27 = vld [vmem:[#allocation10 + $0x548] ss:$12 sps:$4 sm:$0xff]  }
 0x5db   : > { %8893 = vmatprep.subr.bf16.mxu0 %v14286_v9  ;;  %v14343_v9 = vld [vmem:[#allocation10 + $0x480] ss:$12 sps:$4 sm:$0xff]  }
 0x5dc   : > { %12680 = vmatpush3.bf16.msra.mxu1 %v14283_v51  ;;  %v14351_v51 = vld [vmem:[#allocation10 + $0x64c] ss:$12 sps:$4 sm:$0xff]  }
 0x5dd   : > { %12681 = vmatprep.subr.bf16.mxu1 %v14287_v42  ;;  %v8545_v42 = vrot.slane %v16150_v5, 2 }
 0x5de   : > { %8894 = vmatpush1.bf16.msra.mxu0 %v14284_v10  ;;  %v14348_v10 = vld [vmem:[#allocation10 + $0x458] ss:$12 sps:$4 sm:$0xff]  }
 0x5df   : > { %8895 = vmatprep.subr.bf16.mxu0 %v14291_v57  ;;  %v14352_v57 = vld [vmem:[#allocation10 + $0x500] ss:$12 sps:$4 sm:$0xff]  }
 0x5e0   : > { %12682 = vmatpush3.bf16.msra.mxu1 %v14288_v62  ;;  %v8546_v62 = vrot.slane %v16091_v8, 2 }
 0x5e1   : > { %12683 = vmatprep.subr.bf16.mxu1 %v14292_v36  ;;  %v14349_v36 = vld [vmem:[#allocation10 + $0x648] ss:$12 sps:$4 sm:$0xff]  }
 0x5e2   : > { %8896 = vmatpush1.bf16.msra.mxu0 %v14289_v38  ;;  %v14356_v38 = vld [vmem:[#allocation10 + $0x634] ss:$12 sps:$4 sm:$0xff]  }
 0x5e3   : > { %8897 = vmatprep.subr.bf16.mxu0 %v14296_v33  ;;  %v16207_v33 = vsel %vm603_vm0, %v8545_v42, %v8546_v62  ;;  %v14406_v42 = vld [vmem:[#allocation10 + $0x754] ss:$12 sps:$4 sm:$0xff]  }
 0x5e4   : > { %12684 = vmatpush3.bf16.msra.mxu1 %v14293_v58  ;;  %v14353_v58 = vld [vmem:[#allocation10 + $0x440] ss:$12 sps:$4 sm:$0xff]  }
 0x5e5   : > { %12685 = vmatprep.subr.bf16.mxu1 %v14297_v43  ;;  %v16687_v43 = vld [vmem:[#allocation30_spill] sm:$0xff] }
 0x5e6   : > { %8898 = vmatpush1.bf16.msra.mxu0 %v14294_v59  ;;  %v16214_v59 = vsel %vm603_vm0, %v8549_v11, %v16687_v43  ;;  %v14358_v11 = vld [vmem:[#allocation10 + $0x428] ss:$12 sps:$4 sm:$0xff]  }
 0x5e7   : > { %8899 = vmatprep.subr.bf16.mxu0 %v14301_v55  ;;  %v14357_v55 = vld [vmem:[#allocation10 + $0x4e8] ss:$12 sps:$4 sm:$0xff]  }
 0x5e8   : > { %12686 = vmatpush3.bf16.msra.mxu1 %v14298_v29  ;;  %v16219_v29 = vsel %vm603_vm0, %v8552_v63, %v16687_v43  ;;  %v14391_v63 = vld [vmem:[#allocation10 + $0x6f0] ss:$12 sps:$4 sm:$0xff]  }
 0x5e9   : > { %12968 = vmatprep.subr.bf16.mxu1 %v14302_v47 }
 0x5ea   : > { %8900 = vmatpush1.bf16.msra.mxu0 %v14299_v49  ;;  %v14361_v49 = vld [vmem:[#allocation10 + $0x61c] ss:$12 sps:$4 sm:$0xff]  }
 0x5eb   : > { %8399 = vmatmul.mubr.bf16.vlgmr.msra.gmra.mxu1 %v16150_v5  ;;  %8901 = vmatprep.subr.bf16.mxu0 %v14305_v45  ;;  %v9188_v45 = vrot.slane %v16128_v35, 3 }
 0x5ec   : > { %8406 = vmatprep.mubr.bf16.mxu1 %v16131_v60  ;;  %12969 = vmatpush3.bf16.msra.mxu1 %v14302_v47  ;;  %v14354_v47 = vld [vmem:[#allocation10 + $0x630] ss:$12 sps:$4 sm:$0xff]  }
 0x5ed   : > { %12970 = vmatprep.subr.bf16.mxu1 %v14306_v39 }
 0x5ee   : > { %8902 = vmatpush1.bf16.msra.mxu0 %v14303_v18  ;;  %v14362_v18 = vld [vmem:[#allocation10 + $0x4d0] ss:$12 sps:$4 sm:$0xff]  }
 0x5ef   : > { %8903 = vmatprep.subr.bf16.mxu0 %v14309_v7  ;;  %v14359_v7 = vld [vmem:[#allocation10 + $0x618] ss:$12 sps:$4 sm:$0xff]  }
 0x5f0   : > { %12971 = vmatpush3.bf16.msra.mxu1 %v14306_v39  ;;  %v9189_v39 = vrot.slane %v16131_v60, 3 }
 0x5f1   : > { %12972 = vmatprep.subr.bf16.mxu1 %v14310_v2 }
 0x5f2   : > { %8904 = vmatpush2.bf16.msra.mxu0 %v14307_v12  ;;  %v8554_v12 = vsel %vm603_vm0, %v8546_v62, %v16687_v43  ;;  %v14404_v62 = vld [vmem:[#allocation10 + $0x750] ss:$12 sps:$4 sm:$0xff]  }
 0x5f3   : > { %8407 = vmatmul.mubr.bf16.gmra.mxu1 %v16091_v8  ;;  %8905 = vmatprep.subr.bf16.mxu0 %v14313_v53  ;;  %v14363_v53 = vld [vmem:[#allocation10 + $0x410] ss:$12 sps:$4 sm:$0xff]  }
 0x5f4   : > { %12973 = vmatpush3.bf16.msra.mxu1 %v14310_v2  ;;  %12976 = vmatprep.mubr.msk.bf16.mxu1 %vm7119_vm5, %v16126_v24  ;;  %v14366_v2 = vld [vmem:[#allocation10 + $0x604] ss:$12 sps:$4 sm:$0xff]  }
 0x5f5   : > { %12974 = vmatprep.subr.bf16.mxu1 %v14314_v4  ;;  %v14413_v43 = vld [vmem:[#allocation10 + $0x690] ss:$12 sps:$4 sm:$0xff]  }
 0x5f6   : > { %8906 = vmatpush2.bf16.msra.mxu0 %v14311_v15  ;;  %v14364_v15 = vld [vmem:[#allocation10 + $0x600] ss:$12 sps:$4 sm:$0xff]  }
 0x5f7   : > { %8907 = vmatprep.subr.bf16.mxu0 %v14317_v40  ;;  %v14371_v40 = vld [vmem:[#allocation10 + $0x5ec] ss:$12 sps:$4 sm:$0xff]  }
 0x5f8   : > { %12975 = vmatpush3.bf16.msra.mxu1 %v14314_v4  ;;  %v14367_v4 = vld [vmem:[#allocation10 + $0x4b8] ss:$12 sps:$4 sm:$0xff]  }
 0x5f9   : > { %8948 = vmatprep.subr.bf16.mxu1 %v14320_v6  ;;  %v14368_v6 = vld [vmem:[#allocation10 + $0x3f8] ss:$12 sps:$4 sm:$0xff]  }
 0x5fa   : > { %8908 = vmatpush2.bf16.msra.mxu0 %v14315_v44  ;;  %v14372_v44 = vld [vmem:[#allocation10 + $0x4a0] ss:$12 sps:$4 sm:$0xff]  }
 0x5fb   : > { %12977 = vmatmul.mubr.msk.bf16.vlgmr.msra.gmra.mxu1 %vm7119_vm5, %v16133_v20  ;;  %8909 = vmatprep.subr.bf16.mxu0 %v14323_v26  ;;  %v14369_v26 = vld [vmem:[#allocation10 + $0x5e8] ss:$12 sps:$4 sm:$0xff]  }
 0x5fc   : > { %8949 = vmatpush1.bf16.msra.mxu1 %v14318_v22  ;;  %8972 = vmatprep.mubr.bf16.mxu1 %v16685_v17  ;;  %v14376_v22 = vld [vmem:[#allocation10 + $0x5d4] ss:$12 sps:$4 sm:$0xff]  }
 0x5fd   : > { %8950 = vmatprep.subr.bf16.mxu1 %v14326_v25  ;;  %v14373_v25 = vld [vmem:[#allocation10 + $0x3e0] ss:$12 sps:$4 sm:$0xff]  }
 0x5fe   : > { %8910 = vmatpush2.bf16.msra.mxu0 %v14321_v52  ;;  %v14377_v52 = vld [vmem:[#allocation10 + $0x488] ss:$12 sps:$4 sm:$0xff]  }
 0x5ff   : > { %8911 = vmatprep.subr.bf16.mxu0 %v14329_v13  ;;  %v14374_v13 = vld [vmem:[#allocation10 + $0x5d0] ss:$12 sps:$4 sm:$0xff]  }
 0x600   : > { %8951 = vmatpush1.bf16.msra.mxu1 %v14324_v31  ;;  %v14381_v31 = vld [vmem:[#allocation10 + $0x5bc] ss:$12 sps:$4 sm:$0xff]  }
 0x601   : > { %8952 = vmatprep.subr.bf16.mxu1 %v14332_v46  ;;  %v14378_v46 = vld [vmem:[#allocation10 + $0x3c8] ss:$12 sps:$4 sm:$0xff]  }
 0x602   : > { %8912 = vmatpush2.bf16.msra.mxu0 %v14327_v28  ;;  %v14382_v28 = vld [vmem:[#allocation10 + $0x590] ss:$12 sps:$4 sm:$0xff]  }
 0x603   : > { %8913 = vmatprep.subr.bf16.mxu0 %v14335_v30  ;;  %v14379_v30 = vld [vmem:[#allocation10 + $0x5b8] ss:$12 sps:$4 sm:$0xff]  }
 0x604   : > { %8953 = vmatpush1.bf16.msra.mxu1 %v14330_v1  ;;  %v14385_v1 = vld [vmem:[#allocation10 + $0x5a4] ss:$12 sps:$4 sm:$0xff]  }
 0x605   : > { %8954 = vmatprep.subr.bf16.mxu1 %v14338_v3  ;;  %v14386_v3 = vld [vmem:[#allocation10 + $0x578] ss:$12 sps:$4 sm:$0xff]  }
 0x606   : > { %8914 = vmatpush2.bf16.msra.mxu0 %v14333_v50  ;;  %v14383_v50 = vld [vmem:[#allocation10 + $0x5a0] ss:$12 sps:$4 sm:$0xff]  }
 0x607   : > { %8915 = vmatprep.subr.bf16.mxu0 %v14341_v16  ;;  %v14389_v16 = vld [vmem:[#allocation10 + $0x70c] ss:$12 sps:$4 sm:$0xff]  }
 0x608   : > { %8955 = vmatpush1.bf16.msra.mxu1 %v14336_v0  ;;  %v14390_v0 = vld [vmem:[#allocation10 + $0x560] ss:$12 sps:$4 sm:$0xff]  }
 0x609   : > { %12705 = vmatprep.subr.bf16.mxu1 %v14342_v23  ;;  %v14387_v23 = vld [vmem:[#allocation10 + $0x708] ss:$12 sps:$4 sm:$0xff]  }
 0x60a   : > { %8916 = vmatpush2.bf16.msra.mxu0 %v14339_v19  ;;  %v14393_v19 = vld [vmem:[#allocation10 + $0x6f4] ss:$12 sps:$4 sm:$0xff]  }
 0x60b   : > { %12239 = vmatmul.mubr.msk.bf16.vlgmr.msra.gmra.mxu1 %vm7119_vm5, %v16199_v61  ;;  %8917 = vmatprep.subr.bf16.mxu0 %v14345_v41  ;;  %v14397_v41 = vld [vmem:[#allocation10 + $0x6dc] ss:$12 sps:$4 sm:$0xff]  }
 0x60c   : > { %12706 = vmatpush3.bf16.msra.mxu1 %v14346_v48  ;;  %8982 = vmatprep.mubr.bf16.mxu1 %v16685_v17  ;;  %v14400_v48 = vld [vmem:[#allocation10 + $0x76c] ss:$12 sps:$4 sm:$0xff]  }
 0x60d   : > { %12707 = vmatprep.subr.bf16.mxu1 %v14347_v37  ;;  %v14395_v37 = vld [vmem:[#allocation10 + $0x6d8] ss:$12 sps:$4 sm:$0xff]  }
 0x60e   : > { %8918 = vmatpush2.bf16.msra.mxu0 %v14343_v9  ;;  %v14403_v9 = vld [vmem:[#allocation10 + $0x6c4] ss:$12 sps:$4 sm:$0xff]  }
 0x60f   : > { %9528 = vmatprep.subr.bf16.mxu0 %v14351_v51  ;;  %v14398_v51 = vld [vmem:[#allocation10 + $0x768] ss:$12 sps:$4 sm:$0xff]  }
 0x610   : > { %12708 = vmatpush3.bf16.msra.mxu1 %v14348_v10  ;;  %v14401_v10 = vld [vmem:[#allocation10 + $0x6c0] ss:$12 sps:$4 sm:$0xff]  }
 0x611   : > { %8920 = vmatmul.mubr.bf16.vlgmr.msra.gmra.mxu0 %v16207_v33  ;;  %12709 = vmatprep.subr.bf16.mxu1 %v14352_v57  ;;  %v14409_v57 = vld [vmem:[#allocation10 + $0x6ac] ss:$12 sps:$4 sm:$0xff]  }
 0x612   : > { %8929 = vmatprep.mubr.bf16.mxu0 %v16214_v59  ;;  %9529 = vmatpush1.bf16.msra.mxu0 %v14349_v36  ;;  %v14407_v36 = vld [vmem:[#allocation10 + $0x6a8] ss:$12 sps:$4 sm:$0xff]  }
 0x613   : > { %12240 = vmatmul.mubr.msk.bf16.gmra.mxu1 %vm7119_vm5, %v16219_v29  ;;  %9530 = vmatprep.subr.bf16.mxu0 %v14356_v38  ;;  %v14415_v38 = vld [vmem:[#allocation10 + $0x694] ss:$12 sps:$4 sm:$0xff]  }
 0x614   : > { %12710 = vmatpush3.bf16.msra.mxu1 %v14353_v58  ;;  %9025 = vmatprep.mubr.bf16.mxu1 %v16185_v14  ;;  %v16231_v14 = vsel %vm9184_vm6, %v9188_v45, %v9189_v39  ;;  %v14418_v58 = vld [vmem:[#allocation10 + $0x724] ss:$12 sps:$4 sm:$0xff]  }
 0x615   : > { %12711 = vmatprep.subr.bf16.mxu1 %v14357_v55  ;;  %v14416_v55 = vld [vmem:[#allocation10 + $0x720] ss:$12 sps:$4 sm:$0xff]   ;;  %v14425_v45 = vld [vmem:[#allocation10 + $0x664] ss:$12 sps:$4 sm:$0xff]  }
 0x616   : > { %9531 = vmatpush1.bf16.msra.mxu0 %v14354_v47  ;;  %v14419_v47 = vld [vmem:[#allocation10 + $0x678] ss:$12 sps:$4 sm:$0xff]  }
 0x617   : > { %9532 = vmatprep.subr.bf16.mxu0 %v14361_v49  ;;  %v9191_v49 = vrot.slane %v16126_v24, 3 }
 0x618   : > { %12712 = vmatpush3.bf16.msra.mxu1 %v14358_v11  ;;  %v9192_v11 = vrot.slane %v16133_v20, 3 }
 0x619   : > { %8930 = vmatmul.mubr.bf16.gmra.mxu0 %v8554_v12  ;;  %12713 = vmatprep.subr.bf16.mxu1 %v14362_v18  ;;  %v14426_v18 = vld [vmem:[#allocation10 + $0x650] ss:$12 sps:$4 sm:$0xff]  }
 0x61a   : > { %9533 = vmatpush1.bf16.msra.mxu0 %v14359_v7  ;;  %9560 = vmatprep.mubr.bf16.mxu0 %v16231_v14  ;;  %v14427_v7 = vld [vmem:[#allocation10 + $0x6f8] ss:$12 sps:$4 sm:$0xff]  }
 0x61b   : > { %9534 = vmatprep.subr.bf16.mxu0 %v14366_v2  ;;  %v16244_v2 = vsel %vm9184_vm6, %v9191_v49, %v9192_v11  ;;  %v14452_v49 = vld [vmem:[#allocation10 + $0x680] ss:$12 sps:$4 sm:$0xff]  }
 0x61c   : > { %12714 = vmatpush3.bf16.msra.mxu1 %v14363_v53  ;;  %v14423_v53 = vld [vmem:[#allocation10 + $0x660] ss:$12 sps:$4 sm:$0xff]  }
 0x61d   : > { %12715 = vmatprep.subr.bf16.mxu1 %v14367_v4  ;;  %v14431_v4 = vld [vmem:[#allocation10 + $0x82c] ss:$12 sps:$4 sm:$0xff]  }
 0x61e   : > { %9535 = vmatpush1.bf16.msra.mxu0 %v14364_v15 }
 0x61f   : > { %9536 = vmatprep.subr.bf16.mxu0 %v14371_v40  ;;  %v9185_v40 = vrot.slane %v16150_v5, 3 }
 0x620   : > { %12716 = vmatpush3.bf16.msra.mxu1 %v14368_v6  ;;  %v14428_v6 = vld [vmem:[#allocation10 + $0x638] ss:$12 sps:$4 sm:$0xff]  }
 0x621   : > { %12717 = vmatprep.subr.bf16.mxu1 %v14372_v44  ;;  %v14432_v44 = vld [vmem:[#allocation10 + $0x6e0] ss:$12 sps:$4 sm:$0xff]  }
 0x622   : > { %9537 = vmatpush1.bf16.msra.mxu0 %v14369_v26 }
 0x623   : > { %9538 = vmatprep.subr.bf16.mxu0 %v14376_v22  ;;  %v9186_v22 = vrot.slane %v16091_v8, 3 }
 0x624   : > { %12718 = vmatpush3.bf16.msra.mxu1 %v14373_v25  ;;  %v14429_v25 = vld [vmem:[#allocation10 + $0x828] ss:$12 sps:$4 sm:$0xff]  }
 0x625   : > { %12719 = vmatprep.subr.bf16.mxu1 %v14377_v52  ;;  %v9194_v52 = vrot.slane %v16685_v17, 3 }
 0x626   : > { %9539 = vmatpush1.bf16.msra.mxu0 %v14374_v13  ;;  %v14436_v13 = vld [vmem:[#allocation10 + $0x814] ss:$12 sps:$4 sm:$0xff]  }
 0x627   : > { %9540 = vmatprep.subr.bf16.mxu0 %v14381_v31  ;;  %v16253_v31 = vsel %vm9184_vm6, %v9185_v40, %v9186_v22  ;;  %v14462_v40 = vld [vmem:[#allocation10 + $0x770] ss:$12 sps:$4 sm:$0xff]  }
 0x628   : > { %12720 = vmatpush3.bf16.msra.mxu1 %v14378_v46  ;;  %v14433_v46 = vld [vmem:[#allocation10 + $0x620] ss:$12 sps:$4 sm:$0xff]  }
 0x629   : > { %12980 = vmatprep.subr.bf16.mxu1 %v14382_v28 }
 0x62a   : > { %9541 = vmatpush1.bf16.msra.mxu0 %v14379_v30  ;;  %v16259_v30 = vsel %vm9184_vm6, %v9189_v39, %v9194_v52  ;;  %v14441_v39 = vld [vmem:[#allocation10 + $0x7fc] ss:$12 sps:$4 sm:$0xff]  }
 0x62b   : > { %9026 = vmatmul.mubr.bf16.vlgmr.msra.gmra.mxu1 %v16207_v33  ;;  %9542 = vmatprep.subr.bf16.mxu0 %v14385_v1  ;;  %v14410_v33 = vld [vmem:[#allocation10 + $0x738] ss:$12 sps:$4 sm:$0xff]  }
 0x62c   : > { %9033 = vmatprep.mubr.bf16.mxu1 %v16214_v59  ;;  %12981 = vmatpush3.bf16.msra.mxu1 %v14382_v28  ;;  %v14421_v59 = vld [vmem:[#allocation10 + $0x67c] ss:$12 sps:$4 sm:$0xff]  }
 0x62d   : > { %12982 = vmatprep.subr.bf16.mxu1 %v14386_v3 }
 0x62e   : > { %9543 = vmatpush1.bf16.msra.mxu0 %v14383_v50 }
 0x62f   : > { %9544 = vmatprep.subr.bf16.mxu0 %v14389_v16  ;;  %v16267_v16 = vsel %vm9184_vm6, %v9192_v11, %v9194_v52 }
 0x630   : > { %12983 = vmatpush3.bf16.msra.mxu1 %v14386_v3  ;;  %v14437_v3 = vld [vmem:[#allocation10 + $0x6c8] ss:$12 sps:$4 sm:$0xff]  }
 0x631   : > { %12984 = vmatprep.subr.bf16.mxu1 %v14390_v0 }
 0x632   : > { %9545 = vmatpush2.bf16.msra.mxu0 %v14387_v23 }
 0x633   : > { %9034 = vmatmul.mubr.bf16.gmra.mxu1 %v8554_v12  ;;  %9546 = vmatprep.subr.bf16.mxu0 %v14393_v19 }
 0x634   : > { %12985 = vmatpush3.bf16.msra.mxu1 %v14390_v0  ;;  %12988 = vmatprep.mubr.msk.bf16.mxu1 %vm7119_vm5, %v16199_v61  ;;  %v14412_v61 = vld [vmem:[#allocation10 + $0x73c] ss:$12 sps:$4 sm:$0xff]  }
 0x635   : > { %12986 = vmatprep.subr.bf16.mxu1 %v14394_v27  ;;  %v14434_v0 = vld [vmem:[#allocation10 + $0x810] ss:$12 sps:$4 sm:$0xff]  }
 0x636   : > { %9547 = vmatpush2.bf16.msra.mxu0 %v14391_v63 }
 0x637   : > { %9548 = vmatprep.subr.bf16.mxu0 %v14397_v41 }
 0x638   : > { %12987 = vmatpush3.bf16.msra.mxu1 %v14394_v27  ;;  %v14438_v27 = vld [vmem:[#allocation10 + $0x608] ss:$12 sps:$4 sm:$0xff]  }
 0x639   : > { %9589 = vmatprep.subr.bf16.mxu1 %v14400_v48  ;;  %v9829_v48 = vrot.slane %v16128_v35, 4 }
 0x63a   : > { %9549 = vmatpush2.bf16.msra.mxu0 %v14395_v37  ;;  %v9830_v37 = vrot.slane %v16131_v60, 4 }
 0x63b   : > { %12989 = vmatmul.mubr.msk.bf16.vlgmr.msra.gmra.mxu1 %vm7119_vm5, %v16219_v29  ;;  %9550 = vmatprep.subr.bf16.mxu0 %v14403_v9  ;;  %v14422_v29 = vld [vmem:[#allocation10 + $0x710] ss:$12 sps:$4 sm:$0xff]  }
 0x63c   : > { %9590 = vmatpush1.bf16.msra.mxu1 %v14398_v51  ;;  %9613 = vmatprep.mubr.bf16.mxu1 %v16685_v17  ;;  %v14442_v9 = vld [vmem:[#allocation10 + $0x6b0] ss:$12 sps:$4 sm:$0xff]  }
 0x63d   : > { %9591 = vmatprep.subr.bf16.mxu1 %v14406_v42  ;;  %v14439_v42 = vld [vmem:[#allocation10 + $0x7f8] ss:$12 sps:$4 sm:$0xff]  }
 0x63e   : > { %9551 = vmatpush2.bf16.msra.mxu0 %v14401_v10 }
 0x63f   : > { %9552 = vmatprep.subr.bf16.mxu0 %v14409_v57  ;;  %v14446_v57 = vld [vmem:[#allocation10 + $0x7e4] ss:$12 sps:$4 sm:$0xff]  }
 0x640   : > { %9592 = vmatpush1.bf16.msra.mxu1 %v14404_v62  ;;  %v16281_v62 = vsel %vm9184_vm6, %v9186_v22, %v9194_v52  ;;  %v14466_v22 = vld [vmem:[#allocation10 + $0x758] ss:$12 sps:$4 sm:$0xff]  }
 0x641   : > { %9593 = vmatprep.subr.bf16.mxu1 %v14412_v61 }
 0x642   : > { %9553 = vmatpush2.bf16.msra.mxu0 %v14407_v36  ;;  %v16289_v36 = vsel %vm9825_vm7, %v9829_v48, %v9830_v37 }
 0x643   : > { %9554 = vmatprep.subr.bf16.mxu0 %v14415_v38  ;;  %v14447_v38 = vld [vmem:[#allocation10 + $0x698] ss:$12 sps:$4 sm:$0xff]  }
 0x644   : > { %9594 = vmatpush1.bf16.msra.mxu1 %v14410_v33 }
 0x645   : > { %9595 = vmatprep.subr.bf16.mxu1 %v14418_v58  ;;  %v14444_v58 = vld [vmem:[#allocation10 + $0x7e0] ss:$12 sps:$4 sm:$0xff]  }
 0x646   : > { %9555 = vmatpush2.bf16.msra.mxu0 %v14413_v43 }
 0x647   : > { %9556 = vmatprep.subr.bf16.mxu0 %v14421_v59  ;;  %v14451_v59 = vld [vmem:[#allocation10 + $0x7cc] ss:$12 sps:$4 sm:$0xff]  }
 0x648   : > { %9596 = vmatpush1.bf16.msra.mxu1 %v14416_v55  ;;  %v14448_v55 = vld [vmem:[#allocation10 + $0x5d8] ss:$12 sps:$4 sm:$0xff]  }
 0x649   : > { %12739 = vmatprep.subr.bf16.mxu1 %v14422_v29 }
 0x64a   : > { %9557 = vmatpush2.bf16.msra.mxu0 %v14419_v47  ;;  %v7817_v12 = vpop.f32.mrf.mxu1 }
 0x64b   : > { %12303 = vmatmul.mubr.msk.bf16.vlgmr.msra.gmra.mxu1 %vm7119_vm5, %v16244_v2  ;;  %9558 = vmatprep.subr.bf16.mxu0 %v14425_v45  ;;  %v14449_v45 = vld [vmem:[#allocation10 + $0x7c8] ss:$12 sps:$4 sm:$0xff]  }
 0x64c   : > { %12740 = vmatpush3.bf16.msra.mxu1 %v14426_v18  ;;  %v7819_v15 = vpop.f32.mrf.mxu1  ;;  %9623 = vmatprep.mubr.bf16.mxu1 %v16685_v17  ;;  %v14456_v18 = vld [vmem:[#allocation10 + $0x7b4] ss:$12 sps:$4 sm:$0xff]  }
 0x64d   : > { %12741 = vmatprep.subr.bf16.mxu1 %v14427_v7  ;;  %v14453_v7 = vld [vmem:[#allocation10 + $0x5c0] ss:$12 sps:$4 sm:$0xff]  }
 0x64e   : > { %9559 = vmatpush2.bf16.msra.mxu0 %v14423_v53  ;;  %v7821_v26 = vpop.f32.mrf.mxu1  ;;  %v14454_v53 = vld [vmem:[#allocation10 + $0x7b0] ss:$12 sps:$4 sm:$0xff]  }
 0x64f   : > { %10169 = vmatprep.subr.bf16.mxu0 %v14431_v4  ;;  %v14461_v4 = vld [vmem:[#allocation10 + $0x79c] ss:$12 sps:$4 sm:$0xff]  }
 0x650   : > { %12742 = vmatpush3.bf16.msra.mxu1 %v14428_v6  ;;  %v16261_v1 = vpop.f32.mrf.mxu1  ;;  %v14459_v6 = vld [vmem:[#allocation10 + $0x798] ss:$12 sps:$4 sm:$0xff]  }
 0x651   : > { %9561 = vmatmul.mubr.bf16.vlgmr.msra.gmra.mxu0 %v16253_v31  ;;  %v7764_v28 = vpop.f32.mrf.mxu0  ;;  %12743 = vmatprep.subr.bf16.mxu1 %v14432_v44  ;;  %v14465_v44 = vld [vmem:[#allocation10 + $0x784] ss:$12 sps:$4 sm:$0xff]  }
 0x652   : > { %v16263_v50 = vadd.f32 %v7817_v12, %v7764_v28  ;;  %9570 = vmatprep.mubr.bf16.mxu0 %v16259_v30  ;;  %10170 = vmatpush1.bf16.msra.mxu0 %v14429_v25  ;;  %v14457_v12 = vld [vmem:[#allocation10 + $0x668] ss:$12 sps:$4 sm:$0xff]   ;;  %v14463_v25 = vld [vmem:[#allocation10 + $0x780] ss:$12 sps:$4 sm:$0xff]  }
 0x653   : > { %v7766_v23 = vpop.f32.mrf.mxu0  ;;  %12304 = vmatmul.mubr.msk.bf16.gmra.mxu1 %vm7119_vm5, %v16267_v16  ;;  %10171 = vmatprep.subr.bf16.mxu0 %v14436_v13  ;;  %v7827_v63 = vpop.f32.mrf.mxu1  ;;  %v14469_v13 = vld [vmem:[#allocation10 + $0x8ec] ss:$12 sps:$4 sm:$0xff]  }
 0x654   : > { %v16271_v19 = vadd.f32 %v7819_v15, %v7766_v23  ;;  %12744 = vmatpush3.bf16.msra.mxu1 %v14433_v46  ;;  %9666 = vmatprep.mubr.bf16.mxu1 %v16231_v14  ;;  %v14443_v14 = vld [vmem:[#allocation10 + $0x5f0] ss:$12 sps:$4 sm:$0xff]   ;;  %v14458_v15 = vld [vmem:[#allocation10 + $0x5a8] ss:$12 sps:$4 sm:$0xff]   ;;  %v14470_v28 = vld [vmem:[#allocation10 + $0x740] ss:$12 sps:$4 sm:$0xff]  }
 0x655   : > { %v7768_v41 = vpop.f32.mrf.mxu0  ;;  %12745 = vmatprep.subr.bf16.mxu1 %v14437_v3  ;;  %v16283_v61 = vpop.f32.mrf.mxu1 }
 0x656   : > { %v16276_v51 = vadd.f32 %v7821_v26, %v7768_v41  ;;  %10172 = vmatpush1.bf16.msra.mxu0 %v14434_v0  ;;  %v14467_v0 = vld [vmem:[#allocation10 + $0x8e8] ss:$12 sps:$4 sm:$0xff]  }
 0x657   : > { %v16278_v10 = vpop.f32.mrf.mxu0  ;;  %10173 = vmatprep.subr.bf16.mxu0 %v14441_v39  ;;  %v7831_v29 = vpop.f32.mrf.mxu1  ;;  %v14473_v39 = vld [vmem:[#allocation10 + $0x8d4] ss:$12 sps:$4 sm:$0xff]  }
 0x658   : > { %12746 = vmatpush3.bf16.msra.mxu1 %v14438_v27 }
 0x659   : > { %9571 = vmatmul.mubr.bf16.gmra.mxu0 %v16281_v62  ;;  %v7774_v35 = vpop.f32.mrf.mxu0  ;;  %12747 = vmatprep.subr.bf16.mxu1 %v14442_v9  ;;  %v16298_v26 = vpop.f32.mrf.mxu1 }
 0x65a   : > { %v16291_v33 = vadd.f32 %v7827_v63, %v7774_v35  ;;  %10174 = vmatpush1.bf16.msra.mxu0 %v14439_v42  ;;  %10201 = vmatprep.mubr.bf16.mxu0 %v16289_v36  ;;  %v14474_v63 = vld [vmem:[#allocation10 + $0x728] ss:$12 sps:$4 sm:$0xff]   ;;  %v14480_v42 = vld [vmem:[#allocation10 + $0x94c] ss:$12 sps:$4 sm:$0xff]  }
 0x65b   : > { %v16294_v43 = vpop.f32.mrf.mxu0  ;;  %10175 = vmatprep.subr.bf16.mxu0 %v14446_v57 }
 0x65c   : > { %12748 = vmatpush3.bf16.msra.mxu1 %v14443_v14  ;;  %v14475_v14 = vld [vmem:[#allocation10 + $0x8b8] ss:$12 sps:$4 sm:$0xff]  }
 0x65d   : > { %v7778_v47 = vpop.f32.mrf.mxu0  ;;  %12749 = vmatprep.subr.bf16.mxu1 %v14447_v38  ;;  %v14483_v38 = vld [vmem:[#allocation10 + $0x8a4] ss:$12 sps:$4 sm:$0xff]  }
 0x65e   : > { %v16296_v11 = vadd.f32 %v7831_v29, %v7778_v47  ;;  %10176 = vmatpush1.bf16.msra.mxu0 %v14444_v58  ;;  %v14478_v58 = vld [vmem:[#allocation10 + $0x948] ss:$12 sps:$4 sm:$0xff]   ;;  %v14481_v29 = vld [vmem:[#allocation10 + $0x8a0] ss:$12 sps:$4 sm:$0xff]  }
 0x65f   : > { %10177 = vmatprep.subr.bf16.mxu0 %v14451_v59 }
 0x660   : > { %12750 = vmatpush3.bf16.msra.mxu1 %v14448_v55 }
 0x661   : > { %12751 = vmatprep.subr.bf16.mxu1 %v14452_v49 }
 0x662   : > { %10178 = vmatpush1.bf16.msra.mxu0 %v14449_v45  ;;  %v14484_v45 = vld [vmem:[#allocation10 + $0x930] ss:$12 sps:$4 sm:$0xff]  }
 0x663   : > { %10179 = vmatprep.subr.bf16.mxu0 %v14456_v18 }
 0x664   : > { %12752 = vmatpush3.bf16.msra.mxu1 %v14453_v7  ;;  %v14492_v7 = vld [vmem:[#allocation10 + $0x91c] ss:$12 sps:$4 sm:$0xff]  }
 0x665   : > { %12753 = vmatprep.subr.bf16.mxu1 %v14457_v12 }
 0x666   : > { %10180 = vmatpush1.bf16.msra.mxu0 %v14454_v53  ;;  %v14487_v53 = vld [vmem:[#allocation10 + $0x888] ss:$12 sps:$4 sm:$0xff]  }
 0x667   : > { %10181 = vmatprep.subr.bf16.mxu0 %v14461_v4 }
 0x668   : > { %12754 = vmatpush3.bf16.msra.mxu1 %v14458_v15  ;;  %v14495_v15 = vld [vmem:[#allocation10 + $0x874] ss:$12 sps:$4 sm:$0xff]  }
 0x669   : > { %12992 = vmatprep.subr.bf16.mxu1 %v14462_v40 }
 0x66a   : > { %10182 = vmatpush1.bf16.msra.mxu0 %v14459_v6 }
 0x66b   : > { %v12653_v52 = vpop.f32.mrf.mxu1  ;;  %9667 = vmatmul.mubr.bf16.vlgmr.msra.gmra.mxu1 %v16253_v31  ;;  %10183 = vmatprep.subr.bf16.mxu0 %v14465_v44  ;;  %v14471_v31 = vld [vmem:[#allocation10 + $0x8d0] ss:$12 sps:$4 sm:$0xff]  }
 0x66c   : > { %9674 = vmatprep.mubr.bf16.mxu1 %v16259_v30  ;;  %12993 = vmatpush3.bf16.msra.mxu1 %v14462_v40  ;;  %v14477_v30 = vld [vmem:[#allocation10 + $0x8bc] ss:$12 sps:$4 sm:$0xff]   ;;  %v14498_v44 = vld [vmem:[#allocation10 + $0x904] ss:$12 sps:$4 sm:$0xff]  }
 0x66d   : > { %v12654_v46 = vpop.f32.mrf.mxu1  ;;  %12994 = vmatprep.subr.bf16.mxu1 %v14466_v22 }
 0x66e   : > { %v12655_v3 = vadd.f32 %v12654_v46, %v12653_v52  ;;  %10184 = vmatpush1.bf16.msra.mxu0 %v14463_v25  ;;  %v14493_v25 = vld [vmem:[#allocation10 + $0x870] ss:$12 sps:$4 sm:$0xff]  }
 0x66f   : > { %v12656_v23 = vpop.f32.mrf.mxu1  ;;  %10185 = vmatprep.subr.bf16.mxu0 %v14469_v13  ;;  %v14501_v52 = vld [vmem:[#allocation10 + $0x85c] ss:$12 sps:$4 sm:$0xff]   ;;  %v14496_v13 = vld [vmem:[#allocation10 + $0x900] ss:$12 sps:$4 sm:$0xff]  }
 0x670   : > { %12995 = vmatpush3.bf16.msra.mxu1 %v14466_v22  ;;  %v14502_v46 = vld [vmem:[#allocation10 + $0x8f0] ss:$12 sps:$4 sm:$0xff]  }
 0x671   : > { %v12657_v27 = vpop.f32.mrf.mxu1  ;;  %12996 = vmatprep.subr.bf16.mxu1 %v14470_v28 }
 0x672   : > { %v12658_v41 = vadd.f32 %v12657_v27, %v12656_v23  ;;  %10186 = vmatpush2.bf16.msra.mxu0 %v14467_v0  ;;  %v9833_v0 = vrot.slane %v16133_v20, 4  ;;  %v14505_v23 = vld [vmem:[#allocation10 + $0x844] ss:$12 sps:$4 sm:$0xff]  }
 0x673   : > { %v12659_v48 = vpop.f32.mrf.mxu1  ;;  %9675 = vmatmul.mubr.bf16.gmra.mxu1 %v16281_v62  ;;  %10187 = vmatprep.subr.bf16.mxu0 %v14473_v39  ;;  %v14486_v62 = vld [vmem:[#allocation10 + $0x934] ss:$12 sps:$4 sm:$0xff]   ;;  %v14506_v39 = vld [vmem:[#allocation10 + $0x830] ss:$12 sps:$4 sm:$0xff]   ;;  %v14507_v27 = vld [vmem:[#allocation10 + $0x8d8] ss:$12 sps:$4 sm:$0xff]  }
 0x674   : > { %12997 = vmatpush3.bf16.msra.mxu1 %v14470_v28  ;;  %13000 = vmatprep.mubr.msk.bf16.mxu1 %vm7119_vm5, %v16244_v2  ;;  %v14489_v2 = vld [vmem:[#allocation10 + $0x88c] ss:$12 sps:$4 sm:$0xff]  }
 0x675   : > { %v12660_v9 = vpop.f32.mrf.mxu1  ;;  %12998 = vmatprep.subr.bf16.mxu1 %v14474_v63  ;;  %v14499_v28 = vld [vmem:[#allocation10 + $0x858] ss:$12 sps:$4 sm:$0xff]  }
 0x676   : > { %v12661_v57 = vadd.f32 %v12660_v9, %v12659_v48  ;;  %10188 = vmatpush2.bf16.msra.mxu0 %v14471_v31  ;;  %v14508_v20 = vld [vmem:[#allocation10 + $0x818] ss:$12 sps:$4 sm:$0xff]   ;;  %v9827_v9 = vrot.slane %v16091_v8, 4  ;;  %v14511_v8 = vld [vmem:[#allocation10 + $0x8a8] ss:$12 sps:$4 sm:$0xff]  }
 0x677   : > { %v12662_v35 = vpop.f32.mrf.mxu1  ;;  %10189 = vmatprep.subr.bf16.mxu0 %v14477_v30  ;;  %v14509_v30 = vld [vmem:[#allocation10 + $0x8c0] ss:$12 sps:$4 sm:$0xff]  }
 0x678   : > { %12999 = vmatpush3.bf16.msra.mxu1 %v14474_v63 }
 0x679   : > { %v12663_v59 = vpop.f32.mrf.mxu1  ;;  %10230 = vmatprep.subr.bf16.mxu1 %v14480_v42  ;;  %v7780_v42 = vpop.f32.mrf.mxu0 }
 0x67a   : > { %v12664_v55 = vadd.f32 %v12663_v59, %v12662_v35  ;;  %10190 = vmatpush2.bf16.msra.mxu0 %v14475_v14  ;;  %v9835_v14 = vrot.slane %v16685_v17, 4 }
 0x67b   : > { %v12966_v47 = vpop.f32.mrf.mxu1  ;;  %13001 = vmatmul.mubr.msk.bf16.vlgmr.msra.gmra.mxu1 %vm7119_vm5, %v16267_v16  ;;  %10191 = vmatprep.subr.bf16.mxu0 %v14483_v38  ;;  %v14490_v16 = vld [vmem:[#allocation10 + $0x918] ss:$12 sps:$4 sm:$0xff]   ;;  %v14510_v38 = vld [vmem:[#allocation10 + $0x800] ss:$12 sps:$4 sm:$0xff]  }
 0x67c   : > { %v16307_v49 = vadd.f32 %v12966_v47, %v12661_v57  ;;  %10231 = vmatpush1.bf16.msra.mxu1 %v14478_v58  ;;  %10254 = vmatprep.mubr.bf16.mxu1 %v16685_v17  ;;  %v16334_v59 = vsel %vm9825_vm7, %v9830_v37, %v9835_v14  ;;  %v14512_v37 = vld [vmem:[#allocation10 + $0x7e8] ss:$12 sps:$4 sm:$0xff]  }
 0x67d   : > { %v7919_v18 = vpop.f32.mrf.mxu1  ;;  %10232 = vmatprep.subr.bf16.mxu1 %v14486_v62 }
 0x67e   : > { %v16310_v12 = vadd.f32 %v12655_v3, %v7919_v18  ;;  %10192 = vmatpush2.bf16.msra.mxu0 %v14481_v29  ;;  %v9832_v3 = vrot.slane %v16126_v24, 4  ;;  %v9826_v24 = vrot.slane %v16150_v5, 4  ;;  %v7824_v18 = vadd.f32 %v16261_v1, %v16278_v10 }
 0x67f   : > { %v12967_v4 = vpop.f32.mrf.mxu1  ;;  %10193 = vmatprep.subr.bf16.mxu0 %v14489_v2  ;;  %v7830_v1 = vadd.f32 %v16283_v61, %v16294_v43 }
 0x680   : > { %v16312_v40 = vadd.f32 %v12967_v4, %v12664_v55  ;;  %10233 = vmatpush1.bf16.msra.mxu1 %v14484_v45  ;;  %v16319_v63 = vsel %vm9825_vm7, %v9832_v3, %v9833_v0  ;;  %v16328_v35 = vsel %vm9825_vm7, %v9826_v24, %v9827_v9  ;;  %v16339_v55 = vsel %vm9825_vm7, %v9833_v0, %v9835_v14 }
 0x681   : > { %v7922_v6 = vpop.f32.mrf.mxu1  ;;  %10234 = vmatprep.subr.bf16.mxu1 %v14492_v7 }
 0x682   : > { %v16314_v22 = vadd.f32 %v12658_v41, %v7922_v6  ;;  %10194 = vmatpush2.bf16.msra.mxu0 %v14487_v53  ;;  %v14503_v41 = vld [vmem:[#allocation10 + $0x840] ss:$12 sps:$4 sm:$0xff]  }
 0x683   : > { %10195 = vmatprep.subr.bf16.mxu0 %v14495_v15 }
 0x684   : > { %10235 = vmatpush1.bf16.msra.mxu1 %v14490_v16 }
 0x685   : > { %10236 = vmatprep.subr.bf16.mxu1 %v14498_v44 }
 0x686   : > { %10196 = vmatpush2.bf16.msra.mxu0 %v14493_v25  ;;  %v14515_v25 = vld [vmem:[#allocation10 + $0x878] ss:$12 sps:$4 sm:$0xff]  }
 0x687   : > { %10197 = vmatprep.subr.bf16.mxu0 %v14501_v52 }
 0x688   : > { %10237 = vmatpush1.bf16.msra.mxu1 %v14496_v13 }
 0x689   : > { %12773 = vmatprep.subr.bf16.mxu1 %v14502_v46 }
 0x68a   : > { %10198 = vmatpush2.bf16.msra.mxu0 %v14499_v28  ;;  %v14516_v28 = vld [vmem:[#allocation10 + $0x7b8] ss:$12 sps:$4 sm:$0xff]  }
 0x68b   : > { %v8347_v31 = vpop.f32.mrf.mxu1  ;;  %12367 = vmatmul.mubr.msk.bf16.vlgmr.msra.gmra.mxu1 %vm7119_vm5, %v16319_v63  ;;  %10199 = vmatprep.subr.bf16.mxu0 %v14505_v23  ;;  %v14517_v23 = vld [vmem:[#allocation10 + $0x860] ss:$12 sps:$4 sm:$0xff]  }
 0x68c   : > { %12774 = vmatpush3.bf16.msra.mxu1 %v14506_v39  ;;  %10264 = vmatprep.mubr.bf16.mxu1 %v16685_v17  ;;  %v7834_v39 = vadd.f32 %v16298_v26, %v7780_v42  ;;  %v14522_v26 = vld [vmem:[#allocation10 + $0x938] ss:$12 sps:$4 sm:$0xff]  }
 0x68d   : > { %v8349_v48 = vpop.f32.mrf.mxu1  ;;  %12775 = vmatprep.subr.bf16.mxu1 %v14507_v27 }
 0x68e   : > { %10200 = vmatpush2.bf16.msra.mxu0 %v14503_v41 }
 0x68f   : > { %v8351_v57 = vpop.f32.mrf.mxu1 }
 0x690   : > { %12776 = vmatpush3.bf16.msra.mxu1 %v14508_v20  ;;  %v14519_v20 = vld [vmem:[#allocation10 + $0x848] ss:$12 sps:$4 sm:$0xff]  }
 0x691   : > { %v8294_v58 = vpop.f32.mrf.mxu0  ;;  %10202 = vmatmul.mubr.bf16.vlgmr.msra.gmra.mxu0 %v16328_v35  ;;  %v8353_v5 = vpop.f32.mrf.mxu1  ;;  %12777 = vmatprep.subr.bf16.mxu1 %v14509_v30  ;;  %v14520_v30 = vld [vmem:[#allocation10 + $0x788] ss:$12 sps:$4 sm:$0xff]  }
 0x692   : > { %v8295_v62 = vadd.f32 %v8294_v58, %v16263_v50  ;;  %10211 = vmatprep.mubr.bf16.mxu0 %v16334_v59  ;;  %v14513_v50 = vld [vmem:[#allocation10 + $0x890] ss:$12 sps:$4 sm:$0xff]  }
 0x693   : > { %v8296_v29 = vpop.f32.mrf.mxu0  ;;  %12368 = vmatmul.mubr.msk.bf16.gmra.mxu1 %vm7119_vm5, %v16339_v55  ;;  %v8357_v2 = vpop.f32.mrf.mxu1 }
 0x694   : > { %v16343_v47 = vadd.f32 %v8347_v31, %v8295_v62  ;;  %v8297_v60 = vadd.f32 %v8296_v29, %v16271_v19  ;;  %12778 = vmatpush3.bf16.msra.mxu1 %v14510_v38  ;;  %10307 = vmatprep.mubr.bf16.mxu1 %v16289_v36  ;;  %v9836_v19 = vsel %vm9825_vm7, %v9827_v9, %v9835_v14  ;;  %v14514_v36 = vld [vmem:[#allocation10 + $0x7d0] ss:$12 sps:$4 sm:$0xff]   ;;  %v14518_v31 = vld [vmem:[#allocation10 + $0x7a0] ss:$12 sps:$4 sm:$0xff]  }
 0x695   : > { %v8298_v45 = vpop.f32.mrf.mxu0  ;;  %12779 = vmatprep.subr.bf16.mxu1 %v14511_v8  ;;  %v8359_v6 = vpop.f32.mrf.mxu1  ;;  %v14521_v9 = vld [vmem:[#allocation10 + $0x950] ss:$12 sps:$4 sm:$0xff]   ;;  %v14524_v8 = vld [vmem:[#allocation10 + $0x908] ss:$12 sps:$4 sm:$0xff]  }
 0x696   : > { %v16349_v7 = vadd.f32 %v8349_v48, %v8297_v60  ;;  %v8299_v53 = vadd.f32 %v8298_v45, %v16276_v51 }
 0x697   : > { %v8300_v4 = vpop.f32.mrf.mxu0  ;;  %v8361_v3 = vpop.f32.mrf.mxu1 }
 0x698   : > { %v16352_v15 = vadd.f32 %v8351_v57, %v8299_v53  ;;  %v8301_v16 = vadd.f32 %v8300_v4, %v7824_v18  ;;  %12780 = vmatpush3.bf16.msra.mxu1 %v14512_v37  ;;  %v14523_v57 = vld [vmem:[#allocation10 + $0x920] ss:$12 sps:$4 sm:$0xff]  }
 0x699   : > { %v8304_v44 = vpop.f32.mrf.mxu0  ;;  %10212 = vmatmul.mubr.bf16.gmra.mxu0 %v9836_v19  ;;  %12781 = vmatprep.subr.bf16.mxu1 %v14513_v50  ;;  %v8363_v24 = vpop.f32.mrf.mxu1 }
 0x69a   : > { %v16357_v10 = vadd.f32 %v8353_v5, %v8301_v16  ;;  %v8305_v51 = vadd.f32 %v8304_v44, %v16291_v33  ;;  %10635 = vmatprep.mubr.bf16.mxu0 %v16685_v17 }
 0x69b   : > { %v8306_v52 = vpop.f32.mrf.mxu0 }
 0x69c   : > { %v16361_v13 = vadd.f32 %v8357_v2, %v8305_v51  ;;  %v8307_v46 = vadd.f32 %v8306_v52, %v7830_v1  ;;  %12782 = vmatpush3.bf16.msra.mxu1 %v14514_v36 }
 0x69d   : > { %v8308_v0 = vpop.f32.mrf.mxu0  ;;  %12783 = vmatprep.subr.bf16.mxu1 %v14515_v25 }
 0x69e   : > { %v16364_v27 = vadd.f32 %v8359_v6, %v8307_v46  ;;  %v8309_v61 = vadd.f32 %v8308_v0, %v16296_v11 }
 0x69f   : > { %v8310_v43 = vpop.f32.mrf.mxu0 }
 0x6a0   : > { %v16367_v33 = vadd.f32 %v8361_v3, %v8309_v61  ;;  %v8311_v41 = vadd.f32 %v8310_v43, %v7834_v39  ;;  %12784 = vmatpush3.bf16.msra.mxu1 %v14516_v28 }
 0x6a1   : > { %12785 = vmatprep.subr.bf16.mxu1 %v14517_v23 }
 0x6a2   : > { %v16369_v48 = vadd.f32 %v8363_v24, %v8311_v41 }
 0x6a4   : > { %12786 = vmatpush3.bf16.msra.mxu1 %v14518_v31 }
 0x6a5   : > { %12787 = vmatprep.subr.bf16.mxu1 %v14519_v20 }
 0x6a8   : > { %12788 = vmatpush3.bf16.msra.mxu1 %v14520_v30 }
 0x6a9   : > { %13004 = vmatprep.subr.bf16.mxu1 %v14521_v9 }
 0x6ab   : > { %v12687_v42 = vpop.f32.mrf.mxu1  ;;  %10308 = vmatmul.mubr.bf16.vlgmr.msra.gmra.mxu1 %v16328_v35 }
 0x6ac   : > { %10315 = vmatprep.mubr.bf16.mxu1 %v16334_v59  ;;  %13005 = vmatpush3.bf16.msra.mxu1 %v14521_v9 }
 0x6ad   : > { %v12688_v11 = vpop.f32.mrf.mxu1  ;;  %13006 = vmatprep.subr.bf16.mxu1 %v14522_v26 }
 0x6ae   : > { %v12689_v14 = vadd.f32 %v12688_v11, %v12687_v42 }
 0x6af   : > { %v12690_v38 = vpop.f32.mrf.mxu1 }
 0x6b0   : > { %13007 = vmatpush3.bf16.msra.mxu1 %v14522_v26  ;;  %v8401_v58 = vadd.f32 %v12689_v14, %v16310_v12 }
 0x6b1   : > { %v12691_v5 = vpop.f32.mrf.mxu1  ;;  %13008 = vmatprep.subr.bf16.mxu1 %v14523_v57 }
 0x6b2   : > { %v12692_v62 = vadd.f32 %v12691_v5, %v12690_v38 }
 0x6b3   : > { %v12693_v29 = vpop.f32.mrf.mxu1  ;;  %10316 = vmatmul.mubr.bf16.gmra.mxu1 %v9836_v19 }
 0x6b4   : > { %13009 = vmatpush3.bf16.msra.mxu1 %v14523_v57  ;;  %13012 = vmatprep.mubr.msk.bf16.mxu1 %vm7119_vm5, %v16319_v63  ;;  %v8404_v35 = vadd.f32 %v12692_v62, %v16314_v22 }
 0x6b5   : > { %v12694_v59 = vpop.f32.mrf.mxu1  ;;  %13010 = vmatprep.subr.bf16.mxu1 %v14524_v8 }
 0x6b6   : > { %v12695_v60 = vadd.f32 %v12694_v59, %v12693_v29 }
 0x6b7   : > { %v12696_v37 = vpop.f32.mrf.mxu1 }
 0x6b8   : > { %13011 = vmatpush3.bf16.msra.mxu1 %v14524_v8  ;;  %v8409_v2 = vadd.f32 %v12695_v60, %v16307_v49 }
 0x6b9   : > { %v12697_v12 = vpop.f32.mrf.mxu1 }
 0x6ba   : > { %v12698_v45 = vadd.f32 %v12697_v12, %v12696_v37 }
 0x6bb   : > { %v12978_v50 = vpop.f32.mrf.mxu1  ;;  %13013 = vmatmul.mubr.msk.bf16.vlgmr.msra.gmra.mxu1 %vm7119_vm5, %v16339_v55 }
 0x6bc   : > { %v8458_v18 = vadd.f32 %v12978_v50, %v8409_v2  ;;  %v8412_v53 = vadd.f32 %v12698_v45, %v16312_v40  ;;  %10560 = vmatprep.mubr.bf16.mxu1 %v16685_v17 }
 0x6bd   : > { %v8449_v63 = vpop.f32.mrf.mxu1 }
 0x6be   : > { %v8450_v22 = vadd.f32 %v8449_v63, %v8401_v58 }
 0x6bf   : > { %v12979_v4 = vpop.f32.mrf.mxu1 }
 0x6c0   : > { %v8461_v16 = vadd.f32 %v12979_v4, %v8412_v53 }
 0x6c1   : > { %v8452_v19 = vpop.f32.mrf.mxu1 }
 0x6c2   : > { %v8453_v36 = vadd.f32 %v8452_v19, %v8404_v35 }
 0x6cb   : > { %v8974_v6 = vpop.f32.mrf.mxu1 }
 0x6cd   : > { %v8976_v44 = vpop.f32.mrf.mxu1 }
 0x6cf   : > { %v8978_v49 = vpop.f32.mrf.mxu1 }
 0x6d1   : > { %v8921_v25 = vpop.f32.mrf.mxu0  ;;  %v8980_v1 = vpop.f32.mrf.mxu1 }
 0x6d2   : > { %v8975_v51 = vadd.f32 %v8974_v6, %v8921_v25 }
 0x6d3   : > { %v8923_v52 = vpop.f32.mrf.mxu0  ;;  %v8984_v46 = vpop.f32.mrf.mxu1 }
 0x6d4   : > { %v9091_v55 = vadd.f32 %v8975_v51, %v16343_v47  ;;  %v8977_v28 = vadd.f32 %v8976_v44, %v8923_v52 }
 0x6d5   : > { %v8925_v40 = vpop.f32.mrf.mxu0  ;;  %v8986_v23 = vpop.f32.mrf.mxu1 }
 0x6d6   : > { %v9092_v3 = vadd.f32 %v8977_v28, %v16349_v7  ;;  %v8979_v0 = vadd.f32 %v8978_v49, %v8925_v40 }
 0x6d7   : > { %v8927_v39 = vpop.f32.mrf.mxu0  ;;  %v8988_v20 = vpop.f32.mrf.mxu1 }
 0x6d8   : > { %v9094_v61 = vadd.f32 %v8979_v0, %v16352_v15  ;;  %v8981_v43 = vadd.f32 %v8980_v1, %v8927_v39 }
 0x6d9   : > { %v8931_v41 = vpop.f32.mrf.mxu0  ;;  %v8990_v11 = vpop.f32.mrf.mxu1 }
 0x6da   : > { %v9095_v31 = vadd.f32 %v8981_v43, %v16357_v10  ;;  %v8985_v24 = vadd.f32 %v8984_v46, %v8931_v41 }
 0x6db   : > { %v8933_v30 = vpop.f32.mrf.mxu0 }
 0x6dc   : > { %v9097_v9 = vadd.f32 %v8985_v24, %v16361_v13  ;;  %v8987_v26 = vadd.f32 %v8986_v23, %v8933_v30 }
 0x6dd   : > { %v8935_v47 = vpop.f32.mrf.mxu0 }
 0x6de   : > { %v16388_v42 = vadd.f32 %v8987_v26, %v16364_v27  ;;  %v8989_v7 = vadd.f32 %v8988_v20, %v8935_v47 }
 0x6df   : > { %v8937_v57 = vpop.f32.mrf.mxu0 }
 0x6e0   : > { %v9100_v14 = vadd.f32 %v8989_v7, %v16367_v33  ;;  %v8991_v15 = vadd.f32 %v8990_v11, %v8937_v57 }
 0x6e2   : > { %v16392_v38 = vadd.f32 %v8991_v15, %v16369_v48 }
 0x6eb   : > { %v12721_v10 = vpop.f32.mrf.mxu1 }
 0x6ed   : > { %v12722_v58 = vpop.f32.mrf.mxu1 }
 0x6ee   : > { %v12723_v5 = vadd.f32 %v12722_v58, %v12721_v10 }
 0x6ef   : > { %v12724_v8 = vpop.f32.mrf.mxu1 }
 0x6f1   : > { %v12725_v62 = vpop.f32.mrf.mxu1 }
 0x6f2   : > { %v12726_v13 = vadd.f32 %v12725_v62, %v12724_v8 }
 0x6f3   : > { %v12727_v29 = vpop.f32.mrf.mxu1 }
 0x6f5   : > { %v12728_v35 = vpop.f32.mrf.mxu1 }
 0x6f6   : > { %v12729_v59 = vadd.f32 %v12728_v35, %v12727_v29 }
 0x6f7   : > { %v12730_v27 = vpop.f32.mrf.mxu1 }
 0x6f9   : > { %v12731_v60 = vpop.f32.mrf.mxu1 }
 0x6fa   : > { %v12732_v37 = vadd.f32 %v12731_v60, %v12730_v27 }
 0x6fb   : > { %v12990_v2 = vpop.f32.mrf.mxu1 }
 0x6fc   : > { %v9085_v12 = vadd.f32 %v12990_v2, %v12729_v59  ;;  %v10385_v2 = vld [vmem:[#allocation11] sm:$0x7] }
 0x6fd   : > { %v9076_v45 = vpop.f32.mrf.mxu1 }
 0x6fe   : > { %v16394_v33 = vadd.f32 %v9085_v12, %v8458_v18  ;;  %v9077_v50 = vadd.f32 %v12723_v5, %v9076_v45 }
 0x6ff   : > { %v12991_v48 = vpop.f32.mrf.mxu1 }
 0x700   : > { %v16396_v53 = vadd.f32 %v9077_v50, %v8450_v22  ;;  %v9088_v63 = vadd.f32 %v12991_v48, %v12732_v37  ;;  %v10390_v50 = vrot.slane %v10385_v2, %v16683_v32 }
 0x701   : > { %v9079_v4 = vpop.f32.mrf.mxu1 }
 0x702   : > { %v16398_v19 = vadd.f32 %v9088_v63, %v8461_v16  ;;  %v9080_v6 = vadd.f32 %v12726_v13, %v9079_v4 }
 0x704   : > { %v16400_v44 = vadd.f32 %v9080_v6, %v8453_v36 }
 0x70b   : > { %v9615_v49 = vpop.f32.mrf.mxu1 }
 0x70d   : > { %v9617_v25 = vpop.f32.mrf.mxu1 }
 0x70f   : > { %v9619_v1 = vpop.f32.mrf.mxu1 }
 0x711   : > { %v9562_v51 = vpop.f32.mrf.mxu0  ;;  %v9621_v52 = vpop.f32.mrf.mxu1 }
 0x712   : > { %v9616_v46 = vadd.f32 %v9615_v49, %v9562_v51 }
 0x713   : > { %v9564_v28 = vpop.f32.mrf.mxu0  ;;  %v9625_v0 = vpop.f32.mrf.mxu1 }
 0x714   : > { %v9732_v18 = vadd.f32 %v9616_v46, %v9091_v55  ;;  %v9618_v40 = vadd.f32 %v9617_v25, %v9564_v28 }
 0x715   : > { %v9566_v23 = vpop.f32.mrf.mxu0  ;;  %v9627_v24 = vpop.f32.mrf.mxu1 }
 0x716   : > { %v16402_v22 = vadd.f32 %v9618_v40, %v9092_v3  ;;  %v9620_v39 = vadd.f32 %v9619_v1, %v9566_v23 }
 0x717   : > { %v9568_v43 = vpop.f32.mrf.mxu0  ;;  %v9629_v7 = vpop.f32.mrf.mxu1 }
 0x718   : > { %v9735_v16 = vadd.f32 %v9620_v39, %v9094_v61  ;;  %v9622_v41 = vadd.f32 %v9621_v52, %v9568_v43 }
 0x719   : > { %v9572_v36 = vpop.f32.mrf.mxu0  ;;  %v9631_v15 = vpop.f32.mrf.mxu1 }
 0x71a   : > { %v16404_v20 = vadd.f32 %v9622_v41, %v9095_v31  ;;  %v9626_v30 = vadd.f32 %v9625_v0, %v9572_v36 }
 0x71b   : > { %v9574_v26 = vpop.f32.mrf.mxu0 }
 0x71c   : > { %v9738_v47 = vadd.f32 %v9626_v30, %v9097_v9 }
 0x71d   : > { %v9576_v11 = vpop.f32.mrf.mxu0 }
 0x71e   : > { %v9630_v57 = vadd.f32 %v9629_v7, %v9576_v11 }
 0x71f   : > { %v9578_v9 = vpop.f32.mrf.mxu0 }
 0x720   : > { %v9741_v55 = vadd.f32 %v9630_v57, %v9100_v14 }
 0x72b   : > { %v12755_v10 = vpop.f32.mrf.mxu1 }
 0x72d   : > { %v12756_v58 = vpop.f32.mrf.mxu1 }
 0x72f   : > { %v12758_v3 = vpop.f32.mrf.mxu1 }
 0x731   : > { %v12759_v5 = vpop.f32.mrf.mxu1 }
 0x733   : > { %v12761_v8 = vpop.f32.mrf.mxu1 }
 0x735   : > { %v12762_v62 = vpop.f32.mrf.mxu1 }
 0x737   : > { %v12764_v61 = vpop.f32.mrf.mxu1 }
 0x739   : > { %v12765_v13 = vpop.f32.mrf.mxu1 }
 0x73b   : > { %v13002_v29 = vpop.f32.mrf.mxu1 }
 0x73d   : > { %v9717_v35 = vpop.f32.mrf.mxu1 }
 0x73f   : > { %v13003_v31 = vpop.f32.mrf.mxu1 }
 0x741   : > { %v9720_v59 = vpop.f32.mrf.mxu1 }
 0x74b   : > { %v10256_v27 = vpop.f32.mrf.mxu1 }
 0x74d   : > { %v10258_v60 = vpop.f32.mrf.mxu1 }
 0x74f   : > { %v10260_v37 = vpop.f32.mrf.mxu1 }
 0x751   : > { %v10203_v12 = vpop.f32.mrf.mxu0  ;;  %v10262_v14 = vpop.f32.mrf.mxu1 }
 0x752   : > { %v10257_v45 = vadd.f32 %v10256_v27, %v10203_v12  ;;  %v9628_v27 = vadd.f32 %v9627_v24, %v9574_v26 }
 0x753   : > { %v10205_v48 = vpop.f32.mrf.mxu0  ;;  %v10266_v4 = vpop.f32.mrf.mxu1 }
 0x754   : > { %v10373_v63 = vadd.f32 %v10257_v45, %v9732_v18 }
 0x755   : > { %v10207_v6 = vpop.f32.mrf.mxu0  ;;  %v10268_v52 = vpop.f32.mrf.mxu1 }
 0x756   : > { %v16407_v49 = vadd.f32 %v10390_v50, %v10373_v63  ;;  %v10261_v25 = vadd.f32 %v10260_v37, %v10207_v6  ;;  %v12763_v63 = vadd.f32 %v12762_v62, %v12761_v8  ;;  %v9632_v6 = vadd.f32 %v9631_v15, %v9578_v9 }
 0x757   : > { %v10209_v1 = vpop.f32.mrf.mxu0  ;;  %v10270_v39 = vpop.f32.mrf.mxu1  ;;  %v10394_v8 = vrot.slane %v10385_v2, %v16684_v56 }
 0x758   : > { %v10376_v51 = vadd.f32 %v10261_v25, %v9735_v16  ;;  %v9742_v24 = vadd.f32 %v9632_v6, %v16392_v38 }
 0x759   : > { %v10213_v46 = vpop.f32.mrf.mxu0  ;;  %v10272_v30 = vpop.f32.mrf.mxu1 }
 0x75a   : > { %v16409_v28 = vadd.f32 %v10390_v50, %v10376_v51  ;;  %v10267_v40 = vadd.f32 %v10266_v4, %v10213_v46  ;;  %v12757_v51 = vadd.f32 %v12756_v58, %v12755_v10  ;;  %v12760_v46 = vadd.f32 %v12759_v5, %v12758_v3 }
 0x75b   : > { %v10215_v0 = vpop.f32.mrf.mxu0  ;;  %v10398_v58 = vrot.slane %v10385_v2, %v16673_v21  ;;  %v10263_v5 = vadd.f32 %v10262_v14, %v10209_v1 }
 0x75c   : > { %v10379_v23 = vadd.f32 %v10267_v40, %v9738_v47  ;;  %v10269_v12 = vadd.f32 %v10268_v52, %v10215_v0  ;;  %v9739_v47 = vadd.f32 %v9628_v27, %v16388_v42  ;;  %v10259_v40 = vadd.f32 %v10258_v60, %v10205_v48 }
 0x75d   : > { %v10217_v43 = vpop.f32.mrf.mxu0  ;;  %v9721_v52 = vadd.f32 %v12760_v46, %v9720_v59 }
 0x75e   : > { %v16411_v41 = vadd.f32 %v10390_v50, %v10379_v23  ;;  %v10271_v32 = vadd.f32 %v10270_v39, %v10217_v43  ;;  %v10380_v23 = vadd.f32 %v10269_v12, %v9739_v47  ;;  %v10374_v3 = vadd.f32 %v10259_v40, %v16402_v22 }
 0x75f   : > { %v10219_v4 = vpop.f32.mrf.mxu0  ;;  %v9737_v60 = vadd.f32 %v9721_v52, %v16400_v44  ;;  %v10377_v22 = vadd.f32 %v10263_v5, %v16404_v20 }
 0x760   : > { %v10382_v18 = vadd.f32 %v10271_v32, %v9741_v55  ;;  %v9726_v55 = vadd.f32 %v13002_v29, %v12763_v63  ;;  %v10273_v39 = vadd.f32 %v10272_v30, %v10219_v4  ;;  %v9718_v32 = vadd.f32 %v12757_v51, %v9717_v35 }
 0x761   : > { %v10403_v2 = vadd.f32 %v10394_v8, %v10374_v3  ;;  %v10406_v63 = vadd.f32 %v10394_v8, %v10377_v22  ;;  %v10492_v3 = vrot.slane %v14933_v34, 2 }
 0x762   : > { %v16413_v36 = vadd.f32 %v10390_v50, %v10382_v18  ;;  %v12766_v50 = vadd.f32 %v12765_v13, %v12764_v61  ;;  %v9740_v42 = vadd.f32 %v9726_v55, %v16394_v33  ;;  %v10409_v61 = vadd.f32 %v10394_v8, %v10380_v23 }
 0x763   : > { %v10383_v13 = vadd.f32 %v10273_v39, %v9742_v24  ;;  %v9734_v35 = vadd.f32 %v9718_v32, %v16396_v53  ;;  %v10415_v44 = vmax.f32 %v10403_v2, 0.0  ;;  %v10420_v23 = vmax.f32 %v16411_v41, 0.0 }
 0x764   : > { %v9729_v26 = vadd.f32 %v13003_v31, %v12766_v50  ;;  %v10421_v14 = vmax.f32 %v10409_v61, 0.0  ;;  %v16432_v32 = vmul.u32 32, %v16668_v54  ;;  %v10417_v54 = vmax.f32 %v16409_v28, 0.0 }
 0x765   : > { %v10412_v1 = vadd.f32 %v10394_v8, %v10383_v13  ;;  %v10414_v8 = vmax.f32 %v16407_v49, 0.0 }
 0x766   : > { %v9743_v56 = vadd.f32 %v9729_v26, %v16398_v19  ;;  %v10595_v49 = vadd.s32 4, %v16432_v32 }
 0x76b   : > { %v12789_v7 = vpop.f32.mrf.mxu1 }
 0x76d   : > { %v12790_v11 = vpop.f32.mrf.mxu1 }
 0x76e   : > { %v12791_v15 = vadd.f32 %v12790_v11, %v12789_v7 }
 0x76f   : > { %v12792_v57 = vpop.f32.mrf.mxu1 }
 0x771   : > { %v12793_v16 = vpop.f32.mrf.mxu1 }
 0x772   : > { %v12794_v9 = vadd.f32 %v12793_v16, %v12792_v57  ;;  %v10424_v57 = vmax.f32 %v10412_v1, 0.0 }
 0x773   : > { %v12795_v37 = vpop.f32.mrf.mxu1 }
 0x775   : > { %v12796_v45 = vpop.f32.mrf.mxu1 }
 0x776   : > { %v12797_v18 = vadd.f32 %v12796_v45, %v12795_v37 }
 0x777   : > { %v12798_v25 = vpop.f32.mrf.mxu1 }
 0x779   : > { %v12799_v43 = vpop.f32.mrf.mxu1 }
 0x77a   : > { %v12800_v38 = vadd.f32 %v12799_v43, %v12798_v25  ;;  %v10418_v25 = vmax.f32 %v10406_v63, 0.0 }
 0x77b   : > { %v13014_v62 = vpop.f32.mrf.mxu1 }
 0x77c   : > { %v10367_v10 = vadd.f32 %v13014_v62, %v12797_v18 }
 0x77d   : > { %v10358_v29 = vpop.f32.mrf.mxu1 }
 0x77e   : > { %v10381_v31 = vadd.f32 %v10367_v10, %v9740_v42  ;;  %v10359_v59 = vadd.f32 %v12791_v15, %v10358_v29  ;;  %v16688_v15 = vlaneseq }
 0x77f   : > { %v13015_v33 = vpop.f32.mrf.mxu1 }
 0x780   : > { %v10410_v48 = vadd.f32 %v10398_v58, %v10381_v31  ;;  %v10375_v0 = vadd.f32 %v10359_v59, %v9734_v35  ;;  %v10370_v21 = vadd.f32 %v13015_v33, %v12800_v38  ;;  %v16436_v10 = vand.u32 127, %v16688_v15  ;;  %v14542_v15 = vld [vmem:[#allocation13 + $0x10] sm:$0xff]  }
 0x781   : > { %v10361_v30 = vpop.f32.mrf.mxu1 }
 0x782   : > { %v10422_v7 = vmax.f32 %v10410_v48, 0.0  ;;  %v10404_v53 = vadd.f32 %v10398_v58, %v10375_v0  ;;  %v10384_v11 = vadd.f32 %v10370_v21, %v9743_v56  ;;  %v10362_v27 = vadd.f32 %v12794_v9, %v10361_v30 }
 0x783   : > { %vm10520_vm8 = vcmp.eq.s32.totalorder %v16436_v10, %v16432_v32  ;;  %vm10596_vm9 = vcmp.eq.s32.totalorder %v16436_v10, %v10595_v49  ;;  %v14536_v49 = vld [vmem:[#allocation13 + $0xa0] sm:$0xff]  }
 0x784   : > { %v10416_v37 = vmax.f32 %v10404_v53, 0.0  ;;  %v10413_v12 = vadd.f32 %v10398_v58, %v10384_v11  ;;  %v10378_v19 = vadd.f32 %v10362_v27, %v9737_v60  ;;  %v13225_v45 = vpack.i.bf16 %v10422_v7, %v10421_v14 }
 0x786   : > { %v10425_v16 = vmax.f32 %v10413_v12, 0.0  ;;  %v10407_v4 = vadd.f32 %v10398_v58, %v10378_v19  ;;  %13226 = vrot.lane.b32.xlu0 %v13225_v45, %s14932_s19  ;;  %v13235_v20 = vpack.i.bf16 %v10416_v37, %v10415_v44  ;;  %v10423_v58 = vmax.f32 %v16413_v36, 0.0 }
 0x788   : > { %v10419_v47 = vmax.f32 %v10407_v4, 0.0  ;;  %v13230_v6 = vpack.i.bf16 %v10425_v16, %v10424_v57 }
 0x78a   : > { %13236 = vrot.lane.b32.xlu0 %v13235_v20, %s14932_s19  ;;  %13231 = vrot.lane.b32.xlu1 %v13230_v6, %s14932_s19  ;;  %v13240_v51 = vpack.i.bf16 %v10419_v47, %v10418_v25  ;;  %v12371_v47 = vsel %vm10520_vm8, 1.0, %v14933_v34 }
 0x78e   : > { %13241 = vrot.lane.b32.xlu1 %v13240_v51, %s14932_s19  ;;  %v12373_v51 = vsel %vm10596_vm9, 1.0, %v14933_v34 }
 0x7f8   : > { %v13227_v46 = vpop.permute.xlu0 %13226 }
 0x7f9   : > { %v13229_v55 = vunpack.i.h.bf16 %v13227_v46  ;;  %v13228_v50 = vunpack.i.l.bf16 %v13227_v46 }
 0x7fb   : > { %v10452_v40 = vsel %vm7119_vm5, %v13228_v50, %v13229_v55  ;;  %v10467_v18 = vmax.f32 %v10421_v14, %v13229_v55  ;;  %v10599_v55 = vpack.c.bf16 %v12373_v51, %v12373_v51  ;;  %v10523_v50 = vpack.c.bf16 %v12371_v47, %v12371_v47  ;;  %v14564_v47 = vld [vmem:[#allocation16 + $0x20] sm:$0xff]  }
 0x7fc   : > { %v13237_v39 = vpop.permute.xlu0 %13236  ;;  %v13232_v43 = vpop.permute.xlu1 %13231  ;;  %v10466_v62 = vmax.f32 %v10420_v23, %v10452_v40  ;;  %v14525_v40 = vld [vmem:[#allocation13 + $0x98] sm:$0xff]  }
 0x7fd   : > { %v13239_v24 = vunpack.i.h.bf16 %v13237_v39  ;;  %v13238_v26 = vunpack.i.l.bf16 %v13237_v39  ;;  %v13234_v52 = vunpack.i.h.bf16 %v13232_v43  ;;  %v13233_v42 = vunpack.i.l.bf16 %v13232_v43  ;;  %v14537_v23 = vld [vmem:[#allocation13 + $0x38] sm:$0xff]   ;;  %v14526_v39 = vld [vmem:[#allocation13 + $0x90] sm:$0xff]  }
 0x7fe   : > { %v10486_v35 = vrot.slane %v10467_v18, 2  ;;  %v10484_v56 = vrot.slane %v10466_v62, 2  ;;  %v14538_v43 = vld [vmem:[#allocation13 + $0x30] sm:$0xff]  }
 0x7ff   : > { %v10450_v41 = vsel %vm7119_vm5, %v13238_v26, %v13239_v24  ;;  %v10469_v5 = vmax.f32 %v10424_v57, %v13234_v52  ;;  %v10463_v61 = vmax.f32 %v10415_v44, %v13239_v24  ;;  %v10453_v13 = vsel %vm7119_vm5, %v13233_v42, %v13234_v52  ;;  %v14539_v24 = vld [vmem:[#allocation13 + $0x28] sm:$0xff]   ;;  %v14528_v26 = vld [vmem:[#allocation13 + $0x80] sm:$0xff]   ;;  %v14530_v42 = vld [vmem:[#allocation13 + $0x70] sm:$0xff]  }
 0x800   : > { %v13242_v29 = vpop.permute.xlu1 %13241  ;;  %v10468_v31 = vmax.f32 %v10423_v58, %v10453_v13  ;;  %v10462_v60 = vmax.f32 %v10414_v8, %v10450_v41  ;;  %v14540_v52 = vld [vmem:[#allocation13 + $0x20] sm:$0xff]   ;;  %v14529_v8 = vld [vmem:[#allocation13 + $0x78] sm:$0xff]   ;;  %v14531_v58 = vld [vmem:[#allocation13 + $0x68] sm:$0xff]  }
 0x801   : > { %v10490_v38 = vrot.slane %v10469_v5, 2  ;;  %v13244_v59 = vunpack.i.h.bf16 %v13242_v29  ;;  %v13243_v36 = vunpack.i.l.bf16 %v13242_v29  ;;  %v10481_v0 = vrot.slane %v10463_v61, 2  ;;  %v14543_v41 = vld [vmem:[#allocation13 + $0x8] sm:$0xff]   ;;  %v14534_v13 = vld [vmem:[#allocation13 + $0xb0] sm:$0xff]  }
 0x802   : > { %v10488_v9 = vrot.slane %v10468_v31, 2  ;;  %v10478_v37 = vrot.slane %v10462_v60, 2  ;;  %v14535_v29 = vld [vmem:[#allocation13 + $0xa8] sm:$0xff]  }
 0x803   : > { %v10494_v33 = vsel %vm603_vm0, %v10490_v38, %v10492_v3  ;;  %v10465_v28 = vmax.f32 %v10418_v25, %v13244_v59  ;;  %v10491_v48 = vsel %vm603_vm0, %v10486_v35, %v10490_v38  ;;  %v10451_v2 = vsel %vm7119_vm5, %v13243_v36, %v13244_v59  ;;  %v14547_v38 = vld [vmem:[#allocation13 + $0x48] sm:$0xff]  }
 0x804   : > { %v10510_v21 = vmax.f32 %v10469_v5, %v10494_v33  ;;  %v10508_v22 = vmax.f32 %v10467_v18, %v10491_v48  ;;  %v10493_v14 = vsel %vm603_vm0, %v10488_v9, %v10492_v3  ;;  %v10464_v30 = vmax.f32 %v10417_v54, %v10451_v2  ;;  %v14527_v18 = vld [vmem:[#allocation13 + $0x88] sm:$0xff]   ;;  %v14532_v3 = vld [vmem:[#allocation13 + $0x60] sm:$0xff]   ;;  %v14533_v54 = vld [vmem:[#allocation13 + $0xb8] sm:$0xff]  }
 0x805   : > { %v10482_v1 = vrot.slane %v10465_v28, 2  ;;  %v10489_v7 = vsel %vm603_vm0, %v10484_v56, %v10488_v9  ;;  %v10509_v53 = vmax.f32 %v10468_v31, %v10493_v14  ;;  %v14544_v5 = vld [vmem:[#allocation13] sm:$0xff]  }
 0x806   : > { %v16451_v11 = vpack.c.bf16 %v10510_v21, %v10508_v22  ;;  %v10507_v27 = vmax.f32 %v10466_v62, %v10489_v7  ;;  %v10479_v19 = vrot.slane %v10464_v30, 2  ;;  %v14541_v62 = vld [vmem:[#allocation13 + $0x18] sm:$0xff]   ;;  %v14548_v31 = vld [vmem:[#allocation13 + $0x40] sm:$0xff]   ;;  %v14551_v7 = vld [vmem:[#allocation13 + $0xe8] sm:$0xff]  }
 0x807   : > { %v10487_v12 = vsel %vm603_vm0, %v10482_v1, %v10486_v35  ;;  %v10483_v45 = vsel %vm603_vm0, %v10481_v0, %v10482_v1  ;;  %v14546_v35 = vld [vmem:[#allocation13 + $0x50] sm:$0xff]   ;;  %v14549_v22 = vld [vmem:[#allocation13 + $0xf8] sm:$0xff]  }
 0x808   : > { %v10506_v44 = vmax.f32 %v10465_v28, %v10487_v12  ;;  %10540 = vmatprep.subr.bf16.mxu1 %v16451_v11  ;;  %10615 = vmatprep.subr.bf16.mxu0 %v16451_v11  ;;  %v16458_v63 = vpack.c.bf16 %v10509_v53, %v10507_v27  ;;  %v10504_v57 = vmax.f32 %v10463_v61, %v10483_v45  ;;  %v14545_v61 = vld [vmem:[#allocation13 + $0x58] sm:$0xff]   ;;  %v14552_v53 = vld [vmem:[#allocation13 + $0xe0] sm:$0xff]   ;;  %v14554_v27 = vld [vmem:[#allocation13 + $0xd0] sm:$0xff]  }
 0x809   : > { %v10485_v16 = vsel %vm603_vm0, %v10479_v19, %v10484_v56  ;;  %v10480_v4 = vsel %vm603_vm0, %v10478_v37, %v10479_v19  ;;  %v14555_v37 = vld [vmem:[#allocation13 + $0xc8] sm:$0xff]   ;;  %v14556_v12 = vld [vmem:[#allocation13 + $0xc0] sm:$0xff]   ;;  %v14557_v19 = vld [vmem:[#allocation13 + $0x118] sm:$0xff]  }
 0x80a   : > { %v10505_v20 = vmax.f32 %v10464_v30, %v10485_v16  ;;  %10541 = vmatpush1.bf16.msra.mxu1 %v16458_v63  ;;  %10616 = vmatpush1.bf16.msra.mxu0 %v16458_v63  ;;  %v16468_v6 = vpack.c.bf16 %v10506_v44, %v10504_v57  ;;  %v10503_v25 = vmax.f32 %v10462_v60, %v10480_v4  ;;  %v10901_v60 = vadd.s32 8, %v16432_v32  ;;  %v14558_v45 = vld [vmem:[#allocation13 + $0x110] sm:$0xff]   ;;  %v14559_v44 = vld [vmem:[#allocation13 + $0x108] sm:$0xff]   ;;  %v14561_v57 = vld [vmem:[#allocation16 + $0x38] sm:$0xff]  }
 0x80b   : > { %v14562_v16 = vld [vmem:[#allocation16 + $0x30] sm:$0xff]   ;;  %v14563_v4 = vld [vmem:[#allocation16 + $0x28] sm:$0xff]  }
 0x80c   : > { %10542 = vmatprep.subr.bf16.mxu1 %v16468_v6  ;;  %10617 = vmatprep.subr.bf16.mxu0 %v16468_v6  ;;  %v16475_v46 = vpack.c.bf16 %v10505_v20, %v10503_v25  ;;  %vm10902_vm11 = vcmp.eq.s32.totalorder %v16436_v10, %v10901_v60  ;;  %v14550_v10 = vld [vmem:[#allocation13 + $0xf0] sm:$0xff]   ;;  %v14565_v20 = vld [vmem:[#allocation16 + $0x18] sm:$0xff]  }
 0x80d   : > { %v12401_v32 = vsel %vm10902_vm11, 1.0, %v14933_v34 }
 0x80e   : > { %10543 = vmatpush1.bf16.msra.mxu1 %v16475_v46  ;;  %10618 = vmatpush1.bf16.msra.mxu0 %v16475_v46  ;;  %v10905_v30 = vpack.c.bf16 %v12401_v32, %v12401_v32 }
 0x80f   : > { %10746 = vmatprep.subr.bf16.mxu1 %v16685_v17  ;;  %10861 = vmatprep.subr.bf16.mxu0 %v16685_v17 }
 0x811   : > { %12374 = vmatmul.mubr.msk.bf16.vlgmr.msra.gmra.mxu0 %vm10524_vm10, %v10599_v55  ;;  %12372 = vmatmul.mubr.msk.bf16.vlgmr.msra.gmra.mxu1 %vm10524_vm10, %v10523_v50 }
 0x812   : > { %10747 = vmatpush1.bf16.msra.mxu1 %v14525_v40  ;;  %10862 = vmatpush1.bf16.msra.mxu0 %v14537_v23 }
 0x813   : > { %10748 = vmatprep.subr.bf16.mxu1 %v16685_v17  ;;  %10863 = vmatprep.subr.bf16.mxu0 %v16685_v17 }
 0x816   : > { %10749 = vmatpush1.bf16.msra.mxu1 %v14526_v39  ;;  %10864 = vmatpush1.bf16.msra.mxu0 %v14538_v43 }
 0x817   : > { %10750 = vmatprep.subr.bf16.mxu1 %v16685_v17  ;;  %10865 = vmatprep.subr.bf16.mxu0 %v16685_v17 }
 0x81a   : > { %10751 = vmatpush1.bf16.msra.mxu1 %v14527_v18  ;;  %10866 = vmatpush1.bf16.msra.mxu0 %v14539_v24 }
 0x81b   : > { %10752 = vmatprep.subr.bf16.mxu1 %v16685_v17  ;;  %10867 = vmatprep.subr.bf16.mxu0 %v16685_v17 }
 0x81e   : > { %10753 = vmatpush1.bf16.msra.mxu1 %v14528_v26  ;;  %10868 = vmatpush1.bf16.msra.mxu0 %v14540_v52 }
 0x81f   : > { %10754 = vmatprep.subr.bf16.mxu1 %v16685_v17  ;;  %10869 = vmatprep.subr.bf16.mxu0 %v16685_v17 }
 0x822   : > { %10755 = vmatpush1.bf16.msra.mxu1 %v14529_v8  ;;  %10870 = vmatpush1.bf16.msra.mxu0 %v14541_v62  ;;  %v14567_v62 = vld [vmem:[#allocation16 + $0x8] sm:$0xff]  }
 0x823   : > { %10756 = vmatprep.subr.bf16.mxu1 %v16685_v17  ;;  %10871 = vmatprep.subr.bf16.mxu0 %v16685_v17 }
 0x826   : > { %10757 = vmatpush1.bf16.msra.mxu1 %v14530_v42  ;;  %10872 = vmatpush1.bf16.msra.mxu0 %v14542_v15  ;;  %v14568_v42 = vld [vmem:[#allocation16] sm:$0xff]  }
 0x827   : > { %10758 = vmatprep.subr.bf16.mxu1 %v16685_v17  ;;  %10873 = vmatprep.subr.bf16.mxu0 %v16685_v17 }
 0x82a   : > { %10759 = vmatpush1.bf16.msra.mxu1 %v14531_v58  ;;  %10874 = vmatpush1.bf16.msra.mxu0 %v14543_v41  ;;  %v11093_v58 = vld [vmem:[#allocation14] sm:$0x1] }
 0x82b   : > { %10760 = vmatprep.subr.bf16.mxu1 %v16685_v17  ;;  %10875 = vmatprep.subr.bf16.mxu0 %v16685_v17 }
 0x82e   : > { %10761 = vmatpush1.bf16.msra.mxu1 %v14532_v3  ;;  %10876 = vmatpush1.bf16.msra.mxu0 %v14544_v5 }
 0x82f   : > { %10770 = vmatprep.subr.bf16.mxu1 %v16685_v17  ;;  %10885 = vmatprep.subr.bf16.mxu0 %v16685_v17 }
 0x832   : > { %10771 = vmatpush2.bf16.msra.mxu1 %v14533_v54  ;;  %10886 = vmatpush2.bf16.msra.mxu0 %v14545_v61 }
 0x833   : > { %10772 = vmatprep.subr.bf16.mxu1 %v16685_v17  ;;  %10887 = vmatprep.subr.bf16.mxu0 %v16685_v17 }
 0x836   : > { %10773 = vmatpush2.bf16.msra.mxu1 %v14534_v13  ;;  %10888 = vmatpush2.bf16.msra.mxu0 %v14546_v35 }
 0x837   : > { %10774 = vmatprep.subr.bf16.mxu1 %v16685_v17  ;;  %10889 = vmatprep.subr.bf16.mxu0 %v16685_v17 }
 0x83a   : > { %10775 = vmatpush2.bf16.msra.mxu1 %v14535_v29  ;;  %10890 = vmatpush2.bf16.msra.mxu0 %v14547_v38 }
 0x83b   : > { %10776 = vmatprep.subr.bf16.mxu1 %v16685_v17  ;;  %10891 = vmatprep.subr.bf16.mxu0 %v16685_v17 }
 0x83e   : > { %10777 = vmatpush2.bf16.msra.mxu1 %v14536_v49  ;;  %10892 = vmatpush2.bf16.msra.mxu0 %v14548_v31  ;;  %v11113_v49 = vld [vmem:[#allocation17] sm:$0x1] }
 0x83f   : > { %10921 = vmatprep.subr.bf16.mxu1 %v16451_v11  ;;  %11052 = vmatprep.subr.bf16.mxu0 %v16685_v17  ;;  %v14553_v11 = vld [vmem:[#allocation13 + $0xd8] sm:$0xff]  }
 0x8d1   : > { %v10637_v59 = vpop.f32.mrf.mxu0  ;;  %v10562_v56 = vpop.f32.mrf.mxu1 }
 0x8d2   : > { %v10569_v33 = vpack.c.bf16 %v10562_v56, %v10562_v56  ;;  %v10644_v0 = vpack.c.bf16 %v10637_v59, %v10637_v59 }
 0x8d3   : > { %v10639_v36 = vpop.f32.mrf.mxu0  ;;  %v10564_v9 = vpop.f32.mrf.mxu1 }
 0x8d4   : > { %v10645_v28 = vpack.c.bf16 %v10639_v36, %v10639_v36  ;;  %v10570_v48 = vpack.c.bf16 %v10564_v9, %v10564_v9 }
 0x8d5   : > { %v10641_v21 = vpop.f32.mrf.mxu0  ;;  %v10566_v2 = vpop.f32.mrf.mxu1 }
 0x8d6   : > { %12387 = vmatprep.mubr.msk.bf16.mxu1 %vm7119_vm5, %v10645_v28  ;;  %12400 = vmatprep.mubr.msk.bf16.mxu0 %vm7119_vm5, %v10570_v48 }
 0x8d7   : > { %10779 = vmatmul.mubr.bf16.vlgmr.msra.gmra.mxu1 %v10644_v0  ;;  %v10642_v14 = vpop.f32.mrf.mxu0  ;;  %10894 = vmatmul.mubr.bf16.vlgmr.msra.gmra.mxu0 %v10569_v33  ;;  %v10567_v1 = vpop.f32.mrf.mxu1 }
 0x8d8   : > { %10922 = vmatpush1.bf16.msra.mxu1 %v16458_v63  ;;  %10941 = vmatprep.mubr.bf16.mxu1 %v16685_v17  ;;  %v14560_v63 = vld [vmem:[#allocation13 + $0x100] sm:$0xff]  }
 0x8d9   : > { %10923 = vmatprep.subr.bf16.mxu1 %v16468_v6  ;;  %11053 = vmatpush1.bf16.msra.mxu0 %v14549_v22 }
 0x8da   : > { %11054 = vmatprep.subr.bf16.mxu0 %v16685_v17 }
 0x8dc   : > { %10924 = vmatpush1.bf16.msra.mxu1 %v16475_v46 }
 0x8dd   : > { %11055 = vmatpush1.bf16.msra.mxu0 %v14550_v10  ;;  %13016 = vmatprep.subr.bf16.mxu1 %v14933_v34 }
 0x8de   : > { %11056 = vmatprep.subr.bf16.mxu0 %v16685_v17 }
 0x8df   : > { %12402 = vmatmul.mubr.msk.bf16.vlgmr.msra.gmra.mxu1 %vm10524_vm10, %v10905_v30 }
 0x8e0   : > { %13017 = vmatpush3.bf16.msra.mxu1 %v14561_v57  ;;  %13032 = vmatprep.mubr.msk.bf16.mxu1 %vm14934_vm12, %v14933_v34 }
 0x8e1   : > { %11057 = vmatpush1.bf16.msra.mxu0 %v14551_v7  ;;  %13018 = vmatprep.subr.bf16.mxu1 %v14933_v34 }
 0x8e2   : > { %11058 = vmatprep.subr.bf16.mxu0 %v16685_v17 }
 0x8e4   : > { %13019 = vmatpush3.bf16.msra.mxu1 %v14562_v16 }
 0x8e5   : > { %11059 = vmatpush1.bf16.msra.mxu0 %v14552_v53  ;;  %13020 = vmatprep.subr.bf16.mxu1 %v14933_v34 }
 0x8e6   : > { %11060 = vmatprep.subr.bf16.mxu0 %v16685_v17 }
 0x8e8   : > { %13021 = vmatpush3.bf16.msra.mxu1 %v14563_v4 }
 0x8e9   : > { %11061 = vmatpush1.bf16.msra.mxu0 %v14553_v11  ;;  %13022 = vmatprep.subr.bf16.mxu1 %v14933_v34 }
 0x8ea   : > { %11062 = vmatprep.subr.bf16.mxu0 %v16685_v17 }
 0x8ec   : > { %13023 = vmatpush3.bf16.msra.mxu1 %v14564_v47 }
 0x8ed   : > { %11063 = vmatpush1.bf16.msra.mxu0 %v14554_v27  ;;  %13024 = vmatprep.subr.bf16.mxu1 %v14933_v34 }
 0x8ee   : > { %11064 = vmatprep.subr.bf16.mxu0 %v16685_v17 }
 0x8f0   : > { %13025 = vmatpush3.bf16.msra.mxu1 %v14565_v20 }
 0x8f1   : > { %11065 = vmatpush1.bf16.msra.mxu0 %v14555_v37  ;;  %13026 = vmatprep.subr.bf16.mxu1 %v14933_v34 }
 0x8f2   : > { %11066 = vmatprep.subr.bf16.mxu0 %v16685_v17 }
 0x8f5   : > { %11067 = vmatpush1.bf16.msra.mxu0 %v14556_v12 }
 0x8f6   : > { %11076 = vmatprep.subr.bf16.mxu0 %v16685_v17 }
 0x8f9   : > { %11077 = vmatpush2.bf16.msra.mxu0 %v14557_v19 }
 0x8fa   : > { %11078 = vmatprep.subr.bf16.mxu0 %v16685_v17 }
 0x8fd   : > { %11079 = vmatpush2.bf16.msra.mxu0 %v14558_v45 }
 0x8fe   : > { %11080 = vmatprep.subr.bf16.mxu0 %v16685_v17 }
 0x901   : > { %11081 = vmatpush2.bf16.msra.mxu0 %v14559_v44 }
 0x902   : > { %11082 = vmatprep.subr.bf16.mxu0 %v16685_v17  ;;  %v14566_v17 = vld [vmem:[#allocation16 + $0x10] sm:$0xff]  }
 0x903   : > { %13027 = vmatpush3.bf16.msra.mxu1 %v14566_v17 }
 0x904   : > { %13028 = vmatprep.subr.bf16.mxu1 %v14933_v34 }
 0x905   : > { %11083 = vmatpush2.bf16.msra.mxu0 %v14560_v63 }
 0x907   : > { %13029 = vmatpush3.bf16.msra.mxu1 %v14567_v62 }
 0x908   : > { %13030 = vmatprep.subr.bf16.mxu1 %v14933_v34 }
 0x90b   : > { %13031 = vmatpush3.bf16.msra.mxu1 %v14568_v42 }
 0x997   : > { %v10780_v6 = vpop.f32.mrf.mxu1  ;;  %v10895_v25 = vpop.f32.mrf.mxu0 }
 0x998   : > { %v10896_v51 = vadd.f32 %v10895_v25, %v10780_v6 }
 0x999   : > { %v10782_v46 = vpop.f32.mrf.mxu1  ;;  %v10897_v55 = vpop.f32.mrf.mxu0 }
 0x99b   : > { %v10783_v50 = vpop.f32.mrf.mxu1  ;;  %v10898_v40 = vpop.f32.mrf.mxu0 }
 0x99d   : > { %v10784_v23 = vpop.f32.mrf.mxu1  ;;  %v10899_v39 = vpop.f32.mrf.mxu0 }
 0x99f   : > { %v10943_v43 = vpop.f32.mrf.mxu1 }
 0x9a0   : > { %v10950_v26 = vpack.c.bf16 %v10943_v43, %v10943_v43 }
 0x9a1   : > { %v10945_v18 = vpop.f32.mrf.mxu1 }
 0x9a2   : > { %v10951_v24 = vpack.c.bf16 %v10945_v18, %v10945_v18 }
 0x9a3   : > { %v10947_v52 = vpop.f32.mrf.mxu1 }
 0x9a4   : > { %12415 = vmatprep.mubr.msk.bf16.mxu0 %vm7119_vm5, %v10951_v24 }
 0x9a5   : > { %11085 = vmatmul.mubr.bf16.vlgmr.msra.gmra.mxu0 %v10950_v26  ;;  %v10948_v8 = vpop.f32.mrf.mxu1 }
 0xa65   : > { %v11086_v15 = vpop.f32.mrf.mxu0 }
 0xa66   : > { %v11092_v41 = vadd.f32 %v11086_v15, %v10896_v51 }
 0xa67   : > { %v11088_v3 = vpop.f32.mrf.mxu0 }
 0xa68   : > { %v11094_v5 = vadd.f32 %v11093_v58, %v11092_v41 }
 0xa69   : > { %v11089_v54 = vpop.f32.mrf.mxu0 }
 0xa6a   : > { %v11095_v61 = vmax.f32 %v11094_v5, 0.0 }
 0xa6b   : > { %v11090_v13 = vpop.f32.mrf.mxu0 }
 0xa6c   : > { %v11096_v29 = vpack.c.bf16 %v11095_v61, %v11095_v61 }
 0xa6e   : > { %13033 = vmatmul.mubr.bf16.vlgmr.msra.gmra.mxu1 %v11096_v29 }
 0xb2e   : > { %v11196_v35 = vpop.f32.mrf.mxu1 }
 0xb2f   : > { %v11197_v34 = vadd.f32 %v11196_v35, %v11113_v49 }
 0xb30   : > { %v13034_v38 = vpop.f32.mrf.mxu1 }
 0xb31   : > { %11203 = vst.msk [vmem:[%s515_s2] sm:$0x1] %vm11202_vm13, %v11197_v34 }
 0xb32   : > { %v11199_v31 = vpop.f32.mrf.mxu1 }
 0xb33   : > { %14842 = shalt.err (!%p14839_p9)
}
 0xb34   : > { %s14843_s1 = scalar_lea.hbm %s16543_s25, 16  ;;  %s14847_s22 = scalar_lea.hbm %s16595_s11, 32 }
 0xb35   : > { %p14844_p3 = scmp.ne.s32.totalorder %s16543_s25, %s14843_s1  ;;  %p14848_p10 = scmp.lt.s32.totalorder %s16543_s25, %s16595_s11 }
 0xb36   : > { %p14849_p4 = scmp.lt.s32.totalorder %s14847_s22, %s14843_s1 }
 0xb37   : > { %p14845_p5 = pnand %p14844_p3, %p16689_p11 }
 0xb38   : > { %p14850_p7 = por %p14849_p4, %p14848_p10 }
 0xb39   : > { %p14846_p6 = pneg %p14845_p5 }
 0xb3b   : > { %p14851_p8 = pnand %p14850_p7, %p14846_p6 }
 0xb3d   : > { %14854 = shalt.err (!%p14851_p8)
}
 0xb3e   : > { %13085 = dma.vmem_to_hbm [thread:$0]  (%p16689_p11), %s16545_s13, 16, %s16543_s25, %s11205_s12   ;;  %v13035_v59 = vpop.f32.mrf.mxu1 }
 0xb3f PF: > { %p13142_p13 = scmp.ge.s32.totalorder %s14913_s20, 2  ;;  %s11229_s30 = sand.u32 1, %s14901_s17  }
 0xb40   : > { %p16690_p0 = scmp.ne.s32.totalorder %s16623_s28, 0  ;;  %s11230_s16 = scalar_lea.sflag [#allocation4], %s11229_s30 }
 0xb42   : > { %p13119_p1 = pnand %p13142_p13, %p16690_p0 }
 0xb44   : > { %p13120_p2 = pneg %p13119_p1 }
 0xb46   : > { %14896 = dma.done.wait (%p13120_p2), %s11230_s16, 16  }
 0xb47   : > { %14898 = vsyncadd (%p13120_p2), %s11230_s16, 4294967280  ;;  %s16691_s21 = sld [smem:[#allocation27_spill]]  ;;  %p27_p12 = scmp.ge.s32.totalorder %s15021_s23, 4  }
 0xb48   : > { %s16692_s19 = sld [smem:[#allocation28_spill]]  ;;  %s16693_s17 = smov %s14905_s18 }
 0xb49   : > { %s16695_s20 = smov %s15021_s23  ;;  %29 = sbr.rel (!%p27_p12) target bundleno = 12 (0xc), region = 154 }
 0xb4d   : > { %s16694_s18 = smov %s16691_s21 }
 0xb4e   :  { %11234 = vsyncpa [#allocation3], 1 }
 0xb4f   :  { %11236 = vsyncpa [#allocation3 + $0x1], 1 }
 0xb50   :  { %11237 = vsyncpa [#allocation6], 1 }
 0xb51   :  { %11238 = vsyncpa [#allocation9], 1 }
 0xb52   :  { %11239 = vsyncpa [#allocation12], 1 }
 0xb53   :  { %11240 = vsyncpa [#allocation15], 1 }
 0xb54   :  { %11241 = vsyncpa [#allocation18], 1 }
 0xb55   :  { %11242 = vsyncpa [#allocation4], 1 }
 0xb56   :  { %11244 = vsyncpa [#allocation4 + $0x1], 1 }

</bundles_post_ra>
